<compile_context>
chip_gen: v5e
topology: v5e:2x2
jax: 0.10.0
libtpu: 0.0.40
codegen_flags: <defaults>
</compile_context>

<pallas_src>
import functools
import math

import jax
import jax.numpy as jnp
from jax import lax
from jax.experimental import pallas as pl
from jax.experimental.pallas import tpu as pltpu


NEG_INF = -1e30      # finite "-inf" for the running max (avoids inf arithmetic)
MASK_VALUE = -1e9    # additive causal-mask value (finite to avoid NaNs)


def _rope(t, cos, sin_signed, half):
    # rotate_half(t) == roll(t, half, axis=-1) * ([-1]*half ++ [+1]*half); the
    # sign vector is pre-folded into sin_signed in the wrapper, so the rotate
    # rides the otherwise-idle XLU slot instead of slices/negate/concat on VPU.
    return t * cos + pltpu.roll(t, shift=half, axis=1) * sin_signed


def gpt_attention_kernel(x_ref, wq_ref, wkv_ref, wo_ref, cos_ref, sin_ref,
                         o_ref, acc_ref, k_scr, v_scr,
                         *, head_dim, heads_per_group, q_tile, seq_len):
    hd, G, TQ, S = head_dim, heads_per_group, q_tile, seq_len
    TK = TQ
    half = hd // 2

    qi = pl.program_id(1)
    hg = pl.program_id(2)
    n_hg = pl.num_programs(2)

    @pl.when(hg == 0)
    def _init_acc():
        acc_ref[...] = jnp.zeros_like(acc_ref)

    # ---- k/v projection + RoPE for this head group, computed once per batch
    #      (qi == 0) and cached in VMEM scratch for every q tile ----
    @pl.when(qi == 0)
    def _compute_kv():
        kv = jnp.dot(x_ref[...], wkv_ref[...],
                     preferred_element_type=jnp.float32)     # (S, 2*G*hd)
        cos_f = cos_ref[...].astype(jnp.float32)             # (S, hd)
        sin_f = sin_ref[...].astype(jnp.float32)             # sign-folded
        k_parts = []
        for g in range(G):
            kg = kv[:, g * hd:(g + 1) * hd]
            k_parts.append(_rope(kg, cos_f, sin_f, half).astype(jnp.bfloat16))
        row0 = pl.multiple_of(hg * S, 8)
        k_scr[pl.ds(row0, S), :] = jnp.concatenate(k_parts, axis=-1)
        v_scr[pl.ds(row0, S), :] = kv[:, G * hd:].astype(jnp.bfloat16)

    # ---- q projection + RoPE for this q tile (1/sqrt(hd) folded into wq) ----
    q0 = pl.multiple_of(qi * TQ, TQ)
    x_q = x_ref[pl.ds(q0, TQ), :]                            # (TQ, H) bf16
    q_grp = jnp.dot(x_q, wq_ref[...],
                    preferred_element_type=jnp.float32)      # (TQ, G*hd)
    cos_q = cos_ref[pl.ds(q0, TQ), :].astype(jnp.float32)
    sin_q = sin_ref[pl.ds(q0, TQ), :].astype(jnp.float32)

    kv_base = hg * S
    ctx_parts = []
    for g in range(G):
        q_g = _rope(q_grp[:, g * hd:(g + 1) * hd], cos_q, sin_q, half)
        q_g = q_g.astype(jnp.bfloat16)                       # (TQ, hd)

        def kv_step(k_idx, carry, q_g=q_g, g=g):
            m, l, acc = carry
            ks = pl.multiple_of(kv_base + k_idx * TK, TK)
            k_t = k_scr[pl.ds(ks, TK), g * hd:(g + 1) * hd]  # (TK, hd) bf16
            v_t = v_scr[pl.ds(ks, TK), g * hd:(g + 1) * hd]  # (TK, hd) bf16
            s = lax.dot_general(q_g, k_t, (((1,), (1,)), ((), ())),
                                preferred_element_type=jnp.float32)  # (TQ, TK)
            # causal mask (only the diagonal kv tile is actually partial)
            row = q0 + lax.broadcasted_iota(jnp.int32, (TQ, TK), 0)
            col = (k_idx * TK) + lax.broadcasted_iota(jnp.int32, (TQ, TK), 1)
            s = jnp.where(col <= row, s, jnp.float32(MASK_VALUE))
            # online softmax update (f32; see bf16-exp TODO above)
            m_new = jnp.maximum(m, jnp.max(s, axis=-1, keepdims=True))
            alpha = jnp.exp(m - m_new)
            p = jnp.exp(s - m_new)
            l_new = alpha * l + jnp.sum(p, axis=-1, keepdims=True)
            acc_new = alpha * acc + jnp.dot(p.astype(jnp.bfloat16), v_t,
                                            preferred_element_type=jnp.float32)
            return m_new, l_new, acc_new

        m0 = jnp.full((TQ, 1), NEG_INF, jnp.float32)
        l0 = jnp.zeros((TQ, 1), jnp.float32)
        a0 = jnp.zeros((TQ, hd), jnp.float32)
        # causal block skipping: only kv tiles 0..qi overlap the causal region
        _, l, acc = lax.fori_loop(0, qi + 1, kv_step, (m0, l0, a0))
        ctx_parts.append((acc * pl.reciprocal(l, approx=True)).astype(jnp.bfloat16))

    ctx_grp = jnp.concatenate(ctx_parts, axis=-1)            # (TQ, G*hd)
    contrib = jnp.dot(ctx_grp, wo_ref[...],
                      preferred_element_type=jnp.float32)    # (TQ, H)

    @pl.when(hg < n_hg - 1)
    def _accumulate():
        acc_ref[...] += contrib

    @pl.when(hg == n_hg - 1)
    def _finalize():
        # fuse the last head group's contribution into the output store
        o_ref[...] = (acc_ref[...] + contrib).astype(o_ref.dtype)


def gpt_attention(x, w_qkv, w_o, cos, sin, *, num_heads,
                  num_key_value_heads=None, heads_per_group=None, q_tile=None):
    """x: (B, S, H); w_qkv: (H, 3H) (in, out); w_o: (H, H); cos/sin: (B, S, hd)."""
    B, S, H = x.shape
    assert H % num_heads == 0
    head_dim = H // num_heads
    assert head_dim % 2 == 0
    if num_key_value_heads is None:
        num_key_value_heads = num_heads
    # reference module is only shape-consistent when n_kv == n_heads
    assert num_key_value_heads == num_heads, "GQA not supported by the reference"

    # heads per grid step: aim for G*head_dim ~ 256 so projection-N / o_proj-K
    # fill the 256-wide MXU on v6e/v7x (head_dim=128 already fills v5e's 128).
    if heads_per_group is None:
        heads_per_group = max(1, min(num_heads, 256 // head_dim))
        while num_heads % heads_per_group:
            heads_per_group -= 1
    G = heads_per_group
    assert num_heads % G == 0
    NG = num_heads // G

    if q_tile is None:
        q_tile = min(S, 256)
    TQ = q_tile
    assert S % TQ == 0, "seq_len must be divisible by q_tile"
    assert TQ % 8 == 0 or TQ == S

    scale = 1.0 / math.sqrt(head_dim)
    wq, wk, wv = jnp.split(w_qkv, 3, axis=1)                 # (H, H) each

    def group(w):                                            # (H,H)->(NG,H,G*hd)
        return w.reshape(H, NG, G * head_dim).transpose(1, 0, 2)

    # 1/sqrt(head_dim) folded into the q weight (RoPE is linear -> exact)
    wq_g = group(wq * scale).astype(jnp.bfloat16)            # (NG, H, G*hd)
    wkv_g = jnp.concatenate([group(wk), group(wv)],
                            axis=-1).astype(jnp.bfloat16)    # (NG, H, 2*G*hd)
    wo_g = w_o.reshape(NG, G * head_dim, H).astype(jnp.bfloat16)  # (NG, G*hd, H)

    # rotate_half sign folded into sin: rotate_half(t)*sin == roll(t,hd/2)*sin_signed
    sign = jnp.concatenate([-jnp.ones((head_dim // 2,), jnp.float32),
                            jnp.ones((head_dim // 2,), jnp.float32)])
    cos_b = cos.astype(jnp.bfloat16)
    sin_b = (sin.astype(jnp.float32) * sign).astype(jnp.bfloat16)
    x_bf = x.astype(jnp.bfloat16)

    kernel = functools.partial(gpt_attention_kernel, head_dim=head_dim,
                               heads_per_group=G, q_tile=TQ, seq_len=S)

    grid = (B, S // TQ, NG)

    return pl.pallas_call(
        kernel,
        out_shape=jax.ShapeDtypeStruct((B, S, H), x.dtype),
        grid_spec=pltpu.PrefetchScalarGridSpec(
            num_scalar_prefetch=0,
            grid=grid,
            in_specs=[
                pl.BlockSpec((None, S, H), lambda b, qi, hg: (b, 0, 0)),                 # x
                pl.BlockSpec((None, H, G * head_dim), lambda b, qi, hg: (hg, 0, 0)),     # wq (scaled)
                pl.BlockSpec((None, H, 2 * G * head_dim), lambda b, qi, hg: (hg, 0, 0)), # wk|wv packed
                pl.BlockSpec((None, G * head_dim, H), lambda b, qi, hg: (hg, 0, 0)),     # wo
                pl.BlockSpec((None, S, head_dim), lambda b, qi, hg: (b, 0, 0)),          # cos (bf16)
                pl.BlockSpec((None, S, head_dim), lambda b, qi, hg: (b, 0, 0)),          # sin*sign (bf16)
            ],
            out_specs=pl.BlockSpec((None, TQ, H), lambda b, qi, hg: (b, qi, 0)),
            scratch_shapes=[
                pltpu.VMEM((TQ, H), jnp.float32),                        # o_proj accumulator
                pltpu.VMEM((NG * S, G * head_dim), jnp.bfloat16),        # k (post-RoPE) cache
                pltpu.VMEM((NG * S, G * head_dim), jnp.bfloat16),        # v cache
            ],
        ),
        compiler_params=pltpu.CompilerParams(
            # batch is parallel (megacore); q-tile must be arbitrary because the
            # kv scratch cache carries a cross-q-tile dependency; head-group is
            # the o_proj reduction axis.
            dimension_semantics=("parallel", "arbitrary", "arbitrary"),
            vmem_limit_bytes=64 * 1024 * 1024,
        ),
    )(x_bf, wq_g, wkv_g, wo_g, cos_b, sin_b)


def rotary_cos_sin(position_ids, head_dim, base=10000.0, dtype=jnp.float32):
    # GPTRotaryEmbedding.forward (pure glue, computed in plain JAX)
    inv_freq = 1.0 / (base ** (jnp.arange(0, head_dim, 2, dtype=jnp.float32)
                               / head_dim))                          # (hd/2,)
    freqs = position_ids[:, :, None].astype(jnp.float32) * inv_freq[None, None, :]
    emb = jnp.concatenate([freqs, freqs], axis=-1)                   # (B, S, hd)
    return jnp.cos(emb).astype(dtype), jnp.sin(emb).astype(dtype)


def reference_attention(x, w_qkv, w_o, cos, sin, mask, num_heads):
    # pure-JAX f32 reference mirroring the PyTorch forward
    B, S, H = x.shape
    hd = H // num_heads
    qkv = x @ w_qkv
    q, k, v = jnp.split(qkv, 3, axis=-1)

    def to_heads(t):
        return t.reshape(B, S, num_heads, hd).transpose(0, 2, 1, 3)

    q, k, v = to_heads(q), to_heads(k), to_heads(v)
    c = cos[:, None, :, :]
    s = sin[:, None, :, :]

    def rot(t):
        t1, t2 = t[..., :hd // 2], t[..., hd // 2:]
        return jnp.concatenate([-t2, t1], axis=-1)

    q = q * c + rot(q) * s
    k = k * c + rot(k) * s
    scores = jnp.einsum('bhqd,bhkd->bhqk', q, k) / math.sqrt(hd)
    scores = scores + mask[:, None, :, :]
    probs = jax.nn.softmax(scores.astype(jnp.float32), axis=-1).astype(x.dtype)
    ctx = jnp.einsum('bhqk,bhkd->bhqd', probs, v)
    ctx = ctx.transpose(0, 2, 1, 3).reshape(B, S, H)
    return ctx @ w_o


if __name__ == "__main__":
    # small but TPU-friendly shapes: head_dim = 128 (one vreg of lanes),
    # 2 q tiles and 2 head groups so every grid axis is exercised.
    B, S, H = 2, 128, 512
    num_heads = 4                      # num_key_value_heads == num_heads (n_rep = 1)
    head_dim = H // num_heads          # 128

    key = jax.random.PRNGKey(0)
    kx, kqkv, ko = jax.random.split(key, 3)

    x = jax.random.normal(kx, (B, S, H), dtype=jnp.float32)
    # deterministic synthetic weights, stored as (in, out)
    w_qkv = jax.random.normal(kqkv, (H, 3 * H), dtype=jnp.float32) * 0.05
    w_o = jax.random.normal(ko, (H, H), dtype=jnp.float32) * 0.05

    position_ids = jnp.broadcast_to(jnp.arange(S, dtype=jnp.int32)[None, :], (B, S))
    cos, sin = rotary_cos_sin(position_ids, head_dim)

    out = gpt_attention(x, w_qkv, w_o, cos, sin, num_heads=num_heads, q_tile=64)
    out = jax.block_until_ready(out)

    # f32 reference uses an explicit causal additive mask (kernel builds it in-kernel)
    causal = jnp.tril(jnp.ones((S, S), dtype=bool))
    attn_mask = jnp.where(causal, 0.0, -1e9).astype(jnp.float32)
    attn_mask = jnp.broadcast_to(attn_mask[None, :, :], (B, S, S))
    ref = reference_attention(x, w_qkv, w_o, cos, sin, attn_mask, num_heads)

    assert out.shape == (B, S, H)
    err = float(jnp.max(jnp.abs(out - ref)))
    ref_scale = float(jnp.max(jnp.abs(ref)))
    # kernel uses bf16 matmul operands, bf16 cos/sin and approx reciprocal;
    # allow a few % of the reference scale
    assert err <= 0.05 * ref_scale + 5e-3, f"max err {err} vs ref scale {ref_scale}"

    print("KERNEL_OK")
</pallas_src>

<mosaic_0001>
module attributes {stable_mosaic.version = 11 : i64} {
  func.func @gpt_attention_kernel(%arg0: i32, %arg1: i32, %arg2: i32, %arg3: memref<1x128x512xbf16, #tpu.memory_space<vmem>>, %arg4: memref<1x512x256xbf16, #tpu.memory_space<vmem>>, %arg5: memref<1x512x512xbf16, #tpu.memory_space<vmem>>, %arg6: memref<1x256x512xbf16, #tpu.memory_space<vmem>>, %arg7: memref<1x128x128xbf16, #tpu.memory_space<vmem>>, %arg8: memref<1x128x128xbf16, #tpu.memory_space<vmem>>, %arg9: memref<1x64x512xf32, #tpu.memory_space<vmem>>, %arg10: memref<64x512xf32, #tpu.memory_space<vmem>>, %arg11: memref<256x256xbf16, #tpu.memory_space<vmem>>, %arg12: memref<256x256xbf16, #tpu.memory_space<vmem>>) attributes {dimension_semantics = [#tpu.dimension_semantics<parallel>, #tpu.dimension_semantics<arbitrary>, #tpu.dimension_semantics<arbitrary>], iteration_bounds = array<i64: 2, 2, 2>, scalar_prefetch = 0 : i64, scratch_operands = 3 : i64, tpu.core_type = #tpu.core_type<tc>, window_params = [{transform_indices = @transform_0, window_bounds = array<i64: 1, 128, 512>}, {transform_indices = @transform_1, window_bounds = array<i64: 1, 512, 256>}, {transform_indices = @transform_2, window_bounds = array<i64: 1, 512, 512>}, {transform_indices = @transform_3, window_bounds = array<i64: 1, 256, 512>}, {transform_indices = @transform_4, window_bounds = array<i64: 1, 128, 128>}, {transform_indices = @transform_5, window_bounds = array<i64: 1, 128, 128>}, {transform_indices = @transform_6, window_bounds = array<i64: 1, 64, 512>}]} {
    %c0_i32 = arith.constant 0 : i32
    %0 = arith.cmpi eq, %arg2, %c0_i32 : i32
    %1 = arith.extui %0 : i1 to i32
    %c0_i32_0 = arith.constant 0 : i32
    %2 = arith.cmpi ne, %1, %c0_i32_0 : i32
    scf.if %2 {
      %cst_32 = arith.constant 0.000000e+00 : f32
      %67 = vector.broadcast %cst_32 : f32 to vector<64x512xf32>
      %c0_33 = arith.constant 0 : index
      %c0_34 = arith.constant 0 : index
      %68 = vector.load %arg10[%c0_33, %c0_34] : memref<64x512xf32, #tpu.memory_space<vmem>>, vector<64x512xf32>
      tpu.vector_store %arg10[%c0_33, %c0_34], %67 {strides = array<i32>} : memref<64x512xf32, #tpu.memory_space<vmem>>, vector<64x512xf32>,
    } else {
    }
    %c0_i32_1 = arith.constant 0 : i32
    %3 = arith.cmpi eq, %arg1, %c0_i32_1 : i32
    %4 = arith.extui %3 : i1 to i32
    %c0_i32_2 = arith.constant 0 : i32
    %5 = arith.cmpi ne, %4, %c0_i32_2 : i32
    scf.if %5 {
      %c0_32 = arith.constant 0 : index
      %c0_33 = arith.constant 0 : index
      %c0_34 = arith.constant 0 : index
      %67 = vector.load %arg3[%c0_32, %c0_33, %c0_34] : memref<1x128x512xbf16, #tpu.memory_space<vmem>>, vector<1x128x512xbf16>
      %68 = vector.shape_cast %67 : vector<1x128x512xbf16> to vector<128x512xbf16>
      %c0_35 = arith.constant 0 : index
      %c0_36 = arith.constant 0 : index
      %c0_37 = arith.constant 0 : index
      %69 = vector.load %arg5[%c0_35, %c0_36, %c0_37] : memref<1x512x512xbf16, #tpu.memory_space<vmem>>, vector<1x512x512xbf16>
      %70 = vector.shape_cast %69 : vector<1x512x512xbf16> to vector<512x512xbf16>
      %cst_38 = arith.constant dense<0.000000e+00> : vector<128x512xf32>
      %71 = tpu.matmul %68, %70, %cst_38 {dimension_numbers = #tpu.dot_dimension_numbers<[1], [0], [0], [1], [0, 0, 1, 1], [], []>} : vector<128x512xbf16>, vector<512x512xbf16>, vector<128x512xf32> -> vector<128x512xf32>
      %c0_39 = arith.constant 0 : index
      %c0_40 = arith.constant 0 : index
      %c0_41 = arith.constant 0 : index
      %72 = vector.load %arg7[%c0_39, %c0_40, %c0_41] : memref<1x128x128xbf16, #tpu.memory_space<vmem>>, vector<1x128x128xbf16>
      %73 = vector.shape_cast %72 : vector<1x128x128xbf16> to vector<128x128xbf16>
      %74 = arith.extf %73 : vector<128x128xbf16> to vector<128x128xf32>
      %c0_42 = arith.constant 0 : index
      %c0_43 = arith.constant 0 : index
      %c0_44 = arith.constant 0 : index
      %75 = vector.load %arg8[%c0_42, %c0_43, %c0_44] : memref<1x128x128xbf16, #tpu.memory_space<vmem>>, vector<1x128x128xbf16>
      %76 = vector.shape_cast %75 : vector<1x128x128xbf16> to vector<128x128xbf16>
      %77 = arith.extf %76 : vector<128x128xbf16> to vector<128x128xf32>
      %78 = vector.extract_strided_slice %71 {offsets = [0, 0], sizes = [128, 128], strides = [1, 1]} : vector<128x512xf32> to vector<128x128xf32>
      %79 = arith.mulf %78, %74 : vector<128x128xf32>
      %c64_i32_45 = arith.constant 64 : i32
      %80 = tpu.dynamic_rotate %78 by %c64_i32_45 dim 1 : vector<128x128xf32>, i32 -> vector<128x128xf32>
      %81 = arith.mulf %80, %77 : vector<128x128xf32>
      %82 = arith.addf %79, %81 : vector<128x128xf32>
      %83 = arith.truncf %82 : vector<128x128xf32> to vector<128x128xbf16>
      %84 = vector.extract_strided_slice %71 {offsets = [0, 128], sizes = [128, 128], strides = [1, 1]} : vector<128x512xf32> to vector<128x128xf32>
      %85 = arith.mulf %84, %74 : vector<128x128xf32>
      %c64_i32_46 = arith.constant 64 : i32
      %86 = tpu.dynamic_rotate %84 by %c64_i32_46 dim 1 : vector<128x128xf32>, i32 -> vector<128x128xf32>
      %87 = arith.mulf %86, %77 : vector<128x128xf32>
      %88 = arith.addf %85, %87 : vector<128x128xf32>
      %89 = arith.truncf %88 : vector<128x128xf32> to vector<128x128xbf16>
      %c128_i32_47 = arith.constant 128 : i32
      %90 = arith.muli %arg2, %c128_i32_47 : i32
      %91 = tpu.assume_multiple %90, 8 : i32
      %92 = tpu.concatenate %83, %89 in 1 : vector<128x128xbf16>, vector<128x128xbf16> -> vector<128x256xbf16>
      %93 = arith.index_cast %91 : i32 to index
      %c0_48 = arith.constant 0 : index
      %94 = vector.load %arg11[%93, %c0_48] : memref<256x256xbf16, #tpu.memory_space<vmem>>, vector<128x256xbf16>
      tpu.vector_store %arg11[%93, %c0_48], %92 {strides = array<i32>} : memref<256x256xbf16, #tpu.memory_space<vmem>>, vector<128x256xbf16>,
      %95 = vector.extract_strided_slice %71 {offsets = [0, 256], sizes = [128, 256], strides = [1, 1]} : vector<128x512xf32> to vector<128x256xf32>
      %96 = arith.truncf %95 : vector<128x256xf32> to vector<128x256xbf16>
      %97 = arith.index_cast %91 : i32 to index
      %c0_49 = arith.constant 0 : index
      %98 = vector.load %arg12[%97, %c0_49] : memref<256x256xbf16, #tpu.memory_space<vmem>>, vector<128x256xbf16>
      tpu.vector_store %arg12[%97, %c0_49], %96 {strides = array<i32>} : memref<256x256xbf16, #tpu.memory_space<vmem>>, vector<128x256xbf16>,
    } else {
    }
    %c64_i32 = arith.constant 64 : i32
    %6 = arith.muli %arg1, %c64_i32 : i32
    %7 = tpu.assume_multiple %6, 64 : i32
    %c0 = arith.constant 0 : index
    %8 = arith.index_cast %7 : i32 to index
    %c0_3 = arith.constant 0 : index
    %9 = vector.load %arg3[%c0, %8, %c0_3] : memref<1x128x512xbf16, #tpu.memory_space<vmem>>, vector<1x64x512xbf16>
    %10 = vector.shape_cast %9 : vector<1x64x512xbf16> to vector<64x512xbf16>
    %c0_4 = arith.constant 0 : index
    %c0_5 = arith.constant 0 : index
    %c0_6 = arith.constant 0 : index
    %11 = vector.load %arg4[%c0_4, %c0_5, %c0_6] : memref<1x512x256xbf16, #tpu.memory_space<vmem>>, vector<1x512x256xbf16>
    %12 = vector.shape_cast %11 : vector<1x512x256xbf16> to vector<512x256xbf16>
    %cst = arith.constant dense<0.000000e+00> : vector<64x256xf32>
    %13 = tpu.matmul %10, %12, %cst {dimension_numbers = #tpu.dot_dimension_numbers<[1], [0], [0], [1], [0, 0, 1, 1], [], []>} : vector<64x512xbf16>, vector<512x256xbf16>, vector<64x256xf32> -> vector<64x256xf32>
    %c0_7 = arith.constant 0 : index
    %14 = arith.index_cast %7 : i32 to index
    %c0_8 = arith.constant 0 : index
    %15 = vector.load %arg7[%c0_7, %14, %c0_8] : memref<1x128x128xbf16, #tpu.memory_space<vmem>>, vector<1x64x128xbf16>
    %16 = vector.shape_cast %15 : vector<1x64x128xbf16> to vector<64x128xbf16>
    %17 = arith.extf %16 : vector<64x128xbf16> to vector<64x128xf32>
    %c0_9 = arith.constant 0 : index
    %18 = arith.index_cast %7 : i32 to index
    %c0_10 = arith.constant 0 : index
    %19 = vector.load %arg8[%c0_9, %18, %c0_10] : memref<1x128x128xbf16, #tpu.memory_space<vmem>>, vector<1x64x128xbf16>
    %20 = vector.shape_cast %19 : vector<1x64x128xbf16> to vector<64x128xbf16>
    %21 = arith.extf %20 : vector<64x128xbf16> to vector<64x128xf32>
    %c128_i32 = arith.constant 128 : i32
    %22 = arith.muli %arg2, %c128_i32 : i32
    %23 = vector.extract_strided_slice %13 {offsets = [0, 0], sizes = [64, 128], strides = [1, 1]} : vector<64x256xf32> to vector<64x128xf32>
    %24 = arith.mulf %23, %17 : vector<64x128xf32>
    %c64_i32_11 = arith.constant 64 : i32
    %25 = tpu.dynamic_rotate %23 by %c64_i32_11 dim 1 : vector<64x128xf32>, i32 -> vector<64x128xf32>
    %26 = arith.mulf %25, %21 : vector<64x128xf32>
    %27 = arith.addf %24, %26 : vector<64x128xf32>
    %28 = arith.truncf %27 : vector<64x128xf32> to vector<64x128xbf16>
    %cst_12 = arith.constant -1.000000e+30 : f32
    %29 = vector.broadcast %cst_12 : f32 to vector<64x1xf32>
    %cst_13 = arith.constant 0.000000e+00 : f32
    %30 = vector.broadcast %cst_13 : f32 to vector<64x1xf32>
    %cst_14 = arith.constant 0.000000e+00 : f32
    %31 = vector.broadcast %cst_14 : f32 to vector<64x128xf32>
    %c1_i32 = arith.constant 1 : i32
    %32 = arith.addi %arg1, %c1_i32 : i32
    %c0_i32_15 = arith.constant 0 : i32
    %33 = arith.subi %32, %c0_i32_15 : i32
    %34 = arith.addi %c0_i32_15, %33 : i32
    %c1_i32_16 = arith.constant 1 : i32
    %35:3 = scf.for %arg13 = %c0_i32_15 to %34 step %c1_i32_16 iter_args(%arg14 = %29, %arg15 = %30, %arg16 = %31) -> (vector<64x1xf32>, vector<64x1xf32>, vector<64x128xf32>)  : i32 {
      %c64_i32_32 = arith.constant 64 : i32
      %67 = arith.muli %arg13, %c64_i32_32 : i32
      %68 = arith.addi %22, %67 : i32
      %69 = tpu.assume_multiple %68, 64 : i32
      %70 = arith.index_cast %69 : i32 to index
      %c0_33 = arith.constant 0 : index
      %71 = vector.load %arg11[%70, %c0_33] : memref<256x256xbf16, #tpu.memory_space<vmem>>, vector<64x128xbf16>
      %72 = arith.index_cast %69 : i32 to index
      %c0_34 = arith.constant 0 : index
      %73 = vector.load %arg12[%72, %c0_34] : memref<256x256xbf16, #tpu.memory_space<vmem>>, vector<64x128xbf16>
      %cst_35 = arith.constant dense<0.000000e+00> : vector<64x64xf32>
      %74 = tpu.matmul %28, %71, %cst_35 {dimension_numbers = #tpu.dot_dimension_numbers<[1], [1], [0], [0], [0, 0, 1, 0], [], []>} : vector<64x128xbf16>, vector<64x128xbf16>, vector<64x64xf32> -> vector<64x64xf32>
      %75 = tpu.iota {dimensions = array<i32: 0>} : vector<64x64xi32>
      %76 = vector.broadcast %7 : i32 to vector<64x64xi32>
      %77 = arith.addi %76, %75 : vector<64x64xi32>
      %c64_i32_36 = arith.constant 64 : i32
      %78 = arith.muli %arg13, %c64_i32_36 : i32
      %79 = tpu.iota {dimensions = array<i32: 1>} : vector<64x64xi32>
      %80 = vector.broadcast %78 : i32 to vector<64x64xi32>
      %81 = arith.addi %80, %79 : vector<64x64xi32>
      %82 = arith.cmpi sle, %81, %77 : vector<64x64xi32>
      %cst_37 = arith.constant -1.000000e+09 : f32
      %83 = vector.broadcast %cst_37 : f32 to vector<64x64xf32>
      %84 = arith.select %82, %74, %83 : vector<64x64xi1>, vector<64x64xf32>
      %cst_38 = arith.constant dense<0xFF800000> : vector<64xf32>
      %85 = vector.multi_reduction <maximumf>, %84, %cst_38 [1] : vector<64x64xf32> to vector<64xf32>
      %86 = vector.shape_cast %85 : vector<64xf32> to vector<64x1xf32>
      %87 = arith.maximumf %arg14, %86 : vector<64x1xf32>
      %88 = arith.subf %arg14, %87 : vector<64x1xf32>
      %89 = math.exp %88 : vector<64x1xf32>
      %90 = vector.broadcast %87 : vector<64x1xf32> to vector<64x64xf32>
      %91 = arith.subf %84, %90 : vector<64x64xf32>
      %92 = math.exp %91 : vector<64x64xf32>
      %93 = arith.mulf %89, %arg15 : vector<64x1xf32>
      %cst_39 = arith.constant dense<0.000000e+00> : vector<64xf32>
      %94 = vector.multi_reduction <add>, %92, %cst_39 [1] : vector<64x64xf32> to vector<64xf32>
      %95 = vector.shape_cast %94 : vector<64xf32> to vector<64x1xf32>
      %96 = arith.addf %93, %95 : vector<64x1xf32>
      %97 = vector.broadcast %89 : vector<64x1xf32> to vector<64x128xf32>
      %98 = arith.mulf %97, %arg16 : vector<64x128xf32>
      %99 = arith.truncf %92 : vector<64x64xf32> to vector<64x64xbf16>
      %cst_40 = arith.constant dense<0.000000e+00> : vector<64x128xf32>
      %100 = tpu.matmul %99, %73, %cst_40 {dimension_numbers = #tpu.dot_dimension_numbers<[1], [0], [0], [1], [0, 0, 1, 1], [], []>} : vector<64x64xbf16>, vector<64x128xbf16>, vector<64x128xf32> -> vector<64x128xf32>
      %101 = arith.addf %98, %100 : vector<64x128xf32>
      scf.yield %87, %96, %101 : vector<64x1xf32>, vector<64x1xf32>, vector<64x128xf32>
    }
    %36 = tpu.reciprocal %35#1 {approx = true} : vector<64x1xf32> -> vector<64x1xf32>
    %37 = vector.broadcast %36 : vector<64x1xf32> to vector<64x128xf32>
    %38 = arith.mulf %35#2, %37 : vector<64x128xf32>
    %39 = arith.truncf %38 : vector<64x128xf32> to vector<64x128xbf16>
    %40 = vector.extract_strided_slice %13 {offsets = [0, 128], sizes = [64, 128], strides = [1, 1]} : vector<64x256xf32> to vector<64x128xf32>
    %41 = arith.mulf %40, %17 : vector<64x128xf32>
    %c64_i32_17 = arith.constant 64 : i32
    %42 = tpu.dynamic_rotate %40 by %c64_i32_17 dim 1 : vector<64x128xf32>, i32 -> vector<64x128xf32>
    %43 = arith.mulf %42, %21 : vector<64x128xf32>
    %44 = arith.addf %41, %43 : vector<64x128xf32>
    %45 = arith.truncf %44 : vector<64x128xf32> to vector<64x128xbf16>
    %cst_18 = arith.constant -1.000000e+30 : f32
    %46 = vector.broadcast %cst_18 : f32 to vector<64x1xf32>
    %cst_19 = arith.constant 0.000000e+00 : f32
    %47 = vector.broadcast %cst_19 : f32 to vector<64x1xf32>
    %cst_20 = arith.constant 0.000000e+00 : f32
    %48 = vector.broadcast %cst_20 : f32 to vector<64x128xf32>
    %c1_i32_21 = arith.constant 1 : i32
    %49 = arith.addi %arg1, %c1_i32_21 : i32
    %c0_i32_22 = arith.constant 0 : i32
    %50 = arith.subi %49, %c0_i32_22 : i32
    %51 = arith.addi %c0_i32_22, %50 : i32
    %c1_i32_23 = arith.constant 1 : i32
    %52:3 = scf.for %arg13 = %c0_i32_22 to %51 step %c1_i32_23 iter_args(%arg14 = %46, %arg15 = %47, %arg16 = %48) -> (vector<64x1xf32>, vector<64x1xf32>, vector<64x128xf32>)  : i32 {
      %c64_i32_32 = arith.constant 64 : i32
      %67 = arith.muli %arg13, %c64_i32_32 : i32
      %68 = arith.addi %22, %67 : i32
      %69 = tpu.assume_multiple %68, 64 : i32
      %70 = arith.index_cast %69 : i32 to index
      %c128 = arith.constant 128 : index
      %71 = vector.load %arg11[%70, %c128] : memref<256x256xbf16, #tpu.memory_space<vmem>>, vector<64x128xbf16>
      %72 = arith.index_cast %69 : i32 to index
      %c128_33 = arith.constant 128 : index
      %73 = vector.load %arg12[%72, %c128_33] : memref<256x256xbf16, #tpu.memory_space<vmem>>, vector<64x128xbf16>
      %cst_34 = arith.constant dense<0.000000e+00> : vector<64x64xf32>
      %74 = tpu.matmul %45, %71, %cst_34 {dimension_numbers = #tpu.dot_dimension_numbers<[1], [1], [0], [0], [0, 0, 1, 0], [], []>} : vector<64x128xbf16>, vector<64x128xbf16>, vector<64x64xf32> -> vector<64x64xf32>
      %75 = tpu.iota {dimensions = array<i32: 0>} : vector<64x64xi32>
      %76 = vector.broadcast %7 : i32 to vector<64x64xi32>
      %77 = arith.addi %76, %75 : vector<64x64xi32>
      %c64_i32_35 = arith.constant 64 : i32
      %78 = arith.muli %arg13, %c64_i32_35 : i32
      %79 = tpu.iota {dimensions = array<i32: 1>} : vector<64x64xi32>
      %80 = vector.broadcast %78 : i32 to vector<64x64xi32>
      %81 = arith.addi %80, %79 : vector<64x64xi32>
      %82 = arith.cmpi sle, %81, %77 : vector<64x64xi32>
      %cst_36 = arith.constant -1.000000e+09 : f32
      %83 = vector.broadcast %cst_36 : f32 to vector<64x64xf32>
      %84 = arith.select %82, %74, %83 : vector<64x64xi1>, vector<64x64xf32>
      %cst_37 = arith.constant dense<0xFF800000> : vector<64xf32>
      %85 = vector.multi_reduction <maximumf>, %84, %cst_37 [1] : vector<64x64xf32> to vector<64xf32>
      %86 = vector.shape_cast %85 : vector<64xf32> to vector<64x1xf32>
      %87 = arith.maximumf %arg14, %86 : vector<64x1xf32>
      %88 = arith.subf %arg14, %87 : vector<64x1xf32>
      %89 = math.exp %88 : vector<64x1xf32>
      %90 = vector.broadcast %87 : vector<64x1xf32> to vector<64x64xf32>
      %91 = arith.subf %84, %90 : vector<64x64xf32>
      %92 = math.exp %91 : vector<64x64xf32>
      %93 = arith.mulf %89, %arg15 : vector<64x1xf32>
      %cst_38 = arith.constant dense<0.000000e+00> : vector<64xf32>
      %94 = vector.multi_reduction <add>, %92, %cst_38 [1] : vector<64x64xf32> to vector<64xf32>
      %95 = vector.shape_cast %94 : vector<64xf32> to vector<64x1xf32>
      %96 = arith.addf %93, %95 : vector<64x1xf32>
      %97 = vector.broadcast %89 : vector<64x1xf32> to vector<64x128xf32>
      %98 = arith.mulf %97, %arg16 : vector<64x128xf32>
      %99 = arith.truncf %92 : vector<64x64xf32> to vector<64x64xbf16>
      %cst_39 = arith.constant dense<0.000000e+00> : vector<64x128xf32>
      %100 = tpu.matmul %99, %73, %cst_39 {dimension_numbers = #tpu.dot_dimension_numbers<[1], [0], [0], [1], [0, 0, 1, 1], [], []>} : vector<64x64xbf16>, vector<64x128xbf16>, vector<64x128xf32> -> vector<64x128xf32>
      %101 = arith.addf %98, %100 : vector<64x128xf32>
      scf.yield %87, %96, %101 : vector<64x1xf32>, vector<64x1xf32>, vector<64x128xf32>
    }
    %53 = tpu.reciprocal %52#1 {approx = true} : vector<64x1xf32> -> vector<64x1xf32>
    %54 = vector.broadcast %53 : vector<64x1xf32> to vector<64x128xf32>
    %55 = arith.mulf %52#2, %54 : vector<64x128xf32>
    %56 = arith.truncf %55 : vector<64x128xf32> to vector<64x128xbf16>
    %57 = tpu.concatenate %39, %56 in 1 : vector<64x128xbf16>, vector<64x128xbf16> -> vector<64x256xbf16>
    %c0_24 = arith.constant 0 : index
    %c0_25 = arith.constant 0 : index
    %c0_26 = arith.constant 0 : index
    %58 = vector.load %arg6[%c0_24, %c0_25, %c0_26] : memref<1x256x512xbf16, #tpu.memory_space<vmem>>, vector<1x256x512xbf16>
    %59 = vector.shape_cast %58 : vector<1x256x512xbf16> to vector<256x512xbf16>
    %cst_27 = arith.constant dense<0.000000e+00> : vector<64x512xf32>
    %60 = tpu.matmul %57, %59, %cst_27 {dimension_numbers = #tpu.dot_dimension_numbers<[1], [0], [0], [1], [0, 0, 1, 1], [], []>} : vector<64x256xbf16>, vector<256x512xbf16>, vector<64x512xf32> -> vector<64x512xf32>
    %c1_i32_28 = arith.constant 1 : i32
    %61 = arith.cmpi slt, %arg2, %c1_i32_28 : i32
    %62 = arith.extui %61 : i1 to i32
    %c0_i32_29 = arith.constant 0 : i32
    %63 = arith.cmpi ne, %62, %c0_i32_29 : i32
    scf.if %63 {
      %c0_32 = arith.constant 0 : index
      %c0_33 = arith.constant 0 : index
      %67 = vector.load %arg10[%c0_32, %c0_33] : memref<64x512xf32, #tpu.memory_space<vmem>>, vector<64x512xf32>
      %68 = arith.addf %67, %60 : vector<64x512xf32>
      %c0_34 = arith.constant 0 : index
      %c0_35 = arith.constant 0 : index
      %69 = vector.load %arg10[%c0_34, %c0_35] : memref<64x512xf32, #tpu.memory_space<vmem>>, vector<64x512xf32>
      tpu.vector_store %arg10[%c0_34, %c0_35], %68 {strides = array<i32>} : memref<64x512xf32, #tpu.memory_space<vmem>>, vector<64x512xf32>,
    } else {
    }
    %c1_i32_30 = arith.constant 1 : i32
    %64 = arith.cmpi eq, %arg2, %c1_i32_30 : i32
    %65 = arith.extui %64 : i1 to i32
    %c0_i32_31 = arith.constant 0 : i32
    %66 = arith.cmpi ne, %65, %c0_i32_31 : i32
    scf.if %66 {
      %c0_32 = arith.constant 0 : index
      %c0_33 = arith.constant 0 : index
      %67 = vector.load %arg10[%c0_32, %c0_33] : memref<64x512xf32, #tpu.memory_space<vmem>>, vector<64x512xf32>
      %68 = arith.addf %67, %60 : vector<64x512xf32>
      %c0_34 = arith.constant 0 : index
      %c0_35 = arith.constant 0 : index
      %c0_36 = arith.constant 0 : index
      %69 = vector.load %arg9[%c0_34, %c0_35, %c0_36] : memref<1x64x512xf32, #tpu.memory_space<vmem>>, vector<1x64x512xf32>
      %70 = vector.shape_cast %69 : vector<1x64x512xf32> to vector<64x512xf32>
      %71 = vector.shape_cast %68 : vector<64x512xf32> to vector<1x64x512xf32>
      tpu.vector_store %arg9[%c0_34, %c0_35, %c0_36], %71 {strides = array<i32>} : memref<1x64x512xf32, #tpu.memory_space<vmem>>, vector<1x64x512xf32>,
    } else {
    }
    return
  }
  func.func @transform_0(%arg0: i32, %arg1: i32, %arg2: i32) -> (i32, i32, i32) {
    %c0_i32 = arith.constant 0 : i32
    %c0_i32_0 = arith.constant 0 : i32
    %c0_i32_1 = arith.constant 0 : i32
    return %arg0, %c0_i32, %c0_i32_0 : i32, i32, i32
  }
  func.func @transform_1(%arg0: i32, %arg1: i32, %arg2: i32) -> (i32, i32, i32) {
    %c0_i32 = arith.constant 0 : i32
    %c0_i32_0 = arith.constant 0 : i32
    %c0_i32_1 = arith.constant 0 : i32
    return %arg2, %c0_i32, %c0_i32_0 : i32, i32, i32
  }
  func.func @transform_2(%arg0: i32, %arg1: i32, %arg2: i32) -> (i32, i32, i32) {
    %c0_i32 = arith.constant 0 : i32
    %c0_i32_0 = arith.constant 0 : i32
    %c0_i32_1 = arith.constant 0 : i32
    return %arg2, %c0_i32, %c0_i32_0 : i32, i32, i32
  }
  func.func @transform_3(%arg0: i32, %arg1: i32, %arg2: i32) -> (i32, i32, i32) {
    %c0_i32 = arith.constant 0 : i32
    %c0_i32_0 = arith.constant 0 : i32
    %c0_i32_1 = arith.constant 0 : i32
    return %arg2, %c0_i32, %c0_i32_0 : i32, i32, i32
  }
  func.func @transform_4(%arg0: i32, %arg1: i32, %arg2: i32) -> (i32, i32, i32) {
    %c0_i32 = arith.constant 0 : i32
    %c0_i32_0 = arith.constant 0 : i32
    %c0_i32_1 = arith.constant 0 : i32
    return %arg0, %c0_i32, %c0_i32_0 : i32, i32, i32
  }
  func.func @transform_5(%arg0: i32, %arg1: i32, %arg2: i32) -> (i32, i32, i32) {
    %c0_i32 = arith.constant 0 : i32
    %c0_i32_0 = arith.constant 0 : i32
    %c0_i32_1 = arith.constant 0 : i32
    return %arg0, %c0_i32, %c0_i32_0 : i32, i32, i32
  }
  func.func @transform_6(%arg0: i32, %arg1: i32, %arg2: i32) -> (i32, i32, i32) {
    %c0_i32 = arith.constant 0 : i32
    %c0_i32_0 = arith.constant 0 : i32
    return %arg0, %arg1, %c0_i32 : i32, i32, i32
  }
}

</mosaic_0001>

<bundles_post_ra>
// kernel: tpu_custom_call.1
= control target key start
LH: loop header
LB: loop body
LE: loop exit
PB: predicated region body
PF: predicated region fallthrough
CT: control target
= control target key end

     0   :  { %s12488_s0 = inlined_call_operand.hbm [shape: bf16[2,128,512], index: 0, kind: input, shape index: {}]   ;;  %s12489_s1 = inlined_call_operand.hbm [shape: bf16[2,512,256], index: 1, kind: input, shape index: {}]   ;;  %s12490_s2 = inlined_call_operand.hbm [shape: bf16[2,512,512], index: 2, kind: input, shape index: {}]   ;;  %s12491_s3 = inlined_call_operand.hbm [shape: bf16[2,256,512], index: 3, kind: input, shape index: {}]   ;;  %s12492_s4 = inlined_call_operand.hbm [shape: bf16[2,128,128], index: 4, kind: input, shape index: {}]   ;;  %s12493_s5 = inlined_call_operand.hbm [shape: bf16[2,128,128], index: 5, kind: input, shape index: {}]   ;;  %s12494_s6 = inlined_call_operand.hbm [shape: f32[2,128,512], index: 6, kind: output, shape index: {}]  }
   0x1   :  { %12605 = sst [smem:[#allocation88_spill]] %s12488_s0 }
   0x2   :  { %12606 = sst [smem:[#allocation89_spill]] %s12489_s1 }
   0x3   :  { %12607 = sst [smem:[#allocation90_spill]] %s12490_s2 }
   0x4   :  { %12608 = sst [smem:[#allocation91_spill]] %s12491_s3 }
   0x5   :  { %12609 = sst [smem:[#allocation92_spill]] %s12492_s4 }
   0x6   :  { %12610 = sst [smem:[#allocation93_spill]] %s12493_s5 }
   0x7   :  { %12611 = sst [smem:[#allocation94_spill]] %s12494_s6 }
   0x8   :  { %11 = vsyncpa [#allocation6], 0 }
   0x9   :  { %13 = vsyncpa [#allocation6 + $0x1], 0 }
   0xa   :  { %14 = vsyncpa [#allocation9], 0 }
   0xb   :  { %16 = vsyncpa [#allocation9 + $0x1], 0 }
   0xc   :  { %17 = vsyncpa [#allocation12], 0 }
   0xd   :  { %19 = vsyncpa [#allocation12 + $0x1], 0 }
   0xe   :  { %20 = vsyncpa [#allocation15], 0 }
   0xf   :  { %22 = vsyncpa [#allocation15 + $0x1], 0 }
  0x10   :  { %23 = vsyncpa [#allocation7], 0 }
  0x11   :  { %25 = vsyncpa [#allocation7 + $0x1], 0  ;;  %s9351_s21 = smov 0   ;;  %s9353_s22 = smov 0  }
  0x12   :  { %s9355_s23 = smov 0   ;;  %s9357_s24 = smov 0  }
  0x13   :  { %s9359_s25 = smov 0   ;;  %s9361_s26 = smov 0  }
  0x14   :  { %s9363_s27 = smov 0   ;;  %s9365_s28 = smov 0  }
  0x15   :  { %s9367_s29 = smov 0   ;;  %s9369_s30 = smov 0  }
  0x16   :  { %s9371_s7 = smov 0   ;;  %s9373_s8 = smov 0  }
  0x17   :  { %s9375_s9 = smov 0   ;;  %s9377_s10 = smov 0  }
  0x18   :  { %s9379_s11 = smov 0   ;;  %s9381_s12 = smov 0  }
  0x19 LB: > { %12612 = sst [smem:[#allocation23_spill]] %s8915_s21  ;;  %s9432_s13 = sadd.s32 4294967295, %s8975_s12   ;;  %s8975_s12 = sphi %s9381_s12, %s31_s12   ;;  %s8971_s11 = sphi %s9379_s11, %s12951_s11   ;;  %s8967_s10 = sphi %s9377_s10, %s12941_s10   ;;  %s8963_s9 = sphi %s9375_s9, %s12940_s9   ;;  %s8959_s8 = sphi %s9373_s8, %s12950_s8   ;;  %s8955_s7 = sphi %s9371_s7, %s12939_s7   ;;  %s8951_s30 = sphi %s9369_s30, %s12938_s30   ;;  %s8947_s29 = sphi %s9367_s29, %s12949_s29   ;;  %s8943_s28 = sphi %s9365_s28, %s12948_s28   ;;  %s8939_s27 = sphi %s9363_s27, %s12947_s27   ;;  %s8935_s26 = sphi %s9361_s26, %s12937_s26   ;;  %s8931_s25 = sphi %s9359_s25, %s12946_s25   ;;  %s8927_s24 = sphi %s9357_s24, %s12935_s24   ;;  %s8923_s23 = sphi %s9355_s23, %s12945_s23   ;;  %s8919_s22 = sphi %s9353_s22, %s12944_s22   ;;  %s8915_s21 = sphi %s9351_s21, %s12934_s21  }
  0x1a   : > { %12613 = sst [smem:[#allocation24_spill]] %s8919_s22  ;;  %s5545_s14 = sadd.s32 4294967294, %s8975_s12  }
  0x1b   : > { %12614 = sst [smem:[#allocation25_spill]] %s8931_s25  ;;  %s43_s15 = sadd.s32 1, %s8963_s9 }
  0x1c   : > { %12615 = sst [smem:[#allocation26_spill]] %s8935_s26  ;;  %s46_s16 = sadd.s32 1, %s8967_s10 }
  0x1d   : > { %12616 = sst [smem:[#allocation27_spill]] %s8951_s30  ;;  %p44_p0 = scmp.ge.s32.totalorder %s43_s15, 2 }
  0x1e   : > { %12617 = sst [smem:[#allocation28_spill]] %s8955_s7  ;;  %p65_p1 = scmp.eq.s32.totalorder %s8975_s12, 0 }
  0x1f   : > { %12618 = sst [smem:[#allocation29_spill]] %s8959_s8  ;;  %p71_p2 = scmp.eq.s32.totalorder %s9432_s13, 0 }
  0x20   : > { %12619 = sst [smem:[#allocation30_spill]] %s8963_s9  ;;  %s83_s17 = sadd.s32 1, %s8935_s26 }
  0x21   : > { %12620 = sst [smem:[#allocation31_spill]] %s8967_s10  ;;  %s12953_s15 = smov (%p44_p0, %s43_s15), 0 }
  0x22   : > { %12621 = sst [smem:[#allocation32_spill]] %s9432_s13  ;;  %s12955_s16 = smov (!%p44_p0, %s46_s16), %s8967_s10 }
  0x23   : > { %12622 = sst [smem:[#allocation33_spill]] %s12953_s15  ;;  %s80_s18 = ssub.s32 %s8963_s9, %s12953_s15 }
  0x24   : > { %p90_p3 = scmp.ne.s32.totalorder %s8935_s26, %s8931_s25  ;;  %p48_p4 = scmp.ge.s32.totalorder %s12955_s16, 2 }
  0x25   : > { %p81_p5 = scmp.eq.s32.totalorder %s80_s18, 0  ;;  %p96_p7 = scmp.ne.s32.totalorder %s8931_s25, %s8927_s24 }
  0x26   : > { %p9452_p6 = por %p90_p3, %p65_p1  ;;  %p225_p9 = scmp.ne.s32.totalorder %s8923_s23, %s8919_s22 }
  0x27   : > { %s9461_s20 = scalar_select %p48_p4, 0, %s12955_s16  }
  0x28   : > { %s9464_s6 = scalar_select %p81_p5, %s8935_s26, %s83_s17  }
  0x29   : > { %12624 = sst [smem:[#allocation34_spill]] %s9461_s20  ;;  %p9468_p8 = por %p96_p7, %p71_p2 }
  0x2a   : > { %12625 = sst [smem:[#allocation35_spill]] %s9464_s6  ;;  %p226_p10 = scmp.eq.s32.totalorder %s9432_s13, 7 }
  0x2b   : > { %s12626_s15 = scalar_select %p9468_p8, 1, 0 }
  0x2c   : > { %p231_p11 = scmp.ne.s32.totalorder %s8919_s22, %s8915_s21  ;;  %p232_p12 = scmp.eq.s32.totalorder %s5545_s14, 7 }
  0x2d   : > { %12627 = sst [smem:[#allocation36_spill]] %s12626_s15  ;;  %p9477_p13 = por %p226_p10, %p225_p9 }
  0x2e   : > { %p7396_p0 = scmp.lt.s32.totalorder %s8975_s12, 8  ;;  %p9482_p3 = por %p232_p12, %p231_p11 }
  0x2f   : > { %s12628_s18 = scalar_select %p9477_p13, 1, 0 }
  0x30   : > { %s12630_s24 = scalar_select %p9482_p3, 1, 0 }
  0x31   : > { %12629 = sst [smem:[#allocation37_spill]] %s12628_s18  ;;  %s274_s17 = sand.u32 1, %s8975_s12  }
  0x32   : > { %12631 = sst [smem:[#allocation38_spill]] %s12630_s24  ;;  %s276_s6 = sand.u32 1, %s8935_s26  }
  0x33   : > { %s5551_s8 = sshll.u32 %s276_s6, 9  ;;  %s6894_s7 = sshll.u32 %s8963_s9, 9 }
  0x34   : > { %s12632_s1 = sld [smem:[#allocation89_spill]]  ;;  %s278_s22 = scalar_lea.vmem [#allocation8], %s5551_s8 }
  0x35   : > { %s286_s25 = sshll.u32 %s278_s22, 4  ;;  %p9496_p5 = pnand %p7396_p0, %p9452_p6  ;;  %s287_s25 = int_to_ptr.vmem [resolvable:$true] %s286_s25 }
  0x36   : > { %s9500_s26 = sshll.u32 %s276_s6, 10  ;;  %p5566_p7 = scmp.ge.s32.totalorder %s8975_s12, 1 }
  0x37   : > { %s9503_s24 = scalar_lea.sflag [#allocation9], %s274_s17  ;;  %s9306_s22 = smov 8  }
  0x38   : > { %p382_p6 = scmp.lt.s32.totalorder %s8975_s12, 9  ;;  %s12635_s3 = sld [smem:[#allocation91_spill]] }
  0x39   : > { %p64_p10 = scmp.ne.s32.totalorder %s8947_s29, %s8943_s28  ;;  %p70_p12 = scmp.ne.s32.totalorder %s8943_s28, %s8939_s27 }
  0x3a   : > { %s283_s21 = scalar_lea.hbm %s12632_s1, %s6894_s7  ;;  %p9509_p9 = pnand %p5566_p7, %p382_p6 }
  0x3b   : > { %s284_s14 = sshll.u32 %s283_s21, 4  ;;  %s9305_s21 = smov 128   ;;  %s285_s14 = int_to_ptr.hbm [resolvable:$true] %s284_s14 }
  0x3c   : > { %7379 = dma.hbm_to_vmem [thread:$0]  (!%p9496_p5), %s285_s14, 8192, %s287_s25, %s9503_s24, %s9305_s21, %s9305_s21, %s9306_s22  }
  0x3d   : > { %s322_s1 = scalar_lea.vmem [#allocation11], %s5551_s8  ;;  %s9516_s25 = scalar_lea.sflag [#allocation12], %s274_s17 }
  0x3e   : > { %s327_s19 = scalar_lea.hbm %s12635_s3, %s6894_s7  ;;  %s330_s5 = sshll.u32 %s322_s1, 4  ;;  %s331_s5 = int_to_ptr.vmem [resolvable:$true] %s330_s5 }
  0x3f   : > { %s328_s4 = sshll.u32 %s327_s19, 4  ;;  %s12509_s14 = smov 256   ;;  %s329_s4 = int_to_ptr.hbm [resolvable:$true] %s328_s4 }
  0x40   : > { %s12511_s21 = smov 16   ;;  %s50_s7 = sadd.s32 1, %s8971_s11 }
  0x41   : > { %7385 = dma.hbm_to_vmem [thread:$0]  (!%p9496_p5), %s329_s4, 8192, %s331_s5, %s9516_s25, %s12509_s14, %s12509_s14, %s12511_s21  }
  0x42   : > { %s12957_s7 = smov (!%p48_p4, %s50_s7), %s8971_s11  ;;  %s57_s1 = sadd.s32 1, %s8947_s29 }
  0x43   : > { %p52_p11 = scmp.ge.s32.totalorder %s12957_s7, 2  ;;  %p9535_p7 = por %p65_p1, %p64_p10 }
  0x44   : > { %s211_s17 = ssub.s32 %s8967_s10, %s9461_s20  ;;  %p9545_p6 = por %p71_p2, %p70_p12 }
  0x45   : > { %s12959_s7 = smov (%p52_p11, %s12957_s7), 0  ;;  %s215_s5 = sadd.s32 1, %s8923_s23 }
  0x46   : > { %12637 = sst [smem:[#allocation39_spill]] %s12959_s7  ;;  %s54_s16 = ssub.s32 %s8971_s11, %s12959_s7 }
  0x47   : > { %s9553_s27 = sand.u32 1, %s8947_s29   ;;  %p55_p1 = scmp.eq.s32.totalorder %s54_s16, 0 }
  0x48   : > { %s212_s22 = sor.u32 %s211_s17, %s54_s16  ;;  %s5548_s19 = sshll.u32 %s9553_s27, 8 }
  0x49   : > { %p213_p4 = scmp.eq.s32.totalorder %s212_s22, 0  ;;  %s6893_s14 = sshll.u32 %s8971_s11, 8 }
  0x4a   : > { %s9556_s6 = scalar_select %p55_p1, %s8947_s29, %s57_s1  }
  0x4b   : > { %s9559_s15 = scalar_select %p213_p4, %s8923_s23, %s215_s5  }
  0x4c   : > { %s12639_s0 = sld [smem:[#allocation88_spill]]  ;;  %s256_s10 = scalar_lea.vmem [#allocation5], %s5548_s19 }
  0x4d   : > { %s264_s13 = sshll.u32 %s256_s10, 4  ;;  %p9570_p2 = pnand %p7396_p0, %p9535_p7  ;;  %s265_s13 = int_to_ptr.vmem [resolvable:$true] %s264_s13 }
  0x4e   : > { %s6895_s17 = sshll.u32 %s8963_s9, 10  ;;  %s300_s5 = scalar_lea.vmem [#allocation10], %s9500_s26 }
  0x4f   : > { %s308_s3 = sshll.u32 %s300_s5, 4  ;;  %s12641_s2 = sld [smem:[#allocation90_spill]]  ;;  %s309_s3 = int_to_ptr.vmem [resolvable:$true] %s308_s3 }
  0x50   : > { %s253_s16 = scalar_lea.sflag [#allocation6], %s9553_s27  ;;  %s12642_s22 = smov 16  }
  0x51   : > { %s12643_s10 = smov 256   ;;  %s5560_s19 = sshll.u32 %s9553_s27, 6 }
  0x52   : > { %s261_s20 = scalar_lea.hbm %s12639_s0, %s6893_s14  ;;  %s6897_s26 = sshll.u32 %s8971_s11, 6 }
  0x53   : > { %s262_s7 = sshll.u32 %s261_s20, 4  ;;  %s12644_s14 = sld [smem:[#allocation92_spill]]  ;;  %s263_s7 = int_to_ptr.hbm [resolvable:$true] %s262_s7 }
  0x54   : > { %7376 = dma.hbm_to_vmem [thread:$0]  (!%p9570_p2), %s263_s7, 4096, %s265_s13, %s253_s16, %s12643_s10, %s12643_s10, %s12642_s22  }
  0x55   : > { %s305_s20 = scalar_lea.hbm %s12641_s2, %s6895_s17  ;;  %s344_s0 = scalar_lea.vmem [#allocation13], %s5560_s19 }
  0x56   : > { %s306_s8 = sshll.u32 %s305_s20, 4  ;;  %s352_s2 = sshll.u32 %s344_s0, 4  ;;  %s307_s8 = int_to_ptr.hbm [resolvable:$true] %s306_s8  ;;  %s353_s2 = int_to_ptr.vmem [resolvable:$true] %s352_s2 }
  0x57   : > { %7382 = dma.hbm_to_vmem [thread:$0]  (!%p9496_p5), %s307_s8, 16384, %s309_s3, %s9503_s24, %s12643_s10, %s12643_s10, %s12642_s22  }
  0x58   : > { %s9309_s13 = smov 64   ;;  %s9310_s7 = smov 4  }
  0x59   : > { %s349_s21 = scalar_lea.hbm %s12644_s14, %s6897_s26  ;;  %s12645_s16 = sld [smem:[#allocation93_spill]] }
  0x5a   : > { %s350_s9 = sshll.u32 %s349_s21, 4  ;;  %s366_s22 = scalar_lea.vmem [#allocation14], %s5560_s19  ;;  %s351_s9 = int_to_ptr.hbm [resolvable:$true] %s350_s9 }
  0x5b   : > { %7388 = dma.hbm_to_vmem [thread:$0]  (!%p9570_p2), %s351_s9, 1024, %s353_s2, %s9516_s25, %s9309_s13, %s9309_s13, %s9310_s7  }
  0x5c   : > { %s374_s10 = sshll.u32 %s366_s22, 4  ;;  %s363_s8 = scalar_lea.sflag [#allocation15], %s9553_s27  ;;  %s375_s10 = int_to_ptr.vmem [resolvable:$true] %s374_s10 }
  0x5d   : > { %386 = sbr.rel (%p9509_p9) target bundleno = 2750 (0xabe), region = 44 }
  0x5f   : > { %s371_s24 = scalar_lea.hbm %s12645_s16, %s6897_s26 }
  0x60   : > { %s372_s3 = sshll.u32 %s371_s24, 4  ;;  %s373_s3 = int_to_ptr.hbm [resolvable:$true] %s372_s3 }
  0x61   : > { %7391 = dma.hbm_to_vmem [thread:$0]  (!%p9570_p2), %s373_s3, 1024, %s375_s10, %s363_s8, %s9309_s13, %s9309_s13, %s9310_s7  }
  0x62   : > { %s388_s0 = sand.u32 1, %s8943_s28  }
  0x63   : > { %s5567_s5 = sshll.u32 %s388_s0, 8  ;;  %s389_s2 = scalar_lea.sflag [#allocation6], %s388_s0 }
  0x64   : > { %s9608_s9 = scalar_lea.vmem [#allocation5], %s5567_s5 }
  0x65   : > { %8890 = dma.done.wait (%p9545_p6), %s389_s2, 4096  }
  0x66   : > { %8892 = vsyncadd (%p9545_p6), %s389_s2, 4294963200  ;;  %s12646_s25 = sld [smem:[#allocation32_spill]] }
  0x67   : > { %s12647_s19 = sld [smem:[#allocation25_spill]] }
  0x6c   : > { %s398_s1 = sand.u32 1, %s12646_s25  }
  0x6d   : > { %s400_s26 = sand.u32 1, %s12647_s19   ;;  %s399_s30 = scalar_lea.sflag [#allocation9], %s398_s1 }
  0x6e   : > { %s5568_s17 = sshll.u32 %s400_s26, 9 }
  0x6f   : > { %s9616_s14 = scalar_lea.vmem [#allocation8], %s5568_s17 }
  0x70   : > { %8894 = dma.done.wait (%p9468_p8), %s399_s30, 24576  }
  0x71   : > { %8896 = vsyncadd (%p9468_p8), %s399_s30, 4294942720  ;;  %s5569_s21 = sshll.u32 %s400_s26, 10  ;;  %s419_s7 = scalar_lea.sflag [#allocation12], %s398_s1 }
  0x72   : > { %s9622_s13 = scalar_lea.vmem [#allocation10], %s5569_s21  ;;  %s9624_s18 = scalar_lea.vmem [#allocation11], %s5568_s17 }
  0x73   : > { %8898 = dma.done.wait (%p9468_p8), %s419_s7, 8192  }
  0x74   : > { %8900 = vsyncadd (%p9468_p8), %s419_s7, 4294959104  ;;  %s5571_s20 = sshll.u32 %s388_s0, 6 }
  0x75   : > { %s9630_s16 = scalar_lea.vmem [#allocation13], %s5571_s20 }
  0x76   : > { %8902 = dma.done.wait (%p9545_p6), %s419_s7, 1024  }
  0x77   : > { %8904 = vsyncadd (%p9545_p6), %s419_s7, 4294966272  ;;  %s439_s24 = scalar_lea.sflag [#allocation15], %s388_s0  ;;  %s9636_s3 = scalar_lea.vmem [#allocation14], %s5571_s20 }
  0x78   : > { %8906 = dma.done.wait (%p9545_p6), %s439_s24, 1024  }
  0x79   : > { %8908 = vsyncadd (%p9545_p6), %s439_s24, 4294966272  ;;  %s12649_s22 = sld [smem:[#allocation24_spill]] }
  0x7a   : > { %s12650_s2 = sld [smem:[#allocation27_spill]] }
  0x7f   : > { %s494_s10 = sand.u32 1, %s12649_s22  }
  0x80   : > { %s5573_s8 = sshll.u32 %s494_s10, 8  ;;  %p5574_p8 = scmp.ne.s32.totalorder %s12650_s2, 0 }
  0x81   : > { %s9645_s5 = scalar_lea.vmem [#allocation16], %s5573_s8 }
  0x82   : > { %502 = sbr.rel (%p5574_p8) target bundleno = 168 (0xa8), region = 72 }
  0x87   : > { %v9311_v0 = vmov 0.0  }
  0x88   : > { %503 = vst [vmem:[#allocation2 + $0xb0] sm:$0xff] %v9311_v0 }
  0x89   : > { %504 = vst [vmem:[#allocation2] sm:$0xff] %v9311_v0 }
  0x8a   : > { %505 = vst [vmem:[#allocation2 + $0xd8] sm:$0xff] %v9311_v0 }
  0x8b   : > { %506 = vst [vmem:[#allocation2 + $0x18] sm:$0xff] %v9311_v0 }
  0x8c   : > { %507 = vst [vmem:[#allocation2 + $0x50] sm:$0xff] %v9311_v0 }
  0x8d   : > { %508 = vst [vmem:[#allocation2 + $0x68] sm:$0xff] %v9311_v0 }
  0x8e   : > { %509 = vst [vmem:[#allocation2 + $0x30] sm:$0xff] %v9311_v0 }
  0x8f   : > { %510 = vst [vmem:[#allocation2 + $0x48] sm:$0xff] %v9311_v0 }
  0x90   : > { %511 = vst [vmem:[#allocation2 + $0x80] sm:$0xff] %v9311_v0 }
  0x91   : > { %512 = vst [vmem:[#allocation2 + $0x88] sm:$0xff] %v9311_v0 }
  0x92   : > { %513 = vst [vmem:[#allocation2 + $0xe8] sm:$0xff] %v9311_v0 }
  0x93   : > { %514 = vst [vmem:[#allocation2 + $0xb8] sm:$0xff] %v9311_v0 }
  0x94   : > { %515 = vst [vmem:[#allocation2 + $0x60] sm:$0xff] %v9311_v0 }
  0x95   : > { %516 = vst [vmem:[#allocation2 + $0xf0] sm:$0xff] %v9311_v0 }
  0x96   : > { %517 = vst [vmem:[#allocation2 + $0x8] sm:$0xff] %v9311_v0 }
  0x97   : > { %518 = vst [vmem:[#allocation2 + $0x78] sm:$0xff] %v9311_v0 }
  0x98   : > { %519 = vst [vmem:[#allocation2 + $0x38] sm:$0xff] %v9311_v0 }
  0x99   : > { %520 = vst [vmem:[#allocation2 + $0x58] sm:$0xff] %v9311_v0 }
  0x9a   : > { %521 = vst [vmem:[#allocation2 + $0x40] sm:$0xff] %v9311_v0 }
  0x9b   : > { %522 = vst [vmem:[#allocation2 + $0xc8] sm:$0xff] %v9311_v0 }
  0x9c   : > { %523 = vst [vmem:[#allocation2 + $0xe0] sm:$0xff] %v9311_v0 }
  0x9d   : > { %524 = vst [vmem:[#allocation2 + $0x90] sm:$0xff] %v9311_v0 }
  0x9e   : > { %525 = vst [vmem:[#allocation2 + $0x70] sm:$0xff] %v9311_v0 }
  0x9f   : > { %526 = vst [vmem:[#allocation2 + $0xc0] sm:$0xff] %v9311_v0 }
  0xa0   : > { %527 = vst [vmem:[#allocation2 + $0xa8] sm:$0xff] %v9311_v0 }
  0xa1   : > { %528 = vst [vmem:[#allocation2 + $0xd0] sm:$0xff] %v9311_v0 }
  0xa2   : > { %529 = vst [vmem:[#allocation2 + $0x10] sm:$0xff] %v9311_v0 }
  0xa3   : > { %530 = vst [vmem:[#allocation2 + $0x28] sm:$0xff] %v9311_v0 }
  0xa4   : > { %531 = vst [vmem:[#allocation2 + $0xa0] sm:$0xff] %v9311_v0 }
  0xa5   : > { %532 = vst [vmem:[#allocation2 + $0xf8] sm:$0xff] %v9311_v0 }
  0xa6   : > { %533 = vst [vmem:[#allocation2 + $0x20] sm:$0xff] %v9311_v0 }
  0xa7   : > { %534 = vst [vmem:[#allocation2 + $0x98] sm:$0xff] %v9311_v0 }
  0xa8 PF: > { %s12651_s4 = sld [smem:[#allocation28_spill]] }
  0xae   : > { %p5575_p0 = scmp.ne.s32.totalorder %s12651_s4, 0 }
  0xb0   : > { %538 = sbr.rel (%p5575_p0) target bundleno = 860 (0x35c), region = 76 }
  0xb5   : > { %v5818_v1 = vld [vmem:[%s9622_s13 + $0xe0] sm:$0xf]  ;;  %v6961_v2 = vld [vmem:[%s9622_s13 + $0xec] sm:$0xf0]  ;;  %s9312_s0 = smov 64   ;;  %s12687_s25 = sld [smem:[#allocation27_spill]] }
  0xb6   : > { %v5946_v3 = vld [vmem:[%s9622_s13 + $0x1e0] sm:$0xf]  ;;  %v5819_v4 = vor.u32 %v6961_v2, %v5818_v1  ;;  %v6993_v5 = vld [vmem:[%s9622_s13 + $0x1ec] sm:$0xf0] }
  0xb7   : > { %v6074_v6 = vld [vmem:[%s9622_s13 + $0x2e0] sm:$0xf]  ;;  %v7025_v7 = vld [vmem:[%s9622_s13 + $0x2ec] sm:$0xf0]  ;;  %v5947_v8 = vor.u32 %v6993_v5, %v5946_v3 }
  0xb8   : > { %v6075_v9 = vor.u32 %v7025_v7, %v6074_v6  ;;  %v6202_v10 = vld [vmem:[%s9622_s13 + $0x3e0] sm:$0xf]  ;;  %v7057_v11 = vld [vmem:[%s9622_s13 + $0x3ec] sm:$0xf0]  ;;  %1499 = vmatpush.bf16.msra.mxu0 %v5819_v4 }
  0xb9   : > { %v5802_v12 = vld [vmem:[%s9622_s13 + $0xc0] sm:$0xf]  ;;  %v6203_v13 = vor.u32 %v7057_v11, %v6202_v10  ;;  %v6957_v14 = vld [vmem:[%s9622_s13 + $0xcc] sm:$0xf0]  ;;  %1548 = vmatpush.bf16.msra.mxu1 %v5947_v8 }
  0xba   : > { %v5930_v15 = vld [vmem:[%s9622_s13 + $0x1c0] sm:$0xf]  ;;  %v6989_v16 = vld [vmem:[%s9622_s13 + $0x1cc] sm:$0xf0]  ;;  %1597 = vmatpush.bf16.msra.mxu2 %v6075_v9  ;;  %v5803_v17 = vor.u32 %v6957_v14, %v5802_v12 }
  0xbb   : > { %v5931_v18 = vor.u32 %v6989_v16, %v5930_v15  ;;  %v6058_v19 = vld [vmem:[%s9622_s13 + $0x2c0] sm:$0xf]  ;;  %v7021_v20 = vld [vmem:[%s9622_s13 + $0x2cc] sm:$0xf0]  ;;  %1646 = vmatpush.bf16.msra.mxu3 %v6203_v13  ;;  %s6216_s19 = sshll.u32 %s12687_s25, 7 }
  0xbc   : > { %v6186_v21 = vld [vmem:[%s9622_s13 + $0x3c0] sm:$0xf]  ;;  %v6059_v22 = vor.u32 %v7021_v20, %v6058_v19  ;;  %v7053_v23 = vld [vmem:[%s9622_s13 + $0x3cc] sm:$0xf0]  ;;  %1500 = vmatpush.bf16.msra.mxu0 %v5803_v17  ;;  %s10402_s27 = scalar_lea.vmem [#allocation3], %s6216_s19  ;;  %s10591_s1 = scalar_lea.vmem [#allocation4], %s6216_s19 }
  0xbd   : > { %v5786_v24 = vld [vmem:[%s9622_s13 + $0xa0] sm:$0xf]  ;;  %v6953_v25 = vld [vmem:[%s9622_s13 + $0xac] sm:$0xf0]  ;;  %v6187_v26 = vor.u32 %v7053_v23, %v6186_v21  ;;  %1549 = vmatpush.bf16.msra.mxu1 %v5931_v18 }
  0xbe   : > { %v5914_v27 = vld [vmem:[%s9622_s13 + $0x1a0] sm:$0xf]  ;;  %v6985_v28 = vld [vmem:[%s9622_s13 + $0x1ac] sm:$0xf0]  ;;  %v5787_v30 = vor.u32 %v6953_v25, %v5786_v24  ;;  %1598 = vmatpush.bf16.msra.mxu2 %v6059_v22 }
  0xbf   : > { %v6042_v29 = vld [vmem:[%s9622_s13 + $0x2a0] sm:$0xf]  ;;  %v7017_v31 = vld [vmem:[%s9622_s13 + $0x2ac] sm:$0xf0]  ;;  %v5915_v34 = vor.u32 %v6985_v28, %v5914_v27  ;;  %1647 = vmatpush.bf16.msra.mxu3 %v6187_v26 }
  0xc0   : > { %v6170_v32 = vld [vmem:[%s9622_s13 + $0x3a0] sm:$0xf]  ;;  %v7049_v33 = vld [vmem:[%s9622_s13 + $0x3ac] sm:$0xf0]  ;;  %v6043_v35 = vor.u32 %v7017_v31, %v6042_v29  ;;  %1501 = vmatpush.bf16.msra.mxu0 %v5787_v30  ;;  %v6899_v31 = vld [vmem:[%s9608_s9 + $0x4] sm:$0xf] }
  0xc1   : > { %v5770_v36 = vld [vmem:[%s9622_s13 + $0x80] sm:$0xf]  ;;  %v6949_v37 = vld [vmem:[%s9622_s13 + $0x8c] sm:$0xf0]  ;;  %v6171_v39 = vor.u32 %v7049_v33, %v6170_v32  ;;  %1550 = vmatpush.bf16.msra.mxu1 %v5915_v34  ;;  %v5580_v32 = vld [vmem:[%s9608_s9 + $0x10] sm:$0xf0] }
  0xc2   : > { %v5898_v38 = vld [vmem:[%s9622_s13 + $0x180] sm:$0xf]  ;;  %v6981_v40 = vld [vmem:[%s9622_s13 + $0x18c] sm:$0xf0]  ;;  %v5771_v45 = vor.u32 %v6949_v37, %v5770_v36  ;;  %1599 = vmatpush.bf16.msra.mxu2 %v6043_v35  ;;  %v7023_v33 = vld [vmem:[%s9622_s13 + $0x2e4] sm:$0xf] }
  0xc3   : > { %v6026_v41 = vld [vmem:[%s9622_s13 + $0x280] sm:$0xf]  ;;  %v7013_v42 = vld [vmem:[%s9622_s13 + $0x28c] sm:$0xf0]  ;;  %v5899_v46 = vor.u32 %v6981_v40, %v5898_v38  ;;  %1648 = vmatpush.bf16.msra.mxu3 %v6171_v39  ;;  %v6076_v34 = vld [vmem:[%s9622_s13 + $0x2f0] sm:$0xf0] }
  0xc4   : > { %v6154_v43 = vld [vmem:[%s9622_s13 + $0x380] sm:$0xf]  ;;  %v7045_v44 = vld [vmem:[%s9622_s13 + $0x38c] sm:$0xf0]  ;;  %v6027_v47 = vor.u32 %v7013_v42, %v6026_v41  ;;  %1502 = vmatpush.bf16.msra.mxu0 %v5771_v45  ;;  %v5586_v36 = vld [vmem:[%s9608_s9 + $0x8] sm:$0xf]  ;;  %v6079_v45 = vor.u32 %v7023_v33, %v6076_v34 }
  0xc5   : > { %v5754_v48 = vld [vmem:[%s9622_s13 + $0x60] sm:$0xf]  ;;  %v6945_v49 = vld [vmem:[%s9622_s13 + $0x6c] sm:$0xf0]  ;;  %v6155_v51 = vor.u32 %v7045_v44, %v6154_v43  ;;  %1551 = vmatpush.bf16.msra.mxu1 %v5899_v46  ;;  %v7055_v37 = vld [vmem:[%s9622_s13 + $0x3e4] sm:$0xf] }
  0xc6   : > { %v5882_v50 = vld [vmem:[%s9622_s13 + $0x160] sm:$0xf]  ;;  %v6977_v52 = vld [vmem:[%s9622_s13 + $0x16c] sm:$0xf0]  ;;  %v5755_v57 = vor.u32 %v6945_v49, %v5754_v48  ;;  %1600 = vmatpush.bf16.msra.mxu2 %v6027_v47  ;;  %v6204_v38 = vld [vmem:[%s9622_s13 + $0x3f0] sm:$0xf0] }
  0xc7   : > { %v6010_v53 = vld [vmem:[%s9622_s13 + $0x260] sm:$0xf]  ;;  %v7009_v54 = vld [vmem:[%s9622_s13 + $0x26c] sm:$0xf0]  ;;  %v5883_v58 = vor.u32 %v6977_v52, %v5882_v50  ;;  %1649 = vmatpush.bf16.msra.mxu3 %v6155_v51  ;;  %v6902_v41 = vld [vmem:[%s9608_s9 + $0x14] sm:$0xf0]  ;;  %v6207_v50 = vor.u32 %v7055_v37, %v6204_v38 }
  0xc8   : > { %v6138_v55 = vld [vmem:[%s9622_s13 + $0x360] sm:$0xf]  ;;  %v7041_v56 = vld [vmem:[%s9622_s13 + $0x36c] sm:$0xf0]  ;;  %v6011_v59 = vor.u32 %v7009_v54, %v6010_v53  ;;  %1503 = vmatpush.bf16.msra.mxu0 %v5755_v57  ;;  %v6900_v42 = vld [vmem:[%s9608_s9 + $0xc] sm:$0xf]  ;;  %v9733_v54 = vor.u32 %v6899_v31, %v5580_v32 }
  0xc9   : > { %v5738_v60 = vld [vmem:[%s9622_s13 + $0x40] sm:$0xf]  ;;  %v6941_v61 = vld [vmem:[%s9622_s13 + $0x4c] sm:$0xf0]  ;;  %v6139_v63 = vor.u32 %v7041_v56, %v6138_v55  ;;  %1552 = vmatpush.bf16.msra.mxu1 %v5883_v58  ;;  %v5588_v43 = vld [vmem:[%s9608_s9 + $0x18] sm:$0xf0]  ;;  %v9735_v55 = vor.u32 %v6902_v41, %v5586_v36 }
  0xca   : > { %v5866_v62 = vld [vmem:[%s9622_s13 + $0x140] sm:$0xf]  ;;  %v6973_v0 = vld [vmem:[%s9622_s13 + $0x14c] sm:$0xf0]  ;;  %v5739_v5 = vor.u32 %v6941_v61, %v5738_v60  ;;  %1601 = vmatpush.bf16.msra.mxu2 %v6011_v59  ;;  %v6959_v46 = vld [vmem:[%s9622_s13 + $0xe4] sm:$0xf]  ;;  %v9739_v58 = vor.u32 %v6900_v42, %v5588_v43 }
  0xcb   : > { %v5994_v1 = vld [vmem:[%s9622_s13 + $0x240] sm:$0xf]  ;;  %v7005_v2 = vld [vmem:[%s9622_s13 + $0x24c] sm:$0xf0]  ;;  %v5867_v6 = vor.u32 %v6973_v0, %v5866_v62  ;;  %1650 = vmatpush.bf16.msra.mxu3 %v6139_v63  ;;  %v5820_v47 = vld [vmem:[%s9622_s13 + $0xf0] sm:$0xf0] }
  0xcc   : > { %v6122_v3 = vld [vmem:[%s9622_s13 + $0x340] sm:$0xf]  ;;  %v7037_v4 = vld [vmem:[%s9622_s13 + $0x34c] sm:$0xf0]  ;;  %v5995_v7 = vor.u32 %v7005_v2, %v5994_v1  ;;  %1504 = vmatpush.bf16.msra.mxu0 %v5739_v5  ;;  %v6991_v48 = vld [vmem:[%s9622_s13 + $0x1e4] sm:$0xf]  ;;  %v5823_v59 = vor.u32 %v6959_v46, %v5820_v47 }
  0xcd   : > { %v5722_v8 = vld [vmem:[%s9622_s13 + $0x20] sm:$0xf]  ;;  %v6937_v9 = vld [vmem:[%s9622_s13 + $0x2c] sm:$0xf0]  ;;  %v6123_v11 = vor.u32 %v7037_v4, %v6122_v3  ;;  %1553 = vmatpush.bf16.msra.mxu1 %v5867_v6  ;;  %v5948_v51 = vld [vmem:[%s9622_s13 + $0x1f0] sm:$0xf0] }
  0xce   : > { %v5850_v10 = vld [vmem:[%s9622_s13 + $0x120] sm:$0xf]  ;;  %v6969_v12 = vld [vmem:[%s9622_s13 + $0x12c] sm:$0xf0]  ;;  %v5723_v18 = vor.u32 %v6937_v9, %v5722_v8  ;;  %1602 = vmatpush.bf16.msra.mxu2 %v5995_v7  ;;  %v7019_v52 = vld [vmem:[%s9622_s13 + $0x2c4] sm:$0xf]  ;;  %v5951_v60 = vor.u32 %v6991_v48, %v5948_v51 }
  0xcf   : > { %v5978_v13 = vld [vmem:[%s9622_s13 + $0x220] sm:$0xf]  ;;  %v7001_v14 = vld [vmem:[%s9622_s13 + $0x22c] sm:$0xf0]  ;;  %v5851_v22 = vor.u32 %v6969_v12, %v5850_v10  ;;  %1651 = vmatpush.bf16.msra.mxu3 %v6123_v11  ;;  %v6060_v53 = vld [vmem:[%s9622_s13 + $0x2d0] sm:$0xf0] }
  0xd0   : > { %v6106_v15 = vld [vmem:[%s9622_s13 + $0x320] sm:$0xf]  ;;  %v7033_v16 = vld [vmem:[%s9622_s13 + $0x32c] sm:$0xf0]  ;;  %v5979_v23 = vor.u32 %v7001_v14, %v5978_v13  ;;  %1505 = vmatpush.bf16.msra.mxu0 %v5723_v18  ;;  %12652 = vst [vmem:[#allocation40_spill] sm:$0xff] %v9733_v54  ;;  %v6063_v61 = vor.u32 %v7019_v52, %v6060_v53 }
  0xd1   : > { %v5706_v17 = vld [vmem:[%s9622_s13] sm:$0xf]  ;;  %v6933_v19 = vld [vmem:[%s9622_s13 + $0xc] sm:$0xf0]  ;;  %v6107_v27 = vor.u32 %v7033_v16, %v6106_v15  ;;  %1554 = vmatpush.bf16.msra.mxu1 %v5851_v22  ;;  %12653 = vst [vmem:[#allocation41_spill] sm:$0xff] %v9735_v55 }
  0xd2   : > { %v5834_v20 = vld [vmem:[%s9622_s13 + $0x100] sm:$0xf]  ;;  %v6965_v21 = vld [vmem:[%s9622_s13 + $0x10c] sm:$0xf0]  ;;  %v5707_v35 = vor.u32 %v6933_v19, %v5706_v17  ;;  %1603 = vmatpush.bf16.msra.mxu2 %v5979_v23  ;;  %v7051_v56 = vld [vmem:[%s9622_s13 + $0x3c4] sm:$0xf] }
  0xd3   : > { %v5962_v24 = vld [vmem:[%s9622_s13 + $0x200] sm:$0xf]  ;;  %v6997_v25 = vld [vmem:[%s9622_s13 + $0x20c] sm:$0xf0]  ;;  %v5835_v39 = vor.u32 %v6965_v21, %v5834_v20  ;;  %1652 = vmatpush.bf16.msra.mxu3 %v6107_v27  ;;  %v6188_v57 = vld [vmem:[%s9622_s13 + $0x3d0] sm:$0xf0] }
  0xd4   : > { %v6090_v26 = vld [vmem:[%s9622_s13 + $0x300] sm:$0xf]  ;;  %v7029_v28 = vld [vmem:[%s9622_s13 + $0x30c] sm:$0xf0]  ;;  %v5963_v40 = vor.u32 %v6997_v25, %v5962_v24  ;;  %1506 = vmatpush.bf16.msra.mxu0 %v5707_v35  ;;  %12654 = vst [vmem:[#allocation42_spill] sm:$0xff] %v9739_v58  ;;  %v6191_v0 = vor.u32 %v7051_v56, %v6188_v57 }
  0xd5   : > { %v5578_v29 = vld [vmem:[%s9608_s9] sm:$0xf]  ;;  %v6901_v30 = vld [vmem:[%s9608_s9 + $0xc] sm:$0xf0]  ;;  %v6091_v44 = vor.u32 %v7029_v28, %v6090_v26  ;;  %1555 = vmatpush.bf16.msra.mxu1 %v5835_v39  ;;  %v6955_v62 = vld [vmem:[%s9622_s13 + $0xc4] sm:$0xf] }
  0xd6   : > { %v9728_v49 = vor.u32 %v6901_v30, %v5578_v29  ;;  %1604 = vmatpush.bf16.msra.mxu2 %v5963_v40  ;;  %v5804_v63 = vld [vmem:[%s9622_s13 + $0xd0] sm:$0xf0]  ;;  %v6987_v1 = vld [vmem:[%s9622_s13 + $0x1c4] sm:$0xf]  ;;  %v5594_v17 = vld [vmem:[%s9608_s9 + $0x20] sm:$0xf] }
  0xd7   : > { %1653 = vmatpush.bf16.msra.mxu3 %v6091_v44  ;;  %v5932_v2 = vld [vmem:[%s9622_s13 + $0x1d0] sm:$0xf0]  ;;  %v5807_v3 = vor.u32 %v6955_v62, %v5804_v63  ;;  %v7015_v4 = vld [vmem:[%s9622_s13 + $0x2a4] sm:$0xf]  ;;  %v6905_v18 = vld [vmem:[%s9608_s9 + $0x2c] sm:$0xf0] }
  0xd8   : > { %1507 = vmatmul.bf16.vlgmr.msra.gmra.mxu0 %v9728_v49  ;;  %1556 = vmatmul.bf16.vlgmr.msra.gmra.mxu1 %v9733_v54  ;;  %v6044_v5 = vld [vmem:[%s9622_s13 + $0x2b0] sm:$0xf0]  ;;  %v7047_v6 = vld [vmem:[%s9622_s13 + $0x3a4] sm:$0xf]  ;;  %v5935_v7 = vor.u32 %v6987_v1, %v5932_v2  ;;  %v5602_v21 = vld [vmem:[%s9608_s9 + $0x28] sm:$0xf]  ;;  %v9765_v25 = vor.u32 %v6905_v18, %v5594_v17 }
  0xd9   : > { %1605 = vmatmul.bf16.vlgmr.msra.gmra.mxu2 %v9735_v55  ;;  %1695 = vmatpush.bf16.msrb.mxu0 %v5823_v59  ;;  %v6047_v8 = vor.u32 %v7015_v4, %v6044_v5  ;;  %v6172_v9 = vld [vmem:[%s9622_s13 + $0x3b0] sm:$0xf0]  ;;  %v6951_v10 = vld [vmem:[%s9622_s13 + $0xa4] sm:$0xf]  ;;  %v6906_v22 = vld [vmem:[%s9608_s9 + $0x34] sm:$0xf0] }
  0xda   : > { %1793 = vmatpush.bf16.msrb.mxu2 %v6079_v45  ;;  %1654 = vmatmul.bf16.vlgmr.msra.gmra.mxu3 %v9739_v58  ;;  %v5788_v11 = vld [vmem:[%s9622_s13 + $0xb0] sm:$0xf0]  ;;  %v6175_v12 = vor.u32 %v7047_v6, %v6172_v9  ;;  %v6983_v13 = vld [vmem:[%s9622_s13 + $0x1a4] sm:$0xf]  ;;  %v6904_v23 = vld [vmem:[%s9608_s9 + $0x2c] sm:$0xf]  ;;  %v9769_v27 = vor.u32 %v6906_v22, %v5602_v21 }
  0xdb   : > { %1842 = vmatpush.bf16.msrb.mxu3 %v6207_v50  ;;  %1744 = vmatpush.bf16.msrb.mxu1 %v5951_v60  ;;  %v5916_v14 = vld [vmem:[%s9622_s13 + $0x1b0] sm:$0xf0]  ;;  %v5791_v15 = vor.u32 %v6951_v10, %v5788_v11  ;;  %v6903_v19 = vld [vmem:[%s9608_s9 + $0x24] sm:$0xf]  ;;  %v5604_v24 = vld [vmem:[%s9608_s9 + $0x38] sm:$0xf0] }
  0xdc   : > { %v5919_v16 = vor.u32 %v6983_v13, %v5916_v14  ;;  %v5596_v20 = vld [vmem:[%s9608_s9 + $0x30] sm:$0xf0]  ;;  %12656 = vst [vmem:[#allocation44_spill] sm:$0xff] %v9769_v27  ;;  %v9771_v28 = vor.u32 %v6904_v23, %v5604_v24  ;;  %v7011_v29 = vld [vmem:[%s9622_s13 + $0x284] sm:$0xf] }
  0xdd   : > { %1696 = vmatpush.bf16.msrb.mxu0 %v5807_v3  ;;  %v9767_v26 = vor.u32 %v6903_v19, %v5596_v20  ;;  %v6028_v30 = vld [vmem:[%s9622_s13 + $0x290] sm:$0xf0]  ;;  %v7043_v31 = vld [vmem:[%s9622_s13 + $0x384] sm:$0xf]  ;;  %v5610_v41 = vld [vmem:[%s9608_s9 + $0x40] sm:$0xf] }
  0xde   : > { %1794 = vmatpush.bf16.msrb.mxu2 %v6063_v61  ;;  %12657 = vst [vmem:[#allocation45_spill] sm:$0xff] %v9771_v28  ;;  %v6031_v32 = vor.u32 %v7011_v29, %v6028_v30  ;;  %v6156_v33 = vld [vmem:[%s9622_s13 + $0x390] sm:$0xf0]  ;;  %v6947_v34 = vld [vmem:[%s9622_s13 + $0x84] sm:$0xf] }
  0xdf   : > { %1843 = vmatpush.bf16.msrb.mxu3 %v6191_v0  ;;  %1745 = vmatpush.bf16.msrb.mxu1 %v5935_v7  ;;  %12655 = vst [vmem:[#allocation43_spill] sm:$0xff] %v9767_v26  ;;  %v5772_v35 = vld [vmem:[%s9622_s13 + $0x90] sm:$0xf0]  ;;  %v6159_v36 = vor.u32 %v7043_v31, %v6156_v33  ;;  %v6979_v38 = vld [vmem:[%s9622_s13 + $0x184] sm:$0xf] }
  0xe0   : > { %v5775_v37 = vor.u32 %v6947_v34, %v5772_v35  ;;  %v5900_v39 = vld [vmem:[%s9622_s13 + $0x190] sm:$0xf0]  ;;  %v6909_v42 = vld [vmem:[%s9608_s9 + $0x4c] sm:$0xf0]  ;;  %v6907_v43 = vld [vmem:[%s9608_s9 + $0x44] sm:$0xf] }
  0xe1   : > { %1697 = vmatpush.bf16.msrb.mxu0 %v5791_v15  ;;  %v5903_v40 = vor.u32 %v6979_v38, %v5900_v39  ;;  %v5612_v44 = vld [vmem:[%s9608_s9 + $0x50] sm:$0xf0]  ;;  %v5618_v45 = vld [vmem:[%s9608_s9 + $0x48] sm:$0xf]  ;;  %v6910_v46 = vld [vmem:[%s9608_s9 + $0x54] sm:$0xf0]  ;;  %v9793_v50 = vor.u32 %v6909_v42, %v5610_v41 }
  0xe2   : > { %1795 = vmatpush.bf16.msrb.mxu2 %v6047_v8  ;;  %v6908_v47 = vld [vmem:[%s9608_s9 + $0x4c] sm:$0xf]  ;;  %v5620_v48 = vld [vmem:[%s9608_s9 + $0x58] sm:$0xf0]  ;;  %v9795_v51 = vor.u32 %v6907_v43, %v5612_v44  ;;  %v9797_v52 = vor.u32 %v6910_v46, %v5618_v45  ;;  %v7007_v56 = vld [vmem:[%s9622_s13 + $0x264] sm:$0xf] }
  0xe3   : > { %1844 = vmatpush.bf16.msrb.mxu3 %v6175_v12  ;;  %1746 = vmatpush.bf16.msrb.mxu1 %v5919_v16  ;;  %12658 = vst [vmem:[#allocation46_spill] sm:$0xff] %v9793_v50  ;;  %v9799_v53 = vor.u32 %v6908_v47, %v5620_v48  ;;  %v6012_v57 = vld [vmem:[%s9622_s13 + $0x270] sm:$0xf0]  ;;  %v7039_v59 = vld [vmem:[%s9622_s13 + $0x364] sm:$0xf] }
  0xe4   : > { %12659 = vst [vmem:[#allocation47_spill] sm:$0xff] %v9795_v51  ;;  %v6015_v60 = vor.u32 %v7007_v56, %v6012_v57  ;;  %v6140_v61 = vld [vmem:[%s9622_s13 + $0x370] sm:$0xf0]  ;;  %v6943_v62 = vld [vmem:[%s9622_s13 + $0x64] sm:$0xf] }
  0xe5   : > { %1698 = vmatpush.bf16.msrb.mxu0 %v5775_v37  ;;  %12660 = vst [vmem:[#allocation48_spill] sm:$0xff] %v9797_v52  ;;  %v5756_v63 = vld [vmem:[%s9622_s13 + $0x70] sm:$0xf0]  ;;  %v6143_v0 = vor.u32 %v7039_v59, %v6140_v61  ;;  %v6975_v2 = vld [vmem:[%s9622_s13 + $0x164] sm:$0xf] }
  0xe6   : > { %1796 = vmatpush.bf16.msrb.mxu2 %v6031_v32  ;;  %12661 = vst [vmem:[#allocation49_spill] sm:$0xff] %v9799_v53  ;;  %v5759_v1 = vor.u32 %v6943_v62, %v5756_v63  ;;  %v5884_v3 = vld [vmem:[%s9622_s13 + $0x170] sm:$0xf0]  ;;  %v5626_v5 = vld [vmem:[%s9608_s9 + $0x60] sm:$0xf] }
  0xe7   : > { %1845 = vmatpush.bf16.msrb.mxu3 %v6159_v36  ;;  %1747 = vmatpush.bf16.msrb.mxu1 %v5903_v40  ;;  %v5887_v4 = vor.u32 %v6975_v2, %v5884_v3  ;;  %v6913_v6 = vld [vmem:[%s9608_s9 + $0x6c] sm:$0xf0]  ;;  %v6911_v7 = vld [vmem:[%s9608_s9 + $0x64] sm:$0xf]  ;;  %v5628_v8 = vld [vmem:[%s9608_s9 + $0x70] sm:$0xf0] }
  0xe8   : > { %1512 = vmatmul.bf16.gmra.mxu0 %v9765_v25  ;;  %1561 = vmatmul.bf16.gmra.mxu1 %v9767_v26  ;;  %v5634_v9 = vld [vmem:[%s9608_s9 + $0x68] sm:$0xf]  ;;  %v6914_v10 = vld [vmem:[%s9608_s9 + $0x74] sm:$0xf0]  ;;  %v6912_v11 = vld [vmem:[%s9608_s9 + $0x6c] sm:$0xf]  ;;  %v9821_v13 = vor.u32 %v6913_v6, %v5626_v5  ;;  %v9823_v14 = vor.u32 %v6911_v7, %v5628_v8 }
  0xe9   : > { %1610 = vmatmul.bf16.gmra.mxu2 %v9769_v27  ;;  %1699 = vmatpush.bf16.msrb.mxu0 %v5759_v1  ;;  %v5636_v12 = vld [vmem:[%s9608_s9 + $0x78] sm:$0xf0]  ;;  %v9825_v15 = vor.u32 %v6914_v10, %v5634_v9  ;;  %v7003_v17 = vld [vmem:[%s9622_s13 + $0x244] sm:$0xf]  ;;  %v5996_v18 = vld [vmem:[%s9622_s13 + $0x250] sm:$0xf0] }
  0xea   : > { %1659 = vmatmul.bf16.gmra.mxu3 %v9771_v28  ;;  %1797 = vmatpush.bf16.msrb.mxu2 %v6015_v60  ;;  %12662 = vst [vmem:[#allocation50_spill] sm:$0xff] %v9821_v13  ;;  %v9827_v16 = vor.u32 %v6912_v11, %v5636_v12  ;;  %v7035_v19 = vld [vmem:[%s9622_s13 + $0x344] sm:$0xf]  ;;  %v5999_v20 = vor.u32 %v7003_v17, %v5996_v18  ;;  %v6124_v21 = vld [vmem:[%s9622_s13 + $0x350] sm:$0xf0] }
  0xeb   : > { %1846 = vmatpush.bf16.msrb.mxu3 %v6143_v0  ;;  %1748 = vmatpush.bf16.msrb.mxu1 %v5887_v4  ;;  %12663 = vst [vmem:[#allocation51_spill] sm:$0xff] %v9823_v14  ;;  %v6939_v22 = vld [vmem:[%s9622_s13 + $0x44] sm:$0xf]  ;;  %v5740_v23 = vld [vmem:[%s9622_s13 + $0x50] sm:$0xf0]  ;;  %v6127_v24 = vor.u32 %v7035_v19, %v6124_v21 }
  0xec   : > { %12664 = vst [vmem:[#allocation52_spill] sm:$0xff] %v9825_v15  ;;  %v5743_v29 = vor.u32 %v6939_v22, %v5740_v23  ;;  %v6971_v30 = vld [vmem:[%s9622_s13 + $0x144] sm:$0xf]  ;;  %v5868_v31 = vld [vmem:[%s9622_s13 + $0x150] sm:$0xf0] }
  0xed   : > { %12665 = vst [vmem:[#allocation53_spill] sm:$0xff] %v9827_v16  ;;  %v5871_v32 = vor.u32 %v6971_v30, %v5868_v31  ;;  %v5642_v33 = vld [vmem:[%s9608_s9 + $0x80] sm:$0xf]  ;;  %v6917_v34 = vld [vmem:[%s9608_s9 + $0x8c] sm:$0xf0] }
  0xee   : > { %1798 = vmatpush.bf16.msrb.mxu2 %v5999_v20  ;;  %1700 = vmatpush.bf16.msrb.mxu0 %v5743_v29  ;;  %v6915_v35 = vld [vmem:[%s9608_s9 + $0x84] sm:$0xf]  ;;  %v5644_v36 = vld [vmem:[%s9608_s9 + $0x90] sm:$0xf0]  ;;  %v5650_v37 = vld [vmem:[%s9608_s9 + $0x88] sm:$0xf]  ;;  %v9849_v41 = vor.u32 %v6917_v34, %v5642_v33 }
  0xef   : > { %1847 = vmatpush.bf16.msrb.mxu3 %v6127_v24  ;;  %1749 = vmatpush.bf16.msrb.mxu1 %v5871_v32  ;;  %v6918_v38 = vld [vmem:[%s9608_s9 + $0x94] sm:$0xf0]  ;;  %v6916_v39 = vld [vmem:[%s9608_s9 + $0x8c] sm:$0xf]  ;;  %v5652_v40 = vld [vmem:[%s9608_s9 + $0x98] sm:$0xf0]  ;;  %v9851_v42 = vor.u32 %v6915_v35, %v5644_v36 }
  0xf0   : > { %v9853_v43 = vor.u32 %v6918_v38, %v5650_v37  ;;  %v9855_v44 = vor.u32 %v6916_v39, %v5652_v40  ;;  %v6999_v45 = vld [vmem:[%s9622_s13 + $0x224] sm:$0xf]  ;;  %v5980_v46 = vld [vmem:[%s9622_s13 + $0x230] sm:$0xf0]  ;;  %v5658_v1 = vld [vmem:[%s9608_s9 + $0xa0] sm:$0xf] }
  0xf1   : > { %12666 = vst [vmem:[#allocation54_spill] sm:$0xff] %v9851_v42  ;;  %v7031_v47 = vld [vmem:[%s9622_s13 + $0x324] sm:$0xf]  ;;  %v5983_v48 = vor.u32 %v6999_v45, %v5980_v46  ;;  %v6108_v56 = vld [vmem:[%s9622_s13 + $0x330] sm:$0xf0] }
  0xf2   : > { %12667 = vst [vmem:[#allocation55_spill] sm:$0xff] %v9853_v43  ;;  %v6935_v57 = vld [vmem:[%s9622_s13 + $0x24] sm:$0xf]  ;;  %v5724_v59 = vld [vmem:[%s9622_s13 + $0x30] sm:$0xf0]  ;;  %v6111_v60 = vor.u32 %v7031_v47, %v6108_v56 }
  0xf3   : > { %12668 = vst [vmem:[#allocation56_spill] sm:$0xff] %v9855_v44  ;;  %v5727_v61 = vor.u32 %v6935_v57, %v5724_v59  ;;  %v6967_v62 = vld [vmem:[%s9622_s13 + $0x124] sm:$0xf]  ;;  %v5852_v63 = vld [vmem:[%s9622_s13 + $0x130] sm:$0xf0]  ;;  %1799 = vmatpush.bf16.msrb.mxu2 %v5983_v48 }
  0xf4   : > { %v5855_v0 = vor.u32 %v6967_v62, %v5852_v63  ;;  %1848 = vmatpush.bf16.msrb.mxu3 %v6111_v60  ;;  %v6921_v2 = vld [vmem:[%s9608_s9 + $0xac] sm:$0xf0]  ;;  %v6919_v3 = vld [vmem:[%s9608_s9 + $0xa4] sm:$0xf]  ;;  %v5660_v4 = vld [vmem:[%s9608_s9 + $0xb0] sm:$0xf0] }
  0xf5   : > { %1701 = vmatpush.bf16.msrb.mxu0 %v5727_v61  ;;  %v5666_v5 = vld [vmem:[%s9608_s9 + $0xa8] sm:$0xf]  ;;  %v6922_v6 = vld [vmem:[%s9608_s9 + $0xb4] sm:$0xf0]  ;;  %v6920_v7 = vld [vmem:[%s9608_s9 + $0xac] sm:$0xf]  ;;  %v9877_v9 = vor.u32 %v6921_v2, %v5658_v1  ;;  %v9879_v10 = vor.u32 %v6919_v3, %v5660_v4 }
  0xf6   : > { %1750 = vmatpush.bf16.msrb.mxu1 %v5855_v0  ;;  %v5668_v8 = vld [vmem:[%s9608_s9 + $0xb8] sm:$0xf0]  ;;  %v9881_v11 = vor.u32 %v6922_v6, %v5666_v5  ;;  %v6995_v17 = vld [vmem:[%s9622_s13 + $0x204] sm:$0xf]  ;;  %v5964_v18 = vld [vmem:[%s9622_s13 + $0x210] sm:$0xf0] }
  0xf7   : > { %12669 = vst [vmem:[#allocation57_spill] sm:$0xff] %v9877_v9  ;;  %v9883_v12 = vor.u32 %v6920_v7, %v5668_v8  ;;  %v7027_v19 = vld [vmem:[%s9622_s13 + $0x304] sm:$0xf]  ;;  %v5967_v20 = vor.u32 %v6995_v17, %v5964_v18  ;;  %v6092_v21 = vld [vmem:[%s9622_s13 + $0x310] sm:$0xf0] }
  0xf8   : > { %1517 = vmatmul.bf16.gmra.mxu0 %v9793_v50  ;;  %1566 = vmatmul.bf16.gmra.mxu1 %v9795_v51  ;;  %12670 = vst [vmem:[#allocation58_spill] sm:$0xff] %v9879_v10  ;;  %v6931_v22 = vld [vmem:[%s9622_s13 + $0x4] sm:$0xf]  ;;  %v5708_v23 = vld [vmem:[%s9622_s13 + $0x10] sm:$0xf0]  ;;  %v6095_v24 = vor.u32 %v7027_v19, %v6092_v21 }
  0xf9   : > { %1615 = vmatmul.bf16.gmra.mxu2 %v9797_v52  ;;  %12671 = vst [vmem:[#allocation59_spill] sm:$0xff] %v9881_v11  ;;  %v5711_v29 = vor.u32 %v6931_v22, %v5708_v23  ;;  %v6963_v30 = vld [vmem:[%s9622_s13 + $0x104] sm:$0xf]  ;;  %v5836_v31 = vld [vmem:[%s9622_s13 + $0x110] sm:$0xf0] }
  0xfa   : > { %1664 = vmatmul.bf16.gmra.mxu3 %v9799_v53  ;;  %12672 = vst [vmem:[#allocation60_spill] sm:$0xff] %v9883_v12  ;;  %1800 = vmatpush.bf16.msrb.mxu2 %v5967_v20  ;;  %v5839_v32 = vor.u32 %v6963_v30, %v5836_v31  ;;  %v5674_v33 = vld [vmem:[%s9608_s9 + $0xc0] sm:$0xf]  ;;  %v6925_v34 = vld [vmem:[%s9608_s9 + $0xcc] sm:$0xf0] }
  0xfb   : > { %1849 = vmatpush.bf16.msrb.mxu3 %v6095_v24  ;;  %1702 = vmatpush.bf16.msrb.mxu0 %v5711_v29  ;;  %v6923_v35 = vld [vmem:[%s9608_s9 + $0xc4] sm:$0xf]  ;;  %v5676_v36 = vld [vmem:[%s9608_s9 + $0xd0] sm:$0xf0]  ;;  %v5682_v37 = vld [vmem:[%s9608_s9 + $0xc8] sm:$0xf]  ;;  %v9905_v45 = vor.u32 %v6925_v34, %v5674_v33 }
  0xfc   : > { %1751 = vmatpush.bf16.msrb.mxu1 %v5839_v32  ;;  %v6926_v38 = vld [vmem:[%s9608_s9 + $0xd4] sm:$0xf0]  ;;  %v6924_v39 = vld [vmem:[%s9608_s9 + $0xcc] sm:$0xf]  ;;  %v5684_v40 = vld [vmem:[%s9608_s9 + $0xd8] sm:$0xf0]  ;;  %v9907_v46 = vor.u32 %v6923_v35, %v5676_v36 }
  0xfd   : > { %v9909_v47 = vor.u32 %v6926_v38, %v5682_v37  ;;  %v9911_v48 = vor.u32 %v6924_v39, %v5684_v40  ;;  %v6082_v56 = vld [vmem:[%s9622_s13 + $0x2e8] sm:$0xf]  ;;  %v7026_v57 = vld [vmem:[%s9622_s13 + $0x2f4] sm:$0xf0]  ;;  %v5690_v63 = vld [vmem:[%s9608_s9 + $0xe0] sm:$0xf] }
  0xfe   : > { %12673 = vst [vmem:[#allocation61_spill] sm:$0xff] %v9907_v46  ;;  %v6210_v59 = vld [vmem:[%s9622_s13 + $0x3e8] sm:$0xf]  ;;  %v6083_v60 = vor.u32 %v7026_v57, %v6082_v56  ;;  %v7058_v61 = vld [vmem:[%s9622_s13 + $0x3f4] sm:$0xf0] }
  0xff   : > { %12674 = vst [vmem:[#allocation62_spill] sm:$0xff] %v9909_v47  ;;  %v6211_v62 = vor.u32 %v7058_v61, %v6210_v59  ;;  %v6929_v0 = vld [vmem:[%s9608_s9 + $0xec] sm:$0xf0]  ;;  %v6927_v1 = vld [vmem:[%s9608_s9 + $0xe4] sm:$0xf] }
 0x100   : > { %12675 = vst [vmem:[#allocation63_spill] sm:$0xff] %v9911_v48  ;;  %1989 = vmatpush.bf16.msra.mxu2 %v6083_v60  ;;  %v5692_v2 = vld [vmem:[%s9608_s9 + $0xf0] sm:$0xf0]  ;;  %v5826_v3 = vld [vmem:[%s9622_s13 + $0xe8] sm:$0xf]  ;;  %v9933_v21 = vor.u32 %v6929_v0, %v5690_v63 }
 0x101   : > { %2038 = vmatpush.bf16.msra.mxu3 %v6211_v62  ;;  %v6962_v4 = vld [vmem:[%s9622_s13 + $0xf4] sm:$0xf0]  ;;  %v5954_v5 = vld [vmem:[%s9622_s13 + $0x1e8] sm:$0xf]  ;;  %v6928_v18 = vld [vmem:[%s9608_s9 + $0xec] sm:$0xf]  ;;  %v9935_v22 = vor.u32 %v6927_v1, %v5692_v2 }
 0x102   : > { %v5698_v6 = vld [vmem:[%s9608_s9 + $0xe8] sm:$0xf]  ;;  %v6930_v7 = vld [vmem:[%s9608_s9 + $0xf4] sm:$0xf0]  ;;  %v5827_v8 = vor.u32 %v6962_v4, %v5826_v3  ;;  %v5700_v19 = vld [vmem:[%s9608_s9 + $0xf8] sm:$0xf0] }
 0x103   : > { %v6994_v17 = vld [vmem:[%s9622_s13 + $0x1f4] sm:$0xf0]  ;;  %v9937_v23 = vor.u32 %v6930_v7, %v5698_v6  ;;  %v9939_v24 = vor.u32 %v6928_v18, %v5700_v19  ;;  %v6066_v29 = vld [vmem:[%s9622_s13 + $0x2c8] sm:$0xf] }
 0x104   : > { %v5955_v20 = vor.u32 %v6994_v17, %v5954_v5  ;;  %1891 = vmatpush.bf16.msra.mxu0 %v5827_v8  ;;  %v7022_v30 = vld [vmem:[%s9622_s13 + $0x2d4] sm:$0xf0]  ;;  %v6194_v31 = vld [vmem:[%s9622_s13 + $0x3c8] sm:$0xf] }
 0x105   : > { %v6067_v32 = vor.u32 %v7022_v30, %v6066_v29  ;;  %v7054_v33 = vld [vmem:[%s9622_s13 + $0x3d4] sm:$0xf0]  ;;  %v5810_v35 = vld [vmem:[%s9622_s13 + $0xc8] sm:$0xf] }
 0x106   : > { %1940 = vmatpush.bf16.msra.mxu1 %v5955_v20  ;;  %v6195_v34 = vor.u32 %v7054_v33, %v6194_v31  ;;  %v6958_v36 = vld [vmem:[%s9622_s13 + $0xd4] sm:$0xf0]  ;;  %v5938_v37 = vld [vmem:[%s9622_s13 + $0x1c8] sm:$0xf] }
 0x107   : > { %1990 = vmatpush.bf16.msra.mxu2 %v6067_v32  ;;  %v5811_v38 = vor.u32 %v6958_v36, %v5810_v35  ;;  %v6990_v39 = vld [vmem:[%s9622_s13 + $0x1d4] sm:$0xf0]  ;;  %v6050_v60 = vld [vmem:[%s9622_s13 + $0x2a8] sm:$0xf] }
 0x108   : > { %1522 = vmatmul.bf16.gmra.mxu0 %v9821_v13  ;;  %1571 = vmatmul.bf16.gmra.mxu1 %v9823_v14  ;;  %v5939_v40 = vor.u32 %v6990_v39, %v5938_v37  ;;  %v7018_v61 = vld [vmem:[%s9622_s13 + $0x2b4] sm:$0xf0]  ;;  %v6178_v62 = vld [vmem:[%s9622_s13 + $0x3a8] sm:$0xf] }
 0x109   : > { %1620 = vmatmul.bf16.gmra.mxu2 %v9825_v15  ;;  %2039 = vmatpush.bf16.msra.mxu3 %v6195_v34  ;;  %v6051_v63 = vor.u32 %v7018_v61, %v6050_v60  ;;  %v7050_v0 = vld [vmem:[%s9622_s13 + $0x3b4] sm:$0xf0]  ;;  %v5794_v8 = vld [vmem:[%s9622_s13 + $0xa8] sm:$0xf] }
 0x10a   : > { %1669 = vmatmul.bf16.gmra.mxu3 %v9827_v16  ;;  %1892 = vmatpush.bf16.msra.mxu0 %v5811_v38  ;;  %v6179_v2 = vor.u32 %v7050_v0, %v6178_v62  ;;  %v6954_v17 = vld [vmem:[%s9622_s13 + $0xb4] sm:$0xf0]  ;;  %v5922_v18 = vld [vmem:[%s9622_s13 + $0x1a8] sm:$0xf] }
 0x10b   : > { %1941 = vmatpush.bf16.msra.mxu1 %v5939_v40  ;;  %1991 = vmatpush.bf16.msra.mxu2 %v6051_v63  ;;  %v5795_v19 = vor.u32 %v6954_v17, %v5794_v8  ;;  %v6986_v20 = vld [vmem:[%s9622_s13 + $0x1b4] sm:$0xf0]  ;;  %v6034_v38 = vld [vmem:[%s9622_s13 + $0x288] sm:$0xf] }
 0x10c   : > { %v5923_v30 = vor.u32 %v6986_v20, %v5922_v18  ;;  %v7014_v39 = vld [vmem:[%s9622_s13 + $0x294] sm:$0xf0]  ;;  %v6162_v40 = vld [vmem:[%s9622_s13 + $0x388] sm:$0xf] }
 0x10d   : > { %2040 = vmatpush.bf16.msra.mxu3 %v6179_v2  ;;  %v5778_v2 = vld [vmem:[%s9622_s13 + $0x88] sm:$0xf] }
 0x10e   : > { %1893 = vmatpush.bf16.msra.mxu0 %v5795_v19 }
 0x10f   : > { %1942 = vmatpush.bf16.msra.mxu1 %v5923_v30 }
 0x118   : > { %1527 = vmatmul.bf16.gmra.mxu0 %v9849_v41  ;;  %1576 = vmatmul.bf16.gmra.mxu1 %v9851_v42 }
 0x119   : > { %1625 = vmatmul.bf16.gmra.mxu2 %v9853_v43 }
 0x11a   : > { %1674 = vmatmul.bf16.gmra.mxu3 %v9855_v44 }
 0x128   : > { %1532 = vmatmul.bf16.gmra.mxu0 %v9877_v9  ;;  %1581 = vmatmul.bf16.gmra.mxu1 %v9879_v10 }
 0x129   : > { %1630 = vmatmul.bf16.gmra.mxu2 %v9881_v11 }
 0x12a   : > { %1679 = vmatmul.bf16.gmra.mxu3 %v9883_v12 }
 0x138   : > { %1537 = vmatmul.bf16.gmra.mxu0 %v9905_v45  ;;  %1586 = vmatmul.bf16.gmra.mxu1 %v9907_v46 }
 0x139   : > { %1635 = vmatmul.bf16.gmra.mxu2 %v9909_v47 }
 0x13a   : > { %1684 = vmatmul.bf16.gmra.mxu3 %v9911_v48 }
 0x148   : > { %1542 = vmatmul.bf16.gmra.mxu0 %v9933_v21  ;;  %1591 = vmatmul.bf16.gmra.mxu1 %v9935_v22 }
 0x149   : > { %1640 = vmatmul.bf16.gmra.mxu2 %v9937_v23 }
 0x14a   : > { %1689 = vmatmul.bf16.gmra.mxu3 %v9939_v24 }
 0x155   : > { %v1508_v56 = vpop.f32.mrf.mxu0  ;;  %v1557_v57 = vpop.f32.mrf.mxu1 }
 0x156   : > { %v1558_v59 = vadd.f32 %v1557_v57, %v1508_v56  ;;  %v6035_v56 = vor.u32 %v7014_v39, %v6034_v38  ;;  %v7046_v57 = vld [vmem:[%s9622_s13 + $0x394] sm:$0xf0] }
 0x157   : > { %v6163_v60 = vor.u32 %v7046_v57, %v6162_v40  ;;  %v7042_v38 = vld [vmem:[%s9622_s13 + $0x374] sm:$0xf0] }
 0x158   : > { %1703 = vmatmul.bf16.vlgmr.msrb.gmra.mxu0 %v9728_v49  ;;  %1752 = vmatmul.bf16.vlgmr.msrb.gmra.mxu1 %v9733_v54 }
 0x159   : > { %1801 = vmatmul.bf16.vlgmr.msrb.gmra.mxu2 %v9735_v55  ;;  %2041 = vmatpush.bf16.msra.mxu3 %v6163_v60 }
 0x15a   : > { %1850 = vmatmul.bf16.vlgmr.msrb.gmra.mxu3 %v9739_v58  ;;  %1992 = vmatpush.bf16.msra.mxu2 %v6035_v56 }
 0x15c   : > { %v1606_v1 = vpop.f32.mrf.mxu2 }
 0x15d   : > { %v1607_v3 = vadd.f32 %v1606_v1, %v1558_v59  ;;  %v1655_v4 = vpop.f32.mrf.mxu3  ;;  %v1510_v5 = vpop.f32.mrf.mxu0 }
 0x15e   : > { %v1559_v6 = vpop.f32.mrf.mxu1 }
 0x15f   : > { %v9961_v7 = vadd.f32 %v1655_v4, %v1607_v3  ;;  %v1560_v29 = vadd.f32 %v1559_v6, %v1510_v5  ;;  %v6950_v3 = vld [vmem:[%s9622_s13 + $0x94] sm:$0xf0]  ;;  %v5906_v4 = vld [vmem:[%s9622_s13 + $0x188] sm:$0xf] }
 0x160   : > { %v5779_v5 = vor.u32 %v6950_v3, %v5778_v2  ;;  %v6982_v6 = vld [vmem:[%s9622_s13 + $0x194] sm:$0xf0] }
 0x161   : > { %2363 = vrot.lane.b32.xlu0 %v9961_v7, %s9312_s0  ;;  %v5907_v17 = vor.u32 %v6982_v6, %v5906_v4  ;;  %v6978_v3 = vld [vmem:[%s9622_s13 + $0x174] sm:$0xf0] }
 0x162   : > { %1894 = vmatpush.bf16.msra.mxu0 %v5779_v5 }
 0x163   : > { %1943 = vmatpush.bf16.msra.mxu1 %v5907_v17 }
 0x164   : > { %v1608_v31 = vpop.f32.mrf.mxu2 }
 0x165   : > { %v1609_v32 = vadd.f32 %v1608_v31, %v1560_v29  ;;  %v1657_v33 = vpop.f32.mrf.mxu3  ;;  %v1513_v34 = vpop.f32.mrf.mxu0 }
 0x166   : > { %v1562_v35 = vpop.f32.mrf.mxu1 }
 0x167   : > { %v9969_v36 = vadd.f32 %v1657_v33, %v1609_v32  ;;  %v1563_v37 = vadd.f32 %v1562_v35, %v1513_v34  ;;  %v6018_v33 = vld [vmem:[%s9622_s13 + $0x268] sm:$0xf]  ;;  %v7010_v34 = vld [vmem:[%s9622_s13 + $0x274] sm:$0xf0] }
 0x168   : > { %1708 = vmatmul.bf16.gmra.mxu0 %v9765_v25  ;;  %1757 = vmatmul.bf16.gmra.mxu1 %v9767_v26  ;;  %v6146_v35 = vld [vmem:[%s9622_s13 + $0x368] sm:$0xf] }
 0x169   : > { %1806 = vmatmul.bf16.gmra.mxu2 %v9769_v27  ;;  %2365 = vrot.lane.b32.xlu0 %v9969_v36, %s9312_s0  ;;  %v6147_v40 = vor.u32 %v7042_v38, %v6146_v35  ;;  %v7038_v35 = vld [vmem:[%s9622_s13 + $0x354] sm:$0xf0] }
 0x16a   : > { %1855 = vmatmul.bf16.gmra.mxu3 %v9771_v28 }
 0x16b   : > { %2042 = vmatpush.bf16.msra.mxu3 %v6147_v40 }
 0x16c   : > { %v1611_v59 = vpop.f32.mrf.mxu2 }
 0x16d   : > { %v1612_v61 = vadd.f32 %v1611_v59, %v1563_v37  ;;  %v1660_v62 = vpop.f32.mrf.mxu3  ;;  %v1515_v63 = vpop.f32.mrf.mxu0  ;;  %v6019_v37 = vor.u32 %v7010_v34, %v6018_v33  ;;  %v6130_v33 = vld [vmem:[%s9622_s13 + $0x348] sm:$0xf] }
 0x16e   : > { %v1564_v0 = vpop.f32.mrf.mxu1  ;;  %v6131_v38 = vor.u32 %v7038_v35, %v6130_v33  ;;  %v6114_v33 = vld [vmem:[%s9622_s13 + $0x328] sm:$0xf]  ;;  %v7034_v35 = vld [vmem:[%s9622_s13 + $0x334] sm:$0xf0] }
 0x16f   : > { %v9981_v1 = vadd.f32 %v1660_v62, %v1612_v61  ;;  %v1565_v8 = vadd.f32 %v1564_v0, %v1515_v63  ;;  %1993 = vmatpush.bf16.msra.mxu2 %v6019_v37  ;;  %v5762_v62 = vld [vmem:[%s9622_s13 + $0x68] sm:$0xf]  ;;  %v6946_v63 = vld [vmem:[%s9622_s13 + $0x74] sm:$0xf0] }
 0x170   : > { %v5890_v0 = vld [vmem:[%s9622_s13 + $0x168] sm:$0xf]  ;;  %v5763_v2 = vor.u32 %v6946_v63, %v5762_v62  ;;  %2043 = vmatpush.bf16.msra.mxu3 %v6131_v38  ;;  %v6942_v62 = vld [vmem:[%s9622_s13 + $0x54] sm:$0xf0]  ;;  %v6115_v38 = vor.u32 %v7034_v35, %v6114_v33 }
 0x171   : > { %12676 = vst [vmem:[#allocation64_spill] sm:$0xff] %v9981_v1  ;;  %2367 = vrot.lane.b32.xlu1 %v9981_v1, %s9312_s0  ;;  %v5891_v5 = vor.u32 %v6978_v3, %v5890_v0  ;;  %v5874_v63 = vld [vmem:[%s9622_s13 + $0x148] sm:$0xf] }
 0x172   : > { %1895 = vmatpush.bf16.msra.mxu0 %v5763_v2  ;;  %v6974_v2 = vld [vmem:[%s9622_s13 + $0x154] sm:$0xf0]  ;;  %v5970_v33 = vld [vmem:[%s9622_s13 + $0x208] sm:$0xf] }
 0x173   : > { %1944 = vmatpush.bf16.msra.mxu1 %v5891_v5  ;;  %v6098_v35 = vld [vmem:[%s9622_s13 + $0x308] sm:$0xf] }
 0x174   : > { %v1613_v18 = vpop.f32.mrf.mxu2  ;;  %2044 = vmatpush.bf16.msra.mxu3 %v6115_v38  ;;  %v7030_v38 = vld [vmem:[%s9622_s13 + $0x314] sm:$0xf0] }
 0x175   : > { %v1614_v19 = vadd.f32 %v1613_v18, %v1565_v8  ;;  %v1662_v20 = vpop.f32.mrf.mxu3  ;;  %v1518_v29 = vpop.f32.mrf.mxu0 }
 0x176   : > { %v1567_v30 = vpop.f32.mrf.mxu1 }
 0x177   : > { %v9989_v31 = vadd.f32 %v1662_v20, %v1614_v19  ;;  %v1568_v32 = vadd.f32 %v1567_v30, %v1518_v29  ;;  %v6002_v30 = vld [vmem:[%s9622_s13 + $0x248] sm:$0xf] }
 0x178   : > { %1713 = vmatmul.bf16.gmra.mxu0 %v9793_v50  ;;  %1762 = vmatmul.bf16.gmra.mxu1 %v9795_v51 }
 0x179   : > { %12677 = vst [vmem:[#allocation65_spill] sm:$0xff] %v9989_v31  ;;  %1811 = vmatmul.bf16.gmra.mxu2 %v9797_v52  ;;  %2369 = vrot.lane.b32.xlu1 %v9989_v31, %s9312_s0 }
 0x17a   : > { %1860 = vmatmul.bf16.gmra.mxu3 %v9799_v53 }
 0x17c   : > { %v1616_v39 = vpop.f32.mrf.mxu2 }
 0x17d   : > { %v1617_v56 = vadd.f32 %v1616_v39, %v1568_v32  ;;  %v1665_v57 = vpop.f32.mrf.mxu3  ;;  %v1520_v59 = vpop.f32.mrf.mxu0  ;;  %v7006_v32 = vld [vmem:[%s9622_s13 + $0x254] sm:$0xf0] }
 0x17e   : > { %v1569_v60 = vpop.f32.mrf.mxu1  ;;  %v6003_v34 = vor.u32 %v7006_v32, %v6002_v30  ;;  %v5986_v30 = vld [vmem:[%s9622_s13 + $0x228] sm:$0xf]  ;;  %v7002_v32 = vld [vmem:[%s9622_s13 + $0x234] sm:$0xf0] }
 0x17f   : > { %v10001_v61 = vadd.f32 %v1665_v57, %v1617_v56  ;;  %v1570_v4 = vadd.f32 %v1569_v60, %v1520_v59  ;;  %v5746_v60 = vld [vmem:[%s9622_s13 + $0x48] sm:$0xf] }
 0x180   : > { %1994 = vmatpush.bf16.msra.mxu2 %v6003_v34  ;;  %v5747_v0 = vor.u32 %v6942_v62, %v5746_v60  ;;  %v5987_v34 = vor.u32 %v7002_v32, %v5986_v30  ;;  %v5730_v62 = vld [vmem:[%s9622_s13 + $0x28] sm:$0xf] }
 0x181   : > { %2371 = vrot.lane.b32.xlu2 %v10001_v61, %s9312_s0 }
 0x182   : > { %1896 = vmatpush.bf16.msra.mxu0 %v5747_v0  ;;  %v5858_v0 = vld [vmem:[%s9622_s13 + $0x128] sm:$0xf] }
 0x184   : > { %v1618_v6 = vpop.f32.mrf.mxu2  ;;  %1995 = vmatpush.bf16.msra.mxu2 %v5987_v34  ;;  %v6998_v34 = vld [vmem:[%s9622_s13 + $0x214] sm:$0xf0] }
 0x185   : > { %v1619_v8 = vadd.f32 %v1618_v6, %v1570_v4  ;;  %v1667_v17 = vpop.f32.mrf.mxu3  ;;  %v1523_v18 = vpop.f32.mrf.mxu0  ;;  %v5875_v4 = vor.u32 %v6974_v2, %v5874_v63  ;;  %v6938_v63 = vld [vmem:[%s9622_s13 + $0x34] sm:$0xf0] }
 0x186   : > { %v1572_v19 = vpop.f32.mrf.mxu1  ;;  %v5731_v2 = vor.u32 %v6938_v63, %v5730_v62 }
 0x187   : > { %v10009_v20 = vadd.f32 %v1667_v17, %v1619_v8  ;;  %v1573_v29 = vadd.f32 %v1572_v19, %v1523_v18  ;;  %1945 = vmatpush.bf16.msra.mxu1 %v5875_v4 }
 0x188   : > { %1718 = vmatmul.bf16.gmra.mxu0 %v9821_v13  ;;  %1767 = vmatmul.bf16.gmra.mxu1 %v9823_v14 }
 0x189   : > { %1816 = vmatmul.bf16.gmra.mxu2 %v9825_v15  ;;  %2373 = vrot.lane.b32.xlu2 %v10009_v20, %s9312_s0 }
 0x18a   : > { %1865 = vmatmul.bf16.gmra.mxu3 %v9827_v16  ;;  %1897 = vmatpush.bf16.msra.mxu0 %v5731_v2  ;;  %v5714_v2 = vld [vmem:[%s9622_s13 + $0x8] sm:$0xf] }
 0x18c   : > { %v1621_v37 = vpop.f32.mrf.mxu2 }
 0x18d   : > { %v1622_v39 = vadd.f32 %v1621_v37, %v1573_v29  ;;  %v1670_v40 = vpop.f32.mrf.mxu3  ;;  %v1525_v56 = vpop.f32.mrf.mxu0 }
 0x18e   : > { %v1574_v57 = vpop.f32.mrf.mxu1 }
 0x18f   : > { %v10021_v59 = vadd.f32 %v1670_v40, %v1622_v39  ;;  %v1575_v3 = vadd.f32 %v1574_v57, %v1525_v56 }
 0x191   : > { %2375 = vrot.lane.b32.xlu0 %v10021_v59, %s9312_s0 }
 0x194   : > { %v1623_v5 = vpop.f32.mrf.mxu2 }
 0x195   : > { %v1624_v6 = vadd.f32 %v1623_v5, %v1575_v3  ;;  %v1672_v8 = vpop.f32.mrf.mxu3  ;;  %v1528_v17 = vpop.f32.mrf.mxu0  ;;  %v6970_v3 = vld [vmem:[%s9622_s13 + $0x134] sm:$0xf0] }
 0x196   : > { %v1577_v18 = vpop.f32.mrf.mxu1  ;;  %v5859_v5 = vor.u32 %v6970_v3, %v5858_v0  ;;  %v6934_v3 = vld [vmem:[%s9622_s13 + $0x14] sm:$0xf0] }
 0x197   : > { %v10029_v19 = vadd.f32 %v1672_v8, %v1624_v6  ;;  %v1578_v29 = vadd.f32 %v1577_v18, %v1528_v17 }
 0x198   : > { %1723 = vmatmul.bf16.gmra.mxu0 %v9849_v41  ;;  %1772 = vmatmul.bf16.gmra.mxu1 %v9851_v42 }
 0x199   : > { %12678 = vst [vmem:[#allocation66_spill] sm:$0xff] %v10029_v19  ;;  %1821 = vmatmul.bf16.gmra.mxu2 %v9853_v43  ;;  %2377 = vrot.lane.b32.xlu1 %v10029_v19, %s9312_s0  ;;  %v5924_v19 = vld [vmem:[%s9622_s13 + $0x1b8] sm:$0xf0] }
 0x19a   : > { %1870 = vmatmul.bf16.gmra.mxu3 %v9855_v44  ;;  %1946 = vmatpush.bf16.msra.mxu1 %v5859_v5  ;;  %v5715_v5 = vor.u32 %v6934_v3, %v5714_v2 }
 0x19c   : > { %v1626_v37 = vpop.f32.mrf.mxu2  ;;  %1898 = vmatpush.bf16.msra.mxu0 %v5715_v5 }
 0x19d   : > { %v1627_v39 = vadd.f32 %v1626_v37, %v1578_v29  ;;  %v1675_v40 = vpop.f32.mrf.mxu3  ;;  %v1530_v56 = vpop.f32.mrf.mxu0  ;;  %v5971_v37 = vor.u32 %v6998_v34, %v5970_v33 }
 0x19e   : > { %v1579_v57 = vpop.f32.mrf.mxu1 }
 0x19f   : > { %v10041_v60 = vadd.f32 %v1675_v40, %v1627_v39  ;;  %v1580_v4 = vadd.f32 %v1579_v57, %v1530_v56  ;;  %v6099_v40 = vor.u32 %v7030_v38, %v6098_v35  ;;  %1996 = vmatpush.bf16.msra.mxu2 %v5971_v37  ;;  %v7024_v38 = vld [vmem:[%s9622_s13 + $0x2ec] sm:$0xf] }
 0x1a1   : > { %2379 = vrot.lane.b32.xlu2 %v10041_v60, %s9312_s0  ;;  %2045 = vmatpush.bf16.msra.mxu3 %v6099_v40  ;;  %v7056_v40 = vld [vmem:[%s9622_s13 + $0x3ec] sm:$0xf] }
 0x1a4   : > { %v1628_v6 = vpop.f32.mrf.mxu2 }
 0x1a5   : > { %v1629_v8 = vadd.f32 %v1628_v6, %v1580_v4  ;;  %v1677_v17 = vpop.f32.mrf.mxu3  ;;  %v1533_v18 = vpop.f32.mrf.mxu0  ;;  %v5842_v4 = vld [vmem:[%s9622_s13 + $0x108] sm:$0xf]  ;;  %v6966_v6 = vld [vmem:[%s9622_s13 + $0x114] sm:$0xf0] }
 0x1a6   : > { %v1582_v29 = vpop.f32.mrf.mxu1 }
 0x1a7   : > { %v10049_v30 = vadd.f32 %v1677_v17, %v1629_v8  ;;  %v1583_v32 = vadd.f32 %v1582_v29, %v1533_v18  ;;  %v5843_v17 = vor.u32 %v6966_v6, %v5842_v4 }
 0x1a8   : > { %1728 = vmatmul.bf16.gmra.mxu0 %v9877_v9  ;;  %1777 = vmatmul.bf16.gmra.mxu1 %v9879_v10 }
 0x1a9   : > { %1826 = vmatmul.bf16.gmra.mxu2 %v9881_v11  ;;  %2381 = vrot.lane.b32.xlu0 %v10049_v30, %s9312_s0 }
 0x1aa   : > { %1875 = vmatmul.bf16.gmra.mxu3 %v9883_v12  ;;  %1947 = vmatpush.bf16.msra.mxu1 %v5843_v17  ;;  %v6960_v17 = vld [vmem:[%s9622_s13 + $0xec] sm:$0xf] }
 0x1ac   : > { %v1631_v39 = vpop.f32.mrf.mxu2 }
 0x1ad   : > { %v1632_v56 = vadd.f32 %v1631_v39, %v1583_v32  ;;  %v1680_v57 = vpop.f32.mrf.mxu3  ;;  %v1535_v62 = vpop.f32.mrf.mxu0  ;;  %v6084_v39 = vld [vmem:[%s9622_s13 + $0x2f8] sm:$0xf0] }
 0x1ae   : > { %v1584_v63 = vpop.f32.mrf.mxu1 }
 0x1af   : > { %v10061_v0 = vadd.f32 %v1680_v57, %v1632_v56  ;;  %v1585_v8 = vadd.f32 %v1584_v63, %v1535_v62  ;;  %v6087_v56 = vor.u32 %v7024_v38, %v6084_v39  ;;  %v6212_v57 = vld [vmem:[%s9622_s13 + $0x3f8] sm:$0xf0] }
 0x1b0   : > { %v6215_v63 = vor.u32 %v7056_v40, %v6212_v57 }
 0x1b1   : > { %2383 = vrot.lane.b32.xlu1 %v10061_v0, %s9312_s0  ;;  %2185 = vmatpush.bf16.msrb.mxu2 %v6087_v56 }
 0x1b2   : > { %2234 = vmatpush.bf16.msrb.mxu3 %v6215_v63  ;;  %v7020_v63 = vld [vmem:[%s9622_s13 + $0x2cc] sm:$0xf] }
 0x1b4   : > { %v1633_v18 = vpop.f32.mrf.mxu2 }
 0x1b5   : > { %v1634_v29 = vadd.f32 %v1633_v18, %v1585_v8  ;;  %v1682_v32 = vpop.f32.mrf.mxu3  ;;  %v1538_v33 = vpop.f32.mrf.mxu0  ;;  %v5828_v18 = vld [vmem:[%s9622_s13 + $0xf8] sm:$0xf0] }
 0x1b6   : > { %v1587_v34 = vpop.f32.mrf.mxu1 }
 0x1b7   : > { %v10069_v35 = vadd.f32 %v1682_v32, %v1634_v29  ;;  %v1588_v37 = vadd.f32 %v1587_v34, %v1538_v33  ;;  %v6992_v29 = vld [vmem:[%s9622_s13 + $0x1ec] sm:$0xf]  ;;  %v5831_v33 = vor.u32 %v6960_v17, %v5828_v18  ;;  %v5956_v34 = vld [vmem:[%s9622_s13 + $0x1f8] sm:$0xf0] }
 0x1b8   : > { %1733 = vmatmul.bf16.gmra.mxu0 %v9905_v45  ;;  %1782 = vmatmul.bf16.gmra.mxu1 %v9907_v46  ;;  %v5959_v40 = vor.u32 %v6992_v29, %v5956_v34 }
 0x1b9   : > { %1831 = vmatmul.bf16.gmra.mxu2 %v9909_v47  ;;  %2385 = vrot.lane.b32.xlu2 %v10069_v35, %s9312_s0 }
 0x1ba   : > { %1880 = vmatmul.bf16.gmra.mxu3 %v9911_v48  ;;  %2087 = vmatpush.bf16.msrb.mxu0 %v5831_v33 }
 0x1bb   : > { %2136 = vmatpush.bf16.msrb.mxu1 %v5959_v40  ;;  %v6988_v40 = vld [vmem:[%s9622_s13 + $0x1cc] sm:$0xf] }
 0x1bc   : > { %v1636_v62 = vpop.f32.mrf.mxu2 }
 0x1bd   : > { %v1637_v2 = vadd.f32 %v1636_v62, %v1588_v37  ;;  %v1685_v3 = vpop.f32.mrf.mxu3  ;;  %v1540_v4 = vpop.f32.mrf.mxu0 }
 0x1be   : > { %v1589_v5 = vpop.f32.mrf.mxu1 }
 0x1bf   : > { %v10081_v6 = vadd.f32 %v1685_v3, %v1637_v2  ;;  %v1590_v8 = vadd.f32 %v1589_v5, %v1540_v4  ;;  %v6068_v2 = vld [vmem:[%s9622_s13 + $0x2d8] sm:$0xf0]  ;;  %v7052_v3 = vld [vmem:[%s9622_s13 + $0x3cc] sm:$0xf] }
 0x1c0   : > { %v6071_v5 = vor.u32 %v7020_v63, %v6068_v2  ;;  %v5940_v2 = vld [vmem:[%s9622_s13 + $0x1d8] sm:$0xf0] }
 0x1c1   : > { %2387 = vrot.lane.b32.xlu0 %v10081_v6, %s9312_s0 }
 0x1c2   : > { %2186 = vmatpush.bf16.msrb.mxu2 %v6071_v5  ;;  %v5943_v5 = vor.u32 %v6988_v40, %v5940_v2 }
 0x1c4   : > { %v1638_v32 = vpop.f32.mrf.mxu2  ;;  %2137 = vmatpush.bf16.msrb.mxu1 %v5943_v5  ;;  %v10126_v5 = vld [vmem:[%s9630_s16 + $0x10] sm:$0xff]  }
 0x1c5   : > { %v1639_v37 = vadd.f32 %v1638_v32, %v1590_v8  ;;  %v1687_v38 = vpop.f32.mrf.mxu3  ;;  %v1543_v39 = vpop.f32.mrf.mxu0  ;;  %v6196_v8 = vld [vmem:[%s9622_s13 + $0x3d8] sm:$0xf0] }
 0x1c6   : > { %v1592_v56 = vpop.f32.mrf.mxu1  ;;  %v6199_v32 = vor.u32 %v7052_v3, %v6196_v8 }
 0x1c7   : > { %v10089_v57 = vadd.f32 %v1687_v38, %v1639_v37  ;;  %v1593_v62 = vadd.f32 %v1592_v56, %v1543_v39  ;;  %v6956_v38 = vld [vmem:[%s9622_s13 + $0xcc] sm:$0xf]  ;;  %v5812_v39 = vld [vmem:[%s9622_s13 + $0xd8] sm:$0xf0] }
 0x1c8   : > { %1738 = vmatmul.bf16.gmra.mxu0 %v9933_v21  ;;  %1787 = vmatmul.bf16.gmra.mxu1 %v9935_v22  ;;  %v5815_v63 = vor.u32 %v6956_v38, %v5812_v39  ;;  %v6180_v39 = vld [vmem:[%s9622_s13 + $0x3b8] sm:$0xf0] }
 0x1c9   : > { %1836 = vmatmul.bf16.gmra.mxu2 %v9937_v23  ;;  %2389 = vrot.lane.b32.xlu1 %v10089_v57, %s9312_s0 }
 0x1ca   : > { %1885 = vmatmul.bf16.gmra.mxu3 %v9939_v24  ;;  %2088 = vmatpush.bf16.msrb.mxu0 %v5815_v63 }
 0x1cb   : > { %2235 = vmatpush.bf16.msrb.mxu3 %v6199_v32  ;;  %v6052_v32 = vld [vmem:[%s9622_s13 + $0x2b8] sm:$0xf0] }
 0x1cc   : > { %v1641_v4 = vpop.f32.mrf.mxu2 }
 0x1cd   : > { %v1642_v17 = vadd.f32 %v1641_v4, %v1593_v62  ;;  %v1690_v18 = vpop.f32.mrf.mxu3  ;;  %v1545_v29 = vpop.f32.mrf.mxu0 }
 0x1ce   : > { %v1594_v33 = vpop.f32.mrf.mxu1 }
 0x1cf   : > { %v10101_v34 = vadd.f32 %v1690_v18, %v1642_v17  ;;  %v1595_v37 = vadd.f32 %v1594_v33, %v1545_v29  ;;  %v7016_v29 = vld [vmem:[%s9622_s13 + $0x2ac] sm:$0xf] }
 0x1d0   : > { %v7048_v33 = vld [vmem:[%s9622_s13 + $0x3ac] sm:$0xf]  ;;  %v6055_v38 = vor.u32 %v7016_v29, %v6052_v32  ;;  %v12525_v29 = vunpack.c.h.bf16 %v10126_v5 }
 0x1d1   : > { %2391 = vrot.lane.b32.xlu2 %v10101_v34, %s9312_s0 }
 0x1d2   : > { %2187 = vmatpush.bf16.msrb.mxu2 %v6055_v38  ;;  %v2352_v31 = vmul.f32 %v12525_v29, %v10009_v20 }
 0x1d4   : > { %v1643_v56 = vpop.f32.mrf.mxu2 }
 0x1d5   : > { %v1644_v62 = vadd.f32 %v1643_v56, %v1595_v37  ;;  %v1692_v3 = vpop.f32.mrf.mxu3  ;;  %v1704_v4 = vpop.f32.mrf.mxu0  ;;  %v6183_v56 = vor.u32 %v7048_v33, %v6180_v39  ;;  %v5796_v33 = vld [vmem:[%s9622_s13 + $0xb8] sm:$0xf0]  ;;  %v6984_v39 = vld [vmem:[%s9622_s13 + $0x1ac] sm:$0xf] }
 0x1d6   : > { %v1753_v8 = vpop.f32.mrf.mxu1 }
 0x1d7   : > { %v10109_v17 = vadd.f32 %v1692_v3, %v1644_v62  ;;  %v1754_v18 = vadd.f32 %v1753_v8, %v1704_v4  ;;  %2236 = vmatpush.bf16.msrb.mxu3 %v6183_v56  ;;  %v10129_v8 = vld [vmem:[%s9636_s3 + $0x10] sm:$0xff]  }
 0x1d8   : > { %1899 = vmatmul.bf16.vlgmr.msra.gmra.mxu0 %v9728_v49  ;;  %1948 = vmatmul.bf16.vlgmr.msra.gmra.mxu1 %v9733_v54  ;;  %v12524_v32 = vunpack.c.h.bf16 %v10129_v8 }
 0x1d9   : > { %1997 = vmatmul.bf16.vlgmr.msra.gmra.mxu2 %v9735_v55  ;;  %2393 = vrot.lane.b32.xlu0 %v10109_v17, %s9312_s0 }
 0x1da   : > { %2046 = vmatmul.bf16.vlgmr.msra.gmra.mxu3 %v9739_v58 }
 0x1db   : > { %v10120_v37 = vpop.permute.xlu2 %2371 }
 0x1dc   : > { %v1802_v40 = vpop.f32.mrf.mxu2 }
 0x1dd   : > { %v1803_v63 = vadd.f32 %v1802_v40, %v1754_v18  ;;  %v1851_v2 = vpop.f32.mrf.mxu3  ;;  %v1706_v62 = vpop.f32.mrf.mxu0  ;;  %v6952_v18 = vld [vmem:[%s9622_s13 + $0xac] sm:$0xf] }
 0x1de   : > { %v1755_v3 = vpop.f32.mrf.mxu1  ;;  %v5799_v38 = vor.u32 %v6952_v18, %v5796_v33  ;;  %v7012_v18 = vld [vmem:[%s9622_s13 + $0x28c] sm:$0xf]  ;;  %v6036_v33 = vld [vmem:[%s9622_s13 + $0x298] sm:$0xf0] }
 0x1df   : > { %v10123_v4 = vadd.f32 %v1851_v2, %v1803_v63  ;;  %v1756_v40 = vadd.f32 %v1755_v3, %v1706_v62  ;;  %v5927_v2 = vor.u32 %v6984_v39, %v5924_v19  ;;  %v7044_v39 = vld [vmem:[%s9622_s13 + $0x38c] sm:$0xf] }
 0x1e0   : > { %2089 = vmatpush.bf16.msrb.mxu0 %v5799_v38 }
 0x1e1   : > { %2459 = vrot.lane.b32.xlu1 %v10123_v4, %s9312_s0  ;;  %2138 = vmatpush.bf16.msrb.mxu1 %v5927_v2  ;;  %v10160_v2 = vpop.permute.xlu0 %2363 }
 0x1e3   : > { %v2374_v56 = vpop.permute.xlu2 %2373 }
 0x1e4   : > { %v1804_v63 = vpop.f32.mrf.mxu2  ;;  %v2400_v1 = vmul.f32 %v12524_v32, %v2374_v56  ;;  %v10169_v32 = vld [vmem:[%s9630_s16 + $0x20] sm:$0xff]  }
 0x1e5   : > { %v1805_v58 = vadd.f32 %v1804_v63, %v1756_v40  ;;  %v1853_v55 = vpop.f32.mrf.mxu3  ;;  %v1709_v54 = vpop.f32.mrf.mxu0 }
 0x1e6   : > { %v1758_v62 = vpop.f32.mrf.mxu1  ;;  %v10144_v3 = vadd.f32 %v2400_v1, %v2352_v31  ;;  %v6039_v1 = vor.u32 %v7012_v18, %v6036_v33  ;;  %v6948_v18 = vld [vmem:[%s9622_s13 + $0x8c] sm:$0xf]  ;;  %v5780_v33 = vld [vmem:[%s9622_s13 + $0x98] sm:$0xf0] }
 0x1e7   : > { %v10146_v19 = vadd.f32 %v1853_v55, %v1805_v58  ;;  %v1759_v20 = vadd.f32 %v1758_v62, %v1709_v54  ;;  %v6164_v55 = vld [vmem:[%s9622_s13 + $0x398] sm:$0xf0] }
 0x1e8   : > { %12679 = vst [vmem:[#allocation67_spill] sm:$0xff] %v10144_v3  ;;  %1904 = vmatmul.bf16.gmra.mxu0 %v9765_v25  ;;  %1953 = vmatmul.bf16.gmra.mxu1 %v9767_v26  ;;  %v6167_v31 = vor.u32 %v7044_v39, %v6164_v55  ;;  %v6980_v39 = vld [vmem:[%s9622_s13 + $0x18c] sm:$0xf] }
 0x1e9   : > { %2002 = vmatmul.bf16.gmra.mxu2 %v9769_v27  ;;  %2461 = vrot.lane.b32.xlu2 %v10146_v19, %s9312_s0 }
 0x1ea   : > { %2051 = vmatmul.bf16.gmra.mxu3 %v9771_v28  ;;  %2188 = vmatpush.bf16.msrb.mxu2 %v6039_v1 }
 0x1eb   : > { %2237 = vmatpush.bf16.msrb.mxu3 %v6167_v31  ;;  %v10172_v31 = vld [vmem:[%s9636_s3 + $0x20] sm:$0xff]  }
 0x1ec   : > { %v1807_v58 = vpop.f32.mrf.mxu2 }
 0x1ed   : > { %v1808_v54 = vadd.f32 %v1807_v58, %v1759_v20  ;;  %v1856_v40 = vpop.f32.mrf.mxu3  ;;  %v1711_v38 = vpop.f32.mrf.mxu0  ;;  %v5783_v20 = vor.u32 %v6948_v18, %v5780_v33  ;;  %v5908_v58 = vld [vmem:[%s9622_s13 + $0x198] sm:$0xf0] }
 0x1ee   : > { %v1760_v56 = vpop.f32.mrf.mxu1 }
 0x1ef   : > { %v10158_v63 = vadd.f32 %v1856_v40, %v1808_v54  ;;  %v1761_v62 = vadd.f32 %v1760_v56, %v1711_v38  ;;  %v5911_v54 = vor.u32 %v6980_v39, %v5908_v58  ;;  %2090 = vmatpush.bf16.msrb.mxu0 %v5783_v20  ;;  %v12534_v56 = vunpack.c.l.bf16 %v10169_v32  ;;  %v7008_v39 = vld [vmem:[%s9622_s13 + $0x26c] sm:$0xf] }
 0x1f0   : > { %v7040_v20 = vld [vmem:[%s9622_s13 + $0x36c] sm:$0xf] }
 0x1f1   : > { %2463 = vrot.lane.b32.xlu0 %v10158_v63, %s9312_s0  ;;  %2139 = vmatpush.bf16.msrb.mxu1 %v5911_v54 }
 0x1f4   : > { %v1809_v55 = vpop.f32.mrf.mxu2 }
 0x1f5   : > { %v1810_v1 = vadd.f32 %v1809_v55, %v1761_v62  ;;  %v1858_v29 = vpop.f32.mrf.mxu3  ;;  %v1714_v3 = vpop.f32.mrf.mxu0  ;;  %v12533_v62 = vunpack.c.l.bf16 %v10172_v31  ;;  %v6020_v55 = vld [vmem:[%s9622_s13 + $0x278] sm:$0xf0] }
 0x1f6   : > { %v1763_v40 = vpop.f32.mrf.mxu1  ;;  %v6023_v54 = vor.u32 %v7008_v39, %v6020_v55 }
 0x1f7   : > { %v10174_v38 = vadd.f32 %v1858_v29, %v1810_v1  ;;  %v1764_v18 = vadd.f32 %v1763_v40, %v1714_v3  ;;  %v10184_v29 = vpop.permute.xlu0 %2365  ;;  %v2355_v3 = vmul.f32 %v12534_v56, %v10041_v60  ;;  %v6148_v40 = vld [vmem:[%s9622_s13 + $0x378] sm:$0xf0] }
 0x1f8   : > { %1909 = vmatmul.bf16.gmra.mxu0 %v9793_v50  ;;  %1958 = vmatmul.bf16.gmra.mxu1 %v9795_v51  ;;  %v6151_v28 = vor.u32 %v7040_v20, %v6148_v40  ;;  %v5764_v56 = vld [vmem:[%s9622_s13 + $0x78] sm:$0xf0]  ;;  %v6976_v20 = vld [vmem:[%s9622_s13 + $0x16c] sm:$0xf] }
 0x1f9   : > { %12680 = vst [vmem:[#allocation68_spill] sm:$0xff] %v10174_v38  ;;  %2007 = vmatmul.bf16.gmra.mxu2 %v9797_v52  ;;  %2465 = vrot.lane.b32.xlu1 %v10174_v38, %s9312_s0  ;;  %v10199_v38 = vld [vmem:[%s9636_s3 + $0x18] sm:$0xff]  }
 0x1fa   : > { %2056 = vmatmul.bf16.gmra.mxu3 %v9799_v53  ;;  %v10196_v53 = vld [vmem:[%s9630_s16 + $0x18] sm:$0xff]   ;;  %2189 = vmatpush.bf16.msrb.mxu2 %v6023_v54  ;;  %v12538_v55 = vunpack.c.l.bf16 %v10199_v38 }
 0x1fb   : > { %v2380_v33 = vpop.permute.xlu2 %2379  ;;  %12681 = vst [vmem:[#allocation69_spill] sm:$0xff] %v10196_v53  ;;  %2238 = vmatpush.bf16.msrb.mxu3 %v6151_v28  ;;  %v12539_v39 = vunpack.c.l.bf16 %v10196_v53 }
 0x1fc   : > { %v2403_v58 = vmul.f32 %v12533_v62, %v2380_v33  ;;  %v1812_v1 = vpop.f32.mrf.mxu2  ;;  %v6944_v62 = vld [vmem:[%s9622_s13 + $0x6c] sm:$0xf] }
 0x1fd   : > { %v1813_v52 = vadd.f32 %v1812_v1, %v1764_v18  ;;  %v1861_v51 = vpop.f32.mrf.mxu3  ;;  %v1716_v50 = vpop.f32.mrf.mxu0 }
 0x1fe   : > { %v10201_v27 = vadd.f32 %v2403_v58, %v2355_v3  ;;  %v1765_v60 = vpop.f32.mrf.mxu1  ;;  %v2353_v3 = vmul.f32 %v12539_v39, %v10021_v59  ;;  %v5892_v58 = vld [vmem:[%s9622_s13 + $0x178] sm:$0xf0]  ;;  %v10223_v59 = vpop.permute.xlu1 %2367 }
 0x1ff   : > { %v10203_v33 = vadd.f32 %v1861_v51, %v1813_v52  ;;  %v1766_v18 = vadd.f32 %v1765_v60, %v1716_v50  ;;  %v5767_v52 = vor.u32 %v6944_v62, %v5764_v56  ;;  %v5895_v50 = vor.u32 %v6976_v20, %v5892_v58  ;;  %v7004_v62 = vld [vmem:[%s9622_s13 + $0x24c] sm:$0xf]  ;;  %v5876_v39 = vld [vmem:[%s9622_s13 + $0x158] sm:$0xf0] }
 0x200   : > { %12682 = vst [vmem:[#allocation70_spill] sm:$0xff] %v10201_v27 }
 0x201   : > { %2467 = vrot.lane.b32.xlu2 %v10203_v33, %s9312_s0  ;;  %2091 = vmatpush.bf16.msrb.mxu0 %v5767_v52 }
 0x202   : > { %2140 = vmatpush.bf16.msrb.mxu1 %v5895_v50  ;;  %v10240_v50 = vld [vmem:[%s9630_s16 + $0x28] sm:$0xff]  }
 0x203   : > { %v2376_v1 = vpop.permute.xlu0 %2375 }
 0x204   : > { %v2401_v51 = vmul.f32 %v12538_v55, %v2376_v1  ;;  %v1814_v28 = vpop.f32.mrf.mxu2  ;;  %v7036_v1 = vld [vmem:[%s9622_s13 + $0x34c] sm:$0xf] }
 0x205   : > { %v1815_v54 = vadd.f32 %v1814_v28, %v1766_v18  ;;  %v1863_v40 = vpop.f32.mrf.mxu3  ;;  %v1719_v27 = vpop.f32.mrf.mxu0  ;;  %v6004_v18 = vld [vmem:[%s9622_s13 + $0x258] sm:$0xf0] }
 0x206   : > { %v10218_v60 = vadd.f32 %v2401_v51, %v2353_v3  ;;  %v1768_v26 = vpop.f32.mrf.mxu1  ;;  %v6007_v20 = vor.u32 %v7004_v62, %v6004_v18  ;;  %v6132_v3 = vld [vmem:[%s9622_s13 + $0x358] sm:$0xf0]  ;;  %v12545_v62 = vunpack.c.h.bf16 %v10240_v50 }
 0x207   : > { %v10220_v53 = vadd.f32 %v1863_v40, %v1815_v54  ;;  %v1769_v56 = vadd.f32 %v1768_v26, %v1719_v27  ;;  %v6135_v26 = vor.u32 %v7036_v1, %v6132_v3  ;;  %v10235_v54 = vld [vmem:[%s9636_s3 + $0x28] sm:$0xff]   ;;  %v5748_v1 = vld [vmem:[%s9622_s13 + $0x58] sm:$0xf0] }
 0x208   : > { %12683 = vst [vmem:[#allocation71_spill] sm:$0xff] %v10218_v60  ;;  %1914 = vmatmul.bf16.gmra.mxu0 %v9821_v13  ;;  %1963 = vmatmul.bf16.gmra.mxu1 %v9823_v14  ;;  %v12544_v18 = vunpack.c.h.bf16 %v10235_v54  ;;  %v6972_v3 = vld [vmem:[%s9622_s13 + $0x14c] sm:$0xf] }
 0x209   : > { %2012 = vmatmul.bf16.gmra.mxu2 %v9825_v15  ;;  %2469 = vrot.lane.b32.xlu0 %v10220_v53, %s9312_s0 }
 0x20a   : > { %2061 = vmatmul.bf16.gmra.mxu3 %v9827_v16  ;;  %2190 = vmatpush.bf16.msrb.mxu2 %v6007_v20  ;;  %v2358_v16 = vmul.f32 %v12545_v62, %v10069_v35  ;;  %v12547_v35 = vunpack.c.h.bf16 %v10169_v32 }
 0x20b   : > { %2239 = vmatpush.bf16.msrb.mxu3 %v6135_v26 }
 0x20c   : > { %v1817_v51 = vpop.f32.mrf.mxu2 }
 0x20d   : > { %v1818_v27 = vadd.f32 %v1817_v51, %v1769_v56  ;;  %v1866_v28 = vpop.f32.mrf.mxu3  ;;  %v1721_v52 = vpop.f32.mrf.mxu0  ;;  %v6940_v56 = vld [vmem:[%s9622_s13 + $0x4c] sm:$0xf] }
 0x20e   : > { %v1770_v58 = vpop.f32.mrf.mxu1  ;;  %v10249_v51 = vpop.permute.xlu1 %2369  ;;  %v5751_v55 = vor.u32 %v6940_v56, %v5748_v1  ;;  %v12546_v1 = vunpack.c.h.bf16 %v10172_v31 }
 0x20f   : > { %v10237_v40 = vadd.f32 %v1866_v28, %v1818_v27  ;;  %v1771_v20 = vadd.f32 %v1770_v58, %v1721_v52  ;;  %v5879_v28 = vor.u32 %v6972_v3, %v5876_v39  ;;  %v6116_v3 = vld [vmem:[%s9622_s13 + $0x338] sm:$0xf0] }
 0x210   : > { %2092 = vmatpush.bf16.msrb.mxu0 %v5751_v55 }
 0x211   : > { %2471 = vrot.lane.b32.xlu1 %v10237_v40, %s9312_s0  ;;  %2141 = vmatpush.bf16.msrb.mxu1 %v5879_v28 }
 0x213   : > { %v2386_v26 = vpop.permute.xlu2 %2385 }
 0x214   : > { %v1819_v27 = vpop.f32.mrf.mxu2  ;;  %v2406_v15 = vmul.f32 %v12544_v18, %v2386_v26 }
 0x215   : > { %v1820_v14 = vadd.f32 %v1819_v27, %v1771_v20  ;;  %v1868_v13 = vpop.f32.mrf.mxu3  ;;  %v1724_v60 = vpop.f32.mrf.mxu0  ;;  %v2356_v27 = vmul.f32 %v12547_v35, %v10049_v30  ;;  %v12553_v30 = vunpack.c.l.bf16 %v10235_v54 }
 0x216   : > { %v1773_v52 = vpop.f32.mrf.mxu1  ;;  %v10257_v58 = vadd.f32 %v2406_v15, %v2358_v16  ;;  %v7000_v15 = vld [vmem:[%s9622_s13 + $0x22c] sm:$0xf]  ;;  %v5988_v16 = vld [vmem:[%s9622_s13 + $0x238] sm:$0xf0] }
 0x217   : > { %v10259_v39 = vadd.f32 %v1868_v13, %v1820_v14  ;;  %v1774_v56 = vadd.f32 %v1773_v52, %v1724_v60  ;;  %v7032_v13 = vld [vmem:[%s9622_s13 + $0x32c] sm:$0xf]  ;;  %v10272_v14 = vpop.permute.xlu1 %2377  ;;  %v5991_v55 = vor.u32 %v7000_v15, %v5988_v16 }
 0x218   : > { %12684 = vst [vmem:[#allocation72_spill] sm:$0xff] %v10257_v58  ;;  %1919 = vmatmul.bf16.gmra.mxu0 %v9849_v41  ;;  %1968 = vmatmul.bf16.gmra.mxu1 %v9851_v42  ;;  %v6119_v26 = vor.u32 %v7032_v13, %v6116_v3  ;;  %v12554_v13 = vunpack.c.l.bf16 %v10240_v50 }
 0x219   : > { %2017 = vmatmul.bf16.gmra.mxu2 %v9853_v43  ;;  %2473 = vrot.lane.b32.xlu2 %v10259_v39, %s9312_s0 }
 0x21a   : > { %2066 = vmatmul.bf16.gmra.mxu3 %v9855_v44  ;;  %2191 = vmatpush.bf16.msrb.mxu2 %v5991_v55  ;;  %v5732_v55 = vld [vmem:[%s9622_s13 + $0x38] sm:$0xf0] }
 0x21b   : > { %v2382_v20 = vpop.permute.xlu0 %2381  ;;  %2240 = vmatpush.bf16.msrb.mxu3 %v6119_v26  ;;  %v2357_v26 = vmul.f32 %v12554_v13, %v10061_v0 }
 0x21c   : > { %v1822_v60 = vpop.f32.mrf.mxu2  ;;  %v2404_v28 = vmul.f32 %v12546_v1, %v2382_v20  ;;  %v6936_v20 = vld [vmem:[%s9622_s13 + $0x2c] sm:$0xf]  ;;  %v10298_v1 = vld [vmem:[%s9630_s16 + $0x38] sm:$0xff]  }
 0x21d   : > { %v1823_v52 = vadd.f32 %v1822_v60, %v1774_v56  ;;  %v1871_v18 = vpop.f32.mrf.mxu3  ;;  %v1726_v62 = vpop.f32.mrf.mxu0  ;;  %v6968_v60 = vld [vmem:[%s9622_s13 + $0x12c] sm:$0xf] }
 0x21e   : > { %v1775_v58 = vpop.f32.mrf.mxu1  ;;  %v10280_v15 = vadd.f32 %v2404_v28, %v2356_v27  ;;  %v5735_v28 = vor.u32 %v6936_v20, %v5732_v55  ;;  %v10321_v55 = vld [vmem:[%s9630_s16 + $0x30] sm:$0xff]  }
 0x21f   : > { %v10282_v16 = vadd.f32 %v1871_v18, %v1823_v52  ;;  %v1776_v56 = vadd.f32 %v1775_v58, %v1726_v62  ;;  %v5860_v52 = vld [vmem:[%s9622_s13 + $0x138] sm:$0xf0] }
 0x220   : > { %12685 = vst [vmem:[#allocation73_spill] sm:$0xff] %v10280_v15  ;;  %v10301_v62 = vld [vmem:[%s9636_s3 + $0x38] sm:$0xff]   ;;  %v5863_v58 = vor.u32 %v6968_v60, %v5860_v52  ;;  %2093 = vmatpush.bf16.msrb.mxu0 %v5735_v28 }
 0x221   : > { %2475 = vrot.lane.b32.xlu0 %v10282_v16, %s9312_s0 }
 0x222   : > { %2142 = vmatpush.bf16.msrb.mxu1 %v5863_v58 }
 0x223   : > { %v2384_v3 = vpop.permute.xlu1 %2383 }
 0x224   : > { %v2405_v18 = vmul.f32 %v12553_v30, %v2384_v3  ;;  %v1824_v27 = vpop.f32.mrf.mxu2  ;;  %v12551_v3 = vunpack.c.l.bf16 %v10298_v1 }
 0x225   : > { %v1825_v35 = vadd.f32 %v1824_v27, %v1776_v56  ;;  %v1873_v15 = vpop.f32.mrf.mxu3  ;;  %v1729_v44 = vpop.f32.mrf.mxu0  ;;  %v12552_v56 = vunpack.c.l.bf16 %v10301_v62  ;;  %v10324_v27 = vld [vmem:[%s9636_s3 + $0x30] sm:$0xff]  }
 0x226   : > { %v10303_v43 = vadd.f32 %v2405_v18, %v2357_v26  ;;  %v1778_v42 = vpop.f32.mrf.mxu1  ;;  %v12559_v30 = vunpack.c.l.bf16 %v10324_v27 }
 0x227   : > { %v10305_v0 = vadd.f32 %v1873_v15, %v1825_v35  ;;  %v1779_v20 = vadd.f32 %v1778_v42, %v1729_v44  ;;  %v2361_v15 = vmul.f32 %v12551_v3, %v10101_v34  ;;  %v6996_v34 = vld [vmem:[%s9622_s13 + $0x20c] sm:$0xf]  ;;  %v5972_v3 = vld [vmem:[%s9622_s13 + $0x218] sm:$0xf0] }
 0x228   : > { %1924 = vmatmul.bf16.gmra.mxu0 %v9877_v9  ;;  %1973 = vmatmul.bf16.gmra.mxu1 %v9879_v10  ;;  %v5844_v10 = vld [vmem:[%s9622_s13 + $0x118] sm:$0xf0] }
 0x229   : > { %2022 = vmatmul.bf16.gmra.mxu2 %v9881_v11  ;;  %2477 = vrot.lane.b32.xlu1 %v10305_v0, %s9312_s0 }
 0x22a   : > { %2071 = vmatmul.bf16.gmra.mxu3 %v9883_v12 }
 0x22b   : > { %v2392_v35 = vpop.permute.xlu2 %2391 }
 0x22c   : > { %v2409_v42 = vmul.f32 %v12552_v56, %v2392_v35  ;;  %v1827_v44 = vpop.f32.mrf.mxu2  ;;  %v7028_v35 = vld [vmem:[%s9622_s13 + $0x30c] sm:$0xf]  ;;  %v12560_v56 = vunpack.c.l.bf16 %v10321_v55 }
 0x22d   : > { %v1828_v60 = vadd.f32 %v1827_v44, %v1779_v20  ;;  %v1876_v26 = vpop.f32.mrf.mxu3  ;;  %v1731_v18 = vpop.f32.mrf.mxu0  ;;  %v5975_v20 = vor.u32 %v6996_v34, %v5972_v3  ;;  %v6100_v44 = vld [vmem:[%s9622_s13 + $0x318] sm:$0xf0] }
 0x22e   : > { %v10326_v28 = vadd.f32 %v2409_v42, %v2361_v15  ;;  %v1780_v52 = vpop.f32.mrf.mxu1  ;;  %v6103_v15 = vor.u32 %v7028_v35, %v6100_v44  ;;  %v2359_v12 = vmul.f32 %v12560_v56, %v10081_v6  ;;  %v12562_v6 = vunpack.c.h.bf16 %v10321_v55 }
 0x22f   : > { %v10328_v58 = vadd.f32 %v1876_v26, %v1828_v60  ;;  %2192 = vmatpush.bf16.msrb.mxu2 %v5975_v20  ;;  %v1781_v42 = vadd.f32 %v1780_v52, %v1731_v18  ;;  %v6932_v60 = vld [vmem:[%s9622_s13 + $0xc] sm:$0xf]  ;;  %v5716_v26 = vld [vmem:[%s9622_s13 + $0x18] sm:$0xf0] }
 0x230   : > { %12686 = vst [vmem:[#allocation74_spill] sm:$0xff] %v10326_v28  ;;  %2241 = vmatpush.bf16.msrb.mxu3 %v6103_v15  ;;  %v6964_v28 = vld [vmem:[%s9622_s13 + $0x10c] sm:$0xf]  ;;  %v5719_v34 = vor.u32 %v6932_v60, %v5716_v26  ;;  %v2360_v26 = vmul.f32 %v12562_v6, %v10089_v57 }
 0x231   : > { %2479 = vrot.lane.b32.xlu2 %v10328_v58, %s9312_s0  ;;  %v5847_v18 = vor.u32 %v6964_v28, %v5844_v10  ;;  %v10357_v10 = vld [vmem:[%s9636_s3] sm:$0xff]  }
 0x232   : > { %2094 = vmatpush.bf16.msrb.mxu0 %v5719_v34 }
 0x233   : > { %v2388_v13 = vpop.permute.xlu0 %2387  ;;  %2143 = vmatpush.bf16.msrb.mxu1 %v5847_v18 }
 0x234   : > { %v2407_v11 = vmul.f32 %v12559_v30, %v2388_v13  ;;  %v1829_v3 = vpop.f32.mrf.mxu2 }
 0x235   : > { %v1830_v9 = vadd.f32 %v1829_v3, %v1781_v42  ;;  %v1878_v35 = vpop.f32.mrf.mxu3  ;;  %v1734_v20 = vpop.f32.mrf.mxu0  ;;  %v12564_v42 = vunpack.c.h.bf16 %v10324_v27 }
 0x236   : > { %v10347_v52 = vadd.f32 %v2407_v11, %v2359_v12  ;;  %v1783_v44 = vpop.f32.mrf.mxu1  ;;  %v10364_v11 = vld [vmem:[%s9630_s16] sm:$0xff]  }
 0x237   : > { %v10349_v15 = vadd.f32 %v1878_v35, %v1830_v9  ;;  %v1784_v13 = vadd.f32 %v1783_v44, %v1734_v20  ;;  %v7262_v9 = vunpack.c.h.bf16 %v10357_v10  ;;  %v7230_v60 = vunpack.c.h.bf16 %v10364_v11 }
 0x238   : > { %1929 = vmatmul.bf16.gmra.mxu0 %v9905_v45  ;;  %1978 = vmatmul.bf16.gmra.mxu1 %v9907_v46 }
 0x239   : > { %2027 = vmatmul.bf16.gmra.mxu2 %v9909_v47  ;;  %2481 = vrot.lane.b32.xlu0 %v10349_v15, %s9312_s0  ;;  %v2396_v44 = vmul.f32 %v7262_v9, %v10184_v29 }
 0x23a   : > { %2076 = vmatmul.bf16.gmra.mxu3 %v9911_v48  ;;  %v2348_v48 = vmul.f32 %v7230_v60, %v9969_v36  ;;  %v12567_v36 = vunpack.c.h.bf16 %v10298_v1 }
 0x23b   : > { %v2390_v12 = vpop.permute.xlu1 %2389 }
 0x23c   : > { %v1832_v28 = vpop.f32.mrf.mxu2  ;;  %v2408_v3 = vmul.f32 %v12564_v42, %v2390_v12  ;;  %v2412_v57 = vadd.f32 %v2396_v44, %v2348_v48 }
 0x23d   : > { %v1833_v34 = vadd.f32 %v1832_v28, %v1784_v13  ;;  %v1881_v35 = vpop.f32.mrf.mxu3  ;;  %v1736_v20 = vpop.f32.mrf.mxu0  ;;  %v2444_v13 = vmul.f32 %v7230_v60, %v10146_v19  ;;  %v7261_v19 = vunpack.c.l.bf16 %v10357_v10 }
 0x23e   : > { %v1785_v18 = vpop.f32.mrf.mxu1  ;;  %v10373_v30 = vadd.f32 %v2408_v3, %v2360_v26  ;;  %v2428_v3 = vpack.c.bf16 %v2412_v57, %v2412_v57 }
 0x23f   : > { %v10375_v56 = vadd.f32 %v1881_v35, %v1833_v34  ;;  %v1786_v6 = vadd.f32 %v1785_v18, %v1736_v20  ;;  %v2362_v18 = vmul.f32 %v12567_v36, %v10109_v17 }
 0x241   : > { %2483 = vrot.lane.b32.xlu1 %v10375_v56, %s9312_s0 }
 0x243   : > { %v2462_v47 = vpop.permute.xlu2 %2461 }
 0x244   : > { %v1834_v12 = vpop.f32.mrf.mxu2  ;;  %v2492_v28 = vmul.f32 %v7262_v9, %v2462_v47  ;;  %v12566_v47 = vunpack.c.h.bf16 %v10301_v62 }
 0x245   : > { %v1835_v42 = vadd.f32 %v1834_v12, %v1786_v6  ;;  %v1883_v46 = vpop.f32.mrf.mxu3  ;;  %v1739_v29 = vpop.f32.mrf.mxu0 }
 0x246   : > { %v1788_v26 = vpop.f32.mrf.mxu1  ;;  %v2508_v34 = vadd.f32 %v2492_v28, %v2444_v13  ;;  %v2395_v28 = vmul.f32 %v7261_v19, %v10160_v2 }
 0x247   : > { %v10381_v35 = vadd.f32 %v1883_v46, %v1835_v42  ;;  %v1789_v20 = vadd.f32 %v1788_v26, %v1739_v29  ;;  %v2557_v46 = vunpack.c.l.b16 %v2428_v3  ;;  %v7229_v42 = vunpack.c.l.bf16 %v10364_v11 }
 0x248   : > { %1934 = vmatmul.bf16.gmra.mxu0 %v9933_v21  ;;  %v2524_v48 = vpack.c.bf16 %v2508_v34, %v2508_v34  ;;  %1983 = vmatmul.bf16.gmra.mxu1 %v9935_v22  ;;  %v7269_v34 = vunpack.c.l.bf16 %v10129_v8 }
 0x249   : > { %2032 = vmatmul.bf16.gmra.mxu2 %v9937_v23  ;;  %2485 = vrot.lane.b32.xlu2 %v10381_v35, %s9312_s0  ;;  %v2347_v17 = vmul.f32 %v7229_v42, %v9961_v7 }
 0x24a   : > { %2081 = vmatmul.bf16.gmra.mxu3 %v9939_v24  ;;  %v2589_v6 = vunpack.c.l.b16 %v2524_v48 }
 0x24b   : > { %v2394_v9 = vpop.permute.xlu0 %2393  ;;  %v2411_v3 = vadd.f32 %v2395_v28, %v2347_v17  ;;  %v10417_v28 = vld [vmem:[%s9636_s3 + $0x8] sm:$0xff]  }
 0x24c   : > { %v1837_v60 = vpop.f32.mrf.mxu2  ;;  %v2605_v44 = vpack.c.b16 %v2589_v6, %v2557_v46  ;;  %v2410_v10 = vmul.f32 %v12566_v47, %v2394_v9  ;;  %v2443_v46 = vmul.f32 %v7229_v42, %v10123_v4  ;;  %v7323_v4 = vld [vmem:[%s9630_s16 + $0x8] sm:$0xff]  }
 0x24d   : > { %v1838_v57 = vadd.f32 %v1837_v60, %v1789_v20  ;;  %v1886_v12 = vpop.f32.mrf.mxu3  ;;  %v1741_v13 = vpop.f32.mrf.mxu0  ;;  %v7237_v20 = vunpack.c.l.bf16 %v10126_v5  ;;  %v2427_v7 = vpack.c.bf16 %v2411_v3, %v2411_v3  ;;  %v12690_v42 = vld [vmem:[#allocation41_spill] sm:$0xff] }
 0x24e   : > { %v1790_v29 = vpop.f32.mrf.mxu1  ;;  %2642 = vst [vmem:[%s10402_s27 + $0x8] sm:$0xff] %v2605_v44  ;;  %v10405_v11 = vadd.f32 %v2410_v10, %v2362_v18  ;;  %v2399_v10 = vmul.f32 %v7269_v34, %v10120_v37  ;;  %v7265_v37 = vunpack.c.l.bf16 %v10417_v28 }
 0x24f   : > { %v10407_v26 = vadd.f32 %v1886_v12, %v1838_v57  ;;  %v1791_v2 = vadd.f32 %v1790_v29, %v1741_v13  ;;  %v2351_v29 = vmul.f32 %v7237_v20, %v10001_v61  ;;  %v2556_v3 = vunpack.c.l.b16 %v2427_v7 }
 0x250   : > { %12688 = vst [vmem:[#allocation75_spill] sm:$0xff] %v10405_v11 }
 0x251   : > { %2487 = vrot.lane.b32.xlu0 %v10407_v26, %s9312_s0 }
 0x253   : > { %v2460_v48 = vpop.permute.xlu1 %2459 }
 0x254   : > { %v2491_v6 = vmul.f32 %v7261_v19, %v2460_v48  ;;  %v1839_v9 = vpop.f32.mrf.mxu2  ;;  %v12689_v19 = vld [vmem:[#allocation40_spill] sm:$0xff] }
 0x255   : > { %v1840_v60 = vadd.f32 %v1839_v9, %v1791_v2  ;;  %v1888_v18 = vpop.f32.mrf.mxu3  ;;  %v1900_v44 = vpop.f32.mrf.mxu0  ;;  %v2415_v2 = vadd.f32 %v2399_v10, %v2351_v29 }
 0x256   : > { %v2507_v57 = vadd.f32 %v2491_v6, %v2443_v46  ;;  %v1949_v12 = vpop.f32.mrf.mxu1  ;;  %v12691_v46 = vld [vmem:[#allocation42_spill] sm:$0xff]  ;;  %v7233_v6 = vunpack.c.l.bf16 %v7323_v4 }
 0x257   : > { %v10419_v17 = vadd.f32 %v1888_v18, %v1840_v60  ;;  %v1950_v13 = vadd.f32 %v1949_v12, %v1900_v44  ;;  %v2431_v10 = vpack.c.bf16 %v2415_v2, %v2415_v2  ;;  %v2397_v12 = vmul.f32 %v7265_v37, %v10223_v59 }
 0x258   : > { %v2523_v47 = vpack.c.bf16 %v2507_v57, %v2507_v57  ;;  %2095 = vmatmul.bf16.vlgmr.msrb.gmra.mxu0 %v9728_v49  ;;  %2144 = vmatmul.bf16.vlgmr.msrb.gmra.mxu1 %v12689_v19  ;;  %v2447_v49 = vmul.f32 %v7237_v20, %v10203_v33  ;;  %v2445_v2 = vmul.f32 %v7233_v6, %v10158_v63  ;;  %v12694_v63 = vld [vmem:[#allocation43_spill] sm:$0xff] }
 0x259   : > { %2193 = vmatmul.bf16.vlgmr.msrb.gmra.mxu2 %v12690_v42  ;;  %2489 = vrot.lane.b32.xlu1 %v10419_v17, %s9312_s0  ;;  %v2560_v33 = vunpack.c.l.b16 %v2431_v10 }
 0x25a   : > { %v2588_v48 = vunpack.c.l.b16 %v2523_v47  ;;  %2242 = vmatmul.bf16.vlgmr.msrb.gmra.mxu3 %v12691_v46  ;;  %v12692_v46 = vld [vmem:[#allocation64_spill] sm:$0xff] }
 0x25b   : > { %v2468_v61 = vpop.permute.xlu2 %2467  ;;  %v2349_v36 = vmul.f32 %v7233_v6, %v12692_v46 }
 0x25c   : > { %v2604_v9 = vpack.c.b16 %v2588_v48, %v2556_v3  ;;  %v2495_v60 = vmul.f32 %v7269_v34, %v2468_v61  ;;  %v1998_v18 = vpop.f32.mrf.mxu2  ;;  %v7266_v34 = vunpack.c.h.bf16 %v10417_v28  ;;  %v7234_v48 = vunpack.c.h.bf16 %v7323_v4 }
 0x25d   : > { %v1999_v44 = vadd.f32 %v1998_v18, %v1950_v13  ;;  %v2047_v57 = vpop.f32.mrf.mxu3  ;;  %v1902_v7 = vpop.f32.mrf.mxu0  ;;  %v2413_v20 = vadd.f32 %v2397_v12, %v2349_v36 }
 0x25e   : > { %2641 = vst [vmem:[%s10402_s27] sm:$0xff] %v2604_v9  ;;  %v2511_v47 = vadd.f32 %v2495_v60, %v2447_v49  ;;  %v1951_v29 = vpop.f32.mrf.mxu1 }
 0x25f   : > { %v10433_v19 = vadd.f32 %v2047_v57, %v1999_v44  ;;  %v1952_v42 = vadd.f32 %v1951_v29, %v1902_v7  ;;  %v2429_v44 = vpack.c.bf16 %v2413_v20, %v2413_v20  ;;  %v2398_v57 = vmul.f32 %v7266_v34, %v10249_v51  ;;  %v12696_v51 = vld [vmem:[#allocation45_spill] sm:$0xff] }
 0x260   : > { %v2527_v11 = vpack.c.bf16 %v2511_v47, %v2511_v47 }
 0x261   : > { %v2558_v6 = vunpack.c.l.b16 %v2429_v44 }
 0x262   : > { %v2592_v13 = vunpack.c.l.b16 %v2527_v11  ;;  %v12693_v11 = vld [vmem:[#allocation65_spill] sm:$0xff] }
 0x263   : > { %v2464_v3 = vpop.permute.xlu0 %2463  ;;  %v2350_v12 = vmul.f32 %v7234_v48, %v12693_v11  ;;  %v12699_v11 = vld [vmem:[#allocation66_spill] sm:$0xff] }
 0x264   : > { %v2608_v59 = vpack.c.b16 %v2592_v13, %v2560_v33  ;;  %v2493_v61 = vmul.f32 %v7265_v37, %v2464_v3  ;;  %v2000_v49 = vpop.f32.mrf.mxu2  ;;  %v12695_v37 = vld [vmem:[#allocation44_spill] sm:$0xff]  ;;  %v12697_v13 = vld [vmem:[#allocation69_spill] sm:$0xff] }
 0x265   : > { %v2001_v9 = vadd.f32 %v2000_v49, %v1952_v42  ;;  %v2049_v60 = vpop.f32.mrf.mxu3  ;;  %v1905_v18 = vpop.f32.mrf.mxu0  ;;  %v2414_v47 = vadd.f32 %v2398_v57, %v2350_v12  ;;  %v7274_v42 = vunpack.c.h.bf16 %v10199_v38  ;;  %v7242_v3 = vunpack.c.h.bf16 %v12697_v13 }
 0x266   : > { %2645 = vst [vmem:[%s10402_s27 + $0x20] sm:$0xff] %v2608_v59  ;;  %v2509_v7 = vadd.f32 %v2493_v61, %v2445_v2  ;;  %v1954_v10 = vpop.f32.mrf.mxu1  ;;  %v12698_v2 = vld [vmem:[#allocation68_spill] sm:$0xff] }
 0x267   : > { %v10440_v36 = vadd.f32 %v2049_v60, %v2001_v9  ;;  %v1955_v28 = vadd.f32 %v1954_v10, %v1905_v18  ;;  %v2446_v59 = vmul.f32 %v7234_v48, %v12698_v2  ;;  %v2430_v60 = vpack.c.bf16 %v2414_v47, %v2414_v47 }
 0x268   : > { %v2525_v4 = vpack.c.bf16 %v2509_v7, %v2509_v7  ;;  %2100 = vmatmul.bf16.gmra.mxu0 %v9765_v25  ;;  %2149 = vmatmul.bf16.gmra.mxu1 %v12694_v63  ;;  %v2402_v44 = vmul.f32 %v7274_v42, %v10272_v14  ;;  %v2354_v12 = vmul.f32 %v7242_v3, %v12699_v11 }
 0x269   : > { %2198 = vmatmul.bf16.gmra.mxu2 %v12695_v37  ;;  %v2559_v63 = vunpack.c.l.b16 %v2430_v60  ;;  %v12702_v60 = vld [vmem:[#allocation48_spill] sm:$0xff] }
 0x26a   : > { %v2590_v29 = vunpack.c.l.b16 %v2525_v4  ;;  %2247 = vmatmul.bf16.gmra.mxu3 %v12696_v51  ;;  %v2418_v37 = vadd.f32 %v2402_v44, %v2354_v12  ;;  %v12705_v12 = vunpack.c.h.bf16 %v10129_v8  ;;  %v12707_v8 = vunpack.c.l.bf16 %v12697_v13  ;;  %v12710_v13 = vld [vmem:[#allocation50_spill] sm:$0xff] }
 0x26b   : > { %v2466_v33 = vpop.permute.xlu1 %2465 }
 0x26c   : > { %v2606_v46 = vpack.c.b16 %v2590_v29, %v2558_v6  ;;  %v2003_v20 = vpop.f32.mrf.mxu2  ;;  %v2494_v25 = vmul.f32 %v7266_v34, %v2466_v33  ;;  %v2450_v6 = vmul.f32 %v7242_v3, %v10259_v39  ;;  %v12703_v39 = vld [vmem:[#allocation49_spill] sm:$0xff] }
 0x26d   : > { %v2004_v61 = vadd.f32 %v2003_v20, %v1955_v28  ;;  %v2052_v49 = vpop.f32.mrf.mxu3  ;;  %v1907_v9 = vpop.f32.mrf.mxu0  ;;  %v2434_v20 = vpack.c.bf16 %v2418_v37, %v2418_v37 }
 0x26e   : > { %2643 = vst [vmem:[%s10402_s27 + $0x10] sm:$0xff] %v2606_v46  ;;  %v1956_v18 = vpop.f32.mrf.mxu1  ;;  %v2510_v57 = vadd.f32 %v2494_v25, %v2446_v59 }
 0x26f   : > { %v10452_v7 = vadd.f32 %v2052_v49, %v2004_v61  ;;  %v1957_v10 = vadd.f32 %v1956_v18, %v1907_v9  ;;  %v12700_v61 = vld [vmem:[#allocation46_spill] sm:$0xff]  ;;  %v12701_v9 = vld [vmem:[#allocation47_spill] sm:$0xff] }
 0x270   : > { %v2526_v4 = vpack.c.bf16 %v2510_v57, %v2510_v57  ;;  %v12704_v57 = vunpack.c.h.bf16 %v10126_v5 }
 0x272   : > { %v2591_v48 = vunpack.c.l.b16 %v2526_v4 }
 0x273   : > { %v2474_v34 = vpop.permute.xlu2 %2473 }
 0x274   : > { %v2005_v28 = vpop.f32.mrf.mxu2  ;;  %v2607_v47 = vpack.c.b16 %v2591_v48, %v2559_v63  ;;  %v2498_v29 = vmul.f32 %v7274_v42, %v2474_v34  ;;  %v2563_v42 = vunpack.c.l.b16 %v2434_v20  ;;  %v12708_v20 = vunpack.c.l.bf16 %v10199_v38  ;;  %v12711_v38 = vld [vmem:[#allocation51_spill] sm:$0xff] }
 0x275   : > { %v2006_v51 = vadd.f32 %v2005_v28, %v1957_v10  ;;  %v2054_v46 = vpop.f32.mrf.mxu3  ;;  %v1910_v14 = vpop.f32.mrf.mxu0  ;;  %v2448_v10 = vmul.f32 %v12704_v57, %v10220_v53  ;;  %v12706_v28 = vld [vmem:[#allocation67_spill] sm:$0xff] }
 0x276   : > { %v1959_v33 = vpop.f32.mrf.mxu1  ;;  %2644 = vst [vmem:[%s10402_s27 + $0x18] sm:$0xff] %v2607_v47  ;;  %v2514_v2 = vadd.f32 %v2498_v29, %v2450_v6  ;;  %v2432_v6 = vpack.c.bf16 %v12706_v28, %v12706_v28  ;;  %v12715_v28 = vunpack.c.l.bf16 %v10235_v54 }
 0x277   : > { %v10457_v59 = vadd.f32 %v2054_v46, %v2006_v51  ;;  %v1960_v25 = vadd.f32 %v1959_v33, %v1910_v14  ;;  %v2449_v33 = vmul.f32 %v12707_v8, %v10237_v40  ;;  %v12712_v40 = vld [vmem:[#allocation52_spill] sm:$0xff] }
 0x278   : > { %2105 = vmatmul.bf16.gmra.mxu0 %v12700_v61  ;;  %v2530_v49 = vpack.c.bf16 %v2514_v2, %v2514_v2  ;;  %2154 = vmatmul.bf16.gmra.mxu1 %v12701_v9  ;;  %v2561_v5 = vunpack.c.l.b16 %v2432_v6 }
 0x279   : > { %2203 = vmatmul.bf16.gmra.mxu2 %v12702_v60 }
 0x27a   : > { %2252 = vmatmul.bf16.gmra.mxu3 %v12703_v39  ;;  %v2595_v3 = vunpack.c.l.b16 %v2530_v49  ;;  %v12709_v39 = vld [vmem:[#allocation71_spill] sm:$0xff] }
 0x27b   : > { %v2470_v18 = vpop.permute.xlu0 %2469 }
 0x27c   : > { %v2008_v44 = vpop.f32.mrf.mxu2  ;;  %v2611_v11 = vpack.c.b16 %v2595_v3, %v2563_v42  ;;  %v2496_v4 = vmul.f32 %v12705_v12, %v2470_v18  ;;  %v2433_v42 = vpack.c.bf16 %v12709_v39, %v12709_v39  ;;  %v12717_v39 = vunpack.c.l.bf16 %v10172_v31 }
 0x27d   : > { %v2009_v63 = vadd.f32 %v2008_v44, %v1960_v25  ;;  %v2057_v37 = vpop.f32.mrf.mxu3  ;;  %v1912_v48 = vpop.f32.mrf.mxu0 }
 0x27e   : > { %v1961_v34 = vpop.f32.mrf.mxu1  ;;  %2648 = vst [vmem:[%s10402_s27 + $0x38] sm:$0xff] %v2611_v11  ;;  %v2512_v47 = vadd.f32 %v2496_v4, %v2448_v10  ;;  %v2562_v11 = vunpack.c.l.b16 %v2433_v42  ;;  %v12713_v4 = vld [vmem:[#allocation53_spill] sm:$0xff] }
 0x27f   : > { %v10471_v29 = vadd.f32 %v2057_v37, %v2009_v63  ;;  %v1962_v51 = vadd.f32 %v1961_v34, %v1912_v48  ;;  %v12714_v37 = vunpack.c.l.bf16 %v10240_v50 }
 0x280   : > { %v2528_v46 = vpack.c.bf16 %v2512_v47, %v2512_v47 }
 0x281   : > { %v2453_v48 = vmul.f32 %v12714_v37, %v10328_v58 }
 0x282   : > { %v2593_v53 = vunpack.c.l.b16 %v2528_v46 }
 0x283   : > { %v2472_v14 = vpop.permute.xlu1 %2471 }
 0x284   : > { %v2497_v2 = vmul.f32 %v12708_v20, %v2472_v14  ;;  %v2010_v25 = vpop.f32.mrf.mxu2  ;;  %v2609_v61 = vpack.c.b16 %v2593_v53, %v2561_v5  ;;  %v2437_v53 = vpack.c.bf16 %v10303_v43, %v10303_v43 }
 0x285   : > { %v2011_v49 = vadd.f32 %v2010_v25, %v1962_v51  ;;  %v2059_v9 = vpop.f32.mrf.mxu3  ;;  %v1915_v60 = vpop.f32.mrf.mxu0 }
 0x286   : > { %v2513_v3 = vadd.f32 %v2497_v2, %v2449_v33  ;;  %v1964_v18 = vpop.f32.mrf.mxu1  ;;  %2646 = vst [vmem:[%s10402_s27 + $0x28] sm:$0xff] %v2609_v61  ;;  %v2566_v58 = vunpack.c.l.b16 %v2437_v53 }
 0x287   : > { %v10481_v44 = vadd.f32 %v2059_v9, %v2011_v49  ;;  %v1965_v57 = vadd.f32 %v1964_v18, %v1915_v60  ;;  %v12716_v49 = vunpack.c.l.bf16 %v10169_v32 }
 0x288   : > { %v2529_v10 = vpack.c.bf16 %v2513_v3, %v2513_v3  ;;  %2110 = vmatmul.bf16.gmra.mxu0 %v12710_v13  ;;  %2159 = vmatmul.bf16.gmra.mxu1 %v12711_v38 }
 0x289   : > { %2208 = vmatmul.bf16.gmra.mxu2 %v12712_v40  ;;  %v2451_v9 = vmul.f32 %v12716_v49, %v10282_v16  ;;  %v12719_v16 = vld [vmem:[#allocation54_spill] sm:$0xff] }
 0x28a   : > { %v2594_v12 = vunpack.c.l.b16 %v2529_v10  ;;  %2257 = vmatmul.bf16.gmra.mxu3 %v12713_v4  ;;  %v12718_v10 = vld [vmem:[#allocation70_spill] sm:$0xff] }
 0x28b   : > { %v2480_v63 = vpop.permute.xlu2 %2479  ;;  %v2435_v13 = vpack.c.bf16 %v12718_v10, %v12718_v10 }
 0x28c   : > { %v2610_v34 = vpack.c.b16 %v2594_v12, %v2562_v11  ;;  %v2501_v6 = vmul.f32 %v12715_v28, %v2480_v63  ;;  %v2013_v47 = vpop.f32.mrf.mxu2  ;;  %v12720_v63 = vld [vmem:[#allocation55_spill] sm:$0xff] }
 0x28d   : > { %v2014_v51 = vadd.f32 %v2013_v47, %v1965_v57  ;;  %v2062_v46 = vpop.f32.mrf.mxu3  ;;  %v1917_v5 = vpop.f32.mrf.mxu0  ;;  %v2564_v37 = vunpack.c.l.b16 %v2435_v13 }
 0x28e   : > { %2647 = vst [vmem:[%s10402_s27 + $0x30] sm:$0xff] %v2610_v34  ;;  %v2517_v14 = vadd.f32 %v2501_v6, %v2453_v48  ;;  %v1966_v8 = vpop.f32.mrf.mxu1  ;;  %v12721_v34 = vld [vmem:[#allocation56_spill] sm:$0xff] }
 0x28f   : > { %v10495_v33 = vadd.f32 %v2062_v46, %v2014_v51  ;;  %v1967_v20 = vadd.f32 %v1966_v8, %v1917_v5  ;;  %v12722_v51 = vunpack.c.h.bf16 %v10169_v32  ;;  %v12723_v5 = vunpack.c.h.bf16 %v10172_v31 }
 0x290   : > { %v2533_v2 = vpack.c.bf16 %v2517_v14, %v2517_v14  ;;  %v12725_v31 = vunpack.c.h.bf16 %v10321_v55 }
 0x291   : > { %v2452_v46 = vmul.f32 %v12722_v51, %v10305_v0 }
 0x292   : > { %v2598_v25 = vunpack.c.l.b16 %v2533_v2  ;;  %v12724_v2 = vld [vmem:[#allocation73_spill] sm:$0xff] }
 0x293   : > { %v2476_v61 = vpop.permute.xlu0 %2475 }
 0x294   : > { %v2614_v60 = vpack.c.b16 %v2598_v25, %v2566_v58  ;;  %v2499_v42 = vmul.f32 %v12717_v39, %v2476_v61  ;;  %v2015_v43 = vpop.f32.mrf.mxu2  ;;  %v2436_v58 = vpack.c.bf16 %v12724_v2, %v12724_v2 }
 0x295   : > { %v2016_v3 = vadd.f32 %v2015_v43, %v1967_v20  ;;  %v2064_v18 = vpop.f32.mrf.mxu3  ;;  %v1920_v57 = vpop.f32.mrf.mxu0 }
 0x296   : > { %2651 = vst [vmem:[%s10402_s27 + $0x50] sm:$0xff] %v2614_v60  ;;  %v2515_v38 = vadd.f32 %v2499_v42, %v2451_v9  ;;  %v1969_v40 = vpop.f32.mrf.mxu1  ;;  %v2565_v60 = vunpack.c.l.b16 %v2436_v58  ;;  %v2456_v42 = vmul.f32 %v12725_v31, %v10381_v35  ;;  %v12728_v35 = vld [vmem:[#allocation58_spill] sm:$0xff]  ;;  %v12733_v58 = vld [vmem:[#allocation72_spill] sm:$0xff]  ;;  %v12735_v31 = vunpack.c.l.bf16 %v10324_v27 }
 0x297   : > { %v10505_v11 = vadd.f32 %v2064_v18, %v2016_v3  ;;  %v1970_v12 = vadd.f32 %v1969_v40, %v1920_v57  ;;  %v12726_v3 = vunpack.c.h.bf16 %v10324_v27  ;;  %v2440_v40 = vpack.c.bf16 %v10373_v30, %v10373_v30  ;;  %v12737_v27 = vld [vmem:[#allocation62_spill] sm:$0xff] }
 0x298   : > { %v2531_v4 = vpack.c.bf16 %v2515_v38, %v2515_v38  ;;  %2115 = vmatmul.bf16.gmra.mxu0 %v9849_v41  ;;  %2164 = vmatmul.bf16.gmra.mxu1 %v12719_v16  ;;  %v12731_v30 = vunpack.c.h.bf16 %v10240_v50 }
 0x299   : > { %2213 = vmatmul.bf16.gmra.mxu2 %v12720_v63  ;;  %v12727_v63 = vld [vmem:[#allocation57_spill] sm:$0xff] }
 0x29a   : > { %v2596_v48 = vunpack.c.l.b16 %v2531_v4  ;;  %2262 = vmatmul.bf16.gmra.mxu3 %v12721_v34  ;;  %v12730_v34 = vld [vmem:[#allocation60_spill] sm:$0xff] }
 0x29b   : > { %v2478_v6 = vpop.permute.xlu1 %2477 }
 0x29c   : > { %v2612_v28 = vpack.c.b16 %v2596_v48, %v2564_v37  ;;  %v2018_v47 = vpop.f32.mrf.mxu2  ;;  %v2500_v53 = vmul.f32 %v12723_v5, %v2478_v6  ;;  %v12729_v48 = vld [vmem:[#allocation59_spill] sm:$0xff] }
 0x29d   : > { %v2019_v14 = vadd.f32 %v2018_v47, %v1970_v12  ;;  %v2067_v41 = vpop.f32.mrf.mxu3  ;;  %v1922_v8 = vpop.f32.mrf.mxu0 }
 0x29e   : > { %2649 = vst [vmem:[%s10402_s27 + $0x40] sm:$0xff] %v2612_v28  ;;  %v1971_v20 = vpop.f32.mrf.mxu1  ;;  %v2516_v25 = vadd.f32 %v2500_v53, %v2452_v46  ;;  %v2569_v28 = vunpack.c.l.b16 %v2440_v40  ;;  %v2454_v46 = vmul.f32 %v12731_v30, %v10349_v15  ;;  %v12732_v53 = vunpack.c.h.bf16 %v10235_v54 }
 0x29f   : > { %v10519_v61 = vadd.f32 %v2067_v41, %v2019_v14  ;;  %v1972_v49 = vadd.f32 %v1971_v20, %v1922_v8  ;;  %v12734_v54 = vunpack.c.l.bf16 %v10321_v55 }
 0x2a0   : > { %v2532_v9 = vpack.c.bf16 %v2516_v25, %v2516_v25  ;;  %v2438_v25 = vpack.c.bf16 %v12733_v58, %v12733_v58  ;;  %v12741_v58 = vld [vmem:[#allocation74_spill] sm:$0xff] }
 0x2a2   : > { %v2597_v32 = vunpack.c.l.b16 %v2532_v9  ;;  %v2567_v50 = vunpack.c.l.b16 %v2438_v25  ;;  %v2441_v25 = vpack.c.bf16 %v12741_v58, %v12741_v58 }
 0x2a3   : > { %v2486_v0 = vpop.permute.xlu2 %2485 }
 0x2a4   : > { %v2020_v39 = vpop.f32.mrf.mxu2  ;;  %v2613_v43 = vpack.c.b16 %v2597_v32, %v2565_v60  ;;  %v2504_v18 = vmul.f32 %v12726_v3, %v2486_v0 }
 0x2a5   : > { %v2021_v57 = vadd.f32 %v2020_v39, %v1972_v49  ;;  %v2069_v10 = vpop.f32.mrf.mxu3  ;;  %v1925_v13 = vpop.f32.mrf.mxu0  ;;  %v2455_v39 = vmul.f32 %v12734_v54, %v10375_v56  ;;  %v12736_v56 = vld [vmem:[#allocation61_spill] sm:$0xff] }
 0x2a6   : > { %v1974_v38 = vpop.f32.mrf.mxu1  ;;  %2650 = vst [vmem:[%s10402_s27 + $0x48] sm:$0xff] %v2613_v43  ;;  %v2520_v12 = vadd.f32 %v2504_v18, %v2456_v42 }
 0x2a7   : > { %v10529_v4 = vadd.f32 %v2069_v10, %v2021_v57  ;;  %v1975_v16 = vadd.f32 %v1974_v38, %v1925_v13  ;;  %v2439_v13 = vpack.c.bf16 %v10347_v52, %v10347_v52 }
 0x2a8   : > { %2120 = vmatmul.bf16.gmra.mxu0 %v12727_v63  ;;  %v2536_v37 = vpack.c.bf16 %v2520_v12, %v2520_v12  ;;  %2169 = vmatmul.bf16.gmra.mxu1 %v12728_v35  ;;  %v12738_v35 = vld [vmem:[#allocation63_spill] sm:$0xff] }
 0x2a9   : > { %2218 = vmatmul.bf16.gmra.mxu2 %v12729_v48  ;;  %v2568_v63 = vunpack.c.l.b16 %v2439_v13 }
 0x2aa   : > { %2267 = vmatmul.bf16.gmra.mxu3 %v12730_v34  ;;  %v2601_v6 = vunpack.c.l.b16 %v2536_v37 }
 0x2ab   : > { %v2482_v47 = vpop.permute.xlu0 %2481 }
 0x2ac   : > { %v2023_v51 = vpop.f32.mrf.mxu2  ;;  %v2617_v5 = vpack.c.b16 %v2601_v6, %v2569_v28  ;;  %v2502_v14 = vmul.f32 %v12732_v53, %v2482_v47  ;;  %v12740_v53 = vunpack.c.l.bf16 %v10301_v62 }
 0x2ad   : > { %v2024_v41 = vadd.f32 %v2023_v51, %v1975_v16  ;;  %v2072_v8 = vpop.f32.mrf.mxu3  ;;  %v1927_v20 = vpop.f32.mrf.mxu0 }
 0x2ae   : > { %v1976_v2 = vpop.f32.mrf.mxu1  ;;  %2654 = vst [vmem:[%s10402_s27 + $0x68] sm:$0xff] %v2617_v5  ;;  %v2518_v49 = vadd.f32 %v2502_v14, %v2454_v46 }
 0x2af   : > { %v10543_v9 = vadd.f32 %v2072_v8, %v2024_v41  ;;  %v1977_v60 = vadd.f32 %v1976_v2, %v1927_v20 }
 0x2b0   : > { %v2534_v32 = vpack.c.bf16 %v2518_v49, %v2518_v49 }
 0x2b2   : > { %v2599_v15 = vunpack.c.l.b16 %v2534_v32 }
 0x2b3   : > { %v2484_v0 = vpop.permute.xlu1 %2483 }
 0x2b4   : > { %v2503_v42 = vmul.f32 %v12735_v31, %v2484_v0  ;;  %v2025_v43 = vpop.f32.mrf.mxu2  ;;  %v2615_v3 = vpack.c.b16 %v2599_v15, %v2567_v50 }
 0x2b5   : > { %v2026_v18 = vadd.f32 %v2025_v43, %v1977_v60  ;;  %v2074_v57 = vpop.f32.mrf.mxu3  ;;  %v1930_v10 = vpop.f32.mrf.mxu0 }
 0x2b6   : > { %v2519_v38 = vadd.f32 %v2503_v42, %v2455_v39  ;;  %v1979_v40 = vpop.f32.mrf.mxu1  ;;  %2652 = vst [vmem:[%s10402_s27 + $0x58] sm:$0xff] %v2615_v3  ;;  %v12742_v42 = vunpack.c.h.bf16 %v10298_v1  ;;  %v12743_v3 = vunpack.c.h.bf16 %v10301_v62 }
 0x2b7   : > { %v10553_v12 = vadd.f32 %v2074_v57, %v2026_v18  ;;  %v1980_v16 = vadd.f32 %v1979_v40, %v1930_v10 }
 0x2b8   : > { %v2535_v55 = vpack.c.bf16 %v2519_v38, %v2519_v38  ;;  %2125 = vmatmul.bf16.gmra.mxu0 %v9905_v45  ;;  %2174 = vmatmul.bf16.gmra.mxu1 %v12736_v56  ;;  %v12739_v45 = vunpack.c.l.bf16 %v10298_v1  ;;  %v2458_v43 = vmul.f32 %v12742_v42, %v10419_v17 }
 0x2b9   : > { %2223 = vmatmul.bf16.gmra.mxu2 %v12737_v27 }
 0x2ba   : > { %v2600_v37 = vunpack.c.l.b16 %v2535_v55  ;;  %2272 = vmatmul.bf16.gmra.mxu3 %v12738_v35  ;;  %v2457_v5 = vmul.f32 %v12739_v45, %v10407_v26  ;;  %v2570_v26 = vunpack.c.l.b16 %v2441_v25 }
 0x2bc   : > { %v2616_v48 = vpack.c.b16 %v2600_v37, %v2568_v63  ;;  %v2028_v52 = vpop.f32.mrf.mxu2 }
 0x2bd   : > { %v2029_v34 = vadd.f32 %v2028_v52, %v1980_v16  ;;  %v2077_v28 = vpop.f32.mrf.mxu3  ;;  %v1932_v6 = vpop.f32.mrf.mxu0 }
 0x2be   : > { %2653 = vst [vmem:[%s10402_s27 + $0x60] sm:$0xff] %v2616_v48  ;;  %v1981_v47 = vpop.f32.mrf.mxu1 }
 0x2bf   : > { %v10560_v51 = vadd.f32 %v2077_v28, %v2029_v34  ;;  %v1982_v30 = vadd.f32 %v1981_v47, %v1932_v6 }
 0x2c3   : > { %v2488_v46 = vpop.permute.xlu0 %2487 }
 0x2c4   : > { %v2505_v14 = vmul.f32 %v12740_v53, %v2488_v46  ;;  %v2030_v41 = vpop.f32.mrf.mxu2 }
 0x2c5   : > { %v2031_v8 = vadd.f32 %v2030_v41, %v1982_v30  ;;  %v2079_v20 = vpop.f32.mrf.mxu3  ;;  %v1935_v2 = vpop.f32.mrf.mxu0 }
 0x2c6   : > { %v2521_v49 = vadd.f32 %v2505_v14, %v2457_v5  ;;  %v1984_v60 = vpop.f32.mrf.mxu1 }
 0x2c7   : > { %v10569_v32 = vadd.f32 %v2079_v20, %v2031_v8  ;;  %v1985_v50 = vadd.f32 %v1984_v60, %v1935_v2 }
 0x2c8   : > { %v2537_v15 = vpack.c.bf16 %v2521_v49, %v2521_v49  ;;  %2130 = vmatmul.bf16.gmra.mxu0 %v9933_v21  ;;  %2179 = vmatmul.bf16.gmra.mxu1 %v9935_v22 }
 0x2c9   : > { %2228 = vmatmul.bf16.gmra.mxu2 %v9937_v23  ;;  %v12744_v23 = vld [vmem:[#allocation75_spill] sm:$0xff] }
 0x2ca   : > { %v2602_v0 = vunpack.c.l.b16 %v2537_v15  ;;  %2277 = vmatmul.bf16.gmra.mxu3 %v9939_v24  ;;  %v2442_v13 = vpack.c.bf16 %v12744_v23, %v12744_v23 }
 0x2cb   : > { %v2490_v39 = vpop.permute.xlu1 %2489 }
 0x2cc   : > { %v2618_v54 = vpack.c.b16 %v2602_v0, %v2570_v26  ;;  %v2033_v31 = vpop.f32.mrf.mxu2  ;;  %v2506_v18 = vmul.f32 %v12743_v3, %v2490_v39  ;;  %v2571_v55 = vunpack.c.l.b16 %v2442_v13 }
 0x2cd   : > { %v2034_v57 = vadd.f32 %v2033_v31, %v1985_v50  ;;  %v2082_v21 = vpop.f32.mrf.mxu3  ;;  %v1937_v10 = vpop.f32.mrf.mxu0 }
 0x2ce   : > { %2655 = vst [vmem:[%s10402_s27 + $0x70] sm:$0xff] %v2618_v54  ;;  %v1986_v22 = vpop.f32.mrf.mxu1  ;;  %v2522_v24 = vadd.f32 %v2506_v18, %v2458_v43 }
 0x2cf   : > { %v10583_v38 = vadd.f32 %v2082_v21, %v2034_v57  ;;  %v1987_v40 = vadd.f32 %v1986_v22, %v1937_v10 }
 0x2d0   : > { %v2538_v16 = vpack.c.bf16 %v2522_v24, %v2522_v24 }
 0x2d2   : > { %v2603_v1 = vunpack.c.l.b16 %v2538_v16 }
 0x2d4   : > { %v2035_v17 = vpop.f32.mrf.mxu2  ;;  %v2619_v62 = vpack.c.b16 %v2603_v1, %v2571_v55 }
 0x2d5   : > { %v2036_v56 = vadd.f32 %v2035_v17, %v1987_v40  ;;  %v2084_v27 = vpop.f32.mrf.mxu3  ;;  %v2096_v63 = vpop.f32.mrf.mxu0 }
 0x2d6   : > { %v2145_v37 = vpop.f32.mrf.mxu1  ;;  %2656 = vst [vmem:[%s10402_s27 + $0x78] sm:$0xff] %v2619_v62 }
 0x2d7   : > { %v10586_v35 = vadd.f32 %v2084_v27, %v2036_v56  ;;  %v2146_v48 = vadd.f32 %v2145_v37, %v2096_v63 }
 0x2dc   : > { %v2194_v52 = vpop.f32.mrf.mxu2 }
 0x2dd   : > { %v2195_v34 = vadd.f32 %v2194_v52, %v2146_v48  ;;  %v2243_v28 = vpop.f32.mrf.mxu3  ;;  %v2098_v6 = vpop.f32.mrf.mxu0 }
 0x2de   : > { %v2147_v47 = vpop.f32.mrf.mxu1 }
 0x2df   : > { %v2244_v30 = vadd.f32 %v2243_v28, %v2195_v34  ;;  %v2148_v45 = vadd.f32 %v2147_v47, %v2098_v6 }
 0x2e1   : > { %v2657_v46 = vpack.c.bf16 %v2244_v30, %v10433_v19 }
 0x2e3   : > { %2675 = vst [vmem:[%s10591_s1] sm:$0xff] %v2657_v46 }
 0x2e4   : > { %v2196_v5 = vpop.f32.mrf.mxu2 }
 0x2e5   : > { %v2197_v53 = vadd.f32 %v2196_v5, %v2148_v45  ;;  %v2245_v14 = vpop.f32.mrf.mxu3  ;;  %v2101_v41 = vpop.f32.mrf.mxu0 }
 0x2e6   : > { %v2150_v8 = vpop.f32.mrf.mxu1 }
 0x2e7   : > { %v2246_v20 = vadd.f32 %v2245_v14, %v2197_v53  ;;  %v2151_v58 = vadd.f32 %v2150_v8, %v2101_v41 }
 0x2e9   : > { %v2658_v2 = vpack.c.bf16 %v2246_v20, %v10440_v36 }
 0x2eb   : > { %2676 = vst [vmem:[%s10591_s1 + $0x8] sm:$0xff] %v2658_v2 }
 0x2ec   : > { %v2199_v25 = vpop.f32.mrf.mxu2 }
 0x2ed   : > { %v2200_v19 = vadd.f32 %v2199_v25, %v2151_v58  ;;  %v2248_v49 = vpop.f32.mrf.mxu3  ;;  %v2103_v60 = vpop.f32.mrf.mxu0 }
 0x2ee   : > { %v2152_v50 = vpop.f32.mrf.mxu1 }
 0x2ef   : > { %v2249_v15 = vadd.f32 %v2248_v49, %v2200_v19  ;;  %v2153_v0 = vadd.f32 %v2152_v50, %v2103_v60 }
 0x2f1   : > { %v2659_v26 = vpack.c.bf16 %v2249_v15, %v10452_v7 }
 0x2f3   : > { %2677 = vst [vmem:[%s10591_s1 + $0x10] sm:$0xff] %v2659_v26 }
 0x2f4   : > { %v2201_v54 = vpop.f32.mrf.mxu2 }
 0x2f5   : > { %v2202_v39 = vadd.f32 %v2201_v54, %v2153_v0  ;;  %v2250_v31 = vpop.f32.mrf.mxu3  ;;  %v2106_v42 = vpop.f32.mrf.mxu0 }
 0x2f6   : > { %v2155_v43 = vpop.f32.mrf.mxu1 }
 0x2f7   : > { %v2251_v36 = vadd.f32 %v2250_v31, %v2202_v39  ;;  %v2156_v18 = vadd.f32 %v2155_v43, %v2106_v42 }
 0x2f9   : > { %v2660_v3 = vpack.c.bf16 %v2251_v36, %v10457_v59 }
 0x2fb   : > { %2678 = vst [vmem:[%s10591_s1 + $0x18] sm:$0xff] %v2660_v3 }
 0x2fc   : > { %v2204_v57 = vpop.f32.mrf.mxu2 }
 0x2fd   : > { %v2205_v21 = vadd.f32 %v2204_v57, %v2156_v18  ;;  %v2253_v10 = vpop.f32.mrf.mxu3  ;;  %v2108_v22 = vpop.f32.mrf.mxu0 }
 0x2fe   : > { %v2157_v23 = vpop.f32.mrf.mxu1 }
 0x2ff   : > { %v2254_v7 = vadd.f32 %v2253_v10, %v2205_v21  ;;  %v2158_v24 = vadd.f32 %v2157_v23, %v2108_v22 }
 0x301   : > { %v2661_v13 = vpack.c.bf16 %v2254_v7, %v10471_v29 }
 0x303   : > { %2679 = vst [vmem:[%s10591_s1 + $0x20] sm:$0xff] %v2661_v13 }
 0x304   : > { %v2206_v40 = vpop.f32.mrf.mxu2 }
 0x305   : > { %v2207_v16 = vadd.f32 %v2206_v40, %v2158_v24  ;;  %v2255_v55 = vpop.f32.mrf.mxu3  ;;  %v2111_v1 = vpop.f32.mrf.mxu0 }
 0x306   : > { %v2160_v17 = vpop.f32.mrf.mxu1 }
 0x307   : > { %v2256_v59 = vadd.f32 %v2255_v55, %v2207_v16  ;;  %v2161_v56 = vadd.f32 %v2160_v17, %v2111_v1 }
 0x309   : > { %v2662_v62 = vpack.c.bf16 %v2256_v59, %v10481_v44 }
 0x30b   : > { %2680 = vst [vmem:[%s10591_s1 + $0x28] sm:$0xff] %v2662_v62 }
 0x30c   : > { %v2209_v27 = vpop.f32.mrf.mxu2 }
 0x30d   : > { %v2210_v63 = vadd.f32 %v2209_v27, %v2161_v56  ;;  %v2258_v37 = vpop.f32.mrf.mxu3  ;;  %v2113_v48 = vpop.f32.mrf.mxu0 }
 0x30e   : > { %v2162_v52 = vpop.f32.mrf.mxu1 }
 0x30f   : > { %v2259_v29 = vadd.f32 %v2258_v37, %v2210_v63  ;;  %v2163_v28 = vadd.f32 %v2162_v52, %v2113_v48 }
 0x311   : > { %v2663_v34 = vpack.c.bf16 %v2259_v29, %v10495_v33 }
 0x313   : > { %2681 = vst [vmem:[%s10591_s1 + $0x30] sm:$0xff] %v2663_v34 }
 0x314   : > { %v2211_v6 = vpop.f32.mrf.mxu2 }
 0x315   : > { %v2212_v47 = vadd.f32 %v2211_v6, %v2163_v28  ;;  %v2260_v30 = vpop.f32.mrf.mxu3  ;;  %v2116_v46 = vpop.f32.mrf.mxu0 }
 0x316   : > { %v2165_v45 = vpop.f32.mrf.mxu1 }
 0x317   : > { %v2261_v44 = vadd.f32 %v2260_v30, %v2212_v47  ;;  %v2166_v53 = vadd.f32 %v2165_v45, %v2116_v46 }
 0x319   : > { %v2664_v5 = vpack.c.bf16 %v2261_v44, %v10505_v11 }
 0x31b   : > { %2682 = vst [vmem:[%s10591_s1 + $0x38] sm:$0xff] %v2664_v5 }
 0x31c   : > { %v2214_v14 = vpop.f32.mrf.mxu2 }
 0x31d   : > { %v2215_v41 = vadd.f32 %v2214_v14, %v2166_v53  ;;  %v2263_v8 = vpop.f32.mrf.mxu3  ;;  %v2118_v20 = vpop.f32.mrf.mxu0 }
 0x31e   : > { %v2167_v2 = vpop.f32.mrf.mxu1 }
 0x31f   : > { %v2264_v33 = vadd.f32 %v2263_v8, %v2215_v41  ;;  %v2168_v25 = vadd.f32 %v2167_v2, %v2118_v20 }
 0x321   : > { %v2665_v58 = vpack.c.bf16 %v2264_v33, %v10519_v61 }
 0x323   : > { %2683 = vst [vmem:[%s10591_s1 + $0x40] sm:$0xff] %v2665_v58 }
 0x324   : > { %v2216_v19 = vpop.f32.mrf.mxu2 }
 0x325   : > { %v2217_v49 = vadd.f32 %v2216_v19, %v2168_v25  ;;  %v2265_v60 = vpop.f32.mrf.mxu3  ;;  %v2121_v50 = vpop.f32.mrf.mxu0 }
 0x326   : > { %v2170_v15 = vpop.f32.mrf.mxu1 }
 0x327   : > { %v2266_v11 = vadd.f32 %v2265_v60, %v2217_v49  ;;  %v2171_v0 = vadd.f32 %v2170_v15, %v2121_v50 }
 0x329   : > { %v2666_v26 = vpack.c.bf16 %v2266_v11, %v10529_v4 }
 0x32b   : > { %2684 = vst [vmem:[%s10591_s1 + $0x48] sm:$0xff] %v2666_v26 }
 0x32c   : > { %v2219_v54 = vpop.f32.mrf.mxu2 }
 0x32d   : > { %v2220_v39 = vadd.f32 %v2219_v54, %v2171_v0  ;;  %v2268_v31 = vpop.f32.mrf.mxu3  ;;  %v2123_v42 = vpop.f32.mrf.mxu0 }
 0x32e   : > { %v2172_v43 = vpop.f32.mrf.mxu1 }
 0x32f   : > { %v2269_v61 = vadd.f32 %v2268_v31, %v2220_v39  ;;  %v2173_v3 = vadd.f32 %v2172_v43, %v2123_v42 }
 0x331   : > { %v2667_v36 = vpack.c.bf16 %v2269_v61, %v10543_v9 }
 0x333   : > { %2685 = vst [vmem:[%s10591_s1 + $0x50] sm:$0xff] %v2667_v36 }
 0x334   : > { %v2221_v18 = vpop.f32.mrf.mxu2 }
 0x335   : > { %v2222_v57 = vadd.f32 %v2221_v18, %v2173_v3  ;;  %v2270_v21 = vpop.f32.mrf.mxu3  ;;  %v2126_v10 = vpop.f32.mrf.mxu0 }
 0x336   : > { %v2175_v22 = vpop.f32.mrf.mxu1 }
 0x337   : > { %v2271_v4 = vadd.f32 %v2270_v21, %v2222_v57  ;;  %v2176_v7 = vadd.f32 %v2175_v22, %v2126_v10 }
 0x339   : > { %v2668_v23 = vpack.c.bf16 %v2271_v4, %v10553_v12 }
 0x33b   : > { %2686 = vst [vmem:[%s10591_s1 + $0x58] sm:$0xff] %v2668_v23 }
 0x33c   : > { %v2224_v13 = vpop.f32.mrf.mxu2 }
 0x33d   : > { %v2225_v24 = vadd.f32 %v2224_v13, %v2176_v7  ;;  %v2273_v40 = vpop.f32.mrf.mxu3  ;;  %v2128_v16 = vpop.f32.mrf.mxu0 }
 0x33e   : > { %v2177_v55 = vpop.f32.mrf.mxu1 }
 0x33f   : > { %v2274_v9 = vadd.f32 %v2273_v40, %v2225_v24  ;;  %v2178_v17 = vadd.f32 %v2177_v55, %v2128_v16 }
 0x341   : > { %v2669_v1 = vpack.c.bf16 %v2274_v9, %v10560_v51 }
 0x343   : > { %2687 = vst [vmem:[%s10591_s1 + $0x60] sm:$0xff] %v2669_v1 }
 0x344   : > { %v2226_v59 = vpop.f32.mrf.mxu2 }
 0x345   : > { %v2227_v62 = vadd.f32 %v2226_v59, %v2178_v17  ;;  %v2275_v56 = vpop.f32.mrf.mxu3  ;;  %v2131_v27 = vpop.f32.mrf.mxu0 }
 0x346   : > { %v2180_v63 = vpop.f32.mrf.mxu1 }
 0x347   : > { %v2276_v12 = vadd.f32 %v2275_v56, %v2227_v62  ;;  %v2181_v48 = vadd.f32 %v2180_v63, %v2131_v27 }
 0x349   : > { %v2670_v37 = vpack.c.bf16 %v2276_v12, %v10569_v32 }
 0x34b   : > { %2688 = vst [vmem:[%s10591_s1 + $0x68] sm:$0xff] %v2670_v37 }
 0x34c   : > { %v2229_v52 = vpop.f32.mrf.mxu2 }
 0x34d   : > { %v2230_v29 = vadd.f32 %v2229_v52, %v2181_v48  ;;  %v2278_v34 = vpop.f32.mrf.mxu3  ;;  %v2133_v6 = vpop.f32.mrf.mxu0 }
 0x34e   : > { %v2182_v51 = vpop.f32.mrf.mxu1 }
 0x34f   : > { %v2279_v28 = vadd.f32 %v2278_v34, %v2230_v29  ;;  %v2183_v30 = vadd.f32 %v2182_v51, %v2133_v6 }
 0x351   : > { %v2671_v47 = vpack.c.bf16 %v2279_v28, %v10583_v38 }
 0x353   : > { %2689 = vst [vmem:[%s10591_s1 + $0x70] sm:$0xff] %v2671_v47 }
 0x354   : > { %v2231_v46 = vpop.f32.mrf.mxu2 }
 0x355   : > { %v2232_v45 = vadd.f32 %v2231_v46, %v2183_v30  ;;  %v2280_v44 = vpop.f32.mrf.mxu3 }
 0x357   : > { %v2281_v5 = vadd.f32 %v2280_v44, %v2232_v45 }
 0x359   : > { %v2672_v53 = vpack.c.bf16 %v2281_v5, %v10586_v35 }
 0x35b   : > { %2690 = vst [vmem:[%s10591_s1 + $0x78] sm:$0xff] %v2672_v53 }
 0x35c PF: > { %v6345_v32 = vld [vmem:[%s9616_s14 + $0x70] sm:$0xf]  ;;  %v7093_v38 = vld [vmem:[%s9616_s14 + $0x74] sm:$0xf0]  ;;  %v6337_v19 = vld [vmem:[%s9616_s14 + $0x60] sm:$0xf] }
 0x35d   : > { %v6409_v14 = vld [vmem:[%s9616_s14 + $0xf0] sm:$0xf]  ;;  %v6346_v41 = vor.u32 %v7093_v38, %v6345_v32  ;;  %v7109_v8 = vld [vmem:[%s9616_s14 + $0xf4] sm:$0xf0]  ;;  %v7091_v60 = vld [vmem:[%s9616_s14 + $0x64] sm:$0xf0] }
 0x35e   : > { %v6473_v35 = vld [vmem:[%s9616_s14 + $0x170] sm:$0xf]  ;;  %v7125_v20 = vld [vmem:[%s9616_s14 + $0x174] sm:$0xf0]  ;;  %v6410_v2 = vor.u32 %v7109_v8, %v6409_v14  ;;  %v6401_v50 = vld [vmem:[%s9616_s14 + $0xe0] sm:$0xf]  ;;  %v6338_v11 = vor.u32 %v7091_v60, %v6337_v19 }
 0x35f   : > { %v6474_v33 = vor.u32 %v7125_v20, %v6473_v35  ;;  %v6537_v58 = vld [vmem:[%s9616_s14 + $0x1f0] sm:$0xf]  ;;  %v7141_v25 = vld [vmem:[%s9616_s14 + $0x1f4] sm:$0xf0]  ;;  %3177 = vmatpush.bf16.msra.mxu0 %v6346_v41  ;;  %v7107_v15 = vld [vmem:[%s9616_s14 + $0xe4] sm:$0xf0] }
 0x360   : > { %v6538_v49 = vor.u32 %v7141_v25, %v6537_v58  ;;  %3206 = vmatpush.bf16.msra.mxu1 %v6410_v2  ;;  %v6402_v26 = vor.u32 %v7107_v15, %v6401_v50  ;;  %v6465_v0 = vld [vmem:[%s9616_s14 + $0x160] sm:$0xf]  ;;  %v7123_v54 = vld [vmem:[%s9616_s14 + $0x164] sm:$0xf0]  ;;  %v6329_v43 = vld [vmem:[%s9616_s14 + $0x50] sm:$0xf] }
 0x361   : > { %3235 = vmatpush.bf16.msra.mxu2 %v6474_v33  ;;  %v6529_v39 = vld [vmem:[%s9616_s14 + $0x1e0] sm:$0xf]  ;;  %v6466_v31 = vor.u32 %v7123_v54, %v6465_v0  ;;  %v7139_v42 = vld [vmem:[%s9616_s14 + $0x1e4] sm:$0xf0]  ;;  %v7089_v61 = vld [vmem:[%s9616_s14 + $0x54] sm:$0xf0] }
 0x362   : > { %3264 = vmatpush.bf16.msra.mxu3 %v6538_v49  ;;  %v6530_v36 = vor.u32 %v7139_v42, %v6529_v39  ;;  %v6393_v3 = vld [vmem:[%s9616_s14 + $0xd0] sm:$0xf]  ;;  %v7105_v18 = vld [vmem:[%s9616_s14 + $0xd4] sm:$0xf0]  ;;  %v6330_v21 = vor.u32 %v7089_v61, %v6329_v43  ;;  %v6321_v13 = vld [vmem:[%s9616_s14 + $0x40] sm:$0xf] }
 0x363   : > { %v6457_v57 = vld [vmem:[%s9616_s14 + $0x150] sm:$0xf]  ;;  %3178 = vmatpush.bf16.msra.mxu0 %v6338_v11  ;;  %v7121_v10 = vld [vmem:[%s9616_s14 + $0x154] sm:$0xf0]  ;;  %v6394_v23 = vor.u32 %v7105_v18, %v6393_v3  ;;  %v7087_v24 = vld [vmem:[%s9616_s14 + $0x44] sm:$0xf0] }
 0x364   : > { %v6521_v22 = vld [vmem:[%s9616_s14 + $0x1d0] sm:$0xf]  ;;  %v7137_v4 = vld [vmem:[%s9616_s14 + $0x1d4] sm:$0xf0]  ;;  %3207 = vmatpush.bf16.msra.mxu1 %v6402_v26  ;;  %v6458_v7 = vor.u32 %v7121_v10, %v6457_v57  ;;  %v6385_v40 = vld [vmem:[%s9616_s14 + $0xc0] sm:$0xf]  ;;  %v6322_v62 = vor.u32 %v7087_v24, %v6321_v13 }
 0x365   : > { %3236 = vmatpush.bf16.msra.mxu2 %v6466_v31  ;;  %v6522_v16 = vor.u32 %v7137_v4, %v6521_v22  ;;  %v7103_v55 = vld [vmem:[%s9616_s14 + $0xc4] sm:$0xf0]  ;;  %v6449_v9 = vld [vmem:[%s9616_s14 + $0x140] sm:$0xf]  ;;  %v6313_v63 = vld [vmem:[%s9616_s14 + $0x30] sm:$0xf] }
 0x366   : > { %3265 = vmatpush.bf16.msra.mxu3 %v6530_v36  ;;  %v7119_v1 = vld [vmem:[%s9616_s14 + $0x144] sm:$0xf0]  ;;  %v6513_v17 = vld [vmem:[%s9616_s14 + $0x1c0] sm:$0xf]  ;;  %v6386_v56 = vor.u32 %v7103_v55, %v6385_v40  ;;  %v7085_v12 = vld [vmem:[%s9616_s14 + $0x34] sm:$0xf0] }
 0x367   : > { %v7135_v59 = vld [vmem:[%s9616_s14 + $0x1c4] sm:$0xf0]  ;;  %3179 = vmatpush.bf16.msra.mxu0 %v6330_v21  ;;  %v6450_v27 = vor.u32 %v7119_v1, %v6449_v9  ;;  %v6377_v37 = vld [vmem:[%s9616_s14 + $0xb0] sm:$0xf]  ;;  %v7101_v52 = vld [vmem:[%s9616_s14 + $0xb4] sm:$0xf0]  ;;  %v6314_v51 = vor.u32 %v7085_v12, %v6313_v63 }
 0x368   : > { %3208 = vmatpush.bf16.msra.mxu1 %v6394_v23  ;;  %v6514_v48 = vor.u32 %v7135_v59, %v6513_v17  ;;  %v6441_v29 = vld [vmem:[%s9616_s14 + $0x130] sm:$0xf]  ;;  %v7117_v34 = vld [vmem:[%s9616_s14 + $0x134] sm:$0xf0]  ;;  %v6378_v47 = vor.u32 %v7101_v52, %v6377_v37  ;;  %v6305_v46 = vld [vmem:[%s9616_s14 + $0x20] sm:$0xf] }
 0x369   : > { %3237 = vmatpush.bf16.msra.mxu2 %v6458_v7  ;;  %v6505_v28 = vld [vmem:[%s9616_s14 + $0x1b0] sm:$0xf]  ;;  %v7133_v6 = vld [vmem:[%s9616_s14 + $0x1b4] sm:$0xf0]  ;;  %v6442_v30 = vor.u32 %v7117_v34, %v6441_v29  ;;  %v7083_v45 = vld [vmem:[%s9616_s14 + $0x24] sm:$0xf0] }
 0x36a   : > { %3266 = vmatpush.bf16.msra.mxu3 %v6522_v16  ;;  %v6369_v44 = vld [vmem:[%s9616_s14 + $0xa0] sm:$0xf]  ;;  %v6506_v5 = vor.u32 %v7133_v6, %v6505_v28  ;;  %v7099_v53 = vld [vmem:[%s9616_s14 + $0xa4] sm:$0xf0]  ;;  %s12745_s26 = sld [smem:[#allocation28_spill]]  ;;  %v6306_v8 = vor.u32 %v7083_v45, %v6305_v46  ;;  %s9313_s7 = smov 64  }
 0x36b   : > { %3180 = vmatpush.bf16.msra.mxu0 %v6322_v62  ;;  %v6433_v32 = vld [vmem:[%s9616_s14 + $0x120] sm:$0xf]  ;;  %v7115_v38 = vld [vmem:[%s9616_s14 + $0x124] sm:$0xf0]  ;;  %v6297_v35 = vld [vmem:[%s9616_s14 + $0x10] sm:$0xf]  ;;  %v6370_v20 = vor.u32 %v7099_v53, %v6369_v44 }
 0x36c   : > { %3209 = vmatpush.bf16.msra.mxu1 %v6386_v56  ;;  %v6497_v14 = vld [vmem:[%s9616_s14 + $0x1a0] sm:$0xf]  ;;  %v7131_v41 = vld [vmem:[%s9616_s14 + $0x1a4] sm:$0xf0]  ;;  %v6434_v2 = vor.u32 %v7115_v38, %v6433_v32  ;;  %v7081_v33 = vld [vmem:[%s9616_s14 + $0x14] sm:$0xf0] }
 0x36d   : > { %3238 = vmatpush.bf16.msra.mxu2 %v6450_v27  ;;  %v6361_v58 = vld [vmem:[%s9616_s14 + $0x90] sm:$0xf]  ;;  %v7097_v25 = vld [vmem:[%s9616_s14 + $0x94] sm:$0xf0]  ;;  %v6498_v19 = vor.u32 %v7131_v41, %v6497_v14  ;;  %v6298_v11 = vor.u32 %v7081_v33, %v6297_v35  ;;  %v6289_v54 = vld [vmem:[%s9616_s14] sm:$0xf] }
 0x36e   : > { %3267 = vmatpush.bf16.msra.mxu3 %v6514_v48  ;;  %v6425_v49 = vld [vmem:[%s9616_s14 + $0x110] sm:$0xf]  ;;  %v7113_v60 = vld [vmem:[%s9616_s14 + $0x114] sm:$0xf0]  ;;  %v6362_v26 = vor.u32 %v7097_v25, %v6361_v58  ;;  %v7079_v39 = vld [vmem:[%s9616_s14 + $0x4] sm:$0xf0] }
 0x36f   : > { %3181 = vmatpush.bf16.msra.mxu0 %v6314_v51  ;;  %v6489_v50 = vld [vmem:[%s9616_s14 + $0x190] sm:$0xf]  ;;  %v7129_v15 = vld [vmem:[%s9616_s14 + $0x194] sm:$0xf0]  ;;  %v6426_v0 = vor.u32 %v7113_v60, %v6425_v49  ;;  %v6353_v31 = vld [vmem:[%s9616_s14 + $0x80] sm:$0xf]  ;;  %v6290_v57 = vor.u32 %v7079_v39, %v6289_v54 }
 0x370   : > { %3210 = vmatpush.bf16.msra.mxu1 %v6378_v47  ;;  %s10679_s17 = sshll.u32 %s12745_s26, 6  ;;  %v6490_v42 = vor.u32 %v7129_v15, %v6489_v50  ;;  %v7095_v43 = vld [vmem:[%s9616_s14 + $0x84] sm:$0xf0]  ;;  %v6417_v61 = vld [vmem:[%s9616_s14 + $0x100] sm:$0xf]  ;;  %s12746_s20 = sld [smem:[#allocation27_spill]] }
 0x371   : > { %3239 = vmatpush.bf16.msra.mxu2 %v6442_v30  ;;  %s2692_s30 = sshra.s32 %s10679_s17, 3  ;;  %v7111_v36 = vld [vmem:[%s9616_s14 + $0x104] sm:$0xf0]  ;;  %v6481_v3 = vld [vmem:[%s9616_s14 + $0x180] sm:$0xf]  ;;  %v6354_v4 = vor.u32 %v7095_v43, %v6353_v31  ;;  %s10900_s24 = sadd.s32 1, %s12745_s26 }
 0x372   : > { %3268 = vmatpush.bf16.msra.mxu3 %v6506_v5  ;;  %s7061_s21 = sshll.u32 %s2692_s30, 4  ;;  %v7127_v18 = vld [vmem:[%s9616_s14 + $0x184] sm:$0xf0]  ;;  %v6418_v23 = vor.u32 %v7111_v36, %v6417_v61  ;;  %v7124_v51 = vld [vmem:[%s9616_s14 + $0x174] sm:$0xf]  ;;  %p6546_p5 = scmp.le.s32.totalorder %s10900_s24, 0 }
 0x373   : > { %3182 = vmatpush.bf16.msra.mxu0 %v6306_v8  ;;  %s10690_s13 = scalar_lea.vmem %s9608_s9, %s7061_s21 [#allocation5]  ;;  %v6482_v40 = vor.u32 %v7127_v18, %v6481_v3  ;;  %v6475_v47 = vld [vmem:[%s9616_s14 + $0x178] sm:$0xf0]  ;;  %v7140_v30 = vld [vmem:[%s9616_s14 + $0x1f4] sm:$0xf]  ;;  %v7122_v41 = vld [vmem:[%s9616_s14 + $0x164] sm:$0xf] }
 0x374   : > { %3211 = vmatpush.bf16.msra.mxu1 %v6370_v20  ;;  %v6225_v21 = vld [vmem:[%s10690_s13] sm:$0xf]  ;;  %v7064_v10 = vld [vmem:[%s10690_s13 + $0xc] sm:$0xf0]  ;;  %v7062_v22 = vld [vmem:[%s10690_s13 + $0x4] sm:$0xf]  ;;  %v6478_v46 = vor.u32 %v7124_v51, %v6475_v47 }
 0x375   : > { %3240 = vmatpush.bf16.msra.mxu2 %v6434_v2  ;;  %v6227_v7 = vld [vmem:[%s10690_s13 + $0x10] sm:$0xf0]  ;;  %v6233_v13 = vld [vmem:[%s10690_s13 + $0x8] sm:$0xf]  ;;  %v7065_v24 = vld [vmem:[%s10690_s13 + $0x14] sm:$0xf0]  ;;  %v10705_v9 = vor.u32 %v7064_v10, %v6225_v21 }
 0x376   : > { %3269 = vmatpush.bf16.msra.mxu3 %v6498_v19  ;;  %v7063_v16 = vld [vmem:[%s10690_s13 + $0xc] sm:$0xf]  ;;  %v6235_v55 = vld [vmem:[%s10690_s13 + $0x18] sm:$0xf0]  ;;  %v10707_v1 = vor.u32 %v7062_v22, %v6227_v7  ;;  %v10709_v17 = vor.u32 %v7065_v24, %v6233_v13  ;;  %v6241_v62 = vld [vmem:[%s10690_s13 + $0x20] sm:$0xf] }
 0x377   : > { %3183 = vmatpush.bf16.msra.mxu0 %v6298_v11  ;;  %v10711_v59 = vor.u32 %v7063_v16, %v6235_v55  ;;  %v7068_v56 = vld [vmem:[%s10690_s13 + $0x2c] sm:$0xf0]  ;;  %v7066_v27 = vld [vmem:[%s10690_s13 + $0x24] sm:$0xf]  ;;  %v6243_v63 = vld [vmem:[%s10690_s13 + $0x30] sm:$0xf0] }
 0x378   : > { %3212 = vmatpush.bf16.msra.mxu1 %v6362_v26  ;;  %v6249_v12 = vld [vmem:[%s10690_s13 + $0x28] sm:$0xf]  ;;  %v7069_v37 = vld [vmem:[%s10690_s13 + $0x34] sm:$0xf0]  ;;  %v7067_v48 = vld [vmem:[%s10690_s13 + $0x2c] sm:$0xf]  ;;  %v10725_v29 = vor.u32 %v7068_v56, %v6241_v62  ;;  %v10727_v34 = vor.u32 %v7066_v27, %v6243_v63 }
 0x379   : > { %3241 = vmatpush.bf16.msra.mxu2 %v6426_v0  ;;  %v6251_v52 = vld [vmem:[%s10690_s13 + $0x38] sm:$0xf0]  ;;  %v10729_v28 = vor.u32 %v7069_v37, %v6249_v12  ;;  %v7092_v44 = vld [vmem:[%s9616_s14 + $0x74] sm:$0xf]  ;;  %v6467_v35 = vld [vmem:[%s9616_s14 + $0x168] sm:$0xf0] }
 0x37a   : > { %3270 = vmatpush.bf16.msra.mxu3 %v6490_v42  ;;  %v10731_v6 = vor.u32 %v7067_v48, %v6251_v52  ;;  %v6539_v45 = vld [vmem:[%s9616_s14 + $0x1f8] sm:$0xf0]  ;;  %v7108_v38 = vld [vmem:[%s9616_s14 + $0xf4] sm:$0xf]  ;;  %v7138_v20 = vld [vmem:[%s9616_s14 + $0x1e4] sm:$0xf]  ;;  %v6470_v33 = vor.u32 %v7122_v41, %v6467_v35 }
 0x37b   : > { %3184 = vmatpush.bf16.msra.mxu0 %v6290_v57  ;;  %v6347_v5 = vld [vmem:[%s9616_s14 + $0x78] sm:$0xf0]  ;;  %v6542_v53 = vor.u32 %v7140_v30, %v6539_v45  ;;  %v6531_v2 = vld [vmem:[%s9616_s14 + $0x1e8] sm:$0xf0]  ;;  %v7090_v25 = vld [vmem:[%s9616_s14 + $0x64] sm:$0xf] }
 0x37c   : > { %3213 = vmatpush.bf16.msra.mxu1 %v6354_v4  ;;  %v6350_v32 = vor.u32 %v7092_v44, %v6347_v5  ;;  %v6411_v14 = vld [vmem:[%s9616_s14 + $0xf8] sm:$0xf0]  ;;  %v6534_v58 = vor.u32 %v7138_v20, %v6531_v2  ;;  %v6339_v19 = vld [vmem:[%s9616_s14 + $0x68] sm:$0xf0]  ;;  %v7106_v49 = vld [vmem:[%s9616_s14 + $0xe4] sm:$0xf] }
 0x37d   : > { %3242 = vmatpush.bf16.msra.mxu2 %v6418_v23  ;;  %v6414_v8 = vor.u32 %v7108_v38, %v6411_v14  ;;  %v6257_v60 = vld [vmem:[%s10690_s13 + $0x40] sm:$0xf]  ;;  %v7072_v50 = vld [vmem:[%s10690_s13 + $0x4c] sm:$0xf0]  ;;  %v6342_v15 = vor.u32 %v7090_v25, %v6339_v19  ;;  %v6403_v11 = vld [vmem:[%s9616_s14 + $0xe8] sm:$0xf0] }
 0x37e   : > { %3271 = vmatpush.bf16.msra.mxu3 %v6482_v40  ;;  %3185 = vmatmul.bf16.vlgmr.msra.gmra.mxu0 %v10705_v9  ;;  %v7120_v26 = vld [vmem:[%s9616_s14 + $0x154] sm:$0xf]  ;;  %v6459_v0 = vld [vmem:[%s9616_s14 + $0x158] sm:$0xf0]  ;;  %v7070_v54 = vld [vmem:[%s10690_s13 + $0x44] sm:$0xf]  ;;  %v6406_v42 = vor.u32 %v7106_v49, %v6403_v11  ;;  %v10772_v55 = vor.u32 %v7072_v50, %v6257_v60 }
 0x37f   : > { %3214 = vmatmul.bf16.vlgmr.msra.gmra.mxu1 %v10707_v1  ;;  %3293 = vmatpush.bf16.msrb.mxu0 %v6350_v32  ;;  %v6259_v39 = vld [vmem:[%s10690_s13 + $0x50] sm:$0xf0]  ;;  %v6265_v31 = vld [vmem:[%s10690_s13 + $0x48] sm:$0xf]  ;;  %v6523_v61 = vld [vmem:[%s9616_s14 + $0x1d8] sm:$0xf0]  ;;  %v6462_v3 = vor.u32 %v7120_v26, %v6459_v0 }
 0x380   : > { %3243 = vmatmul.bf16.vlgmr.msra.gmra.mxu2 %v10709_v17  ;;  %3322 = vmatpush.bf16.msrb.mxu1 %v6414_v8  ;;  %v7136_v43 = vld [vmem:[%s9616_s14 + $0x1d4] sm:$0xf]  ;;  %v6331_v18 = vld [vmem:[%s9616_s14 + $0x58] sm:$0xf0]  ;;  %v7073_v10 = vld [vmem:[%s10690_s13 + $0x54] sm:$0xf0]  ;;  %v10777_v63 = vor.u32 %v7070_v54, %v6259_v39 }
 0x381   : > { %3272 = vmatmul.bf16.vlgmr.msra.gmra.mxu3 %v10711_v59  ;;  %3351 = vmatpush.bf16.msrb.mxu2 %v6478_v46  ;;  %v7088_v36 = vld [vmem:[%s9616_s14 + $0x54] sm:$0xf]  ;;  %v6395_v21 = vld [vmem:[%s9616_s14 + $0xd8] sm:$0xf0]  ;;  %v7071_v22 = vld [vmem:[%s10690_s13 + $0x4c] sm:$0xf]  ;;  %v6526_v23 = vor.u32 %v7136_v43, %v6523_v61  ;;  %v10779_v12 = vor.u32 %v7073_v10, %v6265_v31 }
 0x382   : > { %3380 = vmatpush.bf16.msrb.mxu3 %v6542_v53  ;;  %v7104_v57 = vld [vmem:[%s9616_s14 + $0xd4] sm:$0xf]  ;;  %v6267_v4 = vld [vmem:[%s10690_s13 + $0x58] sm:$0xf0]  ;;  %v6334_v7 = vor.u32 %v7088_v36, %v6331_v18  ;;  %v7118_v24 = vld [vmem:[%s9616_s14 + $0x144] sm:$0xf] }
 0x383   : > { %3294 = vmatpush.bf16.msrb.mxu0 %v6342_v15  ;;  %v6398_v13 = vor.u32 %v7104_v57, %v6395_v21  ;;  %v6451_v40 = vld [vmem:[%s9616_s14 + $0x148] sm:$0xf0]  ;;  %v7134_v16 = vld [vmem:[%s9616_s14 + $0x1c4] sm:$0xf]  ;;  %v10783_v52 = vor.u32 %v7071_v22, %v6267_v4  ;;  %v7116_v46 = vld [vmem:[%s9616_s14 + $0x134] sm:$0xf] }
 0x384   : > { %3323 = vmatpush.bf16.msrb.mxu1 %v6406_v42  ;;  %v6515_v62 = vld [vmem:[%s9616_s14 + $0x1c8] sm:$0xf0]  ;;  %v7086_v56 = vld [vmem:[%s9616_s14 + $0x44] sm:$0xf]  ;;  %v6454_v51 = vor.u32 %v7118_v24, %v6451_v40  ;;  %v6443_v45 = vld [vmem:[%s9616_s14 + $0x138] sm:$0xf0] }
 0x385   : > { %3352 = vmatpush.bf16.msrb.mxu2 %v6470_v33  ;;  %v6323_v27 = vld [vmem:[%s9616_s14 + $0x48] sm:$0xf0]  ;;  %v7102_v37 = vld [vmem:[%s9616_s14 + $0xc4] sm:$0xf]  ;;  %v6518_v47 = vor.u32 %v7134_v16, %v6515_v62  ;;  %v7132_v44 = vld [vmem:[%s9616_s14 + $0x1b4] sm:$0xf]  ;;  %v6446_v8 = vor.u32 %v7116_v46, %v6443_v45 }
 0x386   : > { %3381 = vmatpush.bf16.msrb.mxu3 %v6534_v58  ;;  %v6387_v48 = vld [vmem:[%s9616_s14 + $0xc8] sm:$0xf0]  ;;  %v6326_v30 = vor.u32 %v7086_v56, %v6323_v27  ;;  %v6507_v53 = vld [vmem:[%s9616_s14 + $0x1b8] sm:$0xf0]  ;;  %v7084_v32 = vld [vmem:[%s9616_s14 + $0x34] sm:$0xf] }
 0x387   : > { %3295 = vmatpush.bf16.msrb.mxu0 %v6334_v7  ;;  %v6390_v5 = vor.u32 %v7102_v37, %v6387_v48  ;;  %v6315_v38 = vld [vmem:[%s9616_s14 + $0x38] sm:$0xf0]  ;;  %v7100_v14 = vld [vmem:[%s9616_s14 + $0xb4] sm:$0xf]  ;;  %v6510_v35 = vor.u32 %v7132_v44, %v6507_v53  ;;  %v7114_v2 = vld [vmem:[%s9616_s14 + $0x124] sm:$0xf] }
 0x388   : > { %3324 = vmatpush.bf16.msrb.mxu1 %v6398_v13  ;;  %v6379_v41 = vld [vmem:[%s9616_s14 + $0xb8] sm:$0xf0]  ;;  %v6318_v20 = vor.u32 %v7084_v32, %v6315_v38  ;;  %v6435_v33 = vld [vmem:[%s9616_s14 + $0x128] sm:$0xf0]  ;;  %v7130_v58 = vld [vmem:[%s9616_s14 + $0x1a4] sm:$0xf] }
 0x389   : > { %3353 = vmatpush.bf16.msrb.mxu2 %v6462_v3  ;;  %v6382_v25 = vor.u32 %v7100_v14, %v6379_v41  ;;  %v6499_v19 = vld [vmem:[%s9616_s14 + $0x1a8] sm:$0xf0]  ;;  %v7082_v49 = vld [vmem:[%s9616_s14 + $0x24] sm:$0xf]  ;;  %v6438_v11 = vor.u32 %v7114_v2, %v6435_v33  ;;  %v6273_v26 = vld [vmem:[%s10690_s13 + $0x60] sm:$0xf] }
 0x38a   : > { %3382 = vmatpush.bf16.msrb.mxu3 %v6526_v23  ;;  %v6307_v60 = vld [vmem:[%s9616_s14 + $0x28] sm:$0xf0]  ;;  %v7098_v50 = vld [vmem:[%s9616_s14 + $0xa4] sm:$0xf]  ;;  %v7076_v0 = vld [vmem:[%s10690_s13 + $0x6c] sm:$0xf0]  ;;  %v6502_v54 = vor.u32 %v7130_v58, %v6499_v19 }
 0x38b   : > { %3296 = vmatpush.bf16.msrb.mxu0 %v6326_v30  ;;  %v6371_v15 = vld [vmem:[%s9616_s14 + $0xa8] sm:$0xf0]  ;;  %v6310_v39 = vor.u32 %v7082_v49, %v6307_v60  ;;  %v7112_v31 = vld [vmem:[%s9616_s14 + $0x114] sm:$0xf]  ;;  %v6427_v42 = vld [vmem:[%s9616_s14 + $0x118] sm:$0xf0]  ;;  %v6274_v37 = vor.u32 %v7076_v0, %v6273_v26 }
 0x38c   : > { %3325 = vmatpush.bf16.msrb.mxu1 %v6390_v5  ;;  %v7128_v43 = vld [vmem:[%s9616_s14 + $0x194] sm:$0xf]  ;;  %v7074_v61 = vld [vmem:[%s10690_s13 + $0x64] sm:$0xf]  ;;  %v6374_v3 = vor.u32 %v7098_v50, %v6371_v15  ;;  %v6491_v18 = vld [vmem:[%s9616_s14 + $0x198] sm:$0xf0]  ;;  %v6430_v24 = vor.u32 %v7112_v31, %v6427_v42 }
 0x38d   : > { %3354 = vmatpush.bf16.msrb.mxu2 %v6454_v51  ;;  %v6275_v36 = vld [vmem:[%s10690_s13 + $0x70] sm:$0xf0]  ;;  %v6299_v21 = vld [vmem:[%s9616_s14 + $0x18] sm:$0xf0]  ;;  %v6281_v10 = vld [vmem:[%s10690_s13 + $0x68] sm:$0xf]  ;;  %v6494_v40 = vor.u32 %v7128_v43, %v6491_v18 }
 0x38e   : > { %3190 = vmatmul.bf16.gmra.mxu0 %v10725_v29  ;;  %3383 = vmatpush.bf16.msrb.mxu3 %v6518_v47  ;;  %v7080_v57 = vld [vmem:[%s9616_s14 + $0x14] sm:$0xf]  ;;  %v6363_v4 = vld [vmem:[%s9616_s14 + $0x98] sm:$0xf0]  ;;  %v7077_v23 = vld [vmem:[%s10690_s13 + $0x74] sm:$0xf0]  ;;  %v6278_v46 = vor.u32 %v7074_v61, %v6275_v36 }
 0x38f   : > { %3219 = vmatmul.bf16.gmra.mxu1 %v10727_v34  ;;  %3297 = vmatpush.bf16.msrb.mxu0 %v6318_v20  ;;  %v7096_v22 = vld [vmem:[%s9616_s14 + $0x94] sm:$0xf]  ;;  %v7075_v7 = vld [vmem:[%s10690_s13 + $0x6c] sm:$0xf]  ;;  %v6283_v13 = vld [vmem:[%s10690_s13 + $0x78] sm:$0xf0]  ;;  %v6302_v16 = vor.u32 %v7080_v57, %v6299_v21  ;;  %v6282_v45 = vor.u32 %v7077_v23, %v6281_v10 }
 0x390   : > { %3248 = vmatmul.bf16.gmra.mxu2 %v10729_v28  ;;  %3326 = vmatpush.bf16.msrb.mxu1 %v6382_v25  ;;  %v7110_v62 = vld [vmem:[%s9616_s14 + $0x104] sm:$0xf]  ;;  %v6419_v56 = vld [vmem:[%s9616_s14 + $0x108] sm:$0xf0]  ;;  %v6366_v48 = vor.u32 %v7096_v22, %v6363_v4  ;;  %v6286_v53 = vor.u32 %v7075_v7, %v6283_v13  ;;  %s10843_s9 = sshll.u32 %s2692_s30, 2 }
 0x391   : > { %3277 = vmatmul.bf16.gmra.mxu3 %v10731_v6  ;;  %3355 = vmatpush.bf16.msrb.mxu2 %v6446_v8  ;;  %v7126_v27 = vld [vmem:[%s9616_s14 + $0x184] sm:$0xf]  ;;  %v6483_v51 = vld [vmem:[%s9616_s14 + $0x188] sm:$0xf0]  ;;  %v6422_v32 = vor.u32 %v7110_v62, %v6419_v56  ;;  %s10923_s22 = scalar_lea.vmem %s9636_s3, %s10843_s9 [#allocation14]  ;;  %s11084_s3 = smov (!%p6546_p5), 0  }
 0x392   : > { %3384 = vmatpush.bf16.msrb.mxu3 %v6510_v35  ;;  %v7078_v47 = vld [vmem:[%s9616_s14 + $0x4] sm:$0xf]  ;;  %v6291_v30 = vld [vmem:[%s9616_s14 + $0x8] sm:$0xf0]  ;;  %v6486_v38 = vor.u32 %v7126_v27, %v6483_v51 }
 0x393   : > { %3298 = vmatpush.bf16.msrb.mxu0 %v6310_v39  ;;  %v7094_v44 = vld [vmem:[%s9616_s14 + $0x84] sm:$0xf]  ;;  %v6355_v5 = vld [vmem:[%s9616_s14 + $0x88] sm:$0xf0]  ;;  %v6294_v14 = vor.u32 %v7078_v47, %v6291_v30  ;;  %s10847_s14 = scalar_lea.vmem %s9630_s16, %s10843_s9 [#allocation13]  ;;  %s6545_s16 = sshll.u32 %s12746_s20, 7 }
 0x394   : > { %3327 = vmatpush.bf16.msrb.mxu1 %v6374_v3  ;;  %v6358_v41 = vor.u32 %v7094_v44, %v6355_v5  ;;  %v10865_v50 = vld [vmem:[%s10847_s14 + $0x8] sm:$0xff]   ;;  %v10880_v23 = vld [vmem:[%s10847_s14 + $0x10] sm:$0xff]  }
 0x395   : > { %3356 = vmatpush.bf16.msrb.mxu2 %v6438_v11  ;;  %v12579_v0 = vunpack.c.l.bf16 %v10865_v50  ;;  %v12575_v18 = vunpack.c.h.bf16 %v10865_v50  ;;  %v12581_v30 = vunpack.c.h.bf16 %v10880_v23 }
 0x396   : > { %3385 = vmatpush.bf16.msrb.mxu3 %v6502_v54 }
 0x397   : > { %3299 = vmatpush.bf16.msrb.mxu0 %v6302_v16 }
 0x398   : > { %3328 = vmatpush.bf16.msrb.mxu1 %v6366_v48 }
 0x399   : > { %3357 = vmatpush.bf16.msrb.mxu2 %v6430_v24 }
 0x39a   : > { %3386 = vmatpush.bf16.msrb.mxu3 %v6494_v40  ;;  %v12583_v40 = vunpack.c.l.bf16 %v10880_v23 }
 0x39b   : > { %3300 = vmatpush.bf16.msrb.mxu0 %v6294_v14 }
 0x39c   : > { %3329 = vmatpush.bf16.msrb.mxu1 %v6358_v41 }
 0x39d   : > { %3358 = vmatpush.bf16.msrb.mxu2 %v6422_v32  ;;  %v10895_v32 = vld [vmem:[%s10847_s14 + $0x18] sm:$0xff]  }
 0x39e   : > { %3195 = vmatmul.bf16.gmra.mxu0 %v10772_v55  ;;  %3387 = vmatpush.bf16.msrb.mxu3 %v6486_v38  ;;  %12747 = vst [vmem:[#allocation76_spill] sm:$0xff] %v10895_v32 }
 0x39f   : > { %3224 = vmatmul.bf16.gmra.mxu1 %v10777_v63 }
 0x3a0   : > { %3253 = vmatmul.bf16.gmra.mxu2 %v10779_v12 }
 0x3a1   : > { %3282 = vmatmul.bf16.gmra.mxu3 %v10783_v52 }
 0x3ae   : > { %3200 = vmatmul.bf16.gmra.mxu0 %v6274_v37 }
 0x3af   : > { %3229 = vmatmul.bf16.gmra.mxu1 %v6278_v46 }
 0x3b0   : > { %3258 = vmatmul.bf16.gmra.mxu2 %v6282_v45 }
 0x3b1   : > { %3287 = vmatmul.bf16.gmra.mxu3 %v6286_v53 }
 0x3be   : > { %3301 = vmatmul.bf16.vlgmr.msrb.gmra.mxu0 %v10705_v9 }
 0x3bf   : > { %3330 = vmatmul.bf16.vlgmr.msrb.gmra.mxu1 %v10707_v1 }
 0x3c0   : > { %3359 = vmatmul.bf16.vlgmr.msrb.gmra.mxu2 %v10709_v17 }
 0x3c1   : > { %3388 = vmatmul.bf16.vlgmr.msrb.gmra.mxu3 %v10711_v59  ;;  %v10850_v59 = vld [vmem:[%s10847_s14] sm:$0xff]  }
 0x3c2   : > { %v12574_v33 = vunpack.c.h.bf16 %v10850_v59 }
 0x3ce   : > { %3306 = vmatmul.bf16.gmra.mxu0 %v10725_v29 }
 0x3cf   : > { %3335 = vmatmul.bf16.gmra.mxu1 %v10727_v34 }
 0x3d0   : > { %3364 = vmatmul.bf16.gmra.mxu2 %v10729_v28 }
 0x3d1   : > { %3393 = vmatmul.bf16.gmra.mxu3 %v10731_v6  ;;  %v12578_v6 = vunpack.c.l.bf16 %v10850_v59 }
 0x3de   : > { %3311 = vmatmul.bf16.gmra.mxu0 %v10772_v55 }
 0x3df   : > { %3340 = vmatmul.bf16.gmra.mxu1 %v10777_v63 }
 0x3e0   : > { %3369 = vmatmul.bf16.gmra.mxu2 %v10779_v12 }
 0x3e1   : > { %3398 = vmatmul.bf16.gmra.mxu3 %v10783_v52 }
 0x3ee   : > { %3316 = vmatmul.bf16.gmra.mxu0 %v6274_v37 }
 0x3ef   : > { %3345 = vmatmul.bf16.gmra.mxu1 %v6278_v46 }
 0x3f0   : > { %3374 = vmatmul.bf16.gmra.mxu2 %v6282_v45 }
 0x3f1   : > { %3403 = vmatmul.bf16.gmra.mxu3 %v6286_v53 }
 0x3fb   : > { %v3186_v9 = vpop.f32.mrf.mxu0 }
 0x3fc   : > { %v3215_v1 = vpop.f32.mrf.mxu1 }
 0x3fd   : > { %v3216_v17 = vadd.f32 %v3215_v1, %v3186_v9  ;;  %v12570_v9 = vunpack.c.l.bf16 %v10895_v32 }
 0x403   : > { %v3244_v29 = vpop.f32.mrf.mxu2  ;;  %v3188_v55 = vpop.f32.mrf.mxu0 }
 0x404   : > { %v3245_v34 = vadd.f32 %v3244_v29, %v3216_v17  ;;  %v3273_v28 = vpop.f32.mrf.mxu3  ;;  %v3217_v63 = vpop.f32.mrf.mxu1 }
 0x405   : > { %v3218_v8 = vadd.f32 %v3217_v63, %v3188_v55 }
 0x406   : > { %v3274_v12 = vadd.f32 %v3273_v28, %v3245_v34 }
 0x408   : > { %v10855_v52 = vmul.f32 %v12578_v6, %v3274_v12  ;;  %3454 = vrot.lane.b32.xlu0 %v3274_v12, %s9313_s7  ;;  %v12571_v12 = vunpack.c.h.bf16 %v10895_v32 }
 0x40b   : > { %v3246_v35 = vpop.f32.mrf.mxu2  ;;  %v3191_v58 = vpop.f32.mrf.mxu0 }
 0x40c   : > { %v3247_v20 = vadd.f32 %v3246_v35, %v3218_v8  ;;  %v3275_v2 = vpop.f32.mrf.mxu3  ;;  %v3220_v25 = vpop.f32.mrf.mxu1 }
 0x40d   : > { %v3221_v60 = vadd.f32 %v3220_v25, %v3191_v58 }
 0x40e   : > { %v3276_v19 = vadd.f32 %v3275_v2, %v3247_v20 }
 0x410   : > { %v10861_v49 = vmul.f32 %v12574_v33, %v3276_v19  ;;  %3456 = vrot.lane.b32.xlu0 %v3276_v19, %s9313_s7 }
 0x413   : > { %v3249_v15 = vpop.f32.mrf.mxu2  ;;  %v3193_v54 = vpop.f32.mrf.mxu0 }
 0x414   : > { %v3250_v11 = vadd.f32 %v3249_v15, %v3221_v60  ;;  %v3278_v26 = vpop.f32.mrf.mxu3  ;;  %v3222_v39 = vpop.f32.mrf.mxu1 }
 0x415   : > { %v3223_v43 = vadd.f32 %v3222_v39, %v3193_v54 }
 0x416   : > { %v3279_v31 = vadd.f32 %v3278_v26, %v3250_v11 }
 0x418   : > { %v10870_v42 = vmul.f32 %v12579_v0, %v3279_v31  ;;  %3458 = vrot.lane.b32.xlu1 %v3279_v31, %s9313_s7 }
 0x41b   : > { %v3251_v61 = vpop.f32.mrf.mxu2  ;;  %v3196_v57 = vpop.f32.mrf.mxu0 }
 0x41c   : > { %v3252_v36 = vadd.f32 %v3251_v61, %v3223_v43  ;;  %v3280_v3 = vpop.f32.mrf.mxu3  ;;  %v3225_v21 = vpop.f32.mrf.mxu1 }
 0x41d   : > { %v3226_v4 = vadd.f32 %v3225_v21, %v3196_v57 }
 0x41e   : > { %v3281_v10 = vadd.f32 %v3280_v3, %v3252_v36 }
 0x420   : > { %v10876_v22 = vmul.f32 %v12575_v18, %v3281_v10  ;;  %3460 = vrot.lane.b32.xlu1 %v3281_v10, %s9313_s7 }
 0x423   : > { %v3254_v7 = vpop.f32.mrf.mxu2  ;;  %v3198_v16 = vpop.f32.mrf.mxu0 }
 0x424   : > { %v3255_v13 = vadd.f32 %v3254_v7, %v3226_v4  ;;  %v3283_v24 = vpop.f32.mrf.mxu3  ;;  %v3227_v62 = vpop.f32.mrf.mxu1 }
 0x425   : > { %v3228_v37 = vadd.f32 %v3227_v62, %v3198_v16 }
 0x426   : > { %v3284_v56 = vadd.f32 %v3283_v24, %v3255_v13 }
 0x428   : > { %v10885_v27 = vmul.f32 %v12583_v40, %v3284_v56  ;;  %3462 = vrot.lane.b32.xlu2 %v3284_v56, %s9313_s7 }
 0x42b   : > { %v3256_v48 = vpop.f32.mrf.mxu2  ;;  %v3201_v46 = vpop.f32.mrf.mxu0 }
 0x42c   : > { %v3257_v51 = vadd.f32 %v3256_v48, %v3228_v37  ;;  %v3285_v47 = vpop.f32.mrf.mxu3  ;;  %v3230_v45 = vpop.f32.mrf.mxu1 }
 0x42d   : > { %v3231_v53 = vadd.f32 %v3230_v45, %v3201_v46 }
 0x42e   : > { %v3286_v44 = vadd.f32 %v3285_v47, %v3257_v51 }
 0x430   : > { %v10891_v5 = vmul.f32 %v12581_v30, %v3286_v44  ;;  %3464 = vrot.lane.b32.xlu2 %v3286_v44, %s9313_s7  ;;  %v10926_v44 = vld [vmem:[%s10923_s22] sm:$0xff]  }
 0x431   : > { %12748 = vst [vmem:[#allocation77_spill] sm:$0xff] %v10926_v44 }
 0x433   : > { %v3259_v38 = vpop.f32.mrf.mxu2  ;;  %v3203_v17 = vpop.f32.mrf.mxu0 }
 0x434   : > { %v3260_v14 = vadd.f32 %v3259_v38, %v3231_v53  ;;  %v3288_v41 = vpop.f32.mrf.mxu3  ;;  %v3232_v29 = vpop.f32.mrf.mxu1  ;;  %v12576_v38 = vunpack.c.l.bf16 %v10926_v44 }
 0x435   : > { %v3233_v28 = vadd.f32 %v3232_v29, %v3203_v17 }
 0x436   : > { %v3289_v1 = vadd.f32 %v3288_v41, %v3260_v14 }
 0x438   : > { %v10904_v34 = vmul.f32 %v12570_v9, %v3289_v1  ;;  %3466 = vrot.lane.b32.xlu0 %v3289_v1, %s9313_s7 }
 0x43b   : > { %v3261_v55 = vpop.f32.mrf.mxu2  ;;  %v3302_v20 = vpop.f32.mrf.mxu0 }
 0x43c   : > { %v3262_v63 = vadd.f32 %v3261_v55, %v3233_v28  ;;  %v3290_v8 = vpop.f32.mrf.mxu3  ;;  %v3331_v2 = vpop.f32.mrf.mxu1 }
 0x43d   : > { %v3332_v25 = vadd.f32 %v3331_v2, %v3302_v20 }
 0x43e   : > { %v3291_v35 = vadd.f32 %v3290_v8, %v3262_v63  ;;  %v10934_v8 = vld [vmem:[%s10923_s22 + $0x10] sm:$0xff]  }
 0x440   : > { %v10910_v58 = vmul.f32 %v12571_v12, %v3291_v35  ;;  %3468 = vrot.lane.b32.xlu1 %v3291_v35, %s9313_s7 }
 0x443   : > { %v3360_v19 = vpop.f32.mrf.mxu2  ;;  %v3304_v26 = vpop.f32.mrf.mxu0 }
 0x444   : > { %v3361_v60 = vadd.f32 %v3360_v19, %v3332_v25  ;;  %v3389_v15 = vpop.f32.mrf.mxu3  ;;  %v3333_v54 = vpop.f32.mrf.mxu1  ;;  %v12582_v25 = vunpack.c.l.bf16 %v10934_v8  ;;  %v12572_v19 = vunpack.c.h.bf16 %v10926_v44 }
 0x445   : > { %v3334_v39 = vadd.f32 %v3333_v54, %v3304_v26 }
 0x446   : > { %v10913_v11 = vadd.f32 %v3389_v15, %v3361_v60 }
 0x44b   : > { %v3362_v31 = vpop.f32.mrf.mxu2  ;;  %v3307_v36 = vpop.f32.mrf.mxu0 }
 0x44c   : > { %v3391_v43 = vpop.f32.mrf.mxu3  ;;  %v3363_v61 = vadd.f32 %v3362_v31, %v3334_v39  ;;  %v3336_v3 = vpop.f32.mrf.mxu1 }
 0x44d   : > { %v3337_v21 = vadd.f32 %v3336_v3, %v3307_v36  ;;  %v10948_v36 = vld [vmem:[%s10923_s22 + $0x8] sm:$0xff]  }
 0x44e   : > { %v10915_v57 = vadd.f32 %v3391_v43, %v3363_v61  ;;  %12750 = vst [vmem:[#allocation79_spill] sm:$0xff] %v10948_v36 }
 0x453   : > { %v3365_v10 = vpop.f32.mrf.mxu2  ;;  %v3309_v13 = vpop.f32.mrf.mxu0 }
 0x454   : > { %v3366_v4 = vadd.f32 %v3365_v10, %v3337_v21  ;;  %v3394_v7 = vpop.f32.mrf.mxu3  ;;  %v3338_v24 = vpop.f32.mrf.mxu1 }
 0x455   : > { %v3339_v62 = vadd.f32 %v3338_v24, %v3309_v13  ;;  %v12580_v13 = vunpack.c.h.bf16 %v10934_v8  ;;  %v12577_v24 = vunpack.c.l.bf16 %v10948_v36 }
 0x456   : > { %v10917_v16 = vadd.f32 %v3394_v7, %v3366_v4 }
 0x45b   : > { %v3367_v56 = vpop.f32.mrf.mxu2  ;;  %v3312_v51 = vpop.f32.mrf.mxu0 }
 0x45c   : > { %v3368_v37 = vadd.f32 %v3367_v56, %v3339_v62  ;;  %v3396_v48 = vpop.f32.mrf.mxu3  ;;  %v3341_v46 = vpop.f32.mrf.mxu1 }
 0x45d   : > { %v3342_v45 = vadd.f32 %v3341_v46, %v3312_v51 }
 0x45e   : > { %v10919_v47 = vadd.f32 %v3396_v48, %v3368_v37 }
 0x463   : > { %v3370_v53 = vpop.f32.mrf.mxu2  ;;  %v3314_v1 = vpop.f32.mrf.mxu0 }
 0x464   : > { %v3371_v14 = vadd.f32 %v3370_v53, %v3342_v45  ;;  %v3399_v41 = vpop.f32.mrf.mxu3  ;;  %v3343_v17 = vpop.f32.mrf.mxu1 }
 0x465   : > { %v3344_v55 = vadd.f32 %v3343_v17, %v3314_v1 }
 0x466   : > { %v10929_v29 = vadd.f32 %v3399_v41, %v3371_v14 }
 0x46b   : > { %v3372_v20 = vpop.f32.mrf.mxu2  ;;  %v3317_v15 = vpop.f32.mrf.mxu0 }
 0x46c   : > { %v3373_v2 = vadd.f32 %v3372_v20, %v3344_v55  ;;  %v3401_v60 = vpop.f32.mrf.mxu3  ;;  %v3346_v54 = vpop.f32.mrf.mxu1 }
 0x46d   : > { %v3347_v43 = vadd.f32 %v3346_v54, %v3317_v15 }
 0x46e   : > { %v10941_v26 = vadd.f32 %v3401_v60, %v3373_v2  ;;  %v10985_v60 = vld [vmem:[%s10923_s22 + $0x18] sm:$0xff]  }
 0x46f   : > { %12756 = vst [vmem:[#allocation85_spill] sm:$0xff] %v10985_v60  ;;  %v12568_v15 = vunpack.c.l.bf16 %v10985_v60 }
 0x473   : > { %v3375_v10 = vpop.f32.mrf.mxu2  ;;  %v3319_v56 = vpop.f32.mrf.mxu0 }
 0x474   : > { %v3376_v4 = vadd.f32 %v3375_v10, %v3347_v43  ;;  %v3404_v62 = vpop.f32.mrf.mxu3  ;;  %v3348_v48 = vpop.f32.mrf.mxu1  ;;  %v12569_v43 = vunpack.c.h.bf16 %v10985_v60 }
 0x475   : > { %v3349_v46 = vadd.f32 %v3348_v48, %v3319_v56  ;;  %v11008_v56 = vmov 0.0   ;;  %v11010_v48 = vmov 0.0  }
 0x476   : > { %v10960_v37 = vadd.f32 %v3404_v62, %v3376_v4  ;;  %v11002_v4 = vmov 0.0   ;;  %v11004_v62 = vmov 0.0  }
 0x47a   : > { %v3455_v28 = vpop.permute.xlu0 %3454 }
 0x47b   : > { %v3470_v63 = vmul.f32 %v12576_v38, %v3455_v28  ;;  %v3377_v41 = vpop.f32.mrf.mxu2  ;;  %v12573_v28 = vunpack.c.h.bf16 %v10948_v36 }
 0x47c   : > { %v3378_v1 = vadd.f32 %v3377_v41, %v3349_v46  ;;  %v3406_v55 = vpop.f32.mrf.mxu3  ;;  %v11018_v46 = vmov 0.0   ;;  %v11024_v41 = vmov 0.0  }
 0x47d   : > { %v10937_v35 = vadd.f32 %v3470_v63, %v10855_v52 }
 0x47e   : > { %v10975_v63 = vadd.f32 %v3406_v55, %v3378_v1  ;;  %v11026_v1 = vmov 0.0   ;;  %v11028_v55 = vmov 0.0  }
 0x47f   : > { %12749 = vst [vmem:[#allocation78_spill] sm:$0xff] %v10937_v35 }
 0x482   : > { %v3463_v39 = vpop.permute.xlu2 %3462  ;;  %v3457_v31 = vpop.permute.xlu0 %3456 }
 0x483   : > { %v3474_v61 = vmul.f32 %v12582_v25, %v3463_v39  ;;  %v3471_v52 = vmul.f32 %v12572_v19, %v3457_v31 }
 0x485   : > { %v10951_v3 = vadd.f32 %v3474_v61, %v10885_v27  ;;  %v10954_v21 = vadd.f32 %v3471_v52, %v10861_v49 }
 0x487   : > { %12751 = vst [vmem:[#allocation80_spill] sm:$0xff] %v10951_v3 }
 0x488   : > { %12752 = vst [vmem:[#allocation81_spill] sm:$0xff] %v10954_v21 }
 0x48a   : > { %v3465_v51 = vpop.permute.xlu2 %3464  ;;  %v3459_v27 = vpop.permute.xlu1 %3458 }
 0x48b   : > { %v3475_v49 = vmul.f32 %v12580_v13, %v3465_v51  ;;  %v3472_v45 = vmul.f32 %v12577_v24, %v3459_v27  ;;  %v11012_v51 = vmov 0.0   ;;  %v11016_v27 = vmov 0.0  }
 0x48d   : > { %v10967_v53 = vadd.f32 %v3475_v49, %v10891_v5  ;;  %v10970_v14 = vadd.f32 %v3472_v45, %v10870_v42  ;;  %v11020_v49 = vmov 0.0   ;;  %v11022_v45 = vmov 0.0  }
 0x48f   : > { %12753 = vst [vmem:[#allocation82_spill] sm:$0xff] %v10967_v53 }
 0x490   : > { %12754 = vst [vmem:[#allocation83_spill] sm:$0xff] %v10970_v14 }
 0x492   : > { %v3461_v20 = vpop.permute.xlu1 %3460 }
 0x493   : > { %v3473_v2 = vmul.f32 %v12573_v28, %v3461_v20  ;;  %v11030_v20 = vmov 0.0  }
 0x495   : > { %v10980_v5 = vadd.f32 %v3473_v2, %v10876_v22  ;;  %v11032_v2 = vmov 0.0  }
 0x497   : > { %12755 = vst [vmem:[#allocation84_spill] sm:$0xff] %v10980_v5 }
 0x4aa   : > { %v3467_v54 = vpop.permute.xlu0 %3466 }
 0x4ab   : > { %v3476_v39 = vmul.f32 %v12568_v15, %v3467_v54 }
 0x4ad   : > { %v10991_v31 = vadd.f32 %v3476_v39, %v10904_v34  ;;  %v11006_v34 = vmov 0.0  }
 0x4af   : > { %12757 = vst [vmem:[#allocation86_spill] sm:$0xff] %v10991_v31 }
 0x4b2   : > { %v3469_v61 = vpop.permute.xlu1 %3468 }
 0x4b3   : > { %v3477_v22 = vmul.f32 %v12569_v43, %v3469_v61  ;;  %5330 = sbr.rel (%p6546_p5) target bundleno = 1712 (0x6b0), region = 183 }
 0x4b5   : > { %v10997_v52 = vadd.f32 %v3477_v22, %v10910_v58  ;;  %v11014_v58 = vmov 0.0  }
 0x4b7   : > { %12758 = vst [vmem:[#allocation87_spill] sm:$0xff] %v10997_v52 }
 0x4b8   : > { %v11036_v54 = vmov 0.0   ;;  %v11038_v39 = vmov 0.0   ;;  %v11040_v61 = vmov 0.0   ;;  %v11042_v22 = vmov 0.0  }
 0x4b9   : > { %v11044_v15 = vmov 0.0   ;;  %v11046_v43 = vmov 0.0   ;;  %v11048_v9 = vmov 0.0   ;;  %v11050_v12 = vmov 0.0  }
 0x4ba   : > { %v11052_v19 = vmov 0.0   ;;  %v11054_v28 = vmov 0.0   ;;  %v11056_v4 = vmov 0.0   ;;  %v11058_v62 = vmov 0.0  }
 0x4bb   : > { %v11060_v34 = vmov 0.0   ;;  %v11062_v56 = vmov 0.0   ;;  %v11064_v48 = vmov 0.0   ;;  %v11066_v51 = vmov 0.0  }
 0x4bc   : > { %v11068_v58 = vmov -1e+30   ;;  %v11070_v27 = vmov -1e+30   ;;  %v11072_v46 = vmov -1e+30  }
 0x4bd   : > { %v11074_v49 = vmov -1e+30   ;;  %v11076_v45 = vmov -1e+30   ;;  %v11078_v41 = vmov -1e+30  }
 0x4be   : > { %v11080_v1 = vmov -1e+30   ;;  %v11082_v55 = vmov -1e+30  }
 0x4bf LB: >> { %s6547_s2 = sshll.u32 %s9075_s3, 6  ;;  %v12760_v21 = vld [vmem:[#allocation81_spill] sm:$0xff]  ;;  %v12761_v35 = vld [vmem:[#allocation78_spill] sm:$0xff]  ;;  %v12764_v3 = vld [vmem:[#allocation80_spill] sm:$0xff]  ;;  %vm3637_vm1 = vcmask 523264   ;;  %s3494_s3 = sadd.s32 1, %s9075_s3   ;;  %s9075_s3 = sphi %s11084_s3, %s3494_s3   ;;  %v9071_v55 = vphi %v11082_v55, %v12809_v55   ;;  %v9067_v1 = vphi %v11080_v1, %v12808_v1   ;;  %v9063_v41 = vphi %v11078_v41, %v12807_v41   ;;  %v9059_v45 = vphi %v11076_v45, %v12806_v45   ;;  %v9055_v49 = vphi %v11074_v49, %v12805_v49   ;;  %v9051_v46 = vphi %v11072_v46, %v12804_v46   ;;  %v9047_v27 = vphi %v11070_v27, %v12803_v27   ;;  %v9043_v58 = vphi %v11068_v58, %v12802_v58   ;;  %v9039_v51 = vphi %v11066_v51, %v12801_v51   ;;  %v9035_v48 = vphi %v11064_v48, %v12800_v48   ;;  %v9031_v56 = vphi %v11062_v56, %v12799_v56   ;;  %v9027_v34 = vphi %v11060_v34, %v12798_v34   ;;  %v9023_v62 = vphi %v11058_v62, %v12797_v62   ;;  %v9019_v4 = vphi %v11056_v4, %v12796_v4   ;;  %v9015_v28 = vphi %v11054_v28, %v12795_v28   ;;  %v9011_v19 = vphi %v11052_v19, %v12794_v19   ;;  %v9007_v12 = vphi %v11050_v12, %v12793_v12   ;;  %v9003_v9 = vphi %v11048_v9, %v12792_v9   ;;  %v8999_v43 = vphi %v11046_v43, %v12791_v43   ;;  %v8995_v15 = vphi %v11044_v15, %v12790_v15   ;;  %v8991_v22 = vphi %v11042_v22, %v12789_v22   ;;  %v8987_v61 = vphi %v11040_v61, %v12788_v61   ;;  %v8983_v39 = vphi %v11038_v39, %v12787_v39   ;;  %v8979_v54 = vphi %v11036_v54, %v12786_v54  }
 0x4c0   : >> { %s3522_s4 = sadd.s32 %s6547_s2, %s6545_s16  ;;  %v12762_v7 = vpack.c.bf16 %v12760_v21, %v12761_v35  ;;  %v12763_v53 = vld [vmem:[#allocation82_spill] sm:$0xff]  ;;  %v12766_v5 = vld [vmem:[#allocation84_spill] sm:$0xff]  ;;  %v12767_v14 = vld [vmem:[#allocation83_spill] sm:$0xff]  ;;  %p11335_p9 = scmp.ge.s32.totalorder %s3494_s3, %s10900_s24 }
 0x4c1   : >> { %s3523_s0 = sshra.s32 %s3522_s4, 3  ;;  %v12765_v17 = vpack.c.bf16 %v12763_v53, %v12764_v3  ;;  %v12768_v42 = vpack.c.bf16 %v12766_v5, %v12767_v14  ;;  %v12769_v52 = vld [vmem:[#allocation87_spill] sm:$0xff]  ;;  %v12770_v31 = vld [vmem:[#allocation86_spill] sm:$0xff] }
 0x4c2   : >> { %s11166_s25 = sshll.u32 %s3523_s0, 3  ;;  %v12771_v10 = vpack.c.bf16 %v12769_v52, %v12770_v31 }
 0x4c3   : >> { %s3527_s19 = scalar_lea.vmem [#allocation3], %s11166_s25  ;;  %s3537_s27 = scalar_lea.vmem [#allocation4], %s11166_s25 }
 0x4c4   : >> { %v6565_v20 = vld [vmem:[%s3527_s19 + $0x30] sm:$0xf]  ;;  %v7146_v2 = vld [vmem:[%s3527_s19 + $0x34] sm:$0xf0]  ;;  %v6561_v18 = vld [vmem:[%s3527_s19 + $0x20] sm:$0xf] }
 0x4c5   : >> { %v6566_v33 = vor.u32 %v7146_v2, %v6565_v20  ;;  %v7145_v38 = vld [vmem:[%s3527_s19 + $0x24] sm:$0xf0]  ;;  %v6557_v6 = vld [vmem:[%s3527_s19 + $0x10] sm:$0xf]  ;;  %v7144_v0 = vld [vmem:[%s3527_s19 + $0x14] sm:$0xf0] }
 0x4c6   : >> { %v6562_v24 = vor.u32 %v7145_v38, %v6561_v18  ;;  %v6558_v13 = vor.u32 %v7144_v0, %v6557_v6  ;;  %v6553_v30 = vld [vmem:[%s3527_s19] sm:$0xf]  ;;  %v7143_v25 = vld [vmem:[%s3527_s19 + $0x4] sm:$0xf0]  ;;  %v3599_v6 = vlaneseq }
 0x4c7   : >> { %3574 = vmatpush.bf16.xpose.msra.mxu0 %v6566_v33  ;;  %7343 = vmatpush.bf16.xpose.msra.mxu2 %v6566_v33  ;;  %v6554_v40 = vor.u32 %v7143_v25, %v6553_v30  ;;  %v3608_v30 = vstv %s10679_s17 }
 0x4c8   : >> { %v3600_v33 = vshrl.u32 %v3599_v6, 7  ;;  %v3618_v18 = vand.u32 127, %v3599_v6 }
 0x4ca   : >> { %v3604_v0 = vadd.s32 32, %v3600_v33  ;;  %v3602_v2 = vadd.s32 16, %v3600_v33  ;;  %v3601_v6 = vadd.s32 8, %v3600_v33  ;;  %v3606_v5 = vadd.s32 48, %v3600_v33 }
 0x4cc   : >> { %v3613_v25 = vadd.s32 %v3608_v30, %v3604_v0  ;;  %v3611_v3 = vadd.s32 %v3608_v30, %v3602_v2  ;;  %v3610_v14 = vadd.s32 %v3608_v30, %v3601_v6  ;;  %v3615_v21 = vadd.s32 %v3608_v30, %v3606_v5 }
 0x4cf   : >> { %3575 = vmatpush.bf16.xpose.msra.mxu0 %v6562_v24  ;;  %7344 = vmatpush.bf16.xpose.msra.mxu2 %v6562_v24  ;;  %v3605_v24 = vadd.s32 40, %v3600_v33 }
 0x4d7   : >> { %3576 = vmatpush.bf16.xpose.msra.mxu0 %v6558_v13  ;;  %7345 = vmatpush.bf16.xpose.msra.mxu2 %v6558_v13 }
 0x4df   : >> { %3577 = vmatpush.bf16.xpose.msra.mxu0 %v6554_v40  ;;  %7346 = vmatpush.bf16.xpose.msra.mxu2 %v6554_v40  ;;  %v3619_v40 = vstv %s6547_s2 }
 0x4e0   : >> { %v3620_v13 = vadd.s32 %v3619_v40, %v3618_v18  ;;  %v3603_v18 = vadd.s32 24, %v3600_v33 }
 0x4e2   : >> { %vm3625_vm0 = vcmp.le.s32.totalorder %v3620_v13, %v3613_v25  ;;  %vm3623_vm3 = vcmp.le.s32.totalorder %v3620_v13, %v3611_v3  ;;  %vm3622_vm4 = vcmp.le.s32.totalorder %v3620_v13, %v3610_v14  ;;  %vm3627_vm5 = vcmp.le.s32.totalorder %v3620_v13, %v3615_v21 }
 0x4e6   : >> { %3578 = vmatmul.bf16.vlgmr.msra.gmra.mxu0 %v12762_v7  ;;  %3588 = vmatmul.bf16.vlgmr.msra.gmra.mxu2 %v12765_v17 }
 0x4f6   : >> { %3583 = vmatmul.bf16.gmra.mxu0 %v12768_v42  ;;  %3593 = vmatmul.bf16.gmra.mxu2 %v12771_v10  ;;  %v3614_v42 = vadd.s32 %v3608_v30, %v3605_v24  ;;  %v3607_v24 = vadd.s32 56, %v3600_v33 }
 0x4f8   : >> { %vm3626_vm2 = vcmp.le.s32.totalorder %v3620_v13, %v3614_v42  ;;  %v3612_v42 = vadd.s32 %v3608_v30, %v3603_v18 }
 0x4fa   : >> { %vm3624_vm6 = vcmp.le.s32.totalorder %v3620_v13, %v3612_v42  ;;  %v7151_v42 = vld [vmem:[%s3537_s27 + $0x34] sm:$0xf0] }
 0x563   : >> { %v3579_v38 = vpop.f32.mrf.mxu0 }
 0x569   : >> { %v3589_v20 = vpop.f32.mrf.mxu2 }
 0x56a   : >> { %v11184_v7 = vsel %vm3625_vm0, %v3589_v20, -1e+09 }
 0x56b   : >> { %v3581_v17 = vpop.f32.mrf.mxu0  ;;  %v3650_v10 = vsel %vm3637_vm1, %v11184_v7, -inf }
 0x56c   : >> { %3651 = vmax.xlane.f32.xlu1 %v3650_v10  ;;  %v11196_v3 = vsel %vm3622_vm4, %v3581_v17, -1e+09 }
 0x56d   : >> { %v3641_v14 = vsel %vm3637_vm1, %v11196_v3, -inf }
 0x571   : >> { %v3591_v0 = vpop.f32.mrf.mxu2 }
 0x572   : >> { %v11188_v40 = vsel %vm3626_vm2, %v3591_v0, -1e+09  ;;  %v3609_v0 = vadd.s32 %v3608_v30, %v3600_v33 }
 0x573   : >> { %v3584_v25 = vpop.f32.mrf.mxu0  ;;  %v3653_v20 = vsel %vm3637_vm1, %v11188_v40, -inf }
 0x574   : >> { %v11192_v31 = vsel %vm3623_vm3, %v3584_v25, -1e+09  ;;  %3654 = vmax.xlane.f32.xlu1 %v3653_v20  ;;  %v3616_v25 = vadd.s32 %v3608_v30, %v3607_v24  ;;  %vm3621_vm7 = vcmp.le.s32.totalorder %v3620_v13, %v3609_v0  ;;  %v6581_v30 = vld [vmem:[%s3537_s27 + $0x30] sm:$0xf] }
 0x575   : >> { %v3644_v10 = vsel %vm3637_vm1, %v11192_v31, -inf  ;;  %v11208_v33 = vsel %vm3621_vm7, %v3579_v38, -1e+09  ;;  %v6582_v24 = vor.u32 %v7151_v42, %v6581_v30  ;;  %v6573_v0 = vld [vmem:[%s3537_s27 + $0x10] sm:$0xf] }
 0x576   : >> { %3645 = vmax.xlane.f32.xlu0 %v3644_v10  ;;  %vm3628_vm8 = vcmp.le.s32.totalorder %v3620_v13, %v3616_v25  ;;  %v6577_v13 = vld [vmem:[%s3537_s27 + $0x20] sm:$0xf] }
 0x577   : >> { %7347 = vmatpush.bf16.msra.mxu3 %v6582_v24  ;;  %3810 = vmatpush.bf16.msra.mxu1 %v6582_v24  ;;  %v6569_v25 = vld [vmem:[%s3537_s27] sm:$0xf] }
 0x579   : >> { %v3594_v2 = vpop.f32.mrf.mxu2 }
 0x57a   : >> { %v11198_v6 = vsel %vm3627_vm5, %v3594_v2, -1e+09  ;;  %v7150_v2 = vld [vmem:[%s3537_s27 + $0x24] sm:$0xf0] }
 0x57b   : >> { %v3586_v35 = vpop.f32.mrf.mxu0  ;;  %v3656_v5 = vsel %vm3637_vm1, %v11198_v6, -inf  ;;  %v6578_v38 = vor.u32 %v7150_v2, %v6577_v13 }
 0x57c   : >> { %v11204_v18 = vsel %vm3624_vm6, %v3586_v35, -1e+09  ;;  %3657 = vmax.xlane.f32.xlu2 %v3656_v5  ;;  %3642 = vmax.xlane.f32.xlu1 %v3641_v14  ;;  %v3638_v35 = vsel %vm3637_vm1, %v11208_v33, -inf  ;;  %v7149_v5 = vld [vmem:[%s3537_s27 + $0x14] sm:$0xf0] }
 0x57d   : >> { %v3647_v21 = vsel %vm3637_vm1, %v11204_v18, -inf  ;;  %7348 = vmatpush.bf16.msra.mxu3 %v6578_v38  ;;  %3811 = vmatpush.bf16.msra.mxu1 %v6578_v38  ;;  %v6574_v14 = vor.u32 %v7149_v5, %v6573_v0 }
 0x57e   : >> { %3648 = vmax.xlane.f32.xlu0 %v3647_v21  ;;  %v7148_v21 = vld [vmem:[%s3537_s27 + $0x4] sm:$0xf0] }
 0x581   : >> { %v3596_v17 = vpop.f32.mrf.mxu2  ;;  %7349 = vmatpush.bf16.msra.mxu3 %v6574_v14  ;;  %3812 = vmatpush.bf16.msra.mxu1 %v6574_v14 }
 0x582   : >> { %v11210_v20 = vsel %vm3628_vm8, %v3596_v17, -1e+09 }
 0x583   : >> { %v3659_v10 = vsel %vm3637_vm1, %v11210_v20, -inf }
 0x584   : >> { %3660 = vmax.xlane.f32.xlu2 %v3659_v10  ;;  %v6570_v10 = vor.u32 %v7148_v21, %v6569_v25 }
 0x586   : >> { %3639 = vmax.xlane.f32.xlu0 %v3638_v35  ;;  %7350 = vmatpush.bf16.msra.mxu3 %v6570_v10 }
 0x587   : >> { %3813 = vmatpush.bf16.msra.mxu1 %v6570_v10 }
 0x5df   : >> { %v3652_v17 = vpop.xlane.xlu1 %3651 }
 0x5e0   : >> { %v11218_v35 = vmax.f32 %v9055_v49, %v3652_v17  }
 0x5e2   : >> { %v3698_v42 = vsub.f32 %v11184_v7, %v11218_v35 }
 0x5e4   : >> { %v3710_v24 = vmul.f32 1.442695, %v3698_v42 }
 0x5e6   : >> { %8193 = vpow2.f32 %v3710_v24 }
 0x5e7   : >> { %v3655_v13 = vpop.xlane.xlu1 %3654 }
 0x5e8   : >> { %v11225_v2 = vmax.f32 %v9051_v46, %v3655_v13  }
 0x5e9   : >> { %v3646_v38 = vpop.xlane.xlu0 %3645 }
 0x5ea   : >> { %v11230_v5 = vmax.f32 %v9063_v41, %v3646_v38   ;;  %v3699_v10 = vsub.f32 %v11188_v40, %v11225_v2 }
 0x5ec   : >> { %v3696_v25 = vsub.f32 %v11192_v31, %v11230_v5  ;;  %v8194_v7 = vpop.eup %8193 }
 0x5ed   : >> { %v3738_v17 = vsel %vm3637_vm1, %v8194_v7, 0.0 }
 0x5ee   : >> { %v3706_v21 = vmul.f32 1.442695, %v3696_v25  ;;  %3739 = vadd.xlane.f32.xlu0 %v3738_v17  ;;  %v3712_v17 = vmul.f32 1.442695, %v3699_v10 }
 0x5ef   : >> { %v3658_v42 = vpop.xlane.xlu2 %3657  ;;  %v3643_v24 = vpop.xlane.xlu1 %3642 }
 0x5f0   : >> { %v11240_v13 = vmax.f32 %v9047_v27, %v3658_v42   ;;  %v11243_v38 = vmax.f32 %v9067_v1, %v3643_v24   ;;  %8195 = vpow2.f32 %v3706_v21 }
 0x5f1   : >> { %v3649_v0 = vpop.xlane.xlu0 %3648  ;;  %8197 = vpow2.f32 %v3712_v17 }
 0x5f2   : >> { %v3695_v40 = vsub.f32 %v11196_v3, %v11243_v38  ;;  %v11252_v14 = vmax.f32 %v9059_v45, %v3649_v0  }
 0x5f4   : >> { %v3704_v42 = vmul.f32 1.442695, %v3695_v40  ;;  %v3697_v21 = vsub.f32 %v11204_v18, %v11252_v14 }
 0x5f6   : >> { %v8196_v30 = vpop.eup %8195  ;;  %v3708_v31 = vmul.f32 1.442695, %v3697_v21  ;;  %8199 = vpow2.f32 %v3704_v42 }
 0x5f7   : >> { %v3661_v52 = vpop.xlane.xlu2 %3660  ;;  %v3732_v3 = vsel %vm3637_vm1, %v8196_v30, 0.0  ;;  %v8198_v42 = vpop.eup %8197 }
 0x5f8   : >> { %v11259_v25 = vmax.f32 %v9043_v58, %v3661_v52   ;;  %3733 = vadd.xlane.f32.xlu1 %v3732_v3  ;;  %8201 = vpow2.f32 %v3708_v31  ;;  %v3741_v53 = vsel %vm3637_vm1, %v8198_v42, 0.0 }
 0x5f9   : >> { %v3640_v0 = vpop.xlane.xlu0 %3639 }
 0x5fa   : >> { %v3677_v10 = vsub.f32 %v9043_v58, %v11259_v25  ;;  %v3701_v40 = vsub.f32 %v11210_v20, %v11259_v25  ;;  %v11267_v18 = vmax.f32 %v9071_v55, %v3640_v0  }
 0x5fc   : >> { %v3716_v17 = vmul.f32 1.442695, %v3701_v40  ;;  %v3670_v52 = vsub.f32 %v9071_v55, %v11267_v18  ;;  %v3694_v21 = vsub.f32 %v11208_v33, %v11267_v18  ;;  %v8200_v24 = vpop.eup %8199  ;;  %v3700_v33 = vsub.f32 %v11198_v6, %v11240_v13 }
 0x5fd   : >> { %v3729_v58 = vsel %vm3637_vm1, %v8200_v24, 0.0 }
 0x5fe   : >> { %v3702_v3 = vmul.f32 1.442695, %v3694_v21  ;;  %8203 = vpow2.f32 %v3716_v17  ;;  %v8202_v20 = vpop.eup %8201  ;;  %3730 = vadd.xlane.f32.xlu0 %v3729_v58 }
 0x5ff   : >> { %v3767_v31 = vpack.c.bf16 %v8202_v20, %v8196_v30  ;;  %v3768_v30 = vpack.c.bf16 %v8198_v42, %v8194_v7 }
 0x600   : >> { %8205 = vpow2.f32 %v3702_v3  ;;  %3742 = vadd.xlane.f32.xlu1 %v3741_v53  ;;  %v3714_v3 = vmul.f32 1.442695, %v3700_v33  ;;  %v3735_v53 = vsel %vm3637_vm1, %v8202_v20, 0.0  ;;  %v12773_v20 = vsub.f32 %v9063_v41, %v11230_v5 }
 0x601   : >> { %6584 = vmatmul.msk.bf16.vlgmr.msra.gmra.mxu3 %vm3637_vm1, %v3767_v31 }
 0x602   : >> { %8207 = vpow2.f32 %v3714_v3  ;;  %v3682_v33 = vmul.f32 1.442695, %v12773_v20 }
 0x604   : >> { %v8204_v0 = vpop.eup %8203 }
 0x605   : >> { %v3747_v55 = vsel %vm3637_vm1, %v8204_v0, 0.0 }
 0x606   : >> { %v8206_v40 = vpop.eup %8205  ;;  %3748 = vadd.xlane.f32.xlu0 %v3747_v55 }
 0x607   : >> { %v3726_v17 = vsel %vm3637_vm1, %v8206_v40, 0.0  ;;  %v3766_v21 = vpack.c.bf16 %v8200_v24, %v8206_v40  ;;  %v12772_v24 = vsub.f32 %v9055_v49, %v11218_v35  ;;  %v12776_v49 = vsub.f32 %v9067_v1, %v11243_v38 }
 0x608   : >> { %3727 = vadd.xlane.f32.xlu2 %v3726_v17  ;;  %v8208_v58 = vpop.eup %8207 }
 0x609   : >> { %6583 = vmatmul.msk.bf16.vlgmr.msra.gmra.mxu1 %vm3637_vm1, %v3766_v21  ;;  %v3744_v31 = vsel %vm3637_vm1, %v8208_v58, 0.0  ;;  %v3769_v6 = vpack.c.bf16 %v8204_v0, %v8208_v58  ;;  %v3686_v55 = vmul.f32 1.442695, %v12772_v24  ;;  %v12775_v0 = vsub.f32 %v9051_v46, %v11225_v2 }
 0x60a   : >> { %v3680_v3 = vmul.f32 1.442695, %v12776_v49  ;;  %v3692_v58 = vmul.f32 1.442695, %v3677_v10  ;;  %v12780_v10 = vsub.f32 %v9059_v45, %v11252_v14 }
 0x60b   : >> { %8209 = vpow2.f32 %v3686_v55  ;;  %v3688_v21 = vmul.f32 1.442695, %v12775_v0 }
 0x60c   : >> { %8211 = vpow2.f32 %v3682_v33 }
 0x60d   : >> { %8213 = vpow2.f32 %v3688_v21 }
 0x60e   : >> { %8215 = vpow2.f32 %v3680_v3 }
 0x60f   : >> { %8217 = vpow2.f32 %v3692_v58 }
 0x610   : >> { %3736 = vadd.xlane.f32.xlu2 %v3735_v53 }
 0x611   : >> { %6585 = vmatmul.msk.bf16.gmra.mxu3 %vm3637_vm1, %v3768_v30  ;;  %v8210_v40 = vpop.eup %8209 }
 0x612   : >> { %v3722_v7 = vmul.f32 %v9023_v62, %v8210_v40  ;;  %v8212_v53 = vpop.eup %8211 }
 0x613   : >> { %v3720_v41 = vmul.f32 %v9031_v56, %v8212_v53  ;;  %v8214_v24 = vpop.eup %8213 }
 0x614   : >> { %v3723_v55 = vmul.f32 %v9019_v4, %v8214_v24 }
 0x618   : >> { %3745 = vadd.xlane.f32.xlu2 %v3744_v31 }
 0x621   : >> { %6586 = vmatmul.msk.bf16.gmra.mxu3 %vm3637_vm1, %v3769_v6  ;;  %v3678_v6 = vmul.f32 1.442695, %v3670_v52 }
 0x623   : >> { %8219 = vpow2.f32 %v3678_v6 }
 0x661   : >> { %v3740_v42 = vpop.xlane.xlu0 %3739 }
 0x662   : >> { %v11292_v62 = vadd.f32 %v3740_v42, %v3722_v7   ;;  %v3684_v42 = vmul.f32 1.442695, %v12780_v10 }
 0x664   : >> { %v12774_v17 = vmov %v11292_v62  ;;  %v8216_v62 = vpop.eup %8215  ;;  %8221 = vpow2.f32 %v3684_v42 }
 0x665   : >> { %v3719_v46 = vmul.f32 %v9035_v48, %v8216_v62 }
 0x66b   : >> { %v3734_v30 = vpop.xlane.xlu1 %3733 }
 0x66c   : >> { %v11301_v56 = vadd.f32 %v3734_v30, %v3720_v41  }
 0x66e   : >> { %v12777_v31 = vmov %v11301_v56  ;;  %v8218_v56 = vpop.eup %8217 }
 0x66f   : >> { %v8220_v52 = vpop.eup %8219  ;;  %v3725_v0 = vmul.f32 %v9011_v19, %v8218_v56 }
 0x670   : >> { %v3718_v21 = vmul.f32 %v9039_v51, %v8220_v52  ;;  %v8222_v41 = vpop.eup %8221 }
 0x671   : >> { %v3731_v1 = vpop.xlane.xlu0 %3730  ;;  %v3721_v45 = vmul.f32 %v9027_v34, %v8222_v41 }
 0x672   : >> { %v11305_v48 = vadd.f32 %v3731_v1, %v3719_v46   ;;  %v3760_v46 = vmul.f32 %v8999_v43, %v8212_v53  ;;  %v3762_v43 = vmul.f32 %v8991_v22, %v8210_v40 }
 0x673   : >> { %v3743_v20 = vpop.xlane.xlu1 %3742 }
 0x674   : >> { %v12778_v33 = vmov %v11305_v48  ;;  %v11307_v4 = vadd.f32 %v3743_v20, %v3723_v55   ;;  %v3758_v55 = vmul.f32 %v9007_v12, %v8220_v52 }
 0x676   : >> { %v12779_v7 = vmov %v11307_v4  ;;  %v12783_v4 = vsub.f32 %v9047_v27, %v11240_v13 }
 0x678   : >> { %v3690_v48 = vmul.f32 1.442695, %v12783_v4 }
 0x679   : >> { %v3749_v49 = vpop.xlane.xlu0 %3748 }
 0x67a   : >> { %v11314_v19 = vadd.f32 %v3749_v49, %v3725_v0   ;;  %8223 = vpow2.f32 %v3690_v48  ;;  %v3761_v49 = vmul.f32 %v8995_v15, %v8222_v41  ;;  %v3765_v15 = vmul.f32 %v8979_v54, %v8218_v56 }
 0x67b   : >> { %v3728_v3 = vpop.xlane.xlu2 %3727  ;;  %v12799_v56 = vmov %v12777_v31 }
 0x67c   : >> { %v12781_v30 = vmov %v11314_v19  ;;  %v11316_v51 = vadd.f32 %v3728_v3, %v3718_v21   ;;  %v3759_v3 = vmul.f32 %v9003_v9, %v8216_v62  ;;  %v12797_v62 = vmov %v12774_v17 }
 0x67e   : >> { %v12782_v6 = vmov %v11316_v51 }
 0x680   : >> { %v8224_v19 = vpop.eup %8223 }
 0x681   : >> { %v3724_v51 = vmul.f32 %v9015_v28, %v8224_v19  ;;  %v3764_v28 = vmul.f32 %v8983_v39, %v8224_v19  ;;  %v12794_v19 = vmov %v12781_v30 }
 0x683   : >> { %v3737_v58 = vpop.xlane.xlu2 %3736 }
 0x684   : >> { %v11322_v34 = vadd.f32 %v3737_v58, %v3721_v45   ;;  %v3820_v1 = vpop.f32.mrf.mxu3  ;;  %v12802_v58 = vmov %v11259_v25 }
 0x685   : >> { %v3837_v42 = vadd.f32 %v3820_v1, %v3760_v46   ;;  %v12804_v46 = vmov %v11225_v2  ;;  %v12808_v1 = vmov %v11243_v38  ;;  %v12825_v2 = vmov (%p11335_p9), %v12782_v6 }
 0x686   : >> { %v12784_v20 = vmov %v11322_v34  ;;  %v3815_v10 = vpop.f32.mrf.mxu1  ;;  %v3763_v34 = vmul.f32 %v8987_v61, %v8214_v24  ;;  %v12818_v46 = vmov (%p11335_p9), %v12781_v30 }
 0x687   : >> { %v3835_v0 = vadd.f32 %v3815_v10, %v3758_v55   ;;  %v12809_v55 = vmov %v11267_v18  ;;  %v12822_v1 = vmov (%p11335_p9), %v12784_v20 }
 0x688   : > { %v12823_v55 = vmov (%p11335_p9), %v12777_v31 }
 0x68b   : >> { %v3746_v27 = vpop.xlane.xlu2 %3745 }
 0x68c   : >> { %v3756_v21 = vadd.f32 %v3746_v27, %v3724_v51   ;;  %v3822_v4 = vpop.f32.mrf.mxu3  ;;  %v12801_v51 = vmov %v12782_v6  ;;  %v12803_v27 = vmov %v11240_v13 }
 0x68d   : >> { %v3838_v60 = vadd.f32 %v3822_v4, %v3761_v49   ;;  %v12796_v4 = vmov %v12779_v7  ;;  %v12805_v49 = vmov %v11218_v35  ;;  %v12815_v51 = vmov (%p11335_p9), %v3837_v42 }
 0x68e   : >> { %v3817_v48 = vpop.f32.mrf.mxu1  ;;  %v12817_v27 = vmov (%p11335_p9), %v3835_v0  ;;  %v12819_v49 = vmov (%p11335_p9), %v3756_v21 }
 0x68f   : >> { %v3836_v32 = vadd.f32 %v3817_v48, %v3759_v3   ;;  %v12800_v48 = vmov %v12778_v33 }
 0x690   : > { %v12814_v48 = vmov (%p11335_p9), %v3838_v60 }
 0x691   : >> { %v12792_v9 = vmov %v3836_v32  ;;  %v12816_v58 = vmov (%p11335_p9), %v3836_v32 }
 0x694   : >> { %v3825_v12 = vpop.f32.mrf.mxu3 }
 0x695   : >> { %v3839_v53 = vadd.f32 %v3825_v12, %v3762_v43   ;;  %v12791_v43 = vmov %v3837_v42  ;;  %v12793_v12 = vmov %v3835_v0 }
 0x697   : >> { %v12789_v22 = vmov %v3839_v53  ;;  %v12813_v56 = vmov (%p11335_p9), %v3839_v53 }
 0x69c   : >> { %v3827_v52 = vpop.f32.mrf.mxu3 }
 0x69d   : >> { %v3840_v10 = vadd.f32 %v3827_v52, %v3763_v34   ;;  %v12798_v34 = vmov %v12784_v20  ;;  %v12824_v20 = vmov (%p11335_p9), %v12778_v33 }
 0x69f   : >> { %v12788_v61 = vmov %v3840_v10  ;;  %v12812_v34 = vmov (%p11335_p9), %v3840_v10 }
 0x6a4   : >> { %v3830_v45 = vpop.f32.mrf.mxu3 }
 0x6a5   : >> { %v3841_v44 = vadd.f32 %v3830_v45, %v3764_v28   ;;  %v12795_v28 = vmov %v3756_v21  ;;  %v12806_v45 = vmov %v11252_v14 }
 0x6a6   : > { %v12820_v45 = vmov (%p11335_p9), %v12779_v7 }
 0x6a7   : >> { %v12787_v39 = vmov %v3841_v44  ;;  %v12811_v62 = vmov (%p11335_p9), %v3841_v44 }
 0x6ab   : > { %3496 = sbr.rel (!%p11335_p9) target bundleno = 1215 (0x4bf), region = 189 }
 0x6ac   : >> { %v3832_v41 = vpop.f32.mrf.mxu3 }
 0x6ad   : >> { %v3842_v36 = vadd.f32 %v3832_v41, %v3765_v15   ;;  %v12790_v15 = vmov %v3838_v60  ;;  %v12807_v41 = vmov %v11230_v5 }
 0x6ae   : > { %v12821_v41 = vmov (%p11335_p9), %v12774_v17 }
 0x6af   : >> { %v12786_v54 = vmov %v3842_v36  ;;  %v12810_v4 = vmov (%p11335_p9), %v3842_v36 }
 0x6b0 PF: > { %3879 = vrot.lane.b32.xlu1 %v10917_v16, %s9313_s7  ;;  %3875 = vrot.lane.b32.xlu0 %v10913_v11, %s9313_s7  ;;  %8225 = vrcp.f32 %v9139_v2  ;;  %v12826_v9 = vunpack.c.l.bf16 %v10880_v23  ;;  %v12827_v36 = vunpack.c.l.bf16 %v10934_v8  ;;  %v12828_v54 = vunpack.c.h.bf16 %v10880_v23  ;;  %v12833_v3 = vld [vmem:[#allocation79_spill] sm:$0xff]  ;;  %v12835_v43 = vld [vmem:[#allocation77_spill] sm:$0xff]  ;;  %s11655_s26 = smov (!%p6546_p5), 0   ;;  %v9139_v2 = vphi %v11032_v2, %v12825_v2   ;;  %v9135_v20 = vphi %v11030_v20, %v12824_v20   ;;  %v9131_v55 = vphi %v11028_v55, %v12823_v55   ;;  %v9127_v1 = vphi %v11026_v1, %v12822_v1   ;;  %v9123_v41 = vphi %v11024_v41, %v12821_v41   ;;  %v9119_v45 = vphi %v11022_v45, %v12820_v45   ;;  %v9115_v49 = vphi %v11020_v49, %v12819_v49   ;;  %v9111_v46 = vphi %v11018_v46, %v12818_v46   ;;  %v9107_v27 = vphi %v11016_v27, %v12817_v27   ;;  %v9103_v58 = vphi %v11014_v58, %v12816_v58   ;;  %v9099_v51 = vphi %v11012_v51, %v12815_v51   ;;  %v9095_v48 = vphi %v11010_v48, %v12814_v48   ;;  %v9091_v56 = vphi %v11008_v56, %v12813_v56   ;;  %v9087_v34 = vphi %v11006_v34, %v12812_v34   ;;  %v9083_v62 = vphi %v11004_v62, %v12811_v62   ;;  %v9079_v4 = vphi %v11002_v4, %v12810_v4  }
 0x6b1   : > { %3883 = vrot.lane.b32.xlu2 %v10929_v29, %s9313_s7  ;;  %8227 = vrcp.f32 %v9135_v20  ;;  %v12830_v2 = vunpack.c.h.bf16 %v10934_v8  ;;  %v12832_v21 = vunpack.c.l.bf16 %v10850_v59  ;;  %v12836_v12 = vunpack.c.l.bf16 %v12835_v43 }
 0x6b2   : > { %v3871_v44 = vmul.f32 %v12826_v9, %v10929_v29  ;;  %8229 = vrcp.f32 %v9131_v55  ;;  %v3872_v39 = vmul.f32 %v12828_v54, %v10941_v26  ;;  %v12838_v10 = vunpack.c.h.bf16 %v10850_v59 }
 0x6b3   : > { %8231 = vrcp.f32 %v9127_v1  ;;  %v12839_v15 = vunpack.c.h.bf16 %v12833_v3 }
 0x6b4   : > { %8233 = vrcp.f32 %v9123_v41  ;;  %v3868_v28 = vmul.f32 %v12838_v10, %v10915_v57 }
 0x6b5   : > { %8235 = vrcp.f32 %v9119_v45 }
 0x6b6   : > { %v8226_v22 = vpop.eup %8225  ;;  %8237 = vrcp.f32 %v9115_v49  ;;  %v3867_v49 = vmul.f32 %v12832_v21, %v10913_v11  ;;  %v12840_v11 = vunpack.c.h.bf16 %v12835_v43  ;;  %v11585_v21 = vmov 0.0  }
 0x6b7   : > { %v8228_v29 = vpop.eup %8227  ;;  %8239 = vrcp.f32 %v9111_v46  ;;  %v11489_v14 = vmul.f32 %v9107_v27, %v8226_v22  ;;  %v11595_v43 = vmov 0.0  }
 0x6b8   : > { %3881 = vrot.lane.b32.xlu1 %v10919_v47, %s9313_s7  ;;  %3877 = vrot.lane.b32.xlu0 %v10915_v57, %s9313_s7  ;;  %v8230_v13 = vpop.eup %8229  ;;  %v11493_v25 = vmul.f32 %v9103_v58, %v8228_v29 }
 0x6b9   : > { %3885 = vrot.lane.b32.xlu2 %v10941_v26, %s9313_s7  ;;  %v8232_v23 = vpop.eup %8231  ;;  %v11495_v26 = vmul.f32 %v9099_v51, %v8230_v13 }
 0x6ba   : > { %v8234_v40 = vpop.eup %8233  ;;  %v11501_v17 = vmul.f32 %v9095_v48, %v8232_v23 }
 0x6bb   : > { %v8236_v24 = vpop.eup %8235  ;;  %v11505_v33 = vmul.f32 %v9091_v56, %v8234_v40 }
 0x6bc   : > { %v8238_v30 = vpop.eup %8237  ;;  %v11509_v6 = vmul.f32 %v9087_v34, %v8236_v24  ;;  %v12837_v34 = vunpack.c.h.bf16 %v10865_v50 }
 0x6bd   : > { %v8240_v20 = vpop.eup %8239  ;;  %v11513_v46 = vmul.f32 %v9083_v62, %v8238_v30  ;;  %v12831_v62 = vunpack.c.l.bf16 %v10865_v50 }
 0x6be   : > { %v11517_v1 = vmul.f32 %v9079_v4, %v8240_v20  ;;  %v12834_v4 = vunpack.c.l.bf16 %v12833_v3  ;;  %v3870_v52 = vmul.f32 %v12837_v34, %v10919_v47  ;;  %v12843_v47 = vld [vmem:[#allocation76_spill] sm:$0xff]  ;;  %v11589_v3 = vmov 0.0  }
 0x6bf   : > { %v3869_v27 = vmul.f32 %v12831_v62, %v10917_v16  ;;  %v11581_v62 = vmov 0.0   ;;  %v11601_v34 = vmov 0.0  }
 0x6c0   : > { %3889 = vrot.lane.b32.xlu1 %v10975_v63, %s9313_s7  ;;  %3887 = vrot.lane.b32.xlu0 %v10960_v37, %s9313_s7 }
 0x70b   : > { %v3884_v32 = vpop.permute.xlu2 %3883 }
 0x70c   : > { %v3895_v60 = vmul.f32 %v12827_v36, %v3884_v32 }
 0x70e   : > { %v11485_v35 = vadd.f32 %v3895_v60, %v3871_v44  ;;  %v12844_v60 = vunpack.c.h.bf16 %v12843_v47 }
 0x710   : > { %12829 = vst [vmem:[#allocation78_spill] sm:$0xff] %v11485_v35  ;;  %v3874_v54 = vmul.f32 %v12844_v60, %v10975_v63  ;;  %v11573_v63 = vmov 0.0  }
 0x713   : > { %v3886_v61 = vpop.permute.xlu2 %3885 }
 0x714   : > { %v3896_v5 = vmul.f32 %v12830_v2, %v3886_v61 }
 0x716   : > { %v11491_v38 = vadd.f32 %v3896_v5, %v3872_v39  ;;  %v12845_v39 = vunpack.c.l.bf16 %v12843_v47  ;;  %v12846_v5 = vld [vmem:[#allocation85_spill] sm:$0xff] }
 0x717   : > { %v12847_v29 = vunpack.c.h.bf16 %v12846_v5  ;;  %v12848_v23 = vunpack.c.l.bf16 %v12846_v5 }
 0x718   : > { %v3873_v61 = vmul.f32 %v12845_v39, %v10960_v37  ;;  %v11577_v37 = vmov 0.0  }
 0x722   : > { %v3880_v0 = vpop.permute.xlu1 %3879  ;;  %v3876_v51 = vpop.permute.xlu0 %3875 }
 0x723   : > { %v3893_v48 = vmul.f32 %v12834_v4, %v3880_v0  ;;  %v3891_v53 = vmul.f32 %v12836_v12, %v3876_v51  ;;  %v11575_v0 = vmov 0.0   ;;  %v11579_v51 = vmov 0.0  }
 0x724   : > { %v11591_v4 = vmov 0.0   ;;  %v11597_v12 = vmov 0.0  }
 0x725   : > { %v11545_v9 = vadd.f32 %v3893_v48, %v3869_v27  ;;  %v11547_v44 = vadd.f32 %v3891_v53, %v3867_v49  ;;  %v11583_v27 = vmov 0.0   ;;  %v11587_v49 = vmov 0.0  }
 0x726   : > { %v11593_v48 = vmov 0.0   ;;  %v11599_v53 = vmov 0.0  }
 0x727   : > { %12841 = vst [vmem:[#allocation80_spill] sm:$0xff] %v11545_v9 }
 0x72a   : > { %v3882_v45 = vpop.permute.xlu1 %3881  ;;  %v3878_v16 = vpop.permute.xlu0 %3877 }
 0x72b   : > { %v3894_v41 = vmul.f32 %v12839_v15, %v3882_v45  ;;  %v3892_v32 = vmul.f32 %v12840_v11, %v3878_v16 }
 0x72d   : > { %v11549_v36 = vadd.f32 %v3894_v41, %v3870_v52  ;;  %v11551_v50 = vadd.f32 %v3892_v32, %v3868_v28  ;;  %v11603_v52 = vmov 0.0  }
 0x72f   : > { %12842 = vst [vmem:[#allocation81_spill] sm:$0xff] %v11549_v36 }
 0x732   : > { %v3890_v22 = vpop.permute.xlu1 %3889  ;;  %v3888_v2 = vpop.permute.xlu0 %3887 }
 0x733   : > { %v3898_v13 = vmul.f32 %v12847_v29, %v3890_v22  ;;  %v3897_v40 = vmul.f32 %v12848_v23, %v3888_v2 }
 0x734   : > { %5407 = sbr.rel (%p6546_p5) target bundleno = 2353 (0x931), region = 194 }
 0x735   : > { %v11567_v24 = vadd.f32 %v3898_v13, %v3874_v54  ;;  %v11569_v30 = vadd.f32 %v3897_v40, %v3873_v61 }
 0x737   : > { %12849 = vst [vmem:[#allocation82_spill] sm:$0xff] %v11567_v24 }
 0x738   : > { %12850 = vst [vmem:[#allocation83_spill] sm:$0xff] %v11569_v30 }
 0x739   : > { %v11607_v10 = vmov 0.0   ;;  %v11609_v28 = vmov 0.0   ;;  %v11611_v45 = vmov 0.0   ;;  %v11613_v16 = vmov 0.0  }
 0x73a   : > { %v11615_v15 = vmov 0.0   ;;  %v11617_v41 = vmov 0.0   ;;  %v11619_v11 = vmov 0.0   ;;  %v11621_v32 = vmov 0.0  }
 0x73b   : > { %v11623_v47 = vmov 0.0   ;;  %v11625_v60 = vmov 0.0   ;;  %v11627_v54 = vmov 0.0   ;;  %v11629_v39 = vmov 0.0  }
 0x73c   : > { %v11631_v61 = vmov 0.0   ;;  %v11633_v22 = vmov 0.0   ;;  %v11635_v2 = vmov 0.0   ;;  %v11637_v5 = vmov 0.0  }
 0x73d   : > { %v11639_v29 = vmov -1e+30   ;;  %v11641_v13 = vmov -1e+30   ;;  %v11643_v23 = vmov -1e+30  }
 0x73e   : > { %v11645_v40 = vmov -1e+30   ;;  %v11647_v63 = vmov -1e+30   ;;  %v11649_v0 = vmov -1e+30  }
 0x73f   : > { %v11651_v37 = vmov -1e+30   ;;  %v11653_v51 = vmov -1e+30  }
 0x740 LB: >> { %s6588_s21 = sshll.u32 %s9239_s26, 6  ;;  %v12852_v57 = vpack.c.bf16 %v11551_v50, %v11547_v44  ;;  %v12853_v35 = vld [vmem:[#allocation78_spill] sm:$0xff]  ;;  %v12855_v36 = vld [vmem:[#allocation81_spill] sm:$0xff]  ;;  %v12856_v9 = vld [vmem:[#allocation80_spill] sm:$0xff]  ;;  %vm4057_vm10 = vcmask 523264   ;;  %s3914_s26 = sadd.s32 1, %s9239_s26   ;;  %s9239_s26 = sphi %s11655_s26, %s3914_s26   ;;  %v9235_v51 = vphi %v11653_v51, %v12898_v51   ;;  %v9231_v37 = vphi %v11651_v37, %v12897_v37   ;;  %v9227_v0 = vphi %v11649_v0, %v12896_v0   ;;  %v9223_v63 = vphi %v11647_v63, %v12895_v63   ;;  %v9219_v40 = vphi %v11645_v40, %v12894_v40   ;;  %v9215_v23 = vphi %v11643_v23, %v12893_v23   ;;  %v9211_v13 = vphi %v11641_v13, %v12892_v13   ;;  %v9207_v29 = vphi %v11639_v29, %v12891_v29   ;;  %v9203_v5 = vphi %v11637_v5, %v12890_v5   ;;  %v9199_v2 = vphi %v11635_v2, %v12889_v2   ;;  %v9195_v22 = vphi %v11633_v22, %v12888_v22   ;;  %v9191_v61 = vphi %v11631_v61, %v12887_v61   ;;  %v9187_v39 = vphi %v11629_v39, %v12886_v39   ;;  %v9183_v54 = vphi %v11627_v54, %v12885_v54   ;;  %v9179_v60 = vphi %v11625_v60, %v12884_v60   ;;  %v9175_v47 = vphi %v11623_v47, %v12883_v47   ;;  %v9171_v32 = vphi %v11621_v32, %v12882_v32   ;;  %v9167_v11 = vphi %v11619_v11, %v12881_v11   ;;  %v9163_v41 = vphi %v11617_v41, %v12880_v41   ;;  %v9159_v15 = vphi %v11615_v15, %v12879_v15   ;;  %v9155_v16 = vphi %v11613_v16, %v12878_v16   ;;  %v9151_v45 = vphi %v11611_v45, %v12877_v45   ;;  %v9147_v28 = vphi %v11609_v28, %v12876_v28   ;;  %v9143_v10 = vphi %v11607_v10, %v12875_v10  }
 0x741   : >> { %s3942_s13 = sadd.s32 %s6588_s21, %s6545_s16  ;;  %v12854_v8 = vpack.c.bf16 %v11491_v38, %v12853_v35  ;;  %v12857_v59 = vpack.c.bf16 %v12855_v36, %v12856_v9  ;;  %v12858_v24 = vld [vmem:[#allocation82_spill] sm:$0xff]  ;;  %v12859_v30 = vld [vmem:[#allocation83_spill] sm:$0xff]  ;;  %p11906_p10 = scmp.ge.s32.totalorder %s3914_s26, %s10900_s24 }
 0x742   : >> { %s3943_s9 = sshra.s32 %s3942_s13, 3  ;;  %v12860_v20 = vpack.c.bf16 %v12858_v24, %v12859_v30 }
 0x743   : >> { %s11737_s14 = sshll.u32 %s3943_s9, 3 }
 0x744   : >> { %s3947_s7 = scalar_lea.vmem [#allocation3], %s11737_s14  ;;  %s3957_s20 = scalar_lea.vmem [#allocation4], %s11737_s14 }
 0x745   : >> { %v6606_v62 = vld [vmem:[%s3947_s7 + $0x34] sm:$0xf]  ;;  %v7156_v27 = vld [vmem:[%s3947_s7 + $0x38] sm:$0xf0]  ;;  %v6602_v49 = vld [vmem:[%s3947_s7 + $0x24] sm:$0xf] }
 0x746   : >> { %v6607_v21 = vor.u32 %v7156_v27, %v6606_v62  ;;  %v7155_v3 = vld [vmem:[%s3947_s7 + $0x28] sm:$0xf0]  ;;  %v6598_v48 = vld [vmem:[%s3947_s7 + $0x14] sm:$0xf]  ;;  %v7154_v43 = vld [vmem:[%s3947_s7 + $0x18] sm:$0xf0]  ;;  %v4019_v62 = vlaneseq }
 0x747   : >> { %v6603_v4 = vor.u32 %v7155_v3, %v6602_v49  ;;  %v6599_v12 = vor.u32 %v7154_v43, %v6598_v48  ;;  %v6594_v53 = vld [vmem:[%s3947_s7 + $0x4] sm:$0xf]  ;;  %v7153_v34 = vld [vmem:[%s3947_s7 + $0x8] sm:$0xf0]  ;;  %v4039_v3 = vstv %s6588_s21 }
 0x748   : >> { %3994 = vmatpush.bf16.xpose.msra.mxu0 %v6607_v21  ;;  %7351 = vmatpush.bf16.xpose.msra.mxu2 %v6607_v21  ;;  %v6595_v52 = vor.u32 %v7153_v34, %v6594_v53  ;;  %v4020_v27 = vshrl.u32 %v4019_v62, 7  ;;  %v4038_v49 = vand.u32 127, %v4019_v62 }
 0x74a   : >> { %v4024_v21 = vadd.s32 32, %v4020_v27  ;;  %v4025_v53 = vadd.s32 40, %v4020_v27  ;;  %v4021_v62 = vadd.s32 8, %v4020_v27  ;;  %v4026_v19 = vadd.s32 48, %v4020_v27 }
 0x750   : >> { %3995 = vmatpush.bf16.xpose.msra.mxu0 %v6603_v4  ;;  %7352 = vmatpush.bf16.xpose.msra.mxu2 %v6603_v4  ;;  %v4028_v4 = vstv %s10679_s17 }
 0x751   : >> { %v4033_v43 = vadd.s32 %v4028_v4, %v4024_v21  ;;  %v4030_v56 = vadd.s32 %v4028_v4, %v4021_v62  ;;  %v4035_v55 = vadd.s32 %v4028_v4, %v4026_v19 }
 0x758   : >> { %3996 = vmatpush.bf16.xpose.msra.mxu0 %v6599_v12  ;;  %7353 = vmatpush.bf16.xpose.msra.mxu2 %v6599_v12  ;;  %v4040_v12 = vadd.s32 %v4039_v3, %v4038_v49  ;;  %v4023_v49 = vadd.s32 24, %v4020_v27 }
 0x75a   : >> { %vm4045_vm9 = vcmp.le.s32.totalorder %v4040_v12, %v4033_v43  ;;  %vm4042_vm13 = vcmp.le.s32.totalorder %v4040_v12, %v4030_v56  ;;  %vm4047_vm14 = vcmp.le.s32.totalorder %v4040_v12, %v4035_v55 }
 0x760   : >> { %3997 = vmatpush.bf16.xpose.msra.mxu0 %v6595_v52  ;;  %7354 = vmatpush.bf16.xpose.msra.mxu2 %v6595_v52  ;;  %v4022_v52 = vadd.s32 16, %v4020_v27 }
 0x762   : >> { %v4031_v42 = vadd.s32 %v4028_v4, %v4022_v52 }
 0x764   : >> { %vm4043_vm12 = vcmp.le.s32.totalorder %v4040_v12, %v4031_v42 }
 0x767   : >> { %3998 = vmatmul.bf16.vlgmr.msra.gmra.mxu0 %v12852_v57  ;;  %4008 = vmatmul.bf16.vlgmr.msra.gmra.mxu2 %v12854_v8 }
 0x777   : >> { %4003 = vmatmul.bf16.gmra.mxu0 %v12857_v59  ;;  %4013 = vmatmul.bf16.gmra.mxu2 %v12860_v20  ;;  %v4034_v59 = vadd.s32 %v4028_v4, %v4025_v53  ;;  %v4027_v53 = vadd.s32 56, %v4020_v27 }
 0x779   : >> { %vm4046_vm11 = vcmp.le.s32.totalorder %v4040_v12, %v4034_v59  ;;  %v4032_v59 = vadd.s32 %v4028_v4, %v4023_v49 }
 0x77b   : >> { %vm4044_vm15 = vcmp.le.s32.totalorder %v4040_v12, %v4032_v59  ;;  %v7161_v59 = vld [vmem:[%s3957_s20 + $0x38] sm:$0xf0] }
 0x7e4   : >> { %v3999_v48 = vpop.f32.mrf.mxu0 }
 0x7ea   : >> { %v4009_v34 = vpop.f32.mrf.mxu2 }
 0x7eb   : >> { %v11755_v8 = vsel %vm4045_vm9, %v4009_v34, -1e+09 }
 0x7ec   : >> { %v4001_v57 = vpop.f32.mrf.mxu0  ;;  %v4070_v20 = vsel %vm4057_vm10, %v11755_v8, -inf }
 0x7ed   : >> { %4071 = vmax.xlane.f32.xlu1 %v4070_v20  ;;  %v11767_v42 = vsel %vm4042_vm13, %v4001_v57, -1e+09 }
 0x7ee   : >> { %v4061_v56 = vsel %vm4057_vm10, %v11767_v42, -inf }
 0x7f2   : >> { %v4011_v21 = vpop.f32.mrf.mxu2 }
 0x7f3   : >> { %v11759_v3 = vsel %vm4046_vm11, %v4011_v21, -1e+09  ;;  %v4029_v21 = vadd.s32 %v4028_v4, %v4020_v27 }
 0x7f4   : >> { %v4004_v43 = vpop.f32.mrf.mxu0  ;;  %v4073_v34 = vsel %vm4057_vm10, %v11759_v3, -inf }
 0x7f5   : >> { %v11763_v58 = vsel %vm4043_vm12, %v4004_v43, -1e+09  ;;  %4074 = vmax.xlane.f32.xlu1 %v4073_v34  ;;  %v4036_v43 = vadd.s32 %v4028_v4, %v4027_v53  ;;  %vm4041_vm0 = vcmp.le.s32.totalorder %v4040_v12, %v4029_v21  ;;  %v6622_v4 = vld [vmem:[%s3957_s20 + $0x34] sm:$0xf] }
 0x7f6   : >> { %v4064_v20 = vsel %vm4057_vm10, %v11763_v58, -inf  ;;  %v11779_v27 = vsel %vm4041_vm0, %v3999_v48, -1e+09  ;;  %v6623_v53 = vor.u32 %v7161_v59, %v6622_v4  ;;  %v6614_v21 = vld [vmem:[%s3957_s20 + $0x14] sm:$0xf] }
 0x7f7   : >> { %4065 = vmax.xlane.f32.xlu0 %v4064_v20  ;;  %vm4048_vm1 = vcmp.le.s32.totalorder %v4040_v12, %v4036_v43  ;;  %v6618_v12 = vld [vmem:[%s3957_s20 + $0x24] sm:$0xf] }
 0x7f8   : >> { %7355 = vmatpush.bf16.msra.mxu3 %v6623_v53  ;;  %4230 = vmatpush.bf16.msra.mxu1 %v6623_v53  ;;  %v6610_v43 = vld [vmem:[%s3957_s20 + $0x4] sm:$0xf] }
 0x7fa   : >> { %v4014_v52 = vpop.f32.mrf.mxu2 }
 0x7fb   : >> { %v11769_v62 = vsel %vm4047_vm14, %v4014_v52, -1e+09  ;;  %v7160_v52 = vld [vmem:[%s3957_s20 + $0x28] sm:$0xf0] }
 0x7fc   : >> { %v4006_v7 = vpop.f32.mrf.mxu0  ;;  %v4076_v19 = vsel %vm4057_vm10, %v11769_v62, -inf  ;;  %v6619_v48 = vor.u32 %v7160_v52, %v6618_v12 }
 0x7fd   : >> { %v11775_v49 = vsel %vm4044_vm15, %v4006_v7, -1e+09  ;;  %4077 = vmax.xlane.f32.xlu2 %v4076_v19  ;;  %4062 = vmax.xlane.f32.xlu1 %v4061_v56  ;;  %v4058_v7 = vsel %vm4057_vm10, %v11779_v27, -inf  ;;  %v7159_v19 = vld [vmem:[%s3957_s20 + $0x18] sm:$0xf0] }
 0x7fe   : >> { %v4067_v55 = vsel %vm4057_vm10, %v11775_v49, -inf  ;;  %7356 = vmatpush.bf16.msra.mxu3 %v6619_v48  ;;  %4231 = vmatpush.bf16.msra.mxu1 %v6619_v48  ;;  %v6615_v56 = vor.u32 %v7159_v19, %v6614_v21 }
 0x7ff   : >> { %4068 = vmax.xlane.f32.xlu0 %v4067_v55  ;;  %v7158_v55 = vld [vmem:[%s3957_s20 + $0x8] sm:$0xf0] }
 0x802   : >> { %v4016_v57 = vpop.f32.mrf.mxu2  ;;  %7357 = vmatpush.bf16.msra.mxu3 %v6615_v56  ;;  %4232 = vmatpush.bf16.msra.mxu1 %v6615_v56 }
 0x803   : >> { %v11781_v34 = vsel %vm4048_vm1, %v4016_v57, -1e+09 }
 0x804   : >> { %v4079_v20 = vsel %vm4057_vm10, %v11781_v34, -inf }
 0x805   : >> { %4080 = vmax.xlane.f32.xlu2 %v4079_v20  ;;  %v6611_v20 = vor.u32 %v7158_v55, %v6610_v43 }
 0x807   : >> { %4059 = vmax.xlane.f32.xlu0 %v4058_v7  ;;  %7358 = vmatpush.bf16.msra.mxu3 %v6611_v20 }
 0x808   : >> { %4233 = vmatpush.bf16.msra.mxu1 %v6611_v20 }
 0x860   : >> { %v4072_v57 = vpop.xlane.xlu1 %4071 }
 0x861   : >> { %v11789_v7 = vmax.f32 %v9219_v40, %v4072_v57  }
 0x863   : >> { %v4118_v59 = vsub.f32 %v11755_v8, %v11789_v7 }
 0x865   : >> { %v4130_v53 = vmul.f32 1.442695, %v4118_v59 }
 0x867   : >> { %8241 = vpow2.f32 %v4130_v53 }
 0x868   : >> { %v4075_v12 = vpop.xlane.xlu1 %4074 }
 0x869   : >> { %v11796_v52 = vmax.f32 %v9215_v23, %v4075_v12  }
 0x86a   : >> { %v4066_v48 = vpop.xlane.xlu0 %4065 }
 0x86b   : >> { %v11801_v19 = vmax.f32 %v9227_v0, %v4066_v48   ;;  %v4119_v20 = vsub.f32 %v11759_v3, %v11796_v52 }
 0x86d   : >> { %v4116_v43 = vsub.f32 %v11763_v58, %v11801_v19  ;;  %v8242_v8 = vpop.eup %8241 }
 0x86e   : >> { %v4158_v57 = vsel %vm4057_vm10, %v8242_v8, 0.0 }
 0x86f   : >> { %v4126_v55 = vmul.f32 1.442695, %v4116_v43  ;;  %4159 = vadd.xlane.f32.xlu0 %v4158_v57  ;;  %v4132_v57 = vmul.f32 1.442695, %v4119_v20 }
 0x870   : >> { %v4078_v59 = vpop.xlane.xlu2 %4077  ;;  %v4063_v53 = vpop.xlane.xlu1 %4062 }
 0x871   : >> { %v11811_v12 = vmax.f32 %v9211_v13, %v4078_v59   ;;  %v11814_v48 = vmax.f32 %v9231_v37, %v4063_v53   ;;  %8243 = vpow2.f32 %v4126_v55 }
 0x872   : >> { %v4069_v31 = vpop.xlane.xlu0 %4068  ;;  %8245 = vpow2.f32 %v4132_v57 }
 0x873   : >> { %v4115_v3 = vsub.f32 %v11767_v42, %v11814_v48  ;;  %v11823_v18 = vmax.f32 %v9223_v63, %v4069_v31  }
 0x875   : >> { %v4124_v59 = vmul.f32 1.442695, %v4115_v3  ;;  %v4117_v55 = vsub.f32 %v11775_v49, %v11823_v18 }
 0x877   : >> { %v8244_v21 = vpop.eup %8243  ;;  %v4128_v58 = vmul.f32 1.442695, %v4117_v55  ;;  %8247 = vpow2.f32 %v4124_v59 }
 0x878   : >> { %v4081_v56 = vpop.xlane.xlu2 %4080  ;;  %v4152_v42 = vsel %vm4057_vm10, %v8244_v21, 0.0  ;;  %v8246_v59 = vpop.eup %8245 }
 0x879   : >> { %v11830_v43 = vmax.f32 %v9207_v29, %v4081_v56   ;;  %4153 = vadd.xlane.f32.xlu1 %v4152_v42  ;;  %8249 = vpow2.f32 %v4128_v58  ;;  %v4161_v4 = vsel %vm4057_vm10, %v8246_v59, 0.0 }
 0x87a   : >> { %v4060_v31 = vpop.xlane.xlu0 %4059 }
 0x87b   : >> { %v4097_v20 = vsub.f32 %v9207_v29, %v11830_v43  ;;  %v4121_v3 = vsub.f32 %v11781_v34, %v11830_v43  ;;  %v11838_v49 = vmax.f32 %v9235_v51, %v4060_v31  }
 0x87d   : >> { %v4136_v57 = vmul.f32 1.442695, %v4121_v3  ;;  %v4090_v56 = vsub.f32 %v9235_v51, %v11838_v49  ;;  %v4114_v55 = vsub.f32 %v11779_v27, %v11838_v49  ;;  %v8248_v53 = vpop.eup %8247  ;;  %v4120_v27 = vsub.f32 %v11769_v62, %v11811_v12 }
 0x87e   : >> { %v4149_v29 = vsel %vm4057_vm10, %v8248_v53, 0.0 }
 0x87f   : >> { %v4122_v42 = vmul.f32 1.442695, %v4114_v55  ;;  %8251 = vpow2.f32 %v4136_v57  ;;  %v8250_v34 = vpop.eup %8249  ;;  %4150 = vadd.xlane.f32.xlu0 %v4149_v29 }
 0x880   : >> { %v4187_v58 = vpack.c.bf16 %v8250_v34, %v8244_v21  ;;  %v4188_v21 = vpack.c.bf16 %v8246_v59, %v8242_v8 }
 0x881   : >> { %8253 = vpow2.f32 %v4122_v42  ;;  %4162 = vadd.xlane.f32.xlu1 %v4161_v4  ;;  %v4134_v42 = vmul.f32 1.442695, %v4120_v27  ;;  %v4155_v4 = vsel %vm4057_vm10, %v8250_v34, 0.0  ;;  %v12862_v34 = vsub.f32 %v9227_v0, %v11801_v19 }
 0x882   : >> { %6625 = vmatmul.msk.bf16.vlgmr.msra.gmra.mxu3 %vm4057_vm10, %v4187_v58 }
 0x883   : >> { %8255 = vpow2.f32 %v4134_v42  ;;  %v4102_v27 = vmul.f32 1.442695, %v12862_v34 }
 0x885   : >> { %v8252_v31 = vpop.eup %8251 }
 0x886   : >> { %v4167_v51 = vsel %vm4057_vm10, %v8252_v31, 0.0 }
 0x887   : >> { %v8254_v3 = vpop.eup %8253  ;;  %4168 = vadd.xlane.f32.xlu0 %v4167_v51 }
 0x888   : >> { %v4146_v57 = vsel %vm4057_vm10, %v8254_v3, 0.0  ;;  %v4186_v55 = vpack.c.bf16 %v8248_v53, %v8254_v3  ;;  %v12861_v53 = vsub.f32 %v9219_v40, %v11789_v7  ;;  %v12865_v40 = vsub.f32 %v9231_v37, %v11814_v48 }
 0x889   : >> { %4147 = vadd.xlane.f32.xlu2 %v4146_v57  ;;  %v8256_v29 = vpop.eup %8255 }
 0x88a   : >> { %6624 = vmatmul.msk.bf16.vlgmr.msra.gmra.mxu1 %vm4057_vm10, %v4186_v55  ;;  %v4164_v58 = vsel %vm4057_vm10, %v8256_v29, 0.0  ;;  %v4189_v62 = vpack.c.bf16 %v8252_v31, %v8256_v29  ;;  %v4106_v51 = vmul.f32 1.442695, %v12861_v53  ;;  %v12864_v31 = vsub.f32 %v9215_v23, %v11796_v52 }
 0x88b   : >> { %v4100_v42 = vmul.f32 1.442695, %v12865_v40  ;;  %v4112_v29 = vmul.f32 1.442695, %v4097_v20  ;;  %v12869_v20 = vsub.f32 %v9223_v63, %v11823_v18 }
 0x88c   : >> { %8257 = vpow2.f32 %v4106_v51  ;;  %v4108_v55 = vmul.f32 1.442695, %v12864_v31 }
 0x88d   : >> { %8259 = vpow2.f32 %v4102_v27  ;;  %v4104_v27 = vmul.f32 1.442695, %v12869_v20 }
 0x88e   : >> { %8261 = vpow2.f32 %v4108_v55 }
 0x88f   : >> { %8263 = vpow2.f32 %v4100_v42 }
 0x890   : >> { %8265 = vpow2.f32 %v4112_v29 }
 0x891   : >> { %4156 = vadd.xlane.f32.xlu2 %v4155_v4 }
 0x892   : >> { %6626 = vmatmul.msk.bf16.gmra.mxu3 %vm4057_vm10, %v4188_v21  ;;  %v8258_v3 = vpop.eup %8257 }
 0x893   : >> { %v4142_v8 = vmul.f32 %v9187_v39, %v8258_v3  ;;  %v8260_v4 = vpop.eup %8259 }
 0x894   : >> { %v4140_v0 = vmul.f32 %v9195_v22, %v8260_v4  ;;  %v8262_v53 = vpop.eup %8261  ;;  %v4180_v29 = vmul.f32 %v9163_v41, %v8260_v4  ;;  %v4182_v41 = vmul.f32 %v9155_v16, %v8258_v3 }
 0x895   : >> { %v4143_v51 = vmul.f32 %v9183_v54, %v8262_v53 }
 0x899   : >> { %4165 = vadd.xlane.f32.xlu2 %v4164_v58 }
 0x8a2   : >> { %6627 = vmatmul.msk.bf16.gmra.mxu3 %vm4057_vm10, %v4189_v62  ;;  %v4098_v62 = vmul.f32 1.442695, %v4090_v56 }
 0x8a4   : >> { %8267 = vpow2.f32 %v4098_v62 }
 0x8a5   : >> { %8269 = vpow2.f32 %v4104_v27 }
 0x8e2   : >> { %v4160_v59 = vpop.xlane.xlu0 %4159 }
 0x8e3   : >> { %v11863_v39 = vadd.f32 %v4160_v59, %v4142_v8  }
 0x8e5   : >> { %v12863_v57 = vmov %v11863_v39  ;;  %v8264_v39 = vpop.eup %8263 }
 0x8e6   : >> { %v4139_v23 = vmul.f32 %v9199_v2, %v8264_v39  ;;  %v4179_v27 = vmul.f32 %v9167_v11, %v8264_v39  ;;  %v12886_v39 = vmov %v12863_v57 }
 0x8ec   : >> { %v4154_v21 = vpop.xlane.xlu1 %4153 }
 0x8ed   : >> { %v11872_v22 = vadd.f32 %v4154_v21, %v4140_v0  }
 0x8ef   : >> { %v12866_v58 = vmov %v11872_v22  ;;  %v8266_v22 = vpop.eup %8265 }
 0x8f0   : >> { %v8268_v56 = vpop.eup %8267  ;;  %v4145_v31 = vmul.f32 %v9175_v47, %v8266_v22 }
 0x8f1   : >> { %v4138_v55 = vmul.f32 %v9203_v5, %v8268_v56  ;;  %v8270_v0 = vpop.eup %8269  ;;  %v4178_v62 = vmul.f32 %v9171_v32, %v8268_v56 }
 0x8f2   : >> { %v4151_v37 = vpop.xlane.xlu0 %4150  ;;  %v4141_v63 = vmul.f32 %v9191_v61, %v8270_v0 }
 0x8f3   : >> { %v11876_v2 = vadd.f32 %v4151_v37, %v4139_v23   ;;  %v4181_v37 = vmul.f32 %v9159_v15, %v8270_v0  ;;  %v4185_v15 = vmul.f32 %v9143_v10, %v8266_v22  ;;  %v12888_v22 = vmov %v12866_v58 }
 0x8f4   : >> { %v4163_v34 = vpop.xlane.xlu1 %4162  ;;  %v12896_v0 = vmov %v11801_v19 }
 0x8f5   : >> { %v12867_v8 = vmov %v11876_v2  ;;  %v11878_v54 = vadd.f32 %v4163_v34, %v4143_v51  }
 0x8f7   : >> { %v12868_v59 = vmov %v11878_v54  ;;  %v12872_v54 = vsub.f32 %v9211_v13, %v11811_v12 }
 0x8f9   : >> { %v4110_v2 = vmul.f32 1.442695, %v12872_v54 }
 0x8fa   : >> { %v4169_v40 = vpop.xlane.xlu0 %4168 }
 0x8fb   : >> { %v11885_v47 = vadd.f32 %v4169_v40, %v4145_v31   ;;  %8271 = vpow2.f32 %v4110_v2 }
 0x8fc   : >> { %v4148_v42 = vpop.xlane.xlu2 %4147 }
 0x8fd   : >> { %v12870_v9 = vmov %v11885_v47  ;;  %v11887_v5 = vadd.f32 %v4148_v42, %v4138_v55  }
 0x8fe   : > { %v12907_v3 = vmov (%p11906_p10), %v12870_v9 }
 0x8ff   : >> { %v12871_v24 = vmov %v11887_v5 }
 0x901   : >> { %v8272_v47 = vpop.eup %8271 }
 0x902   : >> { %v4144_v5 = vmul.f32 %v9179_v60, %v8272_v47  ;;  %v4184_v60 = vmul.f32 %v9147_v28, %v8272_v47  ;;  %v12883_v47 = vmov %v12870_v9 }
 0x904   : >> { %v4157_v21 = vpop.xlane.xlu2 %4156 }
 0x905   : >> { %v11893_v61 = vadd.f32 %v4157_v21, %v4141_v63   ;;  %v4240_v23 = vpop.f32.mrf.mxu3  ;;  %v12895_v63 = vmov %v11823_v18 }
 0x906   : >> { %v4257_v20 = vadd.f32 %v4240_v23, %v4180_v29   ;;  %v12891_v29 = vmov %v11830_v43  ;;  %v12893_v23 = vmov %v11796_v52  ;;  %v12910_v43 = vmov (%p11906_p10), %v12863_v57 }
 0x907   : >> { %v12873_v34 = vmov %v11893_v61  ;;  %v4235_v51 = vpop.f32.mrf.mxu1  ;;  %v4183_v61 = vmul.f32 %v9151_v45, %v8262_v53  ;;  %v12912_v53 = vmov (%p11906_p10), %v12866_v58  ;;  %v12914_v52 = vmov (%p11906_p10), %v12871_v24 }
 0x908   : >> { %v4255_v31 = vadd.f32 %v4235_v51, %v4178_v62   ;;  %v12898_v51 = vmov %v11838_v49 }
 0x90a   : > { %v12906_v49 = vmov (%p11906_p10), %v4255_v31 }
 0x90c   : >> { %v4166_v13 = vpop.xlane.xlu2 %4165 }
 0x90d   : >> { %v4176_v55 = vadd.f32 %v4166_v13, %v4144_v5   ;;  %v4242_v40 = vpop.f32.mrf.mxu3  ;;  %v12890_v5 = vmov %v12871_v24  ;;  %v12892_v13 = vmov %v11811_v12  ;;  %v12911_v12 = vmov (%p11906_p10), %v12873_v34 }
 0x90e   : >> { %v4258_v21 = vadd.f32 %v4242_v40, %v4181_v37   ;;  %v12894_v40 = vmov %v11789_v7  ;;  %v12897_v37 = vmov %v11814_v48  ;;  %v12909_v48 = vmov (%p11906_p10), %v12868_v59 }
 0x90f   : >> { %v4237_v42 = vpop.f32.mrf.mxu1 }
 0x910   : >> { %v4256_v30 = vadd.f32 %v4237_v42, %v4179_v27   ;;  %v12904_v27 = vmov (%p11906_p10), %v4257_v20 }
 0x912   : >> { %v12881_v11 = vmov %v4256_v30 }
 0x915   : >> { %v4245_v32 = vpop.f32.mrf.mxu3 }
 0x916   : >> { %v4259_v4 = vadd.f32 %v4245_v32, %v4182_v41   ;;  %v12880_v41 = vmov %v4257_v20  ;;  %v12882_v32 = vmov %v4255_v31 }
 0x918   : >> { %v12878_v16 = vmov %v4259_v4  ;;  %v12902_v51 = vmov (%p11906_p10), %v4259_v4  ;;  %v12908_v4 = vmov (%p11906_p10), %v4176_v55 }
 0x91d   : >> { %v4247_v56 = vpop.f32.mrf.mxu3 }
 0x91e   : >> { %v4260_v62 = vadd.f32 %v4247_v56, %v4183_v61   ;;  %v12887_v61 = vmov %v12873_v34  ;;  %v12913_v34 = vmov (%p11906_p10), %v12867_v8 }
 0x920   : >> { %v12877_v45 = vmov %v4260_v62  ;;  %v12901_v37 = vmov (%p11906_p10), %v4260_v62  ;;  %v12903_v62 = vmov (%p11906_p10), %v4258_v21 }
 0x925   : >> { %v4250_v54 = vpop.f32.mrf.mxu3 }
 0x926   : >> { %v4261_v35 = vadd.f32 %v4250_v54, %v4184_v60   ;;  %v12884_v60 = vmov %v4176_v55  ;;  %v12885_v54 = vmov %v12868_v59 }
 0x928   : >> { %v12876_v28 = vmov %v4261_v35  ;;  %v12900_v0 = vmov (%p11906_p10), %v4261_v35 }
 0x92c   : > { %3916 = sbr.rel (!%p11906_p10) target bundleno = 1856 (0x740), region = 200 }
 0x92d   : >> { %v4252_v2 = vpop.f32.mrf.mxu3 }
 0x92e   : >> { %v4262_v36 = vadd.f32 %v4252_v2, %v4185_v15   ;;  %v12879_v15 = vmov %v4258_v21  ;;  %v12889_v2 = vmov %v12867_v8  ;;  %v12905_v21 = vmov (%p11906_p10), %v4256_v30 }
 0x930   : >> { %v12875_v10 = vmov %v4262_v36  ;;  %v12899_v63 = vmov (%p11906_p10), %v4262_v36 }
 0x931 PF: > { %v6742_v35 = vld [vmem:[%s9624_s18 + $0xe0] sm:$0xf]  ;;  %v7192_v38 = vld [vmem:[%s9624_s18 + $0xec] sm:$0xf0]  ;;  %v7190_v36 = vld [vmem:[%s9624_s18 + $0xe4] sm:$0xf]  ;;  %8273 = vrcp.f32 %v9303_v52  ;;  %v9303_v52 = vphi %v11603_v52, %v12914_v52   ;;  %v9299_v34 = vphi %v11601_v34, %v12913_v34   ;;  %v9295_v53 = vphi %v11599_v53, %v12912_v53   ;;  %v9291_v12 = vphi %v11597_v12, %v12911_v12   ;;  %v9287_v43 = vphi %v11595_v43, %v12910_v43   ;;  %v9283_v48 = vphi %v11593_v48, %v12909_v48   ;;  %v9279_v4 = vphi %v11591_v4, %v12908_v4   ;;  %v9275_v3 = vphi %v11589_v3, %v12907_v3   ;;  %v9271_v49 = vphi %v11587_v49, %v12906_v49   ;;  %v9267_v21 = vphi %v11585_v21, %v12905_v21   ;;  %v9263_v27 = vphi %v11583_v27, %v12904_v27   ;;  %v9259_v62 = vphi %v11581_v62, %v12903_v62   ;;  %v9255_v51 = vphi %v11579_v51, %v12902_v51   ;;  %v9251_v37 = vphi %v11577_v37, %v12901_v37   ;;  %v9247_v0 = vphi %v11575_v0, %v12900_v0   ;;  %v9243_v63 = vphi %v11573_v63, %v12899_v63  }
 0x932   : > { %v6870_v18 = vld [vmem:[%s9624_s18 + $0x1e0] sm:$0xf]  ;;  %v6743_v9 = vor.u32 %v7192_v38, %v6742_v35  ;;  %v7224_v44 = vld [vmem:[%s9624_s18 + $0x1ec] sm:$0xf0]  ;;  %v6744_v50 = vld [vmem:[%s9624_s18 + $0xf0] sm:$0xf0]  ;;  %8275 = vrcp.f32 %v9299_v34 }
 0x933   : > { %v6871_v24 = vor.u32 %v7224_v44, %v6870_v18  ;;  %v6747_v30 = vor.u32 %v7190_v36, %v6744_v50  ;;  %v7222_v10 = vld [vmem:[%s9624_s18 + $0x1e4] sm:$0xf]  ;;  %v6872_v28 = vld [vmem:[%s9624_s18 + $0x1f0] sm:$0xf0]  ;;  %v6726_v45 = vld [vmem:[%s9624_s18 + $0xc0] sm:$0xf]  ;;  %8277 = vrcp.f32 %v9295_v53 }
 0x934   : > { %4719 = vmatpush.bf16.msra.mxu0 %v6743_v9  ;;  %v6875_v16 = vor.u32 %v7222_v10, %v6872_v28  ;;  %v7188_v11 = vld [vmem:[%s9624_s18 + $0xcc] sm:$0xf0]  ;;  %v6854_v7 = vld [vmem:[%s9624_s18 + $0x1c0] sm:$0xf]  ;;  %v7186_v39 = vld [vmem:[%s9624_s18 + $0xc4] sm:$0xf]  ;;  %8279 = vrcp.f32 %v9291_v12 }
 0x935   : > { %v7220_v19 = vld [vmem:[%s9624_s18 + $0x1cc] sm:$0xf0]  ;;  %4748 = vmatpush.bf16.msra.mxu1 %v6871_v24  ;;  %4777 = vmatpush.bf16.msra.mxu2 %v6747_v30  ;;  %v6727_v57 = vor.u32 %v7188_v11, %v6726_v45  ;;  %v6728_v8 = vld [vmem:[%s9624_s18 + $0xd0] sm:$0xf0]  ;;  %v7218_v59 = vld [vmem:[%s9624_s18 + $0x1c4] sm:$0xf]  ;;  %8281 = vrcp.f32 %v9287_v43 }
 0x936   : > { %v6855_v58 = vor.u32 %v7220_v19, %v6854_v7  ;;  %4806 = vmatpush.bf16.msra.mxu3 %v6875_v16  ;;  %v6731_v22 = vor.u32 %v7186_v39, %v6728_v8  ;;  %v6856_v29 = vld [vmem:[%s9624_s18 + $0x1d0] sm:$0xf0]  ;;  %v6710_v23 = vld [vmem:[%s9624_s18 + $0xa0] sm:$0xf]  ;;  %v7184_v47 = vld [vmem:[%s9624_s18 + $0xac] sm:$0xf0]  ;;  %8283 = vrcp.f32 %v9283_v48 }
 0x937   : > { %v6859_v20 = vor.u32 %v7218_v59, %v6856_v29  ;;  %v6838_v31 = vld [vmem:[%s9624_s18 + $0x1a0] sm:$0xf]  ;;  %v7216_v5 = vld [vmem:[%s9624_s18 + $0x1ac] sm:$0xf0]  ;;  %v7182_v13 = vld [vmem:[%s9624_s18 + $0xa4] sm:$0xf]  ;;  %v6711_v55 = vor.u32 %v7184_v47, %v6710_v23  ;;  %v8274_v7 = vpop.eup %8273  ;;  %8285 = vrcp.f32 %v9279_v4 }
 0x938   : > { %4720 = vmatpush.bf16.msra.mxu0 %v6727_v57  ;;  %v6712_v40 = vld [vmem:[%s9624_s18 + $0xb0] sm:$0xf0]  ;;  %v7214_v42 = vld [vmem:[%s9624_s18 + $0x1a4] sm:$0xf]  ;;  %v6839_v32 = vor.u32 %v7216_v5, %v6838_v31  ;;  %v6694_v56 = vld [vmem:[%s9624_s18 + $0x80] sm:$0xf]  ;;  %v8276_v57 = vpop.eup %8275  ;;  %8287 = vrcp.f32 %v9275_v3 }
 0x939   : > { %v6840_v41 = vld [vmem:[%s9624_s18 + $0x1b0] sm:$0xf0]  ;;  %4749 = vmatpush.bf16.msra.mxu1 %v6855_v58  ;;  %4778 = vmatpush.bf16.msra.mxu2 %v6731_v22  ;;  %v6715_v61 = vor.u32 %v7182_v13, %v6712_v40  ;;  %v7180_v60 = vld [vmem:[%s9624_s18 + $0x8c] sm:$0xf0]  ;;  %v6822_v54 = vld [vmem:[%s9624_s18 + $0x180] sm:$0xf]  ;;  %v4272_v40 = vmul.f32 %v9267_v21, %v8276_v57 }
 0x93a   : > { %4807 = vmatpush.bf16.msra.mxu3 %v6859_v20  ;;  %v6843_v15 = vor.u32 %v7214_v42, %v6840_v41  ;;  %v7212_v2 = vld [vmem:[%s9624_s18 + $0x18c] sm:$0xf0]  ;;  %v7178_v35 = vld [vmem:[%s9624_s18 + $0x84] sm:$0xf]  ;;  %v6696_v38 = vld [vmem:[%s9624_s18 + $0x90] sm:$0xf0]  ;;  %v6695_v44 = vor.u32 %v7180_v60, %v6694_v56 }
 0x93b   : > { %v7210_v18 = vld [vmem:[%s9624_s18 + $0x184] sm:$0xf]  ;;  %v6824_v9 = vld [vmem:[%s9624_s18 + $0x190] sm:$0xf0]  ;;  %v6823_v36 = vor.u32 %v7212_v2, %v6822_v54  ;;  %v6699_v50 = vor.u32 %v7178_v35, %v6696_v38  ;;  %v6678_v24 = vld [vmem:[%s9624_s18 + $0x60] sm:$0xf] }
 0x93c   : > { %4721 = vmatpush.bf16.msra.mxu0 %v6711_v55  ;;  %v7176_v30 = vld [vmem:[%s9624_s18 + $0x6c] sm:$0xf0]  ;;  %v6806_v10 = vld [vmem:[%s9624_s18 + $0x160] sm:$0xf]  ;;  %v6827_v52 = vor.u32 %v7210_v18, %v6824_v9  ;;  %v7174_v45 = vld [vmem:[%s9624_s18 + $0x64] sm:$0xf]  ;;  %v4271_v55 = vmul.f32 %v9271_v49, %v8274_v7  ;;  %v4280_v9 = vpack.c.bf16 %v4272_v40, %v4272_v40  ;;  %v12916_v7 = vpack.c.bf16 %v11493_v25, %v11493_v25 }
 0x93d   : > { %4750 = vmatpush.bf16.msra.mxu1 %v6839_v32  ;;  %4779 = vmatpush.bf16.msra.mxu2 %v6715_v61  ;;  %v7208_v28 = vld [vmem:[%s9624_s18 + $0x16c] sm:$0xf0]  ;;  %v6680_v16 = vld [vmem:[%s9624_s18 + $0x70] sm:$0xf0]  ;;  %v7206_v34 = vld [vmem:[%s9624_s18 + $0x164] sm:$0xf]  ;;  %v6679_v19 = vor.u32 %v7176_v30, %v6678_v24 }
 0x93e   : > { %4808 = vmatpush.bf16.msra.mxu3 %v6843_v15  ;;  %v6808_v11 = vld [vmem:[%s9624_s18 + $0x170] sm:$0xf0]  ;;  %v6807_v58 = vor.u32 %v7208_v28, %v6806_v10  ;;  %v6683_v39 = vor.u32 %v7174_v45, %v6680_v16  ;;  %v6662_v8 = vld [vmem:[%s9624_s18 + $0x40] sm:$0xf]  ;;  %v7172_v59 = vld [vmem:[%s9624_s18 + $0x4c] sm:$0xf0]  ;;  %v4279_v18 = vpack.c.bf16 %v4271_v55, %v4271_v55  ;;  %v4320_v53 = vunpack.c.l.b16 %v4280_v9 }
 0x93f   : > { %v6790_v22 = vld [vmem:[%s9624_s18 + $0x140] sm:$0xf]  ;;  %v6811_v29 = vor.u32 %v7206_v34, %v6808_v11  ;;  %v7204_v23 = vld [vmem:[%s9624_s18 + $0x14c] sm:$0xf0]  ;;  %v7170_v47 = vld [vmem:[%s9624_s18 + $0x44] sm:$0xf]  ;;  %v6663_v13 = vor.u32 %v7172_v59, %v6662_v8  ;;  %v12915_v34 = vpack.c.bf16 %v11489_v14, %v11489_v14 }
 0x940   : > { %4722 = vmatpush.bf16.msra.mxu0 %v6695_v44  ;;  %v6664_v20 = vld [vmem:[%s9624_s18 + $0x50] sm:$0xf0]  ;;  %v7202_v31 = vld [vmem:[%s9624_s18 + $0x144] sm:$0xf]  ;;  %v6791_v42 = vor.u32 %v7204_v23, %v6790_v22  ;;  %v6646_v32 = vld [vmem:[%s9624_s18 + $0x20] sm:$0xf]  ;;  %v4319_v8 = vunpack.c.l.b16 %v4279_v18 }
 0x941   : > { %4751 = vmatpush.bf16.msra.mxu1 %v6823_v36  ;;  %4780 = vmatpush.bf16.msra.mxu2 %v6699_v50  ;;  %v6792_v5 = vld [vmem:[%s9624_s18 + $0x150] sm:$0xf0]  ;;  %v6667_v41 = vor.u32 %v7170_v47, %v6664_v20  ;;  %v7168_v61 = vld [vmem:[%s9624_s18 + $0x2c] sm:$0xf0]  ;;  %v6774_v56 = vld [vmem:[%s9624_s18 + $0x120] sm:$0xf]  ;;  %v4295_v11 = vunpack.c.l.b16 %v12915_v34 }
 0x942   : > { %4809 = vmatpush.bf16.msra.mxu3 %v6827_v52  ;;  %v6795_v60 = vor.u32 %v7202_v31, %v6792_v5  ;;  %v7200_v54 = vld [vmem:[%s9624_s18 + $0x12c] sm:$0xf0]  ;;  %v7166_v15 = vld [vmem:[%s9624_s18 + $0x24] sm:$0xf]  ;;  %v6648_v2 = vld [vmem:[%s9624_s18 + $0x30] sm:$0xf0]  ;;  %v6647_v21 = vor.u32 %v7168_v61, %v6646_v32 }
 0x943   : > { %v7198_v35 = vld [vmem:[%s9624_s18 + $0x124] sm:$0xf]  ;;  %v6776_v49 = vld [vmem:[%s9624_s18 + $0x130] sm:$0xf0]  ;;  %v6630_v38 = vld [vmem:[%s9624_s18] sm:$0xf]  ;;  %v6775_v44 = vor.u32 %v7200_v54, %v6774_v56  ;;  %v6651_v36 = vor.u32 %v7166_v15, %v6648_v2 }
 0x944   : > { %4723 = vmatpush.bf16.msra.mxu0 %v6679_v19  ;;  %v7164_v50 = vld [vmem:[%s9624_s18 + $0xc] sm:$0xf0]  ;;  %v6758_v24 = vld [vmem:[%s9624_s18 + $0x100] sm:$0xf]  ;;  %v6779_v10 = vor.u32 %v7198_v35, %v6776_v49  ;;  %v7162_v52 = vld [vmem:[%s9624_s18 + $0x4] sm:$0xf]  ;;  %v4296_v19 = vunpack.c.l.b16 %v12916_v7 }
 0x945   : > { %4752 = vmatpush.bf16.msra.mxu1 %v6807_v58  ;;  %4781 = vmatpush.bf16.msra.mxu2 %v6683_v39  ;;  %v7196_v30 = vld [vmem:[%s9624_s18 + $0x10c] sm:$0xf0]  ;;  %v6632_v28 = vld [vmem:[%s9624_s18 + $0x10] sm:$0xf0]  ;;  %v7194_v45 = vld [vmem:[%s9624_s18 + $0x104] sm:$0xf]  ;;  %v6631_v39 = vor.u32 %v7164_v50, %v6630_v38 }
 0x946   : > { %4810 = vmatpush.bf16.msra.mxu3 %v6811_v29  ;;  %v6760_v16 = vld [vmem:[%s9624_s18 + $0x110] sm:$0xf0]  ;;  %v7191_v57 = vld [vmem:[%s9624_s18 + $0xec] sm:$0xf]  ;;  %v6752_v58 = vld [vmem:[%s9624_s18 + $0xf8] sm:$0xf0]  ;;  %v6759_v25 = vor.u32 %v7196_v30, %v6758_v24  ;;  %v6635_v22 = vor.u32 %v7162_v52, %v6632_v28  ;;  %v12141_v31 = vpack.c.b16 %v4296_v19, %v4295_v11 }
 0x947   : > { %v7223_v59 = vld [vmem:[%s9624_s18 + $0x1ec] sm:$0xf]  ;;  %v6880_v14 = vld [vmem:[%s9624_s18 + $0x1f8] sm:$0xf0]  ;;  %v6763_v29 = vor.u32 %v7194_v45, %v6760_v16  ;;  %v6755_v23 = vor.u32 %v7191_v57, %v6752_v58  ;;  %v6750_v12 = vld [vmem:[%s9624_s18 + $0xe8] sm:$0xf] }
 0x948   : > { %4724 = vmatpush.bf16.msra.mxu0 %v6663_v13  ;;  %v7193_v47 = vld [vmem:[%s9624_s18 + $0xf4] sm:$0xf0]  ;;  %v6878_v20 = vld [vmem:[%s9624_s18 + $0x1e8] sm:$0xf]  ;;  %v6883_v5 = vor.u32 %v7223_v59, %v6880_v14  ;;  %v7187_v55 = vld [vmem:[%s9624_s18 + $0xcc] sm:$0xf] }
 0x949   : > { %4753 = vmatpush.bf16.msra.mxu1 %v6791_v42  ;;  %4782 = vmatpush.bf16.msra.mxu2 %v6667_v41  ;;  %v7225_v13 = vld [vmem:[%s9624_s18 + $0x1f4] sm:$0xf0]  ;;  %v6736_v40 = vld [vmem:[%s9624_s18 + $0xd8] sm:$0xf0]  ;;  %v8278_v42 = vpop.eup %8277  ;;  %v12146_v41 = vpack.c.b16 %v4320_v53, %v4319_v8  ;;  %v7219_v32 = vld [vmem:[%s9624_s18 + $0x1cc] sm:$0xf] }
 0x94a   : > { %4811 = vmatpush.bf16.msra.mxu3 %v6795_v60  ;;  %v6864_v61 = vld [vmem:[%s9624_s18 + $0x1d8] sm:$0xf0]  ;;  %v8280_v56 = vpop.eup %8279  ;;  %v6751_v60 = vor.u32 %v7193_v47, %v6750_v12  ;;  %v6879_v54 = vor.u32 %v7225_v13, %v6878_v20  ;;  %v6739_v15 = vor.u32 %v7187_v55, %v6736_v40  ;;  %v6734_v2 = vld [vmem:[%s9624_s18 + $0xc8] sm:$0xf]  ;;  %v7189_v35 = vld [vmem:[%s9624_s18 + $0xd4] sm:$0xf0] }
 0x94b   : > { %v6862_v49 = vld [vmem:[%s9624_s18 + $0x1c8] sm:$0xf]  ;;  %v7221_v38 = vld [vmem:[%s9624_s18 + $0x1d4] sm:$0xf0]  ;;  %v7183_v18 = vld [vmem:[%s9624_s18 + $0xac] sm:$0xf]  ;;  %v6735_v30 = vor.u32 %v7189_v35, %v6734_v2 }
 0x94c   : > { %4725 = vmatpush.bf16.msra.mxu0 %v6647_v21  ;;  %v6867_v21 = vor.u32 %v7219_v32, %v6864_v61  ;;  %v6720_v9 = vld [vmem:[%s9624_s18 + $0xb8] sm:$0xf0]  ;;  %v7215_v50 = vld [vmem:[%s9624_s18 + $0x1ac] sm:$0xf]  ;;  %v6718_v28 = vld [vmem:[%s9624_s18 + $0xa8] sm:$0xf] }
 0x94d   : > { %4754 = vmatpush.bf16.msra.mxu1 %v6775_v44  ;;  %4783 = vmatpush.bf16.msra.mxu2 %v6651_v36  ;;  %v4273_v44 = vmul.f32 %v9263_v27, %v8278_v42  ;;  %v4274_v36 = vmul.f32 %v9259_v62, %v8280_v56  ;;  %v6848_v24 = vld [vmem:[%s9624_s18 + $0x1b8] sm:$0xf0]  ;;  %v6723_v52 = vor.u32 %v7183_v18, %v6720_v9  ;;  %v7185_v45 = vld [vmem:[%s9624_s18 + $0xb4] sm:$0xf0]  ;;  %v6846_v27 = vld [vmem:[%s9624_s18 + $0x1a8] sm:$0xf] }
 0x94e   : > { %4812 = vmatpush.bf16.msra.mxu3 %v6779_v10  ;;  %v6863_v10 = vor.u32 %v7221_v38, %v6862_v49  ;;  %v6851_v62 = vor.u32 %v7215_v50, %v6848_v24  ;;  %v7217_v16 = vld [vmem:[%s9624_s18 + $0x1b4] sm:$0xf0]  ;;  %v7179_v34 = vld [vmem:[%s9624_s18 + $0x8c] sm:$0xf]  ;;  %v6704_v11 = vld [vmem:[%s9624_s18 + $0x98] sm:$0xf0]  ;;  %v8282_v49 = vpop.eup %8281 }
 0x94f   : > { %v4281_v7 = vpack.c.bf16 %v4273_v44, %v4273_v44  ;;  %v4282_v19 = vpack.c.bf16 %v4274_v36, %v4274_v36  ;;  %v7211_v57 = vld [vmem:[%s9624_s18 + $0x18c] sm:$0xf]  ;;  %v6832_v58 = vld [vmem:[%s9624_s18 + $0x198] sm:$0xf0]  ;;  %v6847_v8 = vor.u32 %v7217_v16, %v6846_v27  ;;  %v6707_v53 = vor.u32 %v7179_v34, %v6704_v11  ;;  %v6702_v59 = vld [vmem:[%s9624_s18 + $0x88] sm:$0xf]  ;;  %v8284_v9 = vpop.eup %8283 }
 0x950   : > { %4726 = vmatpush.bf16.msra.mxu0 %v6631_v39  ;;  %v6719_v39 = vor.u32 %v7185_v45, %v6718_v28  ;;  %v7181_v14 = vld [vmem:[%s9624_s18 + $0x94] sm:$0xf0]  ;;  %v6835_v47 = vor.u32 %v7211_v57, %v6832_v58  ;;  %v6688_v13 = vld [vmem:[%s9624_s18 + $0x78] sm:$0xf0]  ;;  %v6686_v61 = vld [vmem:[%s9624_s18 + $0x68] sm:$0xf]  ;;  %v4275_v45 = vmul.f32 %v9255_v51, %v8282_v49  ;;  %v4276_v27 = vmul.f32 %v9251_v37, %v8284_v9 }
 0x951   : > { %4755 = vmatpush.bf16.msra.mxu1 %v6759_v25  ;;  %4784 = vmatpush.bf16.msra.mxu2 %v6635_v22  ;;  %v6830_v25 = vld [vmem:[%s9624_s18 + $0x188] sm:$0xf]  ;;  %v12917_v22 = vpack.c.bf16 %v11495_v26, %v11495_v26  ;;  %v7213_v20 = vld [vmem:[%s9624_s18 + $0x194] sm:$0xf0]  ;;  %v4321_v55 = vunpack.c.l.b16 %v4281_v7  ;;  %v4322_v43 = vunpack.c.l.b16 %v4282_v19  ;;  %v7207_v26 = vld [vmem:[%s9624_s18 + $0x16c] sm:$0xf]  ;;  %v12921_v49 = vpack.c.bf16 %v11513_v46, %v11513_v46 }
 0x952   : > { %4813 = vmatpush.bf16.msra.mxu3 %v6763_v29  ;;  %v6816_v40 = vld [vmem:[%s9624_s18 + $0x178] sm:$0xf0]  ;;  %v6831_v42 = vor.u32 %v7213_v20, %v6830_v25  ;;  %v7177_v56 = vld [vmem:[%s9624_s18 + $0x74] sm:$0xf0]  ;;  %v6814_v48 = vld [vmem:[%s9624_s18 + $0x168] sm:$0xf] }
 0x953   : > { %4727 = vmatmul.bf16.vlgmr.msra.gmra.mxu0 %v12141_v31  ;;  %v4297_v29 = vunpack.c.l.b16 %v12917_v22  ;;  %v7171_v2 = vld [vmem:[%s9624_s18 + $0x4c] sm:$0xf]  ;;  %v6672_v35 = vld [vmem:[%s9624_s18 + $0x58] sm:$0xf0]  ;;  %v6687_v44 = vor.u32 %v7177_v56, %v6686_v61  ;;  %v6670_v24 = vld [vmem:[%s9624_s18 + $0x48] sm:$0xf] }
 0x954   : > { %4756 = vmatmul.bf16.vlgmr.msra.gmra.mxu1 %v12146_v41  ;;  %4785 = vmatmul.bf16.vlgmr.msra.gmra.mxu2 %v12141_v31  ;;  %v7203_v38 = vld [vmem:[%s9624_s18 + $0x14c] sm:$0xf]  ;;  %v6800_v18 = vld [vmem:[%s9624_s18 + $0x158] sm:$0xf0]  ;;  %v6675_v50 = vor.u32 %v7171_v2, %v6672_v35  ;;  %v7205_v28 = vld [vmem:[%s9624_s18 + $0x154] sm:$0xf0] }
 0x955   : > { %4893 = vmatpush.bf16.msrb.mxu2 %v6755_v23  ;;  %4814 = vmatmul.bf16.vlgmr.msra.gmra.mxu3 %v12146_v41  ;;  %v12918_v23 = vpack.c.bf16 %v11501_v17, %v11501_v17  ;;  %v6703_v17 = vor.u32 %v7181_v14, %v6702_v59  ;;  %v7167_v16 = vld [vmem:[%s9624_s18 + $0x2c] sm:$0xf]  ;;  %v6656_v34 = vld [vmem:[%s9624_s18 + $0x38] sm:$0xf0]  ;;  %v6654_v57 = vld [vmem:[%s9624_s18 + $0x28] sm:$0xf]  ;;  %v4283_v59 = vpack.c.bf16 %v4275_v45, %v4275_v45 }
 0x956   : > { %4922 = vmatpush.bf16.msrb.mxu3 %v6883_v5  ;;  %4835 = vmatpush.bf16.msrb.mxu0 %v6751_v60  ;;  %v7175_v5 = vld [vmem:[%s9624_s18 + $0x6c] sm:$0xf]  ;;  %v6659_v19 = vor.u32 %v7167_v16, %v6656_v34  ;;  %v6784_v51 = vld [vmem:[%s9624_s18 + $0x138] sm:$0xf0]  ;;  %v7169_v37 = vld [vmem:[%s9624_s18 + $0x34] sm:$0xf0]  ;;  %v4284_v14 = vpack.c.bf16 %v4276_v27, %v4276_v27 }
 0x957   : > { %4864 = vmatpush.bf16.msrb.mxu1 %v6879_v54  ;;  %v4298_v12 = vunpack.c.l.b16 %v12918_v23  ;;  %v6691_v32 = vor.u32 %v7175_v5, %v6688_v13  ;;  %v6819_v54 = vor.u32 %v7207_v26, %v6816_v40  ;;  %v7199_v11 = vld [vmem:[%s9624_s18 + $0x12c] sm:$0xf]  ;;  %v6640_v25 = vld [vmem:[%s9624_s18 + $0x18] sm:$0xf0]  ;;  %v6655_v23 = vor.u32 %v7169_v37, %v6654_v57  ;;  %v6638_v20 = vld [vmem:[%s9624_s18 + $0x8] sm:$0xf] }
 0x958   : > { %v6787_v58 = vor.u32 %v7199_v11, %v6784_v51  ;;  %v7195_v22 = vld [vmem:[%s9624_s18 + $0x10c] sm:$0xf]  ;;  %v7165_v5 = vld [vmem:[%s9624_s18 + $0x14] sm:$0xf0]  ;;  %v12919_v13 = vpack.c.bf16 %v11505_v33, %v11505_v33  ;;  %v4323_v4 = vunpack.c.l.b16 %v4283_v59  ;;  %v8286_v33 = vpop.eup %8285 }
 0x959   : > { %4894 = vmatpush.bf16.msrb.mxu2 %v6739_v15  ;;  %v12191_v60 = vpack.c.b16 %v4298_v12, %v4297_v29  ;;  %v7209_v15 = vld [vmem:[%s9624_s18 + $0x174] sm:$0xf0]  ;;  %v6768_v29 = vld [vmem:[%s9624_s18 + $0x118] sm:$0xf0]  ;;  %v6639_v61 = vor.u32 %v7165_v5, %v6638_v20 }
 0x95a   : > { %4923 = vmatpush.bf16.msrb.mxu3 %v6867_v21  ;;  %4836 = vmatpush.bf16.msrb.mxu0 %v6735_v30  ;;  %v12196_v21 = vpack.c.b16 %v4322_v43, %v4321_v55  ;;  %v6815_v36 = vor.u32 %v7209_v15, %v6814_v48  ;;  %v7173_v30 = vld [vmem:[%s9624_s18 + $0x54] sm:$0xf0]  ;;  %v4299_v55 = vunpack.c.l.b16 %v12919_v13  ;;  %v12920_v43 = vpack.c.bf16 %v11509_v6, %v11509_v6  ;;  %v8288_v15 = vpop.eup %8287 }
 0x95b   : > { %4865 = vmatpush.bf16.msrb.mxu1 %v6863_v10  ;;  %v6803_v10 = vor.u32 %v7203_v38, %v6800_v18  ;;  %v6771_v40 = vor.u32 %v7195_v22, %v6768_v29  ;;  %v4277_v6 = vmul.f32 %v9247_v0, %v8286_v33  ;;  %v4278_v3 = vmul.f32 %v9243_v63, %v8288_v15 }
 0x95c   : > { %v4300_v26 = vunpack.c.l.b16 %v12920_v43  ;;  %v4301_v38 = vunpack.c.l.b16 %v12921_v49  ;;  %v12922_v18 = vpack.c.bf16 %v11517_v1, %v11517_v1 }
 0x95d   : > { %4895 = vmatpush.bf16.msrb.mxu2 %v6723_v52  ;;  %v6798_v52 = vld [vmem:[%s9624_s18 + $0x148] sm:$0xf]  ;;  %v4285_v2 = vpack.c.bf16 %v4277_v6, %v4277_v6  ;;  %v4286_v35 = vpack.c.bf16 %v4278_v3, %v4278_v3 }
 0x95e   : > { %4924 = vmatpush.bf16.msrb.mxu3 %v6851_v62  ;;  %4837 = vmatpush.bf16.msrb.mxu0 %v6719_v39  ;;  %v6671_v62 = vor.u32 %v7173_v30, %v6670_v24  ;;  %v6799_v7 = vor.u32 %v7205_v28, %v6798_v52  ;;  %v6782_v39 = vld [vmem:[%s9624_s18 + $0x128] sm:$0xf]  ;;  %v4305_v48 = vpack.c.b16 %v4300_v26, %v4299_v55  ;;  %v4302_v9 = vunpack.c.l.b16 %v12922_v18 }
 0x95f   : > { %4866 = vmatpush.bf16.msrb.mxu1 %v6847_v8  ;;  %v7201_v8 = vld [vmem:[%s9624_s18 + $0x134] sm:$0xf0] }
 0x960   : > { %v6783_v12 = vor.u32 %v7201_v8, %v6782_v39 }
 0x961   : > { %4896 = vmatpush.bf16.msrb.mxu2 %v6707_v53  ;;  %v7163_v53 = vld [vmem:[%s9624_s18 + $0xc] sm:$0xf] }
 0x962   : > { %4925 = vmatpush.bf16.msrb.mxu3 %v6835_v47  ;;  %4838 = vmatpush.bf16.msrb.mxu0 %v6703_v17  ;;  %v6643_v47 = vor.u32 %v7163_v53, %v6640_v25  ;;  %v6766_v17 = vld [vmem:[%s9624_s18 + $0x108] sm:$0xf] }
 0x963   : > { %4867 = vmatpush.bf16.msrb.mxu1 %v6831_v42  ;;  %4732 = vmatmul.bf16.gmra.mxu0 %v12191_v60  ;;  %v7197_v42 = vld [vmem:[%s9624_s18 + $0x114] sm:$0xf0]  ;;  %s12923_s18 = sld [smem:[#allocation27_spill]] }
 0x964   : > { %4761 = vmatmul.bf16.gmra.mxu1 %v12196_v21  ;;  %4790 = vmatmul.bf16.gmra.mxu2 %v12191_v60  ;;  %v6767_v56 = vor.u32 %v7197_v42, %v6766_v17 }
 0x965   : > { %4897 = vmatpush.bf16.msrb.mxu2 %v6691_v32  ;;  %4819 = vmatmul.bf16.gmra.mxu3 %v12196_v21  ;;  %v4324_v32 = vunpack.c.l.b16 %v4284_v14 }
 0x966   : > { %4926 = vmatpush.bf16.msrb.mxu3 %v6819_v54  ;;  %4839 = vmatpush.bf16.msrb.mxu0 %v6687_v44  ;;  %v4325_v44 = vunpack.c.l.b16 %v4285_v2 }
 0x967   : > { %4868 = vmatpush.bf16.msrb.mxu1 %v6815_v36  ;;  %v4329_v54 = vpack.c.b16 %v4324_v32, %v4323_v4  ;;  %v4326_v36 = vunpack.c.l.b16 %v4286_v35 }
 0x969   : > { %4898 = vmatpush.bf16.msrb.mxu2 %v6675_v50  ;;  %v4306_v50 = vpack.c.b16 %v4302_v9, %v4301_v38  ;;  %v4330_v24 = vpack.c.b16 %v4326_v36, %v4325_v44  ;;  %p6884_p11 = scmp.ge.s32.totalorder %s12923_s18, 1 }
 0x96a   : > { %4927 = vmatpush.bf16.msrb.mxu3 %v6803_v10  ;;  %4840 = vmatpush.bf16.msrb.mxu0 %v6671_v62 }
 0x96b   : > { %4869 = vmatpush.bf16.msrb.mxu1 %v6799_v7 }
 0x96d   : > { %4899 = vmatpush.bf16.msrb.mxu2 %v6659_v19 }
 0x96e   : > { %4928 = vmatpush.bf16.msrb.mxu3 %v6787_v58  ;;  %4841 = vmatpush.bf16.msrb.mxu0 %v6655_v23 }
 0x96f   : > { %4870 = vmatpush.bf16.msrb.mxu1 %v6783_v12 }
 0x971   : > { %4900 = vmatpush.bf16.msrb.mxu2 %v6643_v47 }
 0x972   : > { %4929 = vmatpush.bf16.msrb.mxu3 %v6771_v40  ;;  %4842 = vmatpush.bf16.msrb.mxu0 %v6639_v61 }
 0x973   : > { %4871 = vmatpush.bf16.msrb.mxu1 %v6767_v56  ;;  %4737 = vmatmul.bf16.gmra.mxu0 %v4305_v48 }
 0x974   : > { %4766 = vmatmul.bf16.gmra.mxu1 %v4329_v54  ;;  %4795 = vmatmul.bf16.gmra.mxu2 %v4305_v48 }
 0x975   : > { %4824 = vmatmul.bf16.gmra.mxu3 %v4329_v54 }
 0x983   : > { %4742 = vmatmul.bf16.gmra.mxu0 %v4306_v50 }
 0x984   : > { %4771 = vmatmul.bf16.gmra.mxu1 %v4330_v24  ;;  %4800 = vmatmul.bf16.gmra.mxu2 %v4306_v50 }
 0x985   : > { %4829 = vmatmul.bf16.gmra.mxu3 %v4330_v24 }
 0x993   : > { %4843 = vmatmul.bf16.vlgmr.msrb.gmra.mxu0 %v12141_v31 }
 0x994   : > { %4872 = vmatmul.bf16.vlgmr.msrb.gmra.mxu1 %v12146_v41  ;;  %4901 = vmatmul.bf16.vlgmr.msrb.gmra.mxu2 %v12141_v31 }
 0x995   : > { %4930 = vmatmul.bf16.vlgmr.msrb.gmra.mxu3 %v12146_v41 }
 0x9a3   : > { %4848 = vmatmul.bf16.gmra.mxu0 %v12191_v60 }
 0x9a4   : > { %4877 = vmatmul.bf16.gmra.mxu1 %v12196_v21  ;;  %4906 = vmatmul.bf16.gmra.mxu2 %v12191_v60 }
 0x9a5   : > { %4935 = vmatmul.bf16.gmra.mxu3 %v12196_v21 }
 0x9b3   : > { %4853 = vmatmul.bf16.gmra.mxu0 %v4305_v48 }
 0x9b4   : > { %4882 = vmatmul.bf16.gmra.mxu1 %v4329_v54  ;;  %4911 = vmatmul.bf16.gmra.mxu2 %v4305_v48 }
 0x9b5   : > { %4940 = vmatmul.bf16.gmra.mxu3 %v4329_v54 }
 0x9c3   : > { %4858 = vmatmul.bf16.gmra.mxu0 %v4306_v50 }
 0x9c4   : > { %4887 = vmatmul.bf16.gmra.mxu1 %v4330_v24  ;;  %4916 = vmatmul.bf16.gmra.mxu2 %v4306_v50 }
 0x9c5   : > { %4945 = vmatmul.bf16.gmra.mxu3 %v4330_v24 }
 0x9d0   : > { %v4728_v46 = vpop.f32.mrf.mxu0 }
 0x9d1   : > { %v4757_v1 = vpop.f32.mrf.mxu1 }
 0x9d2   : > { %v12250_v0 = vadd.f32 %v4757_v1, %v4728_v46 }
 0x9d7   : > { %v4786_v63 = vpop.f32.mrf.mxu2 }
 0x9d8   : > { %v4815_v31 = vpop.f32.mrf.mxu3  ;;  %v4730_v41 = vpop.f32.mrf.mxu0 }
 0x9d9   : > { %v12252_v30 = vadd.f32 %v4815_v31, %v4786_v63  ;;  %v4759_v60 = vpop.f32.mrf.mxu1 }
 0x9da   : > { %v12254_v10 = vadd.f32 %v4759_v60, %v4730_v41 }
 0x9df   : > { %v4788_v21 = vpop.f32.mrf.mxu2 }
 0x9e0   : > { %v4817_v52 = vpop.f32.mrf.mxu3  ;;  %v4733_v28 = vpop.f32.mrf.mxu0 }
 0x9e1   : > { %v12256_v45 = vadd.f32 %v4817_v52, %v4788_v21  ;;  %v4762_v27 = vpop.f32.mrf.mxu1 }
 0x9e2   : > { %v12258_v62 = vadd.f32 %v4762_v27, %v4733_v28 }
 0x9e7   : > { %v4791_v16 = vpop.f32.mrf.mxu2 }
 0x9e8   : > { %v4820_v34 = vpop.f32.mrf.mxu3  ;;  %v4735_v11 = vpop.f32.mrf.mxu0 }
 0x9e9   : > { %v12260_v7 = vadd.f32 %v4820_v34, %v4791_v16  ;;  %v4764_v19 = vpop.f32.mrf.mxu1 }
 0x9ea   : > { %v12262_v51 = vadd.f32 %v4764_v19, %v4735_v11 }
 0x9ef   : > { %v4793_v57 = vpop.f32.mrf.mxu2 }
 0x9f0   : > { %v4822_v37 = vpop.f32.mrf.mxu3  ;;  %v4738_v58 = vpop.f32.mrf.mxu0 }
 0x9f1   : > { %v12264_v39 = vadd.f32 %v4822_v37, %v4793_v57  ;;  %v4767_v8 = vpop.f32.mrf.mxu1 }
 0x9f2   : > { %v12266_v53 = vadd.f32 %v4767_v8, %v4738_v58 }
 0x9f7   : > { %v4796_v59 = vpop.f32.mrf.mxu2 }
 0x9f8   : > { %v4825_v14 = vpop.f32.mrf.mxu3  ;;  %v4740_v25 = vpop.f32.mrf.mxu0 }
 0x9f9   : > { %v12268_v22 = vadd.f32 %v4825_v14, %v4796_v59  ;;  %v4769_v29 = vpop.f32.mrf.mxu1 }
 0x9fa   : > { %v12270_v23 = vadd.f32 %v4769_v29, %v4740_v25 }
 0x9ff   : > { %v4798_v12 = vpop.f32.mrf.mxu2 }
 0xa00   : > { %v4827_v47 = vpop.f32.mrf.mxu3  ;;  %v4743_v20 = vpop.f32.mrf.mxu0 }
 0xa01   : > { %v12272_v5 = vadd.f32 %v4827_v47, %v4798_v12  ;;  %v4772_v13 = vpop.f32.mrf.mxu1 }
 0xa02   : > { %v12274_v55 = vadd.f32 %v4772_v13, %v4743_v20 }
 0xa07   : > { %v4801_v43 = vpop.f32.mrf.mxu2 }
 0xa08   : > { %v4830_v26 = vpop.f32.mrf.mxu3  ;;  %v4745_v40 = vpop.f32.mrf.mxu0 }
 0xa09   : > { %v12276_v17 = vadd.f32 %v4830_v26, %v4801_v43  ;;  %v4774_v42 = vpop.f32.mrf.mxu1 }
 0xa0a   : > { %v12278_v4 = vadd.f32 %v4774_v42, %v4745_v40 }
 0xa0f   : > { %v4803_v32 = vpop.f32.mrf.mxu2 }
 0xa10   : > { %v4832_v61 = vpop.f32.mrf.mxu3  ;;  %v4844_v56 = vpop.f32.mrf.mxu0 }
 0xa11   : > { %v12280_v48 = vadd.f32 %v4832_v61, %v4803_v32  ;;  %v4873_v33 = vpop.f32.mrf.mxu1 }
 0xa12   : > { %v12282_v54 = vadd.f32 %v4873_v33, %v4844_v56 }
 0xa17   : > { %v4902_v15 = vpop.f32.mrf.mxu2 }
 0xa18   : > { %v4931_v6 = vpop.f32.mrf.mxu3  ;;  %v4846_v3 = vpop.f32.mrf.mxu0 }
 0xa19   : > { %v12284_v2 = vadd.f32 %v4931_v6, %v4902_v15  ;;  %v4875_v35 = vpop.f32.mrf.mxu1 }
 0xa1a   : > { %v12286_v49 = vadd.f32 %v4875_v35, %v4846_v3 }
 0xa1f   : > { %v4904_v38 = vpop.f32.mrf.mxu2 }
 0xa20   : > { %v4933_v18 = vpop.f32.mrf.mxu3  ;;  %v4849_v9 = vpop.f32.mrf.mxu0 }
 0xa21   : > { %v12288_v44 = vadd.f32 %v4933_v18, %v4904_v38  ;;  %v4878_v36 = vpop.f32.mrf.mxu1 }
 0xa22   : > { %v12290_v50 = vadd.f32 %v4878_v36, %v4849_v9 }
 0xa27   : > { %v4907_v24 = vpop.f32.mrf.mxu2 }
 0xa28   : > { %v4936_v46 = vpop.f32.mrf.mxu3  ;;  %v4851_v1 = vpop.f32.mrf.mxu0 }
 0xa29   : > { %v12292_v63 = vadd.f32 %v4936_v46, %v4907_v24  ;;  %v4880_v31 = vpop.f32.mrf.mxu1 }
 0xa2a   : > { %v12294_v41 = vadd.f32 %v4880_v31, %v4851_v1 }
 0xa2f   : > { %v4909_v60 = vpop.f32.mrf.mxu2 }
 0xa30   : > { %v4938_v21 = vpop.f32.mrf.mxu3  ;;  %v4854_v52 = vpop.f32.mrf.mxu0 }
 0xa31   : > { %v12296_v28 = vadd.f32 %v4938_v21, %v4909_v60  ;;  %v4883_v27 = vpop.f32.mrf.mxu1 }
 0xa32   : > { %v12298_v16 = vadd.f32 %v4883_v27, %v4854_v52 }
 0xa37   : > { %v4912_v34 = vpop.f32.mrf.mxu2 }
 0xa38   : > { %v4941_v11 = vpop.f32.mrf.mxu3  ;;  %v4856_v19 = vpop.f32.mrf.mxu0 }
 0xa39   : > { %v12300_v57 = vadd.f32 %v4941_v11, %v4912_v34  ;;  %v4885_v37 = vpop.f32.mrf.mxu1 }
 0xa3a   : > { %v12302_v58 = vadd.f32 %v4885_v37, %v4856_v19 }
 0xa3f   : > { %v4914_v8 = vpop.f32.mrf.mxu2 }
 0xa40   : > { %v4943_v59 = vpop.f32.mrf.mxu3  ;;  %v4859_v14 = vpop.f32.mrf.mxu0 }
 0xa41   : > { %v12304_v25 = vadd.f32 %v4943_v59, %v4914_v8  ;;  %v4888_v29 = vpop.f32.mrf.mxu1 }
 0xa42   : > { %v12306_v12 = vadd.f32 %v4888_v29, %v4859_v14 }
 0xa47   : > { %v4917_v47 = vpop.f32.mrf.mxu2 }
 0xa48   : > { %v4946_v20 = vpop.f32.mrf.mxu3  ;;  %v4861_v13 = vpop.f32.mrf.mxu0 }
 0xa49   : > { %v12308_v43 = vadd.f32 %v4946_v20, %v4917_v47  ;;  %v4890_v26 = vpop.f32.mrf.mxu1 }
 0xa4a   : > { %v12310_v40 = vadd.f32 %v4890_v26, %v4861_v13 }
 0xa4d   : > { %4954 = sbr.rel (%p6884_p11) target bundleno = 2677 (0xa75), region = 94 }
 0xa4f   : > { %v4919_v42 = vpop.f32.mrf.mxu2 }
 0xa50   : > { %v4948_v32 = vpop.f32.mrf.mxu3 }
 0xa51   : > { %v12312_v61 = vadd.f32 %v4948_v32, %v4919_v42 }
 0xa52   : > { %v4955_v56 = vld [vmem:[#allocation2 + $0xb0] sm:$0xff]  ;;  %v4956_v33 = vld [vmem:[#allocation2] sm:$0xff]  ;;  %v4957_v15 = vld [vmem:[#allocation2 + $0xd8] sm:$0xff] }
 0xa53   : > { %v4987_v6 = vadd.f32 %v4955_v56, %v12250_v0  ;;  %v4988_v3 = vadd.f32 %v4956_v33, %v12252_v30  ;;  %v4989_v35 = vadd.f32 %v4957_v15, %v12282_v54  ;;  %v4958_v38 = vld [vmem:[#allocation2 + $0x18] sm:$0xff]  ;;  %v4959_v18 = vld [vmem:[#allocation2 + $0x50] sm:$0xff]  ;;  %v4960_v9 = vld [vmem:[#allocation2 + $0x68] sm:$0xff] }
 0xa54   : > { %v4990_v36 = vadd.f32 %v4958_v38, %v12284_v2  ;;  %v4961_v24 = vld [vmem:[#allocation2 + $0x30] sm:$0xff]  ;;  %v4991_v46 = vadd.f32 %v4959_v18, %v12254_v10  ;;  %v4962_v1 = vld [vmem:[#allocation2 + $0x48] sm:$0xff]  ;;  %v4992_v31 = vadd.f32 %v4960_v9, %v12256_v45  ;;  %v4963_v60 = vld [vmem:[#allocation2 + $0x80] sm:$0xff] }
 0xa55   : > { %5019 = vst [vmem:[#allocation2 + $0xb0] sm:$0xff] %v4987_v6  ;;  %v4993_v21 = vadd.f32 %v4961_v24, %v12286_v49  ;;  %v4964_v52 = vld [vmem:[#allocation2 + $0x88] sm:$0xff]  ;;  %v4994_v27 = vadd.f32 %v4962_v1, %v12288_v44  ;;  %v4995_v11 = vadd.f32 %v4963_v60, %v12258_v62  ;;  %v4966_v19 = vld [vmem:[#allocation2 + $0xb8] sm:$0xff]  ;;  %v4967_v8 = vld [vmem:[#allocation2 + $0x60] sm:$0xff] }
 0xa56   : > { %5020 = vst [vmem:[#allocation2] sm:$0xff] %v4988_v3  ;;  %v4965_v34 = vld [vmem:[#allocation2 + $0xe8] sm:$0xff]  ;;  %v4996_v37 = vadd.f32 %v4964_v52, %v12260_v7  ;;  %v4968_v14 = vld [vmem:[#allocation2 + $0xf0] sm:$0xff]  ;;  %v4998_v29 = vadd.f32 %v4966_v19, %v12292_v63  ;;  %v4999_v20 = vadd.f32 %v4967_v8, %v12262_v51  ;;  %v4970_v13 = vld [vmem:[#allocation2 + $0x78] sm:$0xff] }
 0xa57   : > { %5021 = vst [vmem:[#allocation2 + $0xd8] sm:$0xff] %v4989_v35  ;;  %v4997_v59 = vadd.f32 %v4965_v34, %v12290_v50  ;;  %v4969_v47 = vld [vmem:[#allocation2 + $0x8] sm:$0xff]  ;;  %v5000_v26 = vadd.f32 %v4968_v14, %v12264_v39  ;;  %v4971_v42 = vld [vmem:[#allocation2 + $0x38] sm:$0xff]  ;;  %v5002_v33 = vadd.f32 %v4970_v13, %v12296_v28  ;;  %v4973_v15 = vld [vmem:[#allocation2 + $0x40] sm:$0xff] }
 0xa58   : > { %5022 = vst [vmem:[#allocation2 + $0x18] sm:$0xff] %v4990_v36  ;;  %v5001_v32 = vadd.f32 %v4969_v47, %v12294_v41  ;;  %v4972_v56 = vld [vmem:[#allocation2 + $0x58] sm:$0xff]  ;;  %v5003_v6 = vadd.f32 %v4971_v42, %v12266_v53  ;;  %v4974_v3 = vld [vmem:[#allocation2 + $0xc8] sm:$0xff]  ;;  %v4975_v38 = vld [vmem:[#allocation2 + $0xe0] sm:$0xff]  ;;  %v5005_v18 = vadd.f32 %v4973_v15, %v12298_v16 }
 0xa59   : > { %5023 = vst [vmem:[#allocation2 + $0x50] sm:$0xff] %v4991_v46  ;;  %v5004_v35 = vadd.f32 %v4972_v56, %v12268_v22  ;;  %v4976_v9 = vld [vmem:[#allocation2 + $0x90] sm:$0xff]  ;;  %v5006_v36 = vadd.f32 %v4974_v3, %v12300_v57  ;;  %v5007_v46 = vadd.f32 %v4975_v38, %v12270_v23  ;;  %v4978_v1 = vld [vmem:[#allocation2 + $0xc0] sm:$0xff]  ;;  %v4979_v60 = vld [vmem:[#allocation2 + $0xa8] sm:$0xff] }
 0xa5a   : > { %5024 = vst [vmem:[#allocation2 + $0x68] sm:$0xff] %v4992_v31  ;;  %v4977_v24 = vld [vmem:[#allocation2 + $0x70] sm:$0xff]  ;;  %v5008_v31 = vadd.f32 %v4976_v9, %v12272_v5  ;;  %v4982_v19 = vld [vmem:[#allocation2 + $0x28] sm:$0xff]  ;;  %v4983_v8 = vld [vmem:[#allocation2 + $0xa0] sm:$0xff] }
 0xa5b   : > { %5025 = vst [vmem:[#allocation2 + $0x30] sm:$0xff] %v4993_v21  ;;  %v5009_v21 = vadd.f32 %v4977_v24, %v12302_v58  ;;  %v4980_v52 = vld [vmem:[#allocation2 + $0xd0] sm:$0xff]  ;;  %v4984_v14 = vld [vmem:[#allocation2 + $0xf8] sm:$0xff]  ;;  %v4985_v47 = vld [vmem:[#allocation2 + $0x20] sm:$0xff] }
 0xa5c   : > { %5026 = vst [vmem:[#allocation2 + $0x48] sm:$0xff] %v4994_v27  ;;  %v5010_v27 = vadd.f32 %v4978_v1, %v12304_v25  ;;  %v4981_v34 = vld [vmem:[#allocation2 + $0x10] sm:$0xff]  ;;  %v4986_v13 = vld [vmem:[#allocation2 + $0x98] sm:$0xff]  ;;  %v5017_v42 = vadd.f32 %v4985_v47, %v12310_v40 }
 0xa5d   : > { %5027 = vst [vmem:[#allocation2 + $0x80] sm:$0xff] %v4995_v11  ;;  %v5011_v11 = vadd.f32 %v4979_v60, %v12274_v55 }
 0xa5e   : > { %5028 = vst [vmem:[#allocation2 + $0x88] sm:$0xff] %v4996_v37  ;;  %v5012_v37 = vadd.f32 %v4980_v52, %v12276_v17 }
 0xa5f   : > { %5029 = vst [vmem:[#allocation2 + $0xe8] sm:$0xff] %v4997_v59  ;;  %v5013_v59 = vadd.f32 %v4981_v34, %v12306_v12 }
 0xa60   : > { %5030 = vst [vmem:[#allocation2 + $0xb8] sm:$0xff] %v4998_v29  ;;  %v5014_v29 = vadd.f32 %v4982_v19, %v12308_v43 }
 0xa61   : > { %5031 = vst [vmem:[#allocation2 + $0x60] sm:$0xff] %v4999_v20  ;;  %v5015_v20 = vadd.f32 %v4983_v8, %v12278_v4 }
 0xa62   : > { %5032 = vst [vmem:[#allocation2 + $0xf0] sm:$0xff] %v5000_v26  ;;  %v5016_v26 = vadd.f32 %v4984_v14, %v12280_v48 }
 0xa63   : > { %5033 = vst [vmem:[#allocation2 + $0x8] sm:$0xff] %v5001_v32  ;;  %v5018_v32 = vadd.f32 %v4986_v13, %v12312_v61 }
 0xa64   : > { %5034 = vst [vmem:[#allocation2 + $0x78] sm:$0xff] %v5002_v33 }
 0xa65   : > { %5035 = vst [vmem:[#allocation2 + $0x38] sm:$0xff] %v5003_v6 }
 0xa66   : > { %5036 = vst [vmem:[#allocation2 + $0x58] sm:$0xff] %v5004_v35 }
 0xa67   : > { %5037 = vst [vmem:[#allocation2 + $0x40] sm:$0xff] %v5005_v18 }
 0xa68   : > { %5038 = vst [vmem:[#allocation2 + $0xc8] sm:$0xff] %v5006_v36 }
 0xa69   : > { %5039 = vst [vmem:[#allocation2 + $0xe0] sm:$0xff] %v5007_v46 }
 0xa6a   : > { %5040 = vst [vmem:[#allocation2 + $0x90] sm:$0xff] %v5008_v31 }
 0xa6b   : > { %5041 = vst [vmem:[#allocation2 + $0x70] sm:$0xff] %v5009_v21 }
 0xa6c   : > { %5042 = vst [vmem:[#allocation2 + $0xc0] sm:$0xff] %v5010_v27 }
 0xa6d   : > { %5043 = vst [vmem:[#allocation2 + $0xa8] sm:$0xff] %v5011_v11 }
 0xa6e   : > { %5044 = vst [vmem:[#allocation2 + $0xd0] sm:$0xff] %v5012_v37 }
 0xa6f   : > { %5045 = vst [vmem:[#allocation2 + $0x10] sm:$0xff] %v5013_v59 }
 0xa70   : > { %5046 = vst [vmem:[#allocation2 + $0x28] sm:$0xff] %v5014_v29 }
 0xa71   : > { %5047 = vst [vmem:[#allocation2 + $0xa0] sm:$0xff] %v5015_v20 }
 0xa72   : > { %5048 = vst [vmem:[#allocation2 + $0xf8] sm:$0xff] %v5016_v26 }
 0xa73   : > { %5049 = vst [vmem:[#allocation2 + $0x20] sm:$0xff] %v5017_v42 }
 0xa74   : > { %5050 = vst [vmem:[#allocation2 + $0x98] sm:$0xff] %v5018_v32 }
 0xa75 PF: > { %s12924_s17 = sld [smem:[#allocation27_spill]] }
 0xa7b   : > { %p6885_p12 = scmp.ne.s32.totalorder %s12924_s17, 1 }
 0xa7d   : > { %5054 = sbr.rel (%p6885_p12) target bundleno = 2725 (0xaa5), region = 98 }
 0xa82   : > { %v5055_v56 = vld [vmem:[#allocation2 + $0xb0] sm:$0xff]  ;;  %v5056_v33 = vld [vmem:[#allocation2] sm:$0xff]  ;;  %v5057_v15 = vld [vmem:[#allocation2 + $0xd8] sm:$0xff] }
 0xa83   : > { %v5087_v6 = vadd.f32 %v5055_v56, %v12250_v0  ;;  %v5088_v3 = vadd.f32 %v5056_v33, %v12252_v30  ;;  %v5089_v35 = vadd.f32 %v5057_v15, %v12282_v54  ;;  %v5058_v38 = vld [vmem:[#allocation2 + $0x18] sm:$0xff]  ;;  %v5059_v18 = vld [vmem:[#allocation2 + $0x50] sm:$0xff]  ;;  %v5060_v9 = vld [vmem:[#allocation2 + $0x68] sm:$0xff] }
 0xa84   : > { %v5090_v36 = vadd.f32 %v5058_v38, %v12284_v2  ;;  %v5061_v24 = vld [vmem:[#allocation2 + $0x30] sm:$0xff]  ;;  %v5091_v46 = vadd.f32 %v5059_v18, %v12254_v10  ;;  %v5062_v1 = vld [vmem:[#allocation2 + $0x48] sm:$0xff]  ;;  %v5092_v0 = vadd.f32 %v5060_v9, %v12256_v45  ;;  %v5063_v30 = vld [vmem:[#allocation2 + $0x80] sm:$0xff] }
 0xa85   : > { %5119 = vst [vmem:[%s9645_s5] sm:$0xff] %v5087_v6  ;;  %v5093_v54 = vadd.f32 %v5061_v24, %v12286_v49  ;;  %v5064_v31 = vld [vmem:[#allocation2 + $0x88] sm:$0xff]  ;;  %v5094_v2 = vadd.f32 %v5062_v1, %v12288_v44  ;;  %v5095_v10 = vadd.f32 %v5063_v30, %v12258_v62  ;;  %v5066_v21 = vld [vmem:[#allocation2 + $0xb8] sm:$0xff]  ;;  %v5067_v52 = vld [vmem:[#allocation2 + $0x60] sm:$0xff] }
 0xa86   : > { %5120 = vst [vmem:[%s9645_s5 + $0x8] sm:$0xff] %v5088_v3  ;;  %v5065_v60 = vld [vmem:[#allocation2 + $0xe8] sm:$0xff]  ;;  %v5096_v45 = vadd.f32 %v5064_v31, %v12260_v7  ;;  %v5068_v27 = vld [vmem:[#allocation2 + $0xf0] sm:$0xff]  ;;  %v5098_v44 = vadd.f32 %v5066_v21, %v12292_v63  ;;  %v5099_v62 = vadd.f32 %v5067_v52, %v12262_v51  ;;  %v5070_v11 = vld [vmem:[#allocation2 + $0x78] sm:$0xff] }
 0xa87   : > { %5121 = vst [vmem:[%s9645_s5 + $0x10] sm:$0xff] %v5089_v35  ;;  %v5097_v49 = vadd.f32 %v5065_v60, %v12290_v50  ;;  %v5069_v34 = vld [vmem:[#allocation2 + $0x8] sm:$0xff]  ;;  %v5100_v7 = vadd.f32 %v5068_v27, %v12264_v39  ;;  %v5071_v19 = vld [vmem:[#allocation2 + $0x38] sm:$0xff]  ;;  %v5102_v63 = vadd.f32 %v5070_v11, %v12296_v28  ;;  %v5073_v8 = vld [vmem:[#allocation2 + $0x40] sm:$0xff] }
 0xa88   : > { %5122 = vst [vmem:[%s9645_s5 + $0x18] sm:$0xff] %v5090_v36  ;;  %v5101_v50 = vadd.f32 %v5069_v34, %v12294_v41  ;;  %v5072_v37 = vld [vmem:[#allocation2 + $0x58] sm:$0xff]  ;;  %v5103_v51 = vadd.f32 %v5071_v19, %v12266_v53  ;;  %v5074_v59 = vld [vmem:[#allocation2 + $0xc8] sm:$0xff]  ;;  %v5075_v14 = vld [vmem:[#allocation2 + $0xe0] sm:$0xff]  ;;  %v5105_v41 = vadd.f32 %v5073_v8, %v12298_v16 }
 0xa89   : > { %5123 = vst [vmem:[%s9645_s5 + $0x20] sm:$0xff] %v5091_v46  ;;  %v5104_v39 = vadd.f32 %v5072_v37, %v12268_v22  ;;  %v5076_v29 = vld [vmem:[#allocation2 + $0x90] sm:$0xff]  ;;  %v5106_v28 = vadd.f32 %v5074_v59, %v12300_v57  ;;  %v5107_v53 = vadd.f32 %v5075_v14, %v12270_v23  ;;  %v5078_v20 = vld [vmem:[#allocation2 + $0xc0] sm:$0xff]  ;;  %v5079_v13 = vld [vmem:[#allocation2 + $0xa8] sm:$0xff] }
 0xa8a   : > { %5124 = vst [vmem:[%s9645_s5 + $0x28] sm:$0xff] %v5092_v0  ;;  %v5077_v47 = vld [vmem:[#allocation2 + $0x70] sm:$0xff]  ;;  %v5108_v22 = vadd.f32 %v5076_v29, %v12272_v5  ;;  %v5110_v57 = vadd.f32 %v5078_v20, %v12304_v25  ;;  %v5111_v23 = vadd.f32 %v5079_v13, %v12274_v55  ;;  %v5082_v32 = vld [vmem:[#allocation2 + $0x28] sm:$0xff]  ;;  %v5083_v56 = vld [vmem:[#allocation2 + $0xa0] sm:$0xff] }
 0xa8b   : > { %5125 = vst [vmem:[%s9645_s5 + $0x30] sm:$0xff] %v5093_v54  ;;  %v5109_v16 = vadd.f32 %v5077_v47, %v12302_v58  ;;  %v5080_v26 = vld [vmem:[#allocation2 + $0xd0] sm:$0xff]  ;;  %v5084_v33 = vld [vmem:[#allocation2 + $0xf8] sm:$0xff]  ;;  %v5114_v25 = vadd.f32 %v5082_v32, %v12308_v43  ;;  %v5085_v15 = vld [vmem:[#allocation2 + $0x20] sm:$0xff]  ;;  %v5115_v55 = vadd.f32 %v5083_v56, %v12278_v4 }
 0xa8c   : > { %5126 = vst [vmem:[%s9645_s5 + $0x38] sm:$0xff] %v5094_v2  ;;  %v5081_v42 = vld [vmem:[#allocation2 + $0x10] sm:$0xff]  ;;  %v5112_v5 = vadd.f32 %v5080_v26, %v12276_v17  ;;  %v5086_v6 = vld [vmem:[#allocation2 + $0x98] sm:$0xff]  ;;  %v5116_v17 = vadd.f32 %v5084_v33, %v12280_v48  ;;  %v5117_v3 = vadd.f32 %v5085_v15, %v12310_v40 }
 0xa8d   : > { %5127 = vst [vmem:[%s9645_s5 + $0x40] sm:$0xff] %v5095_v10  ;;  %v5113_v58 = vadd.f32 %v5081_v42, %v12306_v12  ;;  %v5118_v12 = vadd.f32 %v5086_v6, %v12312_v61 }
 0xa8e   : > { %5128 = vst [vmem:[%s9645_s5 + $0x48] sm:$0xff] %v5096_v45 }
 0xa8f   : > { %5129 = vst [vmem:[%s9645_s5 + $0x50] sm:$0xff] %v5097_v49 }
 0xa90   : > { %5130 = vst [vmem:[%s9645_s5 + $0x58] sm:$0xff] %v5098_v44 }
 0xa91   : > { %5131 = vst [vmem:[%s9645_s5 + $0x60] sm:$0xff] %v5099_v62 }
 0xa92   : > { %5132 = vst [vmem:[%s9645_s5 + $0x68] sm:$0xff] %v5100_v7 }
 0xa93   : > { %5133 = vst [vmem:[%s9645_s5 + $0x70] sm:$0xff] %v5101_v50 }
 0xa94   : > { %5134 = vst [vmem:[%s9645_s5 + $0x78] sm:$0xff] %v5102_v63 }
 0xa95   : > { %5135 = vst [vmem:[%s9645_s5 + $0x80] sm:$0xff] %v5103_v51 }
 0xa96   : > { %5136 = vst [vmem:[%s9645_s5 + $0x88] sm:$0xff] %v5104_v39 }
 0xa97   : > { %5137 = vst [vmem:[%s9645_s5 + $0x90] sm:$0xff] %v5105_v41 }
 0xa98   : > { %5138 = vst [vmem:[%s9645_s5 + $0x98] sm:$0xff] %v5106_v28 }
 0xa99   : > { %5139 = vst [vmem:[%s9645_s5 + $0xa0] sm:$0xff] %v5107_v53 }
 0xa9a   : > { %5140 = vst [vmem:[%s9645_s5 + $0xa8] sm:$0xff] %v5108_v22 }
 0xa9b   : > { %5141 = vst [vmem:[%s9645_s5 + $0xb0] sm:$0xff] %v5109_v16 }
 0xa9c   : > { %5142 = vst [vmem:[%s9645_s5 + $0xb8] sm:$0xff] %v5110_v57 }
 0xa9d   : > { %5143 = vst [vmem:[%s9645_s5 + $0xc0] sm:$0xff] %v5111_v23 }
 0xa9e   : > { %5144 = vst [vmem:[%s9645_s5 + $0xc8] sm:$0xff] %v5112_v5 }
 0xa9f   : > { %5145 = vst [vmem:[%s9645_s5 + $0xd0] sm:$0xff] %v5113_v58 }
 0xaa0   : > { %5146 = vst [vmem:[%s9645_s5 + $0xd8] sm:$0xff] %v5114_v25 }
 0xaa1   : > { %5147 = vst [vmem:[%s9645_s5 + $0xe0] sm:$0xff] %v5115_v55 }
 0xaa2   : > { %5148 = vst [vmem:[%s9645_s5 + $0xe8] sm:$0xff] %v5116_v17 }
 0xaa3   : > { %5149 = vst [vmem:[%s9645_s5 + $0xf0] sm:$0xff] %v5117_v3 }
 0xaa4   : > { %5150 = vst [vmem:[%s9645_s5 + $0xf8] sm:$0xff] %v5118_v12 }
 0xaa5 PF: > { %s12925_s16 = sld [smem:[#allocation28_spill]]  ;;  %s5167_s0 = sshll.u32 %s9645_s5, 4  ;;  %s5168_s0 = int_to_ptr.vmem [resolvable:$true] %s5167_s0 }
 0xaa6   : > { %s12926_s24 = sld [smem:[#allocation29_spill]]  ;;  %s5152_s9 = scalar_lea.sflag [#allocation7], %s494_s10 }
 0xaa7   : > { %s12929_s26 = sld [smem:[#allocation94_spill]] }
 0xaab   : > { %s7226_s2 = sshll.u32 %s12925_s16, 5 }
 0xaac   : > { %s6889_s4 = sshll.u32 %s12926_s24, 6 }
 0xaad   : > { %s5164_s25 = sadd.s32 %s7226_s2, %s6889_s4  ;;  %s12930_s13 = smov %s12929_s26 }
 0xaae   : > { %s6890_s19 = sshll.u32 %s5164_s25, 3  ;;  %s8489_s22 = scalar_lea.hbm %s12930_s13, 1024 }
 0xaaf   : > { %s5166_s30 = scalar_lea.hbm %s12929_s26, %s6890_s19 }
 0xab0   : > { %s5169_s21 = sshll.u32 %s5166_s30, 4  ;;  %s5170_s21 = int_to_ptr.hbm [resolvable:$true] %s5169_s21 }
 0xab1   : > { %s8483_s14 = sshra.s32 %s5170_s21, 4  ;;  %s8484_s14 = int_to_ptr.hbm [resolvable:$true] %s8483_s14 }
 0xab2   : > { %s8485_s7 = scalar_lea.hbm %s8484_s14, 256  ;;  %p8490_p4 = scmp.lt.s32.totalorder %s8484_s14, %s12930_s13 }
 0xab3   : > { %p8486_p7 = scmp.ne.s32.totalorder %s8484_s14, %s8485_s7  ;;  %p8491_p2 = scmp.lt.s32.totalorder %s8489_s22, %s8485_s7 }
 0xab5   : > { %p8487_p6 = pnand %p8486_p7, %p9477_p13  ;;  %p8492_p8 = por %p8491_p2, %p8490_p4 }
 0xab7   : > { %p8488_p1 = pneg %p8487_p6 }
 0xab9   : > { %p8493_p0 = pnand %p8492_p8, %p8488_p1 }
 0xabb   : > { %8496 = shalt.err (!%p8493_p0)
}
 0xabc   : > { %s9314_s10 = smov 512   ;;  %s9315_s16 = smov 32  }
 0xabd   : > { %7371 = dma.vmem_to_hbm [thread:$0]  (%p9477_p13), %s5168_s0, 4096, %s5170_s21, %s5152_s9, %s9314_s10, %s9314_s10, %s9315_s16  }
 0xabe PF: > { %s12931_s24 = sld [smem:[#allocation23_spill]]  ;;  %p7397_p5 = scmp.ge.s32.totalorder %s8975_s12, 2 }
 0xac0   : > { %p7393_p9 = pnand %p7397_p5, %p9482_p3 }
 0xac2   : > { %p7394_p10 = pneg %p7393_p9 }
 0xac4   : > { %s5184_s2 = sand.u32 1, %s12931_s24  }
 0xac5   : > { %s5185_s4 = scalar_lea.sflag [#allocation7], %s5184_s2 }
 0xac6   : > { %8910 = dma.done.wait (%p7394_p10), %s5185_s4, 4096  }
 0xac7   : > { %8912 = vsyncadd (%p7394_p10), %s5185_s4, 4294963200  ;;  %s31_s12 = sadd.s32 1, %s8975_s12   ;;  %s12934_s21 = sld [smem:[#allocation24_spill]] }
 0xac8   : > { %p12435_p11 = scmp.ge.s32.totalorder %s31_s12, 10   ;;  %s12935_s24 = sld [smem:[#allocation25_spill]] }
 0xac9   : > { %s12936_s8 = sld [smem:[#allocation26_spill]]  ;;  %s12944_s22 = smov %s8923_s23 }
 0xaca   : > { %s12937_s26 = sld [smem:[#allocation35_spill]]  ;;  %s12945_s23 = smov %s9559_s15 }
 0xacb   : > { %s12938_s30 = sld [smem:[#allocation30_spill]]  ;;  %s12947_s27 = smov %s8943_s28 }
 0xacc   : > { %s12939_s7 = sld [smem:[#allocation31_spill]]  ;;  %s12948_s28 = smov %s8947_s29 }
 0xacd   : > { %s12940_s9 = sld [smem:[#allocation33_spill]]  ;;  %s12949_s29 = smov %s9556_s6 }
 0xace   : > { %s12941_s10 = sld [smem:[#allocation34_spill]] }
 0xacf   : > { %s12942_s0 = sld [smem:[#allocation39_spill]]  ;;  %s12946_s25 = smov %s12936_s8 }
 0xad0   : > { %s12950_s8 = smov %s8971_s11 }
 0xad1   :  { %30 = sbr.rel (!%p12435_p11) target bundleno = 25 (0x19), region = 211 }
 0xad5   : > { %s12951_s11 = smov %s12942_s0 }
 0xad6   :  { %5191 = vsyncpa [#allocation6], 1 }
 0xad7   :  { %5193 = vsyncpa [#allocation6 + $0x1], 1 }
 0xad8   :  { %5194 = vsyncpa [#allocation9], 1 }
 0xad9   :  { %5196 = vsyncpa [#allocation9 + $0x1], 1 }
 0xada   :  { %5197 = vsyncpa [#allocation12], 1 }
 0xadb   :  { %5199 = vsyncpa [#allocation12 + $0x1], 1 }
 0xadc   :  { %5200 = vsyncpa [#allocation15], 1 }
 0xadd   :  { %5202 = vsyncpa [#allocation15 + $0x1], 1 }
 0xade   :  { %5203 = vsyncpa [#allocation7], 1 }
 0xadf   :  { %5205 = vsyncpa [#allocation7 + $0x1], 1 }

</bundles_post_ra>
